<compile_context>
chip_gen: v6e
topology: v6e:2x2x1
jax: 0.10.0
libtpu: 0.0.40
codegen_flags: <defaults>
</compile_context>

<pallas_src>
import jax
import jax.numpy as jnp
from jax import lax
from jax.experimental import pallas as pl
from jax.experimental.pallas import tpu as pltpu

COMPUTE_DTYPE = jnp.bfloat16   # MXU-native operand dtype (accumulation stays f32)
LANE = 128                     # lane width: channel padding target
SUBLANE = 8                    # sublane width: spatial (W) padding target


# ----------------------------- Pallas kernel ------------------------------- #

def _basic_block_kernel(x_ref, w1_ref, b1_ref, w2_ref, b2_ref, o_ref, y1_ref):
    """Fused ResNet basic block for one spatially padded, lane/sublane-aligned image.

    x_ref : (1, H+2, Wp, Cp) bf16  zero padded: 1 top/bottom row, 1 left col, Wp-W-1 right
                                   cols, channels padded to Cp (multiple of 128).
    w*_ref: (9*Cp, Cp)       bf16  BN scale folded in, rows ordered (kh, kw, cin).
    b*_ref: (1, Cp)          f32   folded BN bias.
    o_ref : (1, H, W, Cp)    bf16  block output (channel crop / NCHW done in the wrapper).
    y1_ref: (H+2, Wp, Cp)    bf16  scratch for the stage-1 activation: top halo row 0,
                                   bottom halo row H+1, zero columns [W, Wp). There is no
                                   explicit left halo column — conv2's "column -1" reads
                                   land in the zeroed right-pad columns via the roll wrap.
    """
    _, hp, wp, cp = x_ref.shape
    H = hp - 2
    W = o_ref.shape[2]

    # Row-band size: keep each f32 accumulator at <= 256 sublane rows.
    band = 1
    for cand in (8, 4, 2):
        if H % cand == 0 and cand * wp <= 256:
            band = cand
            break
    n_bands = H // band
    nrows = band * wp                      # flattened (row-major over Wp) rows per band

    b1 = b1_ref[...]
    b2 = b2_ref[...]

    # --- zero only the halo strips of y1 (every step: under "parallel" semantics a core
    #     may never run grid step 0, so a zero-once scheme would leave stale garbage) ---
    zrow = jnp.zeros((1, wp, cp), y1_ref.dtype)
    y1_ref[0:1, :, :] = zrow                                     # top halo row
    y1_ref[H + 1:H + 2, :, :] = zrow                             # bottom halo row
    y1_ref[:, W:wp, :] = jnp.zeros((hp, wp - W, cp), y1_ref.dtype)  # right-pad columns

    def conv3x3_band(load_lhs, w_ref, shift_back):
        """3x3 conv over one row band: 9 MXU matmuls (K = Cp), kh as a free row offset in
        `load_lhs`, kw applied to the f32 accumulator with sublane rolls (XLU).

        Processing dw = 2, 1, 0 with a roll-by-(+1 position) between passes yields
            acc[p] = P0[p] + P1[p+1] + P2[p+2]        (reads columns w, w+1, w+2)
        and a final roll by `shift_back` converts that to columns w-1, w, w+1 (stage 2).
        Any wrap-around only touches / reads the discarded or zeroed columns [W, Wp).
        """
        acc = jnp.zeros((nrows, cp), jnp.float32)
        for dw in (2, 1, 0):
            if dw != 2:
                acc = pltpu.roll(acc, shift=nrows - 1, axis=0)   # acc[p] <- acc[p+1]
            for dh in range(3):
                w_blk = w_ref[(dh * 3 + dw) * cp:(dh * 3 + dw + 1) * cp, :]
                acc = acc + jnp.dot(load_lhs(dh), w_blk,
                                    preferred_element_type=jnp.float32)
        if shift_back:
            acc = pltpu.roll(acc, shift=shift_back, axis=0)      # acc[p] <- acc[p-1]
        return acc

    # ---- stage 1: conv1 + folded bn1 + relu, banded over output rows ----
    for bidx in range(n_bands):
        r0 = bidx * band

        def lhs1(dh, r0=r0):
            return x_ref[0, r0 + dh:r0 + dh + band, :, :].reshape(nrows, cp)

        acc1 = conv3x3_band(lhs1, w1_ref, shift_back=0)
        y1 = jnp.maximum(acc1 + b1, 0.0)
        y1 = y1.reshape(band, wp, cp)[:, :W, :].astype(y1_ref.dtype)
        y1_ref[1 + r0:1 + r0 + band, 0:W, :] = y1

    # ---- stage 2: conv2 + folded bn2 + residual add + relu, banded ----
    for bidx in range(n_bands):
        r0 = bidx * band

        def lhs2(dh, r0=r0):
            return y1_ref[r0 + dh:r0 + dh + band, :, :].reshape(nrows, cp)

        acc2 = conv3x3_band(lhs2, w2_ref, shift_back=1)

        # residual = x_padded[h+1, w+1]; aligned row slice + sublane roll (no offset-1 slice).
        xr = x_ref[0, r0 + 1:r0 + 1 + band, :, :].reshape(nrows, cp).astype(jnp.float32)
        resid = pltpu.roll(xr, shift=nrows - 1, axis=0)          # resid[p] = xr[p+1]

        out = jnp.maximum(acc2 + b2 + resid, 0.0)
        out = out.reshape(band, wp, cp)[:, :W, :].astype(o_ref.dtype)
        o_ref[0, r0:r0 + band, :, :] = out


# ------------------------------- JAX glue ---------------------------------- #

def _round_up(n, m):
    return ((n + m - 1) // m) * m


def _fold_bn(gamma, beta, mean, var, eps=1e-5):
    scale = gamma / jnp.sqrt(var + eps)
    bias = beta - mean * scale
    return scale, bias


def _pack_weight(w_oihw, scale, cin_p, cout_p, dtype):
    """OIHW -> (9*cin_p, cout_p), BN scale folded into output columns, zero channel pad."""
    co, ci, kh, kw = w_oihw.shape
    w = jnp.transpose(w_oihw, (2, 3, 1, 0)) * scale.reshape(1, 1, 1, co)   # (kh, kw, ci, co)
    w = jnp.pad(w, ((0, 0), (0, 0), (0, cin_p - ci), (0, cout_p - co)))
    return w.reshape(kh * kw * cin_p, cout_p).astype(dtype)


def _pack_bias(bias, cout_p):
    return jnp.pad(bias, (0, cout_p - bias.shape[0])).reshape(1, cout_p).astype(jnp.float32)


@jax.jit
def basic_block_mem_forward(x_nchw, params):
    """Forward of BasicBlockMem (stride=1, downsample=None), eval-mode BN."""
    N, C, H, W = x_nchw.shape
    Cout = params["w1"].shape[0]
    Cp = _round_up(max(Cout, C), LANE)        # lane-dense channel padding
    Wp = _round_up(W + 2, SUBLANE)            # sublane-aligned padded width
    Hp = H + 2

    # NCHW -> NHWC, zero pad: 1-row halo, 1 left col + (Wp-W-1) right cols, channels -> Cp.
    x_nhwc = jnp.transpose(x_nchw, (0, 2, 3, 1))
    xp = jnp.pad(x_nhwc, ((0, 0), (1, 1), (1, Wp - W - 1), (0, Cp - C))).astype(COMPUTE_DTYPE)

    s1, b1 = _fold_bn(params["bn1_gamma"], params["bn1_beta"],
                      params["bn1_mean"], params["bn1_var"])
    s2, b2 = _fold_bn(params["bn2_gamma"], params["bn2_beta"],
                      params["bn2_mean"], params["bn2_var"])

    w1m = _pack_weight(params["w1"], s1, Cp, Cp, COMPUTE_DTYPE)
    w2m = _pack_weight(params["w2"], s2, Cp, Cp, COMPUTE_DTYPE)
    b1v = _pack_bias(b1, Cp)
    b2v = _pack_bias(b2, Cp)

    # Per-shape VMEM budget (double-buffered blocks + resident scratch) with headroom.
    bb = 2  # bytes per bf16
    need = (2 * Hp * Wp * Cp * bb          # input tile (double buffered)
            + 2 * H * W * Cp * bb          # output tile (double buffered)
            + 2 * 2 * 9 * Cp * Cp * bb     # w1 + w2 (double buffered)
            + Hp * Wp * Cp * bb)           # y1 scratch
    vmem_limit = int(min(max(need * 3 // 2 + (8 << 20), 16 << 20), 96 << 20))

    out = pl.pallas_call(
        _basic_block_kernel,
        out_shape=jax.ShapeDtypeStruct((N, H, W, Cp), COMPUTE_DTYPE),
        grid_spec=pltpu.PrefetchScalarGridSpec(
            num_scalar_prefetch=0,
            grid=(N,),
            in_specs=[
                pl.BlockSpec((1, Hp, Wp, Cp), lambda n: (n, 0, 0, 0)),  # padded image
                pl.BlockSpec((9 * Cp, Cp), lambda n: (0, 0)),           # w1 (resident)
                pl.BlockSpec((1, Cp), lambda n: (0, 0)),                # b1
                pl.BlockSpec((9 * Cp, Cp), lambda n: (0, 0)),           # w2 (resident)
                pl.BlockSpec((1, Cp), lambda n: (0, 0)),                # b2
            ],
            out_specs=pl.BlockSpec((1, H, W, Cp), lambda n: (n, 0, 0, 0)),
            scratch_shapes=[pltpu.VMEM((Hp, Wp, Cp), COMPUTE_DTYPE)],   # haloed y1
        ),
        compiler_params=pltpu.CompilerParams(
            dimension_semantics=("parallel",),
            vmem_limit_bytes=vmem_limit,
        ),
    )(xp, w1m, b1v, w2m, b2v)

    # Crop channel padding, restore NCHW / f32 (single fused XLA pass).
    return jnp.transpose(out[..., :Cout], (0, 3, 1, 2)).astype(jnp.float32)


# ------------------------------ Reference ---------------------------------- #

def _reference_forward(x, p, eps=1e-5):
    def conv(a, w):
        return lax.conv_general_dilated(a, w, (1, 1), ((1, 1), (1, 1)),
                                        dimension_numbers=("NCHW", "OIHW", "NCHW"))

    def bn(a, g, b, m, v):
        g, b, m, v = (t[None, :, None, None] for t in (g, b, m, v))
        return (a - m) / jnp.sqrt(v + eps) * g + b

    y = jax.nn.relu(bn(conv(x, p["w1"]), p["bn1_gamma"], p["bn1_beta"],
                       p["bn1_mean"], p["bn1_var"]))
    y = bn(conv(y, p["w2"]), p["bn2_gamma"], p["bn2_beta"],
           p["bn2_mean"], p["bn2_var"])
    return jax.nn.relu(y + x)


# --------------------------------- Main ------------------------------------ #

if __name__ == "__main__":
    key = jax.random.PRNGKey(0)
    ks = jax.random.split(key, 11)

    N, C, H, W = 2, 4, 16, 16          # in_channels = out_channels = 4, stride = 1
    x = jax.random.normal(ks[0], (N, C, H, W), jnp.float32)

    params = {
        "w1": 0.2 * jax.random.normal(ks[1], (C, C, 3, 3), jnp.float32),
        "w2": 0.2 * jax.random.normal(ks[2], (C, C, 3, 3), jnp.float32),
        "bn1_gamma": jax.random.uniform(ks[3], (C,), jnp.float32, 0.5, 1.5),
        "bn1_beta": 0.1 * jax.random.normal(ks[4], (C,), jnp.float32),
        "bn1_mean": 0.1 * jax.random.normal(ks[5], (C,), jnp.float32),
        "bn1_var": jax.random.uniform(ks[6], (C,), jnp.float32, 0.5, 1.5),
        "bn2_gamma": jax.random.uniform(ks[7], (C,), jnp.float32, 0.5, 1.5),
        "bn2_beta": 0.1 * jax.random.normal(ks[8], (C,), jnp.float32),
        "bn2_mean": 0.1 * jax.random.normal(ks[9], (C,), jnp.float32),
        "bn2_var": jax.random.uniform(ks[10], (C,), jnp.float32, 0.5, 1.5),
    }

    out = jax.block_until_ready(basic_block_mem_forward(x, params))
    ref = jax.block_until_ready(_reference_forward(x, params))

    assert out.shape == (N, C, H, W) and out.dtype == jnp.float32

    # bf16 operands over two convs + BN + bf16 output: compare with a bf16-appropriate
    # tolerance, normalized by the reference magnitude.
    err = float(jnp.max(jnp.abs(out - ref)))
    ref_mag = float(jnp.max(jnp.abs(ref)))
    assert err <= 5e-2 * max(1.0, ref_mag), \
        f"max abs err = {err}, ref magnitude = {ref_mag}"

    print("KERNEL_OK")
</pallas_src>

<mosaic_0001>
module attributes {stable_mosaic.version = 11 : i64} {
  func.func @_basic_block_kernel(%arg0: i32, %arg1: memref<1x18x24x128xbf16, #tpu.memory_space<vmem>>, %arg2: memref<1152x128xbf16, #tpu.memory_space<vmem>>, %arg3: memref<1x128xf32, #tpu.memory_space<vmem>>, %arg4: memref<1152x128xbf16, #tpu.memory_space<vmem>>, %arg5: memref<1x128xf32, #tpu.memory_space<vmem>>, %arg6: memref<1x16x16x128xbf16, #tpu.memory_space<vmem>>, %arg7: memref<18x24x128xbf16, #tpu.memory_space<vmem>>) attributes {dimension_semantics = [#tpu.dimension_semantics<parallel>], iteration_bounds = array<i64: 2>, scalar_prefetch = 0 : i64, scratch_operands = 1 : i64, tpu.core_type = #tpu.core_type<tc>, window_params = [{transform_indices = @transform_0, window_bounds = array<i64: 1, 18, 24, 128>}, {pipeline_mode = #tpu.pipeline_mode<synchronous>, transform_indices = @transform_1, window_bounds = array<i64: 1152, 128>}, {pipeline_mode = #tpu.pipeline_mode<synchronous>, transform_indices = @transform_2, window_bounds = array<i64: 1, 128>}, {pipeline_mode = #tpu.pipeline_mode<synchronous>, transform_indices = @transform_3, window_bounds = array<i64: 1152, 128>}, {pipeline_mode = #tpu.pipeline_mode<synchronous>, transform_indices = @transform_4, window_bounds = array<i64: 1, 128>}, {transform_indices = @transform_5, window_bounds = array<i64: 1, 16, 16, 128>}]} {
    %c0 = arith.constant 0 : index
    %c0_0 = arith.constant 0 : index
    %0 = vector.load %arg3[%c0, %c0_0] : memref<1x128xf32, #tpu.memory_space<vmem>>, vector<1x128xf32>
    %c0_1 = arith.constant 0 : index
    %c0_2 = arith.constant 0 : index
    %1 = vector.load %arg5[%c0_1, %c0_2] : memref<1x128xf32, #tpu.memory_space<vmem>>, vector<1x128xf32>
    %cst = arith.constant 0.000000e+00 : bf16
    %2 = vector.broadcast %cst : bf16 to vector<1x24x128xbf16>
    %c0_3 = arith.constant 0 : index
    %c0_4 = arith.constant 0 : index
    %c0_5 = arith.constant 0 : index
    %3 = vector.load %arg7[%c0_3, %c0_4, %c0_5] : memref<18x24x128xbf16, #tpu.memory_space<vmem>>, vector<1x24x128xbf16>
    tpu.vector_store %arg7[%c0_3, %c0_4, %c0_5], %2 {strides = array<i32>} : memref<18x24x128xbf16, #tpu.memory_space<vmem>>, vector<1x24x128xbf16>,
    %c17 = arith.constant 17 : index
    %c0_6 = arith.constant 0 : index
    %c0_7 = arith.constant 0 : index
    %4 = vector.load %arg7[%c17, %c0_6, %c0_7] : memref<18x24x128xbf16, #tpu.memory_space<vmem>>, vector<1x24x128xbf16>
    tpu.vector_store %arg7[%c17, %c0_6, %c0_7], %2 {strides = array<i32>} : memref<18x24x128xbf16, #tpu.memory_space<vmem>>, vector<1x24x128xbf16>,
    %cst_8 = arith.constant 0.000000e+00 : bf16
    %5 = vector.broadcast %cst_8 : bf16 to vector<18x8x128xbf16>
    %c0_9 = arith.constant 0 : index
    %c16 = arith.constant 16 : index
    %c0_10 = arith.constant 0 : index
    %6 = vector.load %arg7[%c0_9, %c16, %c0_10] : memref<18x24x128xbf16, #tpu.memory_space<vmem>>, vector<18x8x128xbf16>
    tpu.vector_store %arg7[%c0_9, %c16, %c0_10], %5 {strides = array<i32>} : memref<18x24x128xbf16, #tpu.memory_space<vmem>>, vector<18x8x128xbf16>,
    %cst_11 = arith.constant 0.000000e+00 : f32
    %7 = vector.broadcast %cst_11 : f32 to vector<192x128xf32>
    %c256 = arith.constant 256 : index
    %c0_12 = arith.constant 0 : index
    %8 = vector.load %arg2[%c256, %c0_12] : memref<1152x128xbf16, #tpu.memory_space<vmem>>, vector<128x128xbf16>
    %c0_13 = arith.constant 0 : index
    %c0_14 = arith.constant 0 : index
    %c0_15 = arith.constant 0 : index
    %c0_16 = arith.constant 0 : index
    %9 = vector.load %arg1[%c0_13, %c0_14, %c0_15, %c0_16] : memref<1x18x24x128xbf16, #tpu.memory_space<vmem>>, vector<1x8x24x128xbf16>
    %10 = vector.shape_cast %9 : vector<1x8x24x128xbf16> to vector<8x24x128xbf16>
    %11 = vector.shape_cast %10 : vector<8x24x128xbf16> to vector<192x128xbf16>
    %cst_17 = arith.constant dense<0.000000e+00> : vector<192x128xf32>
    %12 = tpu.matmul %11, %8, %cst_17 {dimension_numbers = #tpu.dot_dimension_numbers<[1], [0], [0], [1], [0, 0, 1, 1], [], []>} : vector<192x128xbf16>, vector<128x128xbf16>, vector<192x128xf32> -> vector<192x128xf32>
    %13 = arith.addf %7, %12 : vector<192x128xf32>
    %c640 = arith.constant 640 : index
    %c0_18 = arith.constant 0 : index
    %14 = vector.load %arg2[%c640, %c0_18] : memref<1152x128xbf16, #tpu.memory_space<vmem>>, vector<128x128xbf16>
    %c0_19 = arith.constant 0 : index
    %c1 = arith.constant 1 : index
    %c0_20 = arith.constant 0 : index
    %c0_21 = arith.constant 0 : index
    %15 = vector.load %arg1[%c0_19, %c1, %c0_20, %c0_21] : memref<1x18x24x128xbf16, #tpu.memory_space<vmem>>, vector<1x8x24x128xbf16>
    %16 = vector.shape_cast %15 : vector<1x8x24x128xbf16> to vector<8x24x128xbf16>
    %17 = vector.shape_cast %16 : vector<8x24x128xbf16> to vector<192x128xbf16>
    %cst_22 = arith.constant dense<0.000000e+00> : vector<192x128xf32>
    %18 = tpu.matmul %17, %14, %cst_22 {dimension_numbers = #tpu.dot_dimension_numbers<[1], [0], [0], [1], [0, 0, 1, 1], [], []>} : vector<192x128xbf16>, vector<128x128xbf16>, vector<192x128xf32> -> vector<192x128xf32>
    %19 = arith.addf %13, %18 : vector<192x128xf32>
    %c1024 = arith.constant 1024 : index
    %c0_23 = arith.constant 0 : index
    %20 = vector.load %arg2[%c1024, %c0_23] : memref<1152x128xbf16, #tpu.memory_space<vmem>>, vector<128x128xbf16>
    %c0_24 = arith.constant 0 : index
    %c2 = arith.constant 2 : index
    %c0_25 = arith.constant 0 : index
    %c0_26 = arith.constant 0 : index
    %21 = vector.load %arg1[%c0_24, %c2, %c0_25, %c0_26] : memref<1x18x24x128xbf16, #tpu.memory_space<vmem>>, vector<1x8x24x128xbf16>
    %22 = vector.shape_cast %21 : vector<1x8x24x128xbf16> to vector<8x24x128xbf16>
    %23 = vector.shape_cast %22 : vector<8x24x128xbf16> to vector<192x128xbf16>
    %cst_27 = arith.constant dense<0.000000e+00> : vector<192x128xf32>
    %24 = tpu.matmul %23, %20, %cst_27 {dimension_numbers = #tpu.dot_dimension_numbers<[1], [0], [0], [1], [0, 0, 1, 1], [], []>} : vector<192x128xbf16>, vector<128x128xbf16>, vector<192x128xf32> -> vector<192x128xf32>
    %25 = arith.addf %19, %24 : vector<192x128xf32>
    %c191_i32 = arith.constant 191 : i32
    %26 = tpu.dynamic_rotate %25 by %c191_i32 dim 0 : vector<192x128xf32>, i32 -> vector<192x128xf32>
    %c128 = arith.constant 128 : index
    %c0_28 = arith.constant 0 : index
    %27 = vector.load %arg2[%c128, %c0_28] : memref<1152x128xbf16, #tpu.memory_space<vmem>>, vector<128x128xbf16>
    %c0_29 = arith.constant 0 : index
    %c0_30 = arith.constant 0 : index
    %c0_31 = arith.constant 0 : index
    %c0_32 = arith.constant 0 : index
    %28 = vector.load %arg1[%c0_29, %c0_30, %c0_31, %c0_32] : memref<1x18x24x128xbf16, #tpu.memory_space<vmem>>, vector<1x8x24x128xbf16>
    %29 = vector.shape_cast %28 : vector<1x8x24x128xbf16> to vector<8x24x128xbf16>
    %30 = vector.shape_cast %29 : vector<8x24x128xbf16> to vector<192x128xbf16>
    %cst_33 = arith.constant dense<0.000000e+00> : vector<192x128xf32>
    %31 = tpu.matmul %30, %27, %cst_33 {dimension_numbers = #tpu.dot_dimension_numbers<[1], [0], [0], [1], [0, 0, 1, 1], [], []>} : vector<192x128xbf16>, vector<128x128xbf16>, vector<192x128xf32> -> vector<192x128xf32>
    %32 = arith.addf %26, %31 : vector<192x128xf32>
    %c512 = arith.constant 512 : index
    %c0_34 = arith.constant 0 : index
    %33 = vector.load %arg2[%c512, %c0_34] : memref<1152x128xbf16, #tpu.memory_space<vmem>>, vector<128x128xbf16>
    %c0_35 = arith.constant 0 : index
    %c1_36 = arith.constant 1 : index
    %c0_37 = arith.constant 0 : index
    %c0_38 = arith.constant 0 : index
    %34 = vector.load %arg1[%c0_35, %c1_36, %c0_37, %c0_38] : memref<1x18x24x128xbf16, #tpu.memory_space<vmem>>, vector<1x8x24x128xbf16>
    %35 = vector.shape_cast %34 : vector<1x8x24x128xbf16> to vector<8x24x128xbf16>
    %36 = vector.shape_cast %35 : vector<8x24x128xbf16> to vector<192x128xbf16>
    %cst_39 = arith.constant dense<0.000000e+00> : vector<192x128xf32>
    %37 = tpu.matmul %36, %33, %cst_39 {dimension_numbers = #tpu.dot_dimension_numbers<[1], [0], [0], [1], [0, 0, 1, 1], [], []>} : vector<192x128xbf16>, vector<128x128xbf16>, vector<192x128xf32> -> vector<192x128xf32>
    %38 = arith.addf %32, %37 : vector<192x128xf32>
    %c896 = arith.constant 896 : index
    %c0_40 = arith.constant 0 : index
    %39 = vector.load %arg2[%c896, %c0_40] : memref<1152x128xbf16, #tpu.memory_space<vmem>>, vector<128x128xbf16>
    %c0_41 = arith.constant 0 : index
    %c2_42 = arith.constant 2 : index
    %c0_43 = arith.constant 0 : index
    %c0_44 = arith.constant 0 : index
    %40 = vector.load %arg1[%c0_41, %c2_42, %c0_43, %c0_44] : memref<1x18x24x128xbf16, #tpu.memory_space<vmem>>, vector<1x8x24x128xbf16>
    %41 = vector.shape_cast %40 : vector<1x8x24x128xbf16> to vector<8x24x128xbf16>
    %42 = vector.shape_cast %41 : vector<8x24x128xbf16> to vector<192x128xbf16>
    %cst_45 = arith.constant dense<0.000000e+00> : vector<192x128xf32>
    %43 = tpu.matmul %42, %39, %cst_45 {dimension_numbers = #tpu.dot_dimension_numbers<[1], [0], [0], [1], [0, 0, 1, 1], [], []>} : vector<192x128xbf16>, vector<128x128xbf16>, vector<192x128xf32> -> vector<192x128xf32>
    %44 = arith.addf %38, %43 : vector<192x128xf32>
    %c191_i32_46 = arith.constant 191 : i32
    %45 = tpu.dynamic_rotate %44 by %c191_i32_46 dim 0 : vector<192x128xf32>, i32 -> vector<192x128xf32>
    %c0_47 = arith.constant 0 : index
    %c0_48 = arith.constant 0 : index
    %46 = vector.load %arg2[%c0_47, %c0_48] : memref<1152x128xbf16, #tpu.memory_space<vmem>>, vector<128x128xbf16>
    %c0_49 = arith.constant 0 : index
    %c0_50 = arith.constant 0 : index
    %c0_51 = arith.constant 0 : index
    %c0_52 = arith.constant 0 : index
    %47 = vector.load %arg1[%c0_49, %c0_50, %c0_51, %c0_52] : memref<1x18x24x128xbf16, #tpu.memory_space<vmem>>, vector<1x8x24x128xbf16>
    %48 = vector.shape_cast %47 : vector<1x8x24x128xbf16> to vector<8x24x128xbf16>
    %49 = vector.shape_cast %48 : vector<8x24x128xbf16> to vector<192x128xbf16>
    %cst_53 = arith.constant dense<0.000000e+00> : vector<192x128xf32>
    %50 = tpu.matmul %49, %46, %cst_53 {dimension_numbers = #tpu.dot_dimension_numbers<[1], [0], [0], [1], [0, 0, 1, 1], [], []>} : vector<192x128xbf16>, vector<128x128xbf16>, vector<192x128xf32> -> vector<192x128xf32>
    %51 = arith.addf %45, %50 : vector<192x128xf32>
    %c384 = arith.constant 384 : index
    %c0_54 = arith.constant 0 : index
    %52 = vector.load %arg2[%c384, %c0_54] : memref<1152x128xbf16, #tpu.memory_space<vmem>>, vector<128x128xbf16>
    %c0_55 = arith.constant 0 : index
    %c1_56 = arith.constant 1 : index
    %c0_57 = arith.constant 0 : index
    %c0_58 = arith.constant 0 : index
    %53 = vector.load %arg1[%c0_55, %c1_56, %c0_57, %c0_58] : memref<1x18x24x128xbf16, #tpu.memory_space<vmem>>, vector<1x8x24x128xbf16>
    %54 = vector.shape_cast %53 : vector<1x8x24x128xbf16> to vector<8x24x128xbf16>
    %55 = vector.shape_cast %54 : vector<8x24x128xbf16> to vector<192x128xbf16>
    %cst_59 = arith.constant dense<0.000000e+00> : vector<192x128xf32>
    %56 = tpu.matmul %55, %52, %cst_59 {dimension_numbers = #tpu.dot_dimension_numbers<[1], [0], [0], [1], [0, 0, 1, 1], [], []>} : vector<192x128xbf16>, vector<128x128xbf16>, vector<192x128xf32> -> vector<192x128xf32>
    %57 = arith.addf %51, %56 : vector<192x128xf32>
    %c768 = arith.constant 768 : index
    %c0_60 = arith.constant 0 : index
    %58 = vector.load %arg2[%c768, %c0_60] : memref<1152x128xbf16, #tpu.memory_space<vmem>>, vector<128x128xbf16>
    %c0_61 = arith.constant 0 : index
    %c2_62 = arith.constant 2 : index
    %c0_63 = arith.constant 0 : index
    %c0_64 = arith.constant 0 : index
    %59 = vector.load %arg1[%c0_61, %c2_62, %c0_63, %c0_64] : memref<1x18x24x128xbf16, #tpu.memory_space<vmem>>, vector<1x8x24x128xbf16>
    %60 = vector.shape_cast %59 : vector<1x8x24x128xbf16> to vector<8x24x128xbf16>
    %61 = vector.shape_cast %60 : vector<8x24x128xbf16> to vector<192x128xbf16>
    %cst_65 = arith.constant dense<0.000000e+00> : vector<192x128xf32>
    %62 = tpu.matmul %61, %58, %cst_65 {dimension_numbers = #tpu.dot_dimension_numbers<[1], [0], [0], [1], [0, 0, 1, 1], [], []>} : vector<192x128xbf16>, vector<128x128xbf16>, vector<192x128xf32> -> vector<192x128xf32>
    %63 = arith.addf %57, %62 : vector<192x128xf32>
    %64 = vector.broadcast %0 : vector<1x128xf32> to vector<192x128xf32>
    %65 = arith.addf %63, %64 : vector<192x128xf32>
    %cst_66 = arith.constant 0.000000e+00 : f32
    %66 = vector.broadcast %cst_66 : f32 to vector<192x128xf32>
    %67 = arith.maximumf %65, %66 : vector<192x128xf32>
    %68 = vector.shape_cast %67 : vector<192x128xf32> to vector<8x24x128xf32>
    %69 = vector.extract_strided_slice %68 {offsets = [0, 0, 0], sizes = [8, 16, 128], strides = [1, 1, 1]} : vector<8x24x128xf32> to vector<8x16x128xf32>
    %70 = arith.truncf %69 : vector<8x16x128xf32> to vector<8x16x128xbf16>
    %c1_67 = arith.constant 1 : index
    %c0_68 = arith.constant 0 : index
    %c0_69 = arith.constant 0 : index
    %71 = vector.load %arg7[%c1_67, %c0_68, %c0_69] : memref<18x24x128xbf16, #tpu.memory_space<vmem>>, vector<8x16x128xbf16>
    tpu.vector_store %arg7[%c1_67, %c0_68, %c0_69], %70 {strides = array<i32>} : memref<18x24x128xbf16, #tpu.memory_space<vmem>>, vector<8x16x128xbf16>,
    %cst_70 = arith.constant 0.000000e+00 : f32
    %72 = vector.broadcast %cst_70 : f32 to vector<192x128xf32>
    %c256_71 = arith.constant 256 : index
    %c0_72 = arith.constant 0 : index
    %73 = vector.load %arg2[%c256_71, %c0_72] : memref<1152x128xbf16, #tpu.memory_space<vmem>>, vector<128x128xbf16>
    %c0_73 = arith.constant 0 : index
    %c8 = arith.constant 8 : index
    %c0_74 = arith.constant 0 : index
    %c0_75 = arith.constant 0 : index
    %74 = vector.load %arg1[%c0_73, %c8, %c0_74, %c0_75] : memref<1x18x24x128xbf16, #tpu.memory_space<vmem>>, vector<1x8x24x128xbf16>
    %75 = vector.shape_cast %74 : vector<1x8x24x128xbf16> to vector<8x24x128xbf16>
    %76 = vector.shape_cast %75 : vector<8x24x128xbf16> to vector<192x128xbf16>
    %cst_76 = arith.constant dense<0.000000e+00> : vector<192x128xf32>
    %77 = tpu.matmul %76, %73, %cst_76 {dimension_numbers = #tpu.dot_dimension_numbers<[1], [0], [0], [1], [0, 0, 1, 1], [], []>} : vector<192x128xbf16>, vector<128x128xbf16>, vector<192x128xf32> -> vector<192x128xf32>
    %78 = arith.addf %72, %77 : vector<192x128xf32>
    %c640_77 = arith.constant 640 : index
    %c0_78 = arith.constant 0 : index
    %79 = vector.load %arg2[%c640_77, %c0_78] : memref<1152x128xbf16, #tpu.memory_space<vmem>>, vector<128x128xbf16>
    %c0_79 = arith.constant 0 : index
    %c9 = arith.constant 9 : index
    %c0_80 = arith.constant 0 : index
    %c0_81 = arith.constant 0 : index
    %80 = vector.load %arg1[%c0_79, %c9, %c0_80, %c0_81] : memref<1x18x24x128xbf16, #tpu.memory_space<vmem>>, vector<1x8x24x128xbf16>
    %81 = vector.shape_cast %80 : vector<1x8x24x128xbf16> to vector<8x24x128xbf16>
    %82 = vector.shape_cast %81 : vector<8x24x128xbf16> to vector<192x128xbf16>
    %cst_82 = arith.constant dense<0.000000e+00> : vector<192x128xf32>
    %83 = tpu.matmul %82, %79, %cst_82 {dimension_numbers = #tpu.dot_dimension_numbers<[1], [0], [0], [1], [0, 0, 1, 1], [], []>} : vector<192x128xbf16>, vector<128x128xbf16>, vector<192x128xf32> -> vector<192x128xf32>
    %84 = arith.addf %78, %83 : vector<192x128xf32>
    %c1024_83 = arith.constant 1024 : index
    %c0_84 = arith.constant 0 : index
    %85 = vector.load %arg2[%c1024_83, %c0_84] : memref<1152x128xbf16, #tpu.memory_space<vmem>>, vector<128x128xbf16>
    %c0_85 = arith.constant 0 : index
    %c10 = arith.constant 10 : index
    %c0_86 = arith.constant 0 : index
    %c0_87 = arith.constant 0 : index
    %86 = vector.load %arg1[%c0_85, %c10, %c0_86, %c0_87] : memref<1x18x24x128xbf16, #tpu.memory_space<vmem>>, vector<1x8x24x128xbf16>
    %87 = vector.shape_cast %86 : vector<1x8x24x128xbf16> to vector<8x24x128xbf16>
    %88 = vector.shape_cast %87 : vector<8x24x128xbf16> to vector<192x128xbf16>
    %cst_88 = arith.constant dense<0.000000e+00> : vector<192x128xf32>
    %89 = tpu.matmul %88, %85, %cst_88 {dimension_numbers = #tpu.dot_dimension_numbers<[1], [0], [0], [1], [0, 0, 1, 1], [], []>} : vector<192x128xbf16>, vector<128x128xbf16>, vector<192x128xf32> -> vector<192x128xf32>
    %90 = arith.addf %84, %89 : vector<192x128xf32>
    %c191_i32_89 = arith.constant 191 : i32
    %91 = tpu.dynamic_rotate %90 by %c191_i32_89 dim 0 : vector<192x128xf32>, i32 -> vector<192x128xf32>
    %c128_90 = arith.constant 128 : index
    %c0_91 = arith.constant 0 : index
    %92 = vector.load %arg2[%c128_90, %c0_91] : memref<1152x128xbf16, #tpu.memory_space<vmem>>, vector<128x128xbf16>
    %c0_92 = arith.constant 0 : index
    %c8_93 = arith.constant 8 : index
    %c0_94 = arith.constant 0 : index
    %c0_95 = arith.constant 0 : index
    %93 = vector.load %arg1[%c0_92, %c8_93, %c0_94, %c0_95] : memref<1x18x24x128xbf16, #tpu.memory_space<vmem>>, vector<1x8x24x128xbf16>
    %94 = vector.shape_cast %93 : vector<1x8x24x128xbf16> to vector<8x24x128xbf16>
    %95 = vector.shape_cast %94 : vector<8x24x128xbf16> to vector<192x128xbf16>
    %cst_96 = arith.constant dense<0.000000e+00> : vector<192x128xf32>
    %96 = tpu.matmul %95, %92, %cst_96 {dimension_numbers = #tpu.dot_dimension_numbers<[1], [0], [0], [1], [0, 0, 1, 1], [], []>} : vector<192x128xbf16>, vector<128x128xbf16>, vector<192x128xf32> -> vector<192x128xf32>
    %97 = arith.addf %91, %96 : vector<192x128xf32>
    %c512_97 = arith.constant 512 : index
    %c0_98 = arith.constant 0 : index
    %98 = vector.load %arg2[%c512_97, %c0_98] : memref<1152x128xbf16, #tpu.memory_space<vmem>>, vector<128x128xbf16>
    %c0_99 = arith.constant 0 : index
    %c9_100 = arith.constant 9 : index
    %c0_101 = arith.constant 0 : index
    %c0_102 = arith.constant 0 : index
    %99 = vector.load %arg1[%c0_99, %c9_100, %c0_101, %c0_102] : memref<1x18x24x128xbf16, #tpu.memory_space<vmem>>, vector<1x8x24x128xbf16>
    %100 = vector.shape_cast %99 : vector<1x8x24x128xbf16> to vector<8x24x128xbf16>
    %101 = vector.shape_cast %100 : vector<8x24x128xbf16> to vector<192x128xbf16>
    %cst_103 = arith.constant dense<0.000000e+00> : vector<192x128xf32>
    %102 = tpu.matmul %101, %98, %cst_103 {dimension_numbers = #tpu.dot_dimension_numbers<[1], [0], [0], [1], [0, 0, 1, 1], [], []>} : vector<192x128xbf16>, vector<128x128xbf16>, vector<192x128xf32> -> vector<192x128xf32>
    %103 = arith.addf %97, %102 : vector<192x128xf32>
    %c896_104 = arith.constant 896 : index
    %c0_105 = arith.constant 0 : index
    %104 = vector.load %arg2[%c896_104, %c0_105] : memref<1152x128xbf16, #tpu.memory_space<vmem>>, vector<128x128xbf16>
    %c0_106 = arith.constant 0 : index
    %c10_107 = arith.constant 10 : index
    %c0_108 = arith.constant 0 : index
    %c0_109 = arith.constant 0 : index
    %105 = vector.load %arg1[%c0_106, %c10_107, %c0_108, %c0_109] : memref<1x18x24x128xbf16, #tpu.memory_space<vmem>>, vector<1x8x24x128xbf16>
    %106 = vector.shape_cast %105 : vector<1x8x24x128xbf16> to vector<8x24x128xbf16>
    %107 = vector.shape_cast %106 : vector<8x24x128xbf16> to vector<192x128xbf16>
    %cst_110 = arith.constant dense<0.000000e+00> : vector<192x128xf32>
    %108 = tpu.matmul %107, %104, %cst_110 {dimension_numbers = #tpu.dot_dimension_numbers<[1], [0], [0], [1], [0, 0, 1, 1], [], []>} : vector<192x128xbf16>, vector<128x128xbf16>, vector<192x128xf32> -> vector<192x128xf32>
    %109 = arith.addf %103, %108 : vector<192x128xf32>
    %c191_i32_111 = arith.constant 191 : i32
    %110 = tpu.dynamic_rotate %109 by %c191_i32_111 dim 0 : vector<192x128xf32>, i32 -> vector<192x128xf32>
    %c0_112 = arith.constant 0 : index
    %c0_113 = arith.constant 0 : index
    %111 = vector.load %arg2[%c0_112, %c0_113] : memref<1152x128xbf16, #tpu.memory_space<vmem>>, vector<128x128xbf16>
    %c0_114 = arith.constant 0 : index
    %c8_115 = arith.constant 8 : index
    %c0_116 = arith.constant 0 : index
    %c0_117 = arith.constant 0 : index
    %112 = vector.load %arg1[%c0_114, %c8_115, %c0_116, %c0_117] : memref<1x18x24x128xbf16, #tpu.memory_space<vmem>>, vector<1x8x24x128xbf16>
    %113 = vector.shape_cast %112 : vector<1x8x24x128xbf16> to vector<8x24x128xbf16>
    %114 = vector.shape_cast %113 : vector<8x24x128xbf16> to vector<192x128xbf16>
    %cst_118 = arith.constant dense<0.000000e+00> : vector<192x128xf32>
    %115 = tpu.matmul %114, %111, %cst_118 {dimension_numbers = #tpu.dot_dimension_numbers<[1], [0], [0], [1], [0, 0, 1, 1], [], []>} : vector<192x128xbf16>, vector<128x128xbf16>, vector<192x128xf32> -> vector<192x128xf32>
    %116 = arith.addf %110, %115 : vector<192x128xf32>
    %c384_119 = arith.constant 384 : index
    %c0_120 = arith.constant 0 : index
    %117 = vector.load %arg2[%c384_119, %c0_120] : memref<1152x128xbf16, #tpu.memory_space<vmem>>, vector<128x128xbf16>
    %c0_121 = arith.constant 0 : index
    %c9_122 = arith.constant 9 : index
    %c0_123 = arith.constant 0 : index
    %c0_124 = arith.constant 0 : index
    %118 = vector.load %arg1[%c0_121, %c9_122, %c0_123, %c0_124] : memref<1x18x24x128xbf16, #tpu.memory_space<vmem>>, vector<1x8x24x128xbf16>
    %119 = vector.shape_cast %118 : vector<1x8x24x128xbf16> to vector<8x24x128xbf16>
    %120 = vector.shape_cast %119 : vector<8x24x128xbf16> to vector<192x128xbf16>
    %cst_125 = arith.constant dense<0.000000e+00> : vector<192x128xf32>
    %121 = tpu.matmul %120, %117, %cst_125 {dimension_numbers = #tpu.dot_dimension_numbers<[1], [0], [0], [1], [0, 0, 1, 1], [], []>} : vector<192x128xbf16>, vector<128x128xbf16>, vector<192x128xf32> -> vector<192x128xf32>
    %122 = arith.addf %116, %121 : vector<192x128xf32>
    %c768_126 = arith.constant 768 : index
    %c0_127 = arith.constant 0 : index
    %123 = vector.load %arg2[%c768_126, %c0_127] : memref<1152x128xbf16, #tpu.memory_space<vmem>>, vector<128x128xbf16>
    %c0_128 = arith.constant 0 : index
    %c10_129 = arith.constant 10 : index
    %c0_130 = arith.constant 0 : index
    %c0_131 = arith.constant 0 : index
    %124 = vector.load %arg1[%c0_128, %c10_129, %c0_130, %c0_131] : memref<1x18x24x128xbf16, #tpu.memory_space<vmem>>, vector<1x8x24x128xbf16>
    %125 = vector.shape_cast %124 : vector<1x8x24x128xbf16> to vector<8x24x128xbf16>
    %126 = vector.shape_cast %125 : vector<8x24x128xbf16> to vector<192x128xbf16>
    %cst_132 = arith.constant dense<0.000000e+00> : vector<192x128xf32>
    %127 = tpu.matmul %126, %123, %cst_132 {dimension_numbers = #tpu.dot_dimension_numbers<[1], [0], [0], [1], [0, 0, 1, 1], [], []>} : vector<192x128xbf16>, vector<128x128xbf16>, vector<192x128xf32> -> vector<192x128xf32>
    %128 = arith.addf %122, %127 : vector<192x128xf32>
    %129 = vector.broadcast %0 : vector<1x128xf32> to vector<192x128xf32>
    %130 = arith.addf %128, %129 : vector<192x128xf32>
    %cst_133 = arith.constant 0.000000e+00 : f32
    %131 = vector.broadcast %cst_133 : f32 to vector<192x128xf32>
    %132 = arith.maximumf %130, %131 : vector<192x128xf32>
    %133 = vector.shape_cast %132 : vector<192x128xf32> to vector<8x24x128xf32>
    %134 = vector.extract_strided_slice %133 {offsets = [0, 0, 0], sizes = [8, 16, 128], strides = [1, 1, 1]} : vector<8x24x128xf32> to vector<8x16x128xf32>
    %135 = arith.truncf %134 : vector<8x16x128xf32> to vector<8x16x128xbf16>
    %c9_134 = arith.constant 9 : index
    %c0_135 = arith.constant 0 : index
    %c0_136 = arith.constant 0 : index
    %136 = vector.load %arg7[%c9_134, %c0_135, %c0_136] : memref<18x24x128xbf16, #tpu.memory_space<vmem>>, vector<8x16x128xbf16>
    tpu.vector_store %arg7[%c9_134, %c0_135, %c0_136], %135 {strides = array<i32>} : memref<18x24x128xbf16, #tpu.memory_space<vmem>>, vector<8x16x128xbf16>,
    %cst_137 = arith.constant 0.000000e+00 : f32
    %137 = vector.broadcast %cst_137 : f32 to vector<192x128xf32>
    %c256_138 = arith.constant 256 : index
    %c0_139 = arith.constant 0 : index
    %138 = vector.load %arg4[%c256_138, %c0_139] : memref<1152x128xbf16, #tpu.memory_space<vmem>>, vector<128x128xbf16>
    %c0_140 = arith.constant 0 : index
    %c0_141 = arith.constant 0 : index
    %c0_142 = arith.constant 0 : index
    %139 = vector.load %arg7[%c0_140, %c0_141, %c0_142] : memref<18x24x128xbf16, #tpu.memory_space<vmem>>, vector<8x24x128xbf16>
    %140 = vector.shape_cast %139 : vector<8x24x128xbf16> to vector<192x128xbf16>
    %cst_143 = arith.constant dense<0.000000e+00> : vector<192x128xf32>
    %141 = tpu.matmul %140, %138, %cst_143 {dimension_numbers = #tpu.dot_dimension_numbers<[1], [0], [0], [1], [0, 0, 1, 1], [], []>} : vector<192x128xbf16>, vector<128x128xbf16>, vector<192x128xf32> -> vector<192x128xf32>
    %142 = arith.addf %137, %141 : vector<192x128xf32>
    %c640_144 = arith.constant 640 : index
    %c0_145 = arith.constant 0 : index
    %143 = vector.load %arg4[%c640_144, %c0_145] : memref<1152x128xbf16, #tpu.memory_space<vmem>>, vector<128x128xbf16>
    %c1_146 = arith.constant 1 : index
    %c0_147 = arith.constant 0 : index
    %c0_148 = arith.constant 0 : index
    %144 = vector.load %arg7[%c1_146, %c0_147, %c0_148] : memref<18x24x128xbf16, #tpu.memory_space<vmem>>, vector<8x24x128xbf16>
    %145 = vector.shape_cast %144 : vector<8x24x128xbf16> to vector<192x128xbf16>
    %cst_149 = arith.constant dense<0.000000e+00> : vector<192x128xf32>
    %146 = tpu.matmul %145, %143, %cst_149 {dimension_numbers = #tpu.dot_dimension_numbers<[1], [0], [0], [1], [0, 0, 1, 1], [], []>} : vector<192x128xbf16>, vector<128x128xbf16>, vector<192x128xf32> -> vector<192x128xf32>
    %147 = arith.addf %142, %146 : vector<192x128xf32>
    %c1024_150 = arith.constant 1024 : index
    %c0_151 = arith.constant 0 : index
    %148 = vector.load %arg4[%c1024_150, %c0_151] : memref<1152x128xbf16, #tpu.memory_space<vmem>>, vector<128x128xbf16>
    %c2_152 = arith.constant 2 : index
    %c0_153 = arith.constant 0 : index
    %c0_154 = arith.constant 0 : index
    %149 = vector.load %arg7[%c2_152, %c0_153, %c0_154] : memref<18x24x128xbf16, #tpu.memory_space<vmem>>, vector<8x24x128xbf16>
    %150 = vector.shape_cast %149 : vector<8x24x128xbf16> to vector<192x128xbf16>
    %cst_155 = arith.constant dense<0.000000e+00> : vector<192x128xf32>
    %151 = tpu.matmul %150, %148, %cst_155 {dimension_numbers = #tpu.dot_dimension_numbers<[1], [0], [0], [1], [0, 0, 1, 1], [], []>} : vector<192x128xbf16>, vector<128x128xbf16>, vector<192x128xf32> -> vector<192x128xf32>
    %152 = arith.addf %147, %151 : vector<192x128xf32>
    %c191_i32_156 = arith.constant 191 : i32
    %153 = tpu.dynamic_rotate %152 by %c191_i32_156 dim 0 : vector<192x128xf32>, i32 -> vector<192x128xf32>
    %c128_157 = arith.constant 128 : index
    %c0_158 = arith.constant 0 : index
    %154 = vector.load %arg4[%c128_157, %c0_158] : memref<1152x128xbf16, #tpu.memory_space<vmem>>, vector<128x128xbf16>
    %c0_159 = arith.constant 0 : index
    %c0_160 = arith.constant 0 : index
    %c0_161 = arith.constant 0 : index
    %155 = vector.load %arg7[%c0_159, %c0_160, %c0_161] : memref<18x24x128xbf16, #tpu.memory_space<vmem>>, vector<8x24x128xbf16>
    %156 = vector.shape_cast %155 : vector<8x24x128xbf16> to vector<192x128xbf16>
    %cst_162 = arith.constant dense<0.000000e+00> : vector<192x128xf32>
    %157 = tpu.matmul %156, %154, %cst_162 {dimension_numbers = #tpu.dot_dimension_numbers<[1], [0], [0], [1], [0, 0, 1, 1], [], []>} : vector<192x128xbf16>, vector<128x128xbf16>, vector<192x128xf32> -> vector<192x128xf32>
    %158 = arith.addf %153, %157 : vector<192x128xf32>
    %c512_163 = arith.constant 512 : index
    %c0_164 = arith.constant 0 : index
    %159 = vector.load %arg4[%c512_163, %c0_164] : memref<1152x128xbf16, #tpu.memory_space<vmem>>, vector<128x128xbf16>
    %c1_165 = arith.constant 1 : index
    %c0_166 = arith.constant 0 : index
    %c0_167 = arith.constant 0 : index
    %160 = vector.load %arg7[%c1_165, %c0_166, %c0_167] : memref<18x24x128xbf16, #tpu.memory_space<vmem>>, vector<8x24x128xbf16>
    %161 = vector.shape_cast %160 : vector<8x24x128xbf16> to vector<192x128xbf16>
    %cst_168 = arith.constant dense<0.000000e+00> : vector<192x128xf32>
    %162 = tpu.matmul %161, %159, %cst_168 {dimension_numbers = #tpu.dot_dimension_numbers<[1], [0], [0], [1], [0, 0, 1, 1], [], []>} : vector<192x128xbf16>, vector<128x128xbf16>, vector<192x128xf32> -> vector<192x128xf32>
    %163 = arith.addf %158, %162 : vector<192x128xf32>
    %c896_169 = arith.constant 896 : index
    %c0_170 = arith.constant 0 : index
    %164 = vector.load %arg4[%c896_169, %c0_170] : memref<1152x128xbf16, #tpu.memory_space<vmem>>, vector<128x128xbf16>
    %c2_171 = arith.constant 2 : index
    %c0_172 = arith.constant 0 : index
    %c0_173 = arith.constant 0 : index
    %165 = vector.load %arg7[%c2_171, %c0_172, %c0_173] : memref<18x24x128xbf16, #tpu.memory_space<vmem>>, vector<8x24x128xbf16>
    %166 = vector.shape_cast %165 : vector<8x24x128xbf16> to vector<192x128xbf16>
    %cst_174 = arith.constant dense<0.000000e+00> : vector<192x128xf32>
    %167 = tpu.matmul %166, %164, %cst_174 {dimension_numbers = #tpu.dot_dimension_numbers<[1], [0], [0], [1], [0, 0, 1, 1], [], []>} : vector<192x128xbf16>, vector<128x128xbf16>, vector<192x128xf32> -> vector<192x128xf32>
    %168 = arith.addf %163, %167 : vector<192x128xf32>
    %c191_i32_175 = arith.constant 191 : i32
    %169 = tpu.dynamic_rotate %168 by %c191_i32_175 dim 0 : vector<192x128xf32>, i32 -> vector<192x128xf32>
    %c0_176 = arith.constant 0 : index
    %c0_177 = arith.constant 0 : index
    %170 = vector.load %arg4[%c0_176, %c0_177] : memref<1152x128xbf16, #tpu.memory_space<vmem>>, vector<128x128xbf16>
    %c0_178 = arith.constant 0 : index
    %c0_179 = arith.constant 0 : index
    %c0_180 = arith.constant 0 : index
    %171 = vector.load %arg7[%c0_178, %c0_179, %c0_180] : memref<18x24x128xbf16, #tpu.memory_space<vmem>>, vector<8x24x128xbf16>
    %172 = vector.shape_cast %171 : vector<8x24x128xbf16> to vector<192x128xbf16>
    %cst_181 = arith.constant dense<0.000000e+00> : vector<192x128xf32>
    %173 = tpu.matmul %172, %170, %cst_181 {dimension_numbers = #tpu.dot_dimension_numbers<[1], [0], [0], [1], [0, 0, 1, 1], [], []>} : vector<192x128xbf16>, vector<128x128xbf16>, vector<192x128xf32> -> vector<192x128xf32>
    %174 = arith.addf %169, %173 : vector<192x128xf32>
    %c384_182 = arith.constant 384 : index
    %c0_183 = arith.constant 0 : index
    %175 = vector.load %arg4[%c384_182, %c0_183] : memref<1152x128xbf16, #tpu.memory_space<vmem>>, vector<128x128xbf16>
    %c1_184 = arith.constant 1 : index
    %c0_185 = arith.constant 0 : index
    %c0_186 = arith.constant 0 : index
    %176 = vector.load %arg7[%c1_184, %c0_185, %c0_186] : memref<18x24x128xbf16, #tpu.memory_space<vmem>>, vector<8x24x128xbf16>
    %177 = vector.shape_cast %176 : vector<8x24x128xbf16> to vector<192x128xbf16>
    %cst_187 = arith.constant dense<0.000000e+00> : vector<192x128xf32>
    %178 = tpu.matmul %177, %175, %cst_187 {dimension_numbers = #tpu.dot_dimension_numbers<[1], [0], [0], [1], [0, 0, 1, 1], [], []>} : vector<192x128xbf16>, vector<128x128xbf16>, vector<192x128xf32> -> vector<192x128xf32>
    %179 = arith.addf %174, %178 : vector<192x128xf32>
    %c768_188 = arith.constant 768 : index
    %c0_189 = arith.constant 0 : index
    %180 = vector.load %arg4[%c768_188, %c0_189] : memref<1152x128xbf16, #tpu.memory_space<vmem>>, vector<128x128xbf16>
    %c2_190 = arith.constant 2 : index
    %c0_191 = arith.constant 0 : index
    %c0_192 = arith.constant 0 : index
    %181 = vector.load %arg7[%c2_190, %c0_191, %c0_192] : memref<18x24x128xbf16, #tpu.memory_space<vmem>>, vector<8x24x128xbf16>
    %182 = vector.shape_cast %181 : vector<8x24x128xbf16> to vector<192x128xbf16>
    %cst_193 = arith.constant dense<0.000000e+00> : vector<192x128xf32>
    %183 = tpu.matmul %182, %180, %cst_193 {dimension_numbers = #tpu.dot_dimension_numbers<[1], [0], [0], [1], [0, 0, 1, 1], [], []>} : vector<192x128xbf16>, vector<128x128xbf16>, vector<192x128xf32> -> vector<192x128xf32>
    %184 = arith.addf %179, %183 : vector<192x128xf32>
    %c1_i32 = arith.constant 1 : i32
    %185 = tpu.dynamic_rotate %184 by %c1_i32 dim 0 : vector<192x128xf32>, i32 -> vector<192x128xf32>
    %c0_194 = arith.constant 0 : index
    %c1_195 = arith.constant 1 : index
    %c0_196 = arith.constant 0 : index
    %c0_197 = arith.constant 0 : index
    %186 = vector.load %arg1[%c0_194, %c1_195, %c0_196, %c0_197] : memref<1x18x24x128xbf16, #tpu.memory_space<vmem>>, vector<1x8x24x128xbf16>
    %187 = vector.shape_cast %186 : vector<1x8x24x128xbf16> to vector<8x24x128xbf16>
    %188 = vector.shape_cast %187 : vector<8x24x128xbf16> to vector<192x128xbf16>
    %189 = arith.extf %188 : vector<192x128xbf16> to vector<192x128xf32>
    %c191_i32_198 = arith.constant 191 : i32
    %190 = tpu.dynamic_rotate %189 by %c191_i32_198 dim 0 : vector<192x128xf32>, i32 -> vector<192x128xf32>
    %191 = vector.broadcast %1 : vector<1x128xf32> to vector<192x128xf32>
    %192 = arith.addf %185, %191 : vector<192x128xf32>
    %193 = arith.addf %192, %190 : vector<192x128xf32>
    %cst_199 = arith.constant 0.000000e+00 : f32
    %194 = vector.broadcast %cst_199 : f32 to vector<192x128xf32>
    %195 = arith.maximumf %193, %194 : vector<192x128xf32>
    %196 = vector.shape_cast %195 : vector<192x128xf32> to vector<8x24x128xf32>
    %197 = vector.extract_strided_slice %196 {offsets = [0, 0, 0], sizes = [8, 16, 128], strides = [1, 1, 1]} : vector<8x24x128xf32> to vector<8x16x128xf32>
    %198 = arith.truncf %197 : vector<8x16x128xf32> to vector<8x16x128xbf16>
    %c0_200 = arith.constant 0 : index
    %c0_201 = arith.constant 0 : index
    %c0_202 = arith.constant 0 : index
    %c0_203 = arith.constant 0 : index
    %199 = vector.load %arg6[%c0_200, %c0_201, %c0_202, %c0_203] : memref<1x16x16x128xbf16, #tpu.memory_space<vmem>>, vector<1x8x16x128xbf16>
    %200 = vector.shape_cast %199 : vector<1x8x16x128xbf16> to vector<8x16x128xbf16>
    %201 = vector.shape_cast %198 : vector<8x16x128xbf16> to vector<1x8x16x128xbf16>
    tpu.vector_store %arg6[%c0_200, %c0_201, %c0_202, %c0_203], %201 {strides = array<i32>} : memref<1x16x16x128xbf16, #tpu.memory_space<vmem>>, vector<1x8x16x128xbf16>,
    %cst_204 = arith.constant 0.000000e+00 : f32
    %202 = vector.broadcast %cst_204 : f32 to vector<192x128xf32>
    %c256_205 = arith.constant 256 : index
    %c0_206 = arith.constant 0 : index
    %203 = vector.load %arg4[%c256_205, %c0_206] : memref<1152x128xbf16, #tpu.memory_space<vmem>>, vector<128x128xbf16>
    %c8_207 = arith.constant 8 : index
    %c0_208 = arith.constant 0 : index
    %c0_209 = arith.constant 0 : index
    %204 = vector.load %arg7[%c8_207, %c0_208, %c0_209] : memref<18x24x128xbf16, #tpu.memory_space<vmem>>, vector<8x24x128xbf16>
    %205 = vector.shape_cast %204 : vector<8x24x128xbf16> to vector<192x128xbf16>
    %cst_210 = arith.constant dense<0.000000e+00> : vector<192x128xf32>
    %206 = tpu.matmul %205, %203, %cst_210 {dimension_numbers = #tpu.dot_dimension_numbers<[1], [0], [0], [1], [0, 0, 1, 1], [], []>} : vector<192x128xbf16>, vector<128x128xbf16>, vector<192x128xf32> -> vector<192x128xf32>
    %207 = arith.addf %202, %206 : vector<192x128xf32>
    %c640_211 = arith.constant 640 : index
    %c0_212 = arith.constant 0 : index
    %208 = vector.load %arg4[%c640_211, %c0_212] : memref<1152x128xbf16, #tpu.memory_space<vmem>>, vector<128x128xbf16>
    %c9_213 = arith.constant 9 : index
    %c0_214 = arith.constant 0 : index
    %c0_215 = arith.constant 0 : index
    %209 = vector.load %arg7[%c9_213, %c0_214, %c0_215] : memref<18x24x128xbf16, #tpu.memory_space<vmem>>, vector<8x24x128xbf16>
    %210 = vector.shape_cast %209 : vector<8x24x128xbf16> to vector<192x128xbf16>
    %cst_216 = arith.constant dense<0.000000e+00> : vector<192x128xf32>
    %211 = tpu.matmul %210, %208, %cst_216 {dimension_numbers = #tpu.dot_dimension_numbers<[1], [0], [0], [1], [0, 0, 1, 1], [], []>} : vector<192x128xbf16>, vector<128x128xbf16>, vector<192x128xf32> -> vector<192x128xf32>
    %212 = arith.addf %207, %211 : vector<192x128xf32>
    %c1024_217 = arith.constant 1024 : index
    %c0_218 = arith.constant 0 : index
    %213 = vector.load %arg4[%c1024_217, %c0_218] : memref<1152x128xbf16, #tpu.memory_space<vmem>>, vector<128x128xbf16>
    %c10_219 = arith.constant 10 : index
    %c0_220 = arith.constant 0 : index
    %c0_221 = arith.constant 0 : index
    %214 = vector.load %arg7[%c10_219, %c0_220, %c0_221] : memref<18x24x128xbf16, #tpu.memory_space<vmem>>, vector<8x24x128xbf16>
    %215 = vector.shape_cast %214 : vector<8x24x128xbf16> to vector<192x128xbf16>
    %cst_222 = arith.constant dense<0.000000e+00> : vector<192x128xf32>
    %216 = tpu.matmul %215, %213, %cst_222 {dimension_numbers = #tpu.dot_dimension_numbers<[1], [0], [0], [1], [0, 0, 1, 1], [], []>} : vector<192x128xbf16>, vector<128x128xbf16>, vector<192x128xf32> -> vector<192x128xf32>
    %217 = arith.addf %212, %216 : vector<192x128xf32>
    %c191_i32_223 = arith.constant 191 : i32
    %218 = tpu.dynamic_rotate %217 by %c191_i32_223 dim 0 : vector<192x128xf32>, i32 -> vector<192x128xf32>
    %c128_224 = arith.constant 128 : index
    %c0_225 = arith.constant 0 : index
    %219 = vector.load %arg4[%c128_224, %c0_225] : memref<1152x128xbf16, #tpu.memory_space<vmem>>, vector<128x128xbf16>
    %c8_226 = arith.constant 8 : index
    %c0_227 = arith.constant 0 : index
    %c0_228 = arith.constant 0 : index
    %220 = vector.load %arg7[%c8_226, %c0_227, %c0_228] : memref<18x24x128xbf16, #tpu.memory_space<vmem>>, vector<8x24x128xbf16>
    %221 = vector.shape_cast %220 : vector<8x24x128xbf16> to vector<192x128xbf16>
    %cst_229 = arith.constant dense<0.000000e+00> : vector<192x128xf32>
    %222 = tpu.matmul %221, %219, %cst_229 {dimension_numbers = #tpu.dot_dimension_numbers<[1], [0], [0], [1], [0, 0, 1, 1], [], []>} : vector<192x128xbf16>, vector<128x128xbf16>, vector<192x128xf32> -> vector<192x128xf32>
    %223 = arith.addf %218, %222 : vector<192x128xf32>
    %c512_230 = arith.constant 512 : index
    %c0_231 = arith.constant 0 : index
    %224 = vector.load %arg4[%c512_230, %c0_231] : memref<1152x128xbf16, #tpu.memory_space<vmem>>, vector<128x128xbf16>
    %c9_232 = arith.constant 9 : index
    %c0_233 = arith.constant 0 : index
    %c0_234 = arith.constant 0 : index
    %225 = vector.load %arg7[%c9_232, %c0_233, %c0_234] : memref<18x24x128xbf16, #tpu.memory_space<vmem>>, vector<8x24x128xbf16>
    %226 = vector.shape_cast %225 : vector<8x24x128xbf16> to vector<192x128xbf16>
    %cst_235 = arith.constant dense<0.000000e+00> : vector<192x128xf32>
    %227 = tpu.matmul %226, %224, %cst_235 {dimension_numbers = #tpu.dot_dimension_numbers<[1], [0], [0], [1], [0, 0, 1, 1], [], []>} : vector<192x128xbf16>, vector<128x128xbf16>, vector<192x128xf32> -> vector<192x128xf32>
    %228 = arith.addf %223, %227 : vector<192x128xf32>
    %c896_236 = arith.constant 896 : index
    %c0_237 = arith.constant 0 : index
    %229 = vector.load %arg4[%c896_236, %c0_237] : memref<1152x128xbf16, #tpu.memory_space<vmem>>, vector<128x128xbf16>
    %c10_238 = arith.constant 10 : index
    %c0_239 = arith.constant 0 : index
    %c0_240 = arith.constant 0 : index
    %230 = vector.load %arg7[%c10_238, %c0_239, %c0_240] : memref<18x24x128xbf16, #tpu.memory_space<vmem>>, vector<8x24x128xbf16>
    %231 = vector.shape_cast %230 : vector<8x24x128xbf16> to vector<192x128xbf16>
    %cst_241 = arith.constant dense<0.000000e+00> : vector<192x128xf32>
    %232 = tpu.matmul %231, %229, %cst_241 {dimension_numbers = #tpu.dot_dimension_numbers<[1], [0], [0], [1], [0, 0, 1, 1], [], []>} : vector<192x128xbf16>, vector<128x128xbf16>, vector<192x128xf32> -> vector<192x128xf32>
    %233 = arith.addf %228, %232 : vector<192x128xf32>
    %c191_i32_242 = arith.constant 191 : i32
    %234 = tpu.dynamic_rotate %233 by %c191_i32_242 dim 0 : vector<192x128xf32>, i32 -> vector<192x128xf32>
    %c0_243 = arith.constant 0 : index
    %c0_244 = arith.constant 0 : index
    %235 = vector.load %arg4[%c0_243, %c0_244] : memref<1152x128xbf16, #tpu.memory_space<vmem>>, vector<128x128xbf16>
    %c8_245 = arith.constant 8 : index
    %c0_246 = arith.constant 0 : index
    %c0_247 = arith.constant 0 : index
    %236 = vector.load %arg7[%c8_245, %c0_246, %c0_247] : memref<18x24x128xbf16, #tpu.memory_space<vmem>>, vector<8x24x128xbf16>
    %237 = vector.shape_cast %236 : vector<8x24x128xbf16> to vector<192x128xbf16>
    %cst_248 = arith.constant dense<0.000000e+00> : vector<192x128xf32>
    %238 = tpu.matmul %237, %235, %cst_248 {dimension_numbers = #tpu.dot_dimension_numbers<[1], [0], [0], [1], [0, 0, 1, 1], [], []>} : vector<192x128xbf16>, vector<128x128xbf16>, vector<192x128xf32> -> vector<192x128xf32>
    %239 = arith.addf %234, %238 : vector<192x128xf32>
    %c384_249 = arith.constant 384 : index
    %c0_250 = arith.constant 0 : index
    %240 = vector.load %arg4[%c384_249, %c0_250] : memref<1152x128xbf16, #tpu.memory_space<vmem>>, vector<128x128xbf16>
    %c9_251 = arith.constant 9 : index
    %c0_252 = arith.constant 0 : index
    %c0_253 = arith.constant 0 : index
    %241 = vector.load %arg7[%c9_251, %c0_252, %c0_253] : memref<18x24x128xbf16, #tpu.memory_space<vmem>>, vector<8x24x128xbf16>
    %242 = vector.shape_cast %241 : vector<8x24x128xbf16> to vector<192x128xbf16>
    %cst_254 = arith.constant dense<0.000000e+00> : vector<192x128xf32>
    %243 = tpu.matmul %242, %240, %cst_254 {dimension_numbers = #tpu.dot_dimension_numbers<[1], [0], [0], [1], [0, 0, 1, 1], [], []>} : vector<192x128xbf16>, vector<128x128xbf16>, vector<192x128xf32> -> vector<192x128xf32>
    %244 = arith.addf %239, %243 : vector<192x128xf32>
    %c768_255 = arith.constant 768 : index
    %c0_256 = arith.constant 0 : index
    %245 = vector.load %arg4[%c768_255, %c0_256] : memref<1152x128xbf16, #tpu.memory_space<vmem>>, vector<128x128xbf16>
    %c10_257 = arith.constant 10 : index
    %c0_258 = arith.constant 0 : index
    %c0_259 = arith.constant 0 : index
    %246 = vector.load %arg7[%c10_257, %c0_258, %c0_259] : memref<18x24x128xbf16, #tpu.memory_space<vmem>>, vector<8x24x128xbf16>
    %247 = vector.shape_cast %246 : vector<8x24x128xbf16> to vector<192x128xbf16>
    %cst_260 = arith.constant dense<0.000000e+00> : vector<192x128xf32>
    %248 = tpu.matmul %247, %245, %cst_260 {dimension_numbers = #tpu.dot_dimension_numbers<[1], [0], [0], [1], [0, 0, 1, 1], [], []>} : vector<192x128xbf16>, vector<128x128xbf16>, vector<192x128xf32> -> vector<192x128xf32>
    %249 = arith.addf %244, %248 : vector<192x128xf32>
    %c1_i32_261 = arith.constant 1 : i32
    %250 = tpu.dynamic_rotate %249 by %c1_i32_261 dim 0 : vector<192x128xf32>, i32 -> vector<192x128xf32>
    %c0_262 = arith.constant 0 : index
    %c9_263 = arith.constant 9 : index
    %c0_264 = arith.constant 0 : index
    %c0_265 = arith.constant 0 : index
    %251 = vector.load %arg1[%c0_262, %c9_263, %c0_264, %c0_265] : memref<1x18x24x128xbf16, #tpu.memory_space<vmem>>, vector<1x8x24x128xbf16>
    %252 = vector.shape_cast %251 : vector<1x8x24x128xbf16> to vector<8x24x128xbf16>
    %253 = vector.shape_cast %252 : vector<8x24x128xbf16> to vector<192x128xbf16>
    %254 = arith.extf %253 : vector<192x128xbf16> to vector<192x128xf32>
    %c191_i32_266 = arith.constant 191 : i32
    %255 = tpu.dynamic_rotate %254 by %c191_i32_266 dim 0 : vector<192x128xf32>, i32 -> vector<192x128xf32>
    %256 = vector.broadcast %1 : vector<1x128xf32> to vector<192x128xf32>
    %257 = arith.addf %250, %256 : vector<192x128xf32>
    %258 = arith.addf %257, %255 : vector<192x128xf32>
    %cst_267 = arith.constant 0.000000e+00 : f32
    %259 = vector.broadcast %cst_267 : f32 to vector<192x128xf32>
    %260 = arith.maximumf %258, %259 : vector<192x128xf32>
    %261 = vector.shape_cast %260 : vector<192x128xf32> to vector<8x24x128xf32>
    %262 = vector.extract_strided_slice %261 {offsets = [0, 0, 0], sizes = [8, 16, 128], strides = [1, 1, 1]} : vector<8x24x128xf32> to vector<8x16x128xf32>
    %263 = arith.truncf %262 : vector<8x16x128xf32> to vector<8x16x128xbf16>
    %c0_268 = arith.constant 0 : index
    %c8_269 = arith.constant 8 : index
    %c0_270 = arith.constant 0 : index
    %c0_271 = arith.constant 0 : index
    %264 = vector.load %arg6[%c0_268, %c8_269, %c0_270, %c0_271] : memref<1x16x16x128xbf16, #tpu.memory_space<vmem>>, vector<1x8x16x128xbf16>
    %265 = vector.shape_cast %264 : vector<1x8x16x128xbf16> to vector<8x16x128xbf16>
    %266 = vector.shape_cast %263 : vector<8x16x128xbf16> to vector<1x8x16x128xbf16>
    tpu.vector_store %arg6[%c0_268, %c8_269, %c0_270, %c0_271], %266 {strides = array<i32>} : memref<1x16x16x128xbf16, #tpu.memory_space<vmem>>, vector<1x8x16x128xbf16>,
    return
  }
  func.func @transform_0(%arg0: i32) -> (i32, i32, i32, i32) {
    %c0_i32 = arith.constant 0 : i32
    %c0_i32_0 = arith.constant 0 : i32
    %c0_i32_1 = arith.constant 0 : i32
    %c0_i32_2 = arith.constant 0 : i32
    return %arg0, %c0_i32, %c0_i32_0, %c0_i32_1 : i32, i32, i32, i32
  }
  func.func @transform_1(%arg0: i32) -> (i32, i32) {
    %c0_i32 = arith.constant 0 : i32
    %c0_i32_0 = arith.constant 0 : i32
    %c0_i32_1 = arith.constant 0 : i32
    return %c0_i32, %c0_i32_0 : i32, i32
  }
  func.func @transform_2(%arg0: i32) -> (i32, i32) {
    %c0_i32 = arith.constant 0 : i32
    %c0_i32_0 = arith.constant 0 : i32
    %c0_i32_1 = arith.constant 0 : i32
    return %c0_i32, %c0_i32_0 : i32, i32
  }
  func.func @transform_3(%arg0: i32) -> (i32, i32) {
    %c0_i32 = arith.constant 0 : i32
    %c0_i32_0 = arith.constant 0 : i32
    %c0_i32_1 = arith.constant 0 : i32
    return %c0_i32, %c0_i32_0 : i32, i32
  }
  func.func @transform_4(%arg0: i32) -> (i32, i32) {
    %c0_i32 = arith.constant 0 : i32
    %c0_i32_0 = arith.constant 0 : i32
    %c0_i32_1 = arith.constant 0 : i32
    return %c0_i32, %c0_i32_0 : i32, i32
  }
  func.func @transform_5(%arg0: i32) -> (i32, i32, i32, i32) {
    %c0_i32 = arith.constant 0 : i32
    %c0_i32_0 = arith.constant 0 : i32
    %c0_i32_1 = arith.constant 0 : i32
    %c0_i32_2 = arith.constant 0 : i32
    return %arg0, %c0_i32, %c0_i32_0, %c0_i32_1 : i32, i32, i32, i32
  }
}

</mosaic_0001>

<bundles_post_ra>
// kernel: basic_block_mem_forward.1
= control target key start
LH: loop header
LB: loop body
LE: loop exit
PB: predicated region body
PF: predicated region fallthrough
CT: control target
= control target key end

     0   :  { %s13887_s18 = smov 0   ;;  %s17957_s0 = inlined_call_operand.vmem [shape: bf16[2,18,24,128], index: 0, kind: input, shape index: {}]   ;;  %s17958_s1 = inlined_call_operand.vmem [shape: bf16[1152,128], index: 1, kind: input, shape index: {}]   ;;  %s17959_s2 = inlined_call_operand.vmem [shape: f32[1,128], index: 2, kind: input, shape index: {}]   ;;  %s17960_s3 = inlined_call_operand.vmem [shape: bf16[1152,128], index: 3, kind: input, shape index: {}]   ;;  %s17961_s4 = inlined_call_operand.vmem [shape: f32[1,128], index: 4, kind: input, shape index: {}]   ;;  %s17962_s5 = inlined_call_operand.vmem [shape: bf16[2,16,16,128], index: 5, kind: output, shape index: {}]  }
   0x1 LB: > { %s10115_s19 = sadd.s32 4294967295, %s13854_s18   ;;  %p10119_p0 = scmp.ge.s32.totalorder %s13854_s18, 1  ;;  %s13854_s18 = sphi %s13887_s18, %s15_s18  }
   0x2   : > { %p187_p1 = scmp.lt.s32.totalorder %s13854_s18, 3 }
   0x4   : > { %p188_p2 = pnand %p10119_p0, %p187_p1 }
   0x6   : > { %191 = sbr.rel (%p188_p2) target bundleno = 1196 (0x4ac), region = 40 }
   0xb   : > { %v13295_v0 = vld [vmem:[%s17958_s1 + $0x178] sm:$0xff]   ;;  %p215_p3 = scmp.lt.s32.totalorder %s10115_s19, 1  ;;  %v13297_v2 = vld [vmem:[%s17958_s1 + $0x170] sm:$0xff]   ;;  %v13299_v4 = vld [vmem:[%s17958_s1 + $0x168] sm:$0xff]  }
   0xc   : > { %v13296_v1 = vld [vmem:[%s17958_s1 + $0xb8] sm:$0xff]   ;;  %11845 = vmatprep.subr.bf16.mxu0 %v13295_v0  ;;  %v13298_v3 = vld [vmem:[%s17958_s1 + $0xb0] sm:$0xff]   ;;  %v13300_v5 = vld [vmem:[%s17958_s1 + $0xa8] sm:$0xff]  }
   0xd   : > { %11885 = vmatprep.subr.bf16.mxu1 %v13296_v1  ;;  %11846 = vmatpush3.bf16.msra.mxu0 %v13295_v0  ;;  %s18190_s19 = smov (!%p215_p3, %s10115_s19), 1  ;;  %v13301_v6 = vld [vmem:[%s17958_s1 + $0x160] sm:$0xff]   ;;  %v13303_v8 = vld [vmem:[%s17958_s1 + $0x158] sm:$0xff]   ;;  %v13305_v10 = vld [vmem:[%s17958_s1 + $0x150] sm:$0xff]  }
   0xe   : > { %11886 = vmatpush3.bf16.msra.mxu1 %v13296_v1  ;;  %11847 = vmatprep.subr.bf16.mxu0 %v13297_v2  ;;  %v13302_v7 = vld [vmem:[%s17958_s1 + $0xa0] sm:$0xff]   ;;  %s13285_s11 = smul.u32 216, %s18190_s19  ;;  %v13304_v9 = vld [vmem:[%s17958_s1 + $0x98] sm:$0xff]   ;;  %v13306_v11 = vld [vmem:[%s17958_s1 + $0x90] sm:$0xff]   ;;  %s10807_s8 = sshll.u32 %s18190_s19, 7 }
   0xf   : > { %11887 = vmatprep.subr.bf16.mxu1 %v13298_v3  ;;  %v13307_v14 = vld [vmem:[%s17958_s1 + $0x148] sm:$0xff]   ;;  %v13309_v16 = vld [vmem:[%s17958_s1 + $0x140] sm:$0xff]   ;;  %v13315_v19 = vld [vmem:[%s17958_s1 + $0x238] sm:$0xff]   ;;  %s17075_s10 = scalar_lea.vmem %s17962_s5, %s10807_s8 }
  0x10   : > { %s13931_s20 = scalar_lea.vmem %s17957_s0, %s13285_s11  ;;  %v13308_v15 = vld [vmem:[%s17958_s1 + $0x88] sm:$0xff]   ;;  %v13310_v17 = vld [vmem:[%s17958_s1 + $0x80] sm:$0xff]   ;;  %v13316_v20 = vld [vmem:[%s17958_s1 + $0x78] sm:$0xff]  }
  0x11   : > { %11848 = vmatpush3.bf16.msra.mxu0 %v13297_v2  ;;  %v13940_v12 = vld [vmem:[%s13931_s20 + $0xc] sm:$0xff]   ;;  %v13943_v13 = vld [vmem:[%s13931_s20] sm:$0xff]   ;;  %v13960_v18 = vld [vmem:[%s13931_s20 + $0x14] sm:$0xff]  }
  0x12   : > { %11888 = vmatpush3.bf16.msra.mxu1 %v13298_v3  ;;  %11849 = vmatprep.subr.bf16.mxu0 %v13299_v4  ;;  %v13969_v21 = vld [vmem:[%s13931_s20 + $0x8] sm:$0xff]   ;;  %v13317_v22 = vld [vmem:[%s17958_s1 + $0x230] sm:$0xff]   ;;  %v13975_v23 = vld [vmem:[%s13931_s20 + $0x1c] sm:$0xff]  }
  0x13   : > { %11889 = vmatprep.subr.bf16.mxu1 %v13300_v5  ;;  %11861 = vmatprep.mubr.bf16.mxu0 %v13940_v12  ;;  %v13978_v24 = vld [vmem:[%s13931_s20 + $0x10] sm:$0xff]   ;;  %v13986_v26 = vld [vmem:[%s13931_s20 + $0x24] sm:$0xff]   ;;  %v13997_v29 = vld [vmem:[%s13931_s20 + $0x18] sm:$0xff]  }
  0x14   : > { %11901 = vmatprep.mubr.bf16.mxu1 %v13943_v13  ;;  %v13322_v25 = vld [vmem:[%s17958_s1 + $0x70] sm:$0xff]   ;;  %v13323_v27 = vld [vmem:[%s17958_s1 + $0x228] sm:$0xff]   ;;  %v14003_v31 = vld [vmem:[%s13931_s20 + $0x20] sm:$0xff]  }
  0x15   : > { %11850 = vmatpush3.bf16.msra.mxu0 %v13299_v4  ;;  %v13324_v28 = vld [vmem:[%s17958_s1 + $0x68] sm:$0xff]   ;;  %v13329_v32 = vld [vmem:[%s17958_s1 + $0x220] sm:$0xff]   ;;  %v14016_v34 = vld [vmem:[%s13931_s20 + $0x34] sm:$0xff]  }
  0x16   : > { %11890 = vmatpush3.bf16.msra.mxu1 %v13300_v5  ;;  %11851 = vmatprep.subr.bf16.mxu0 %v13301_v6  ;;  %v14000_v30 = vld [vmem:[%s13931_s20 + $0x2c] sm:$0xff]   ;;  %v13330_v33 = vld [vmem:[%s17958_s1 + $0x60] sm:$0xff]   ;;  %v13335_v35 = vld [vmem:[%s17958_s1 + $0x218] sm:$0xff]  }
  0x17   : > { %11891 = vmatprep.subr.bf16.mxu1 %v13302_v7  ;;  %v14022_v36 = vld [vmem:[%s13931_s20 + $0x28] sm:$0xff]   ;;  %v13336_v37 = vld [vmem:[%s17958_s1 + $0x58] sm:$0xff]   ;;  %v14031_v39 = vld [vmem:[%s13931_s20 + $0x30] sm:$0xff]  }
  0x18   : > { %v14028_v38 = vld [vmem:[%s13931_s20 + $0x3c] sm:$0xff]   ;;  %v13337_v40 = vld [vmem:[%s17958_s1 + $0x210] sm:$0xff]   ;;  %v14044_v42 = vld [vmem:[%s13931_s20 + $0x44] sm:$0xff]  }
  0x19   : > { %11852 = vmatpush3.bf16.msra.mxu0 %v13301_v6  ;;  %v13342_v41 = vld [vmem:[%s17958_s1 + $0x50] sm:$0xff]   ;;  %v14047_v43 = vld [vmem:[%s13931_s20 + $0x38] sm:$0xff]   ;;  %v13343_v44 = vld [vmem:[%s17958_s1 + $0x208] sm:$0xff]  }
  0x1a   : > { %11892 = vmatpush3.bf16.msra.mxu1 %v13302_v7  ;;  %11853 = vmatprep.subr.bf16.mxu0 %v13303_v8  ;;  %v13344_v45 = vld [vmem:[%s17958_s1 + $0x48] sm:$0xff]   ;;  %v14059_v47 = vld [vmem:[%s13931_s20 + $0x40] sm:$0xff]   ;;  %v14072_v50 = vld [vmem:[%s13931_s20 + $0x54] sm:$0xff]  }
  0x1b   : > { %11893 = vmatprep.subr.bf16.mxu1 %v13304_v9  ;;  %v14056_v46 = vld [vmem:[%s13931_s20 + $0x4c] sm:$0xff]   ;;  %v13349_v48 = vld [vmem:[%s17958_s1 + $0x200] sm:$0xff]   ;;  %v13353_v52 = vld [vmem:[%s17958_s1 + $0x138] sm:$0xff]  }
  0x1c   : > { %v13350_v49 = vld [vmem:[%s17958_s1 + $0x40] sm:$0xff]   ;;  %v14075_v51 = vld [vmem:[%s13931_s20 + $0x48] sm:$0xff]   ;;  %v13354_v53 = vld [vmem:[%s17958_s1 + $0x1f8] sm:$0xff]  }
  0x1d   : > { %11854 = vmatpush3.bf16.msra.mxu0 %v13303_v8  ;;  %v14084_v54 = vld [vmem:[%s13931_s20 + $0x5c] sm:$0xff]   ;;  %v14087_v55 = vld [vmem:[%s13931_s20 + $0x50] sm:$0xff]   ;;  %v14094_v56 = vld [vmem:[%s13931_s20 + $0x64] sm:$0xff]  }
  0x1e   : > { %11894 = vmatpush3.bf16.msra.mxu1 %v13304_v9  ;;  %11855 = vmatprep.subr.bf16.mxu0 %v13305_v10  ;;  %v14097_v57 = vld [vmem:[%s13931_s20 + $0x58] sm:$0xff]   ;;  %v14107_v59 = vld [vmem:[%s13931_s20 + $0x20] sm:$0xff]   ;;  %v13355_v60 = vld [vmem:[%s17958_s1 + $0x130] sm:$0xff]  }
  0x1f   : > { %11895 = vmatprep.subr.bf16.mxu1 %v13306_v11  ;;  %v14100_v58 = vld [vmem:[%s13931_s20 + $0x18] sm:$0xff]   ;;  %v14113_v61 = vld [vmem:[%s13931_s20 + $0x28] sm:$0xff]   ;;  %v13358_v62 = vld [vmem:[%s17958_s1 + $0x1f0] sm:$0xff]  }
  0x20   : > { %v13359_v63 = vld [vmem:[%s17958_s1 + $0x128] sm:$0xff]   ;;  %v14129_v1 = vld [vmem:[%s13931_s20 + $0x30] sm:$0xff]   ;;  %v14132_v2 = vld [vmem:[%s13931_s20 + $0x38] sm:$0xff]  }
  0x21   : > { %11856 = vmatpush3.bf16.msra.mxu0 %v13305_v10  ;;  %v13360_v0 = vld [vmem:[%s17958_s1 + $0x1e8] sm:$0xff]   ;;  %v13363_v3 = vld [vmem:[%s17958_s1 + $0x120] sm:$0xff]   ;;  %v13367_v5 = vld [vmem:[%s17958_s1 + $0x118] sm:$0xff]  }
  0x22   : > { %11896 = vmatpush3.bf16.msra.mxu1 %v13306_v11  ;;  %11857 = vmatprep.subr.bf16.mxu0 %v13307_v14  ;;  %v13364_v4 = vld [vmem:[%s17958_s1 + $0x1e0] sm:$0xff]   ;;  %v13368_v7 = vld [vmem:[%s17958_s1 + $0x1d8] sm:$0xff]   ;;  %v14154_v8 = vld [vmem:[%s13931_s20 + $0x48] sm:$0xff]  }
  0x23   : > { %11897 = vmatprep.subr.bf16.mxu1 %v13308_v15  ;;  %v14148_v6 = vld [vmem:[%s13931_s20 + $0x40] sm:$0xff]   ;;  %v13369_v9 = vld [vmem:[%s17958_s1 + $0x110] sm:$0xff]  }
  0x24   : > { %v13372_v10 = vld [vmem:[%s17958_s1 + $0x1d0] sm:$0xff]  }
  0x25   : > { %11858 = vmatpush3.bf16.msra.mxu0 %v13307_v14  ;;  %v14167_v11 = vld [vmem:[%s13931_s20 + $0x50] sm:$0xff]   ;;  %v13374_v14 = vld [vmem:[%s17958_s1 + $0x1c8] sm:$0xff]  }
  0x26   : > { %11898 = vmatpush3.bf16.msra.mxu1 %v13308_v15  ;;  %11859 = vmatprep.subr.bf16.mxu0 %v13309_v16  ;;  %v14176_v15 = vld [vmem:[%s13931_s20 + $0x58] sm:$0xff]  }
  0x27   : > { %11899 = vmatprep.subr.bf16.mxu1 %v13310_v17 }
  0x29   : > { %11860 = vmatpush3.bf16.msra.mxu0 %v13309_v16  ;;  %v13377_v16 = vld [vmem:[%s17958_s1 + $0x100] sm:$0xff]  }
  0x2a   : > { %11900 = vmatpush3.bf16.msra.mxu1 %v13310_v17  ;;  %11925 = vmatprep.subr.bf16.mxu0 %v13315_v19  ;;  %v13378_v17 = vld [vmem:[%s17958_s1 + $0x1c0] sm:$0xff]  }
  0x2b   : > { %11965 = vmatprep.subr.bf16.mxu1 %v13316_v20 }
  0x2c   : > { %11862 = vmatmul.mubr.bf16.vlgmr.msra.gmra.mxu0 %v13960_v18 }
  0x2d   : > { %11902 = vmatmul.mubr.bf16.vlgmr.msra.gmra.mxu1 %v13969_v21  ;;  %11926 = vmatpush3.bf16.msra.mxu0 %v13315_v19  ;;  %v14189_v19 = vld [vmem:[%s13931_s20 + $0x60] sm:$0xff]  }
  0x2e   : > { %11966 = vmatpush3.bf16.msra.mxu1 %v13316_v20  ;;  %11927 = vmatprep.subr.bf16.mxu0 %v13317_v22  ;;  %v13379_v20 = vld [vmem:[%s17958_s1 + $0x38] sm:$0xff]  }
  0x2f   : > { %11865 = vmatprep.mubr.bf16.mxu0 %v13975_v23  ;;  %11905 = vmatprep.mubr.bf16.mxu1 %v13978_v24 }
  0x30   : > { %11967 = vmatprep.subr.bf16.mxu1 %v13322_v25 }
  0x31   : > { %11928 = vmatpush3.bf16.msra.mxu0 %v13317_v22  ;;  %v14198_v22 = vld [vmem:[%s13931_s20 + $0x68] sm:$0xff]  }
  0x32   : > { %11968 = vmatpush3.bf16.msra.mxu1 %v13322_v25  ;;  %11929 = vmatprep.subr.bf16.mxu0 %v13323_v27  ;;  %v13381_v25 = vld [vmem:[%s17958_s1 + $0x30] sm:$0xff]  }
  0x33   : > { %11969 = vmatprep.subr.bf16.mxu1 %v13324_v28 }
  0x34   : > { %11866 = vmatmul.mubr.bf16.gmra.mxu0 %v13986_v26 }
  0x35   : > { %11906 = vmatmul.mubr.bf16.gmra.mxu1 %v13997_v29  ;;  %11930 = vmatpush3.bf16.msra.mxu0 %v13323_v27  ;;  %v13382_v27 = vld [vmem:[%s17958_s1 + $0xf0] sm:$0xff]  }
  0x36   : > { %11869 = vmatprep.mubr.bf16.mxu0 %v14000_v30  ;;  %11909 = vmatprep.mubr.bf16.mxu1 %v14003_v31 }
  0x37   : > { %11970 = vmatpush3.bf16.msra.mxu1 %v13324_v28  ;;  %11931 = vmatprep.subr.bf16.mxu0 %v13329_v32  ;;  %v13385_v28 = vld [vmem:[%s17958_s1 + $0x20] sm:$0xff]  }
  0x38   : > { %11971 = vmatprep.subr.bf16.mxu1 %v13330_v33 }
  0x39   : > { %11932 = vmatpush3.bf16.msra.mxu0 %v13329_v32  ;;  %v13391_v32 = vld [vmem:[%s17958_s1 + $0x8] sm:$0xff]  }
  0x3a   : > { %11933 = vmatprep.subr.bf16.mxu0 %v13335_v35 }
  0x3b   : > { %11972 = vmatpush3.bf16.msra.mxu1 %v13330_v33  ;;  %v13392_v33 = vld [vmem:[%s17958_s1 + $0xc8] sm:$0xff]  }
  0x3c   : > { %11870 = vmatmul.mubr.bf16.gmra.mxu0 %v14016_v34  ;;  %11973 = vmatprep.subr.bf16.mxu1 %v13336_v37 }
  0x3d   : > { %11910 = vmatmul.mubr.bf16.gmra.mxu1 %v14022_v36  ;;  %11873 = vmatprep.mubr.bf16.mxu0 %v14028_v38 }
  0x3e   : > { %11913 = vmatprep.mubr.bf16.mxu1 %v14031_v39  ;;  %11934 = vmatpush3.bf16.msra.mxu0 %v13335_v35  ;;  %v13394_v35 = vld [vmem:[%s17958_s1 + $0xc0] sm:$0xff]  }
  0x3f   : > { %11974 = vmatpush3.bf16.msra.mxu1 %v13336_v37  ;;  %11935 = vmatprep.subr.bf16.mxu0 %v13337_v40  ;;  %v13396_v37 = vld [vmem:[%s17958_s1 + $0x178] sm:$0xff]  }
  0x40   : > { %11975 = vmatprep.subr.bf16.mxu1 %v13342_v41 }
  0x42   : > { %11936 = vmatpush3.bf16.msra.mxu0 %v13337_v40  ;;  %v13397_v40 = vld [vmem:[%s17958_s1 + $0x1b0] sm:$0xff]  }
  0x43   : > { %11976 = vmatpush3.bf16.msra.mxu1 %v13342_v41  ;;  %11937 = vmatprep.subr.bf16.mxu0 %v13343_v44  ;;  %v13398_v41 = vld [vmem:[%s17958_s1 + $0x170] sm:$0xff]  }
  0x44   : > { %11874 = vmatmul.mubr.bf16.gmra.mxu0 %v14044_v42  ;;  %11977 = vmatprep.subr.bf16.mxu1 %v13344_v45 }
  0x45   : > { %11914 = vmatmul.mubr.bf16.gmra.mxu1 %v14047_v43  ;;  %11877 = vmatprep.mubr.bf16.mxu0 %v14056_v46 }
  0x46   : > { %11917 = vmatprep.mubr.bf16.mxu1 %v14059_v47  ;;  %11938 = vmatpush3.bf16.msra.mxu0 %v13343_v44  ;;  %v13730_v44 = vld [vmem:[%s13931_s20 + $0x14] sm:$0xff]  }
  0x47   : > { %11978 = vmatpush3.bf16.msra.mxu1 %v13344_v45  ;;  %11939 = vmatprep.subr.bf16.mxu0 %v13349_v48  ;;  %v13731_v45 = vld [vmem:[%s13931_s20 + $0x10] sm:$0xff]  }
  0x48   : > { %11979 = vmatprep.subr.bf16.mxu1 %v13350_v49 }
  0x4a   : > { %11940 = vmatpush3.bf16.msra.mxu0 %v13349_v48  ;;  %v13401_v48 = vld [vmem:[%s17958_s1 + $0x1a0] sm:$0xff]  }
  0x4b   : > { %11980 = vmatpush3.bf16.msra.mxu1 %v13350_v49  ;;  %12005 = vmatprep.subr.bf16.mxu0 %v13353_v52  ;;  %v13402_v49 = vld [vmem:[%s17958_s1 + $0x160] sm:$0xff]  }
  0x4c   : > { %11878 = vmatmul.mubr.bf16.gmra.mxu0 %v14072_v50  ;;  %12045 = vmatprep.subr.bf16.mxu1 %v13354_v53 }
  0x4d   : > { %11918 = vmatmul.mubr.bf16.gmra.mxu1 %v14075_v51  ;;  %11881 = vmatprep.mubr.bf16.mxu0 %v14084_v54 }
  0x4e   : > { %11921 = vmatprep.mubr.bf16.mxu1 %v14087_v55 }
  0x54   : > { %11882 = vmatmul.mubr.bf16.gmra.mxu0 %v14094_v56 }
  0x55   : > { %11922 = vmatmul.mubr.bf16.gmra.mxu1 %v14097_v57  ;;  %11941 = vmatprep.mubr.bf16.mxu0 %v14100_v58 }
  0x56   : > { %11981 = vmatprep.mubr.bf16.mxu1 %v13943_v13  ;;  %v13373_v13 = vld [vmem:[%s17958_s1 + $0x108] sm:$0xff]  }
  0x5c   : > { %11942 = vmatmul.mubr.bf16.vlgmr.msra.gmra.mxu0 %v14107_v59 }
  0x5d   : > { %11982 = vmatmul.mubr.bf16.vlgmr.msra.gmra.mxu1 %v13969_v21  ;;  %12006 = vmatpush3.bf16.msra.mxu0 %v13353_v52  ;;  %v13380_v21 = vld [vmem:[%s17958_s1 + $0xf8] sm:$0xff]   ;;  %v13734_v52 = vld [vmem:[%s13931_s20 + $0x24] sm:$0xff]  }
  0x5e   : > { %12046 = vmatpush3.bf16.msra.mxu1 %v13354_v53  ;;  %12007 = vmatprep.subr.bf16.mxu0 %v13355_v60  ;;  %v13735_v53 = vld [vmem:[%s13931_s20 + $0x20] sm:$0xff]  }
  0x5f   : > { %11945 = vmatprep.mubr.bf16.mxu0 %v14113_v61  ;;  %11985 = vmatprep.mubr.bf16.mxu1 %v13978_v24  ;;  %v14205_v24 = vld [vmem:[%s13931_s20 + $0x70] sm:$0xff]  }
  0x60   : > { %12047 = vmatprep.subr.bf16.mxu1 %v13358_v62 }
  0x61   : > { %12008 = vmatpush3.bf16.msra.mxu0 %v13355_v60  ;;  %v13739_v60 = vld [vmem:[%s13931_s20 + $0x30] sm:$0xff]  }
  0x62   : > { %12048 = vmatpush3.bf16.msra.mxu1 %v13358_v62  ;;  %12009 = vmatprep.subr.bf16.mxu0 %v13359_v63  ;;  %v13740_v62 = vld [vmem:[%s13931_s20 + $0x3c] sm:$0xff]  }
  0x63   : > { %12049 = vmatprep.subr.bf16.mxu1 %v13360_v0 }
  0x64   : > { %11946 = vmatmul.mubr.bf16.gmra.mxu0 %v14129_v1 }
  0x65   : > { %11986 = vmatmul.mubr.bf16.gmra.mxu1 %v13997_v29  ;;  %12010 = vmatpush3.bf16.msra.mxu0 %v13359_v63  ;;  %v13387_v29 = vld [vmem:[%s17958_s1 + $0x18] sm:$0xff]   ;;  %v13408_v63 = vld [vmem:[%s17958_s1 + $0x148] sm:$0xff]  }
  0x66   : > { %11949 = vmatprep.mubr.bf16.mxu0 %v14132_v2  ;;  %11989 = vmatprep.mubr.bf16.mxu1 %v14003_v31  ;;  %v13390_v31 = vld [vmem:[%s17958_s1 + $0xd0] sm:$0xff]  }
  0x67   : > { %12050 = vmatpush3.bf16.msra.mxu1 %v13360_v0  ;;  %12011 = vmatprep.subr.bf16.mxu0 %v13363_v3  ;;  %v13409_v0 = vld [vmem:[%s17958_s1 + $0x180] sm:$0xff]  }
  0x68   : > { %12051 = vmatprep.subr.bf16.mxu1 %v13364_v4 }
  0x69   : > { %12012 = vmatpush3.bf16.msra.mxu0 %v13363_v3  ;;  %v13742_v3 = vld [vmem:[%s13931_s20 + $0x44] sm:$0xff]  }
  0x6a   : > { %12013 = vmatprep.subr.bf16.mxu0 %v13367_v5 }
  0x6b   : > { %12052 = vmatpush3.bf16.msra.mxu1 %v13364_v4  ;;  %v13743_v4 = vld [vmem:[%s13931_s20 + $0x40] sm:$0xff]  }
  0x6c   : > { %11950 = vmatmul.mubr.bf16.gmra.mxu0 %v14148_v6  ;;  %12053 = vmatprep.subr.bf16.mxu1 %v13368_v7 }
  0x6d   : > { %11990 = vmatmul.mubr.bf16.gmra.mxu1 %v14022_v36  ;;  %11953 = vmatprep.mubr.bf16.mxu0 %v14154_v8  ;;  %v13395_v36 = vld [vmem:[%s17958_s1 + $0x1b8] sm:$0xff]  }
  0x6e   : > { %11993 = vmatprep.mubr.bf16.mxu1 %v14031_v39  ;;  %12014 = vmatpush3.bf16.msra.mxu0 %v13367_v5  ;;  %v13728_v39 = vld [vmem:[%s13931_s20 + $0xc] sm:$0xff]   ;;  %v13413_v5 = vld [vmem:[%s17958_s1 + $0xb8] sm:$0xff]  }
  0x6f   : > { %12054 = vmatpush3.bf16.msra.mxu1 %v13368_v7  ;;  %12015 = vmatprep.subr.bf16.mxu0 %v13369_v9  ;;  %v13414_v7 = vld [vmem:[%s17958_s1 + $0x238] sm:$0xff]  }
  0x70   : > { %12055 = vmatprep.subr.bf16.mxu1 %v13372_v10 }
  0x72   : > { %12016 = vmatpush3.bf16.msra.mxu0 %v13369_v9  ;;  %v13746_v9 = vld [vmem:[%s13931_s20 + $0x54] sm:$0xff]  }
  0x73   : > { %12056 = vmatpush3.bf16.msra.mxu1 %v13372_v10  ;;  %12017 = vmatprep.subr.bf16.mxu0 %v13373_v13  ;;  %v13747_v10 = vld [vmem:[%s13931_s20 + $0x50] sm:$0xff]  }
  0x74   : > { %11954 = vmatmul.mubr.bf16.gmra.mxu0 %v14167_v11  ;;  %12057 = vmatprep.subr.bf16.mxu1 %v13374_v14 }
  0x75   : > { %11994 = vmatmul.mubr.bf16.gmra.mxu1 %v14047_v43  ;;  %11957 = vmatprep.mubr.bf16.mxu0 %v14176_v15  ;;  %v13399_v43 = vld [vmem:[%s17958_s1 + $0x1a8] sm:$0xff]  }
  0x76   : > { %11997 = vmatprep.mubr.bf16.mxu1 %v14059_v47  ;;  %12018 = vmatpush3.bf16.msra.mxu0 %v13373_v13  ;;  %v13400_v47 = vld [vmem:[%s17958_s1 + $0x168] sm:$0xff]  }
  0x77   : > { %12058 = vmatpush3.bf16.msra.mxu1 %v13374_v14  ;;  %12019 = vmatprep.subr.bf16.mxu0 %v13377_v16  ;;  %v13411_v13 = vld [vmem:[%s13931_s20 + $0x6c] sm:$0xff]   ;;  %v13749_v14 = vld [vmem:[%s13931_s20 + $0x58] sm:$0xff]  }
  0x78   : > { %12059 = vmatprep.subr.bf16.mxu1 %v13378_v17 }
  0x7a   : > { %12020 = vmatpush3.bf16.msra.mxu0 %v13377_v16  ;;  %v13751_v16 = vld [vmem:[%s13931_s20 + $0x18] sm:$0xff]  }
  0x7b   : > { %12060 = vmatpush3.bf16.msra.mxu1 %v13378_v17  ;;  %12085 = vmatprep.subr.bf16.mxu0 %v13379_v20  ;;  %v13412_v17 = vld [vmem:[%s13931_s20 + $0x74] sm:$0xff]  }
  0x7c   : > { %11958 = vmatmul.mubr.bf16.gmra.mxu0 %v14189_v19  ;;  %12125 = vmatprep.subr.bf16.mxu1 %v13380_v21 }
  0x7d   : > { %11998 = vmatmul.mubr.bf16.gmra.mxu1 %v14075_v51  ;;  %11961 = vmatprep.mubr.bf16.mxu0 %v14198_v22  ;;  %v13403_v51 = vld [vmem:[%s17958_s1 + $0x198] sm:$0xff]  }
  0x7e   : > { %12001 = vmatprep.mubr.bf16.mxu1 %v14087_v55  ;;  %v13404_v55 = vld [vmem:[%s17958_s1 + $0x158] sm:$0xff]  }
  0x84   : > { %11962 = vmatmul.mubr.bf16.gmra.mxu0 %v14205_v24 }
  0x85   : > { %12002 = vmatmul.mubr.bf16.gmra.mxu1 %v14097_v57  ;;  %12021 = vmatprep.mubr.bf16.mxu0 %v13940_v12  ;;  %v13383_v12 = vld [vmem:[%s17958_s1 + $0x28] sm:$0xff]   ;;  %v13406_v57 = vld [vmem:[%s17958_s1 + $0x150] sm:$0xff]  }
  0x86   : > { %12061 = vmatprep.mubr.bf16.mxu1 %v14100_v58  ;;  %v13737_v58 = vld [vmem:[%s13931_s20 + $0x28] sm:$0xff]  }
  0x8c   : > { %12022 = vmatmul.mubr.bf16.vlgmr.msra.gmra.mxu0 %v13960_v18  ;;  %v13384_v18 = vld [vmem:[%s17958_s1 + $0xe8] sm:$0xff]  }
  0x8d   : > { %12062 = vmatmul.mubr.bf16.vlgmr.msra.gmra.mxu1 %v14107_v59  ;;  %12086 = vmatpush3.bf16.msra.mxu0 %v13379_v20  ;;  %v13738_v59 = vld [vmem:[%s13931_s20 + $0x34] sm:$0xff]   ;;  %v13416_v20 = vld [vmem:[%s13931_s20 + $0x7c] sm:$0xff]  }
  0x8e   : > { %12126 = vmatpush3.bf16.msra.mxu1 %v13380_v21  ;;  %12087 = vmatprep.subr.bf16.mxu0 %v13381_v25  ;;  %v13418_v21 = vld [vmem:[%s17958_s1 + $0x230] sm:$0xff]  }
  0x8f   : > { %12025 = vmatprep.mubr.bf16.mxu0 %v13975_v23  ;;  %12065 = vmatprep.mubr.bf16.mxu1 %v14113_v61  ;;  %v13386_v23 = vld [vmem:[%s17958_s1 + $0xe0] sm:$0xff]   ;;  %v13407_v61 = vld [vmem:[%s17958_s1 + $0x188] sm:$0xff]  }
  0x90   : > { %12127 = vmatprep.subr.bf16.mxu1 %v13382_v27 }
  0x91   : > { %12088 = vmatpush3.bf16.msra.mxu0 %v13381_v25  ;;  %v13419_v25 = vld [vmem:[%s17958_s1 + $0xa8] sm:$0xff]  }
  0x92   : > { %12128 = vmatpush3.bf16.msra.mxu1 %v13382_v27  ;;  %12089 = vmatprep.subr.bf16.mxu0 %v13383_v12 }
  0x93   : > { %12129 = vmatprep.subr.bf16.mxu1 %v13384_v18 }
  0x94   : > { %12026 = vmatmul.mubr.bf16.gmra.mxu0 %v13986_v26  ;;  %v13388_v26 = vld [vmem:[%s17958_s1 + $0xd8] sm:$0xff]  }
  0x95   : > { %12066 = vmatmul.mubr.bf16.gmra.mxu1 %v14129_v1  ;;  %12090 = vmatpush3.bf16.msra.mxu0 %v13383_v12  ;;  %v13410_v1 = vld [vmem:[%s17958_s1 + $0x140] sm:$0xff]  }
  0x96   : > { %12029 = vmatprep.mubr.bf16.mxu0 %v14000_v30  ;;  %12069 = vmatprep.mubr.bf16.mxu1 %v14132_v2  ;;  %v13389_v30 = vld [vmem:[%s17958_s1 + $0x10] sm:$0xff]   ;;  %v13741_v2 = vld [vmem:[%s13931_s20 + $0x38] sm:$0xff]  }
  0x97   : > { %12130 = vmatpush3.bf16.msra.mxu1 %v13384_v18  ;;  %12091 = vmatprep.subr.bf16.mxu0 %v13385_v28 }
  0x98   : > { %12131 = vmatprep.subr.bf16.mxu1 %v13386_v23 }
  0x99   : > { %12092 = vmatpush3.bf16.msra.mxu0 %v13385_v28 }
  0x9a   : > { %12093 = vmatprep.subr.bf16.mxu0 %v13387_v29 }
  0x9b   : > { %12132 = vmatpush3.bf16.msra.mxu1 %v13386_v23  ;;  %v13753_v23 = vld [vmem:[%s13931_s20 + $0x28] sm:$0xff]  }
  0x9c   : > { %12030 = vmatmul.mubr.bf16.gmra.mxu0 %v14016_v34  ;;  %12133 = vmatprep.subr.bf16.mxu1 %v13388_v26  ;;  %v13393_v34 = vld [vmem:[%s17958_s1] sm:$0xff]  }
  0x9d   : > { %12070 = vmatmul.mubr.bf16.gmra.mxu1 %v14148_v6  ;;  %12033 = vmatprep.mubr.bf16.mxu0 %v14028_v38  ;;  %v13727_v38 = vld [vmem:[%s13931_s20] sm:$0xff]   ;;  %v13744_v6 = vld [vmem:[%s13931_s20 + $0x4c] sm:$0xff]  }
  0x9e   : > { %12073 = vmatprep.mubr.bf16.mxu1 %v14154_v8  ;;  %12094 = vmatpush3.bf16.msra.mxu0 %v13387_v29  ;;  %v13745_v8 = vld [vmem:[%s13931_s20 + $0x48] sm:$0xff]  }
  0x9f   : > { %12134 = vmatpush3.bf16.msra.mxu1 %v13388_v26  ;;  %12095 = vmatprep.subr.bf16.mxu0 %v13389_v30  ;;  %v13417_v29 = vld [vmem:[%s13931_s20 + $0x84] sm:$0xff]  }
  0xa0   : > { %12135 = vmatprep.subr.bf16.mxu1 %v13390_v31  ;;  %v13420_v26 = vld [vmem:[%s17958_s1 + $0x228] sm:$0xff]  }
  0xa2   : > { %12096 = vmatpush3.bf16.msra.mxu0 %v13389_v30 }
  0xa3   : > { %12136 = vmatpush3.bf16.msra.mxu1 %v13390_v31  ;;  %12097 = vmatprep.subr.bf16.mxu0 %v13391_v32 }
  0xa4   : > { %12034 = vmatmul.mubr.bf16.gmra.mxu0 %v14044_v42  ;;  %12137 = vmatprep.subr.bf16.mxu1 %v13392_v33  ;;  %v13729_v42 = vld [vmem:[%s13931_s20 + $0x8] sm:$0xff]  }
  0xa5   : > { %12074 = vmatmul.mubr.bf16.gmra.mxu1 %v14167_v11  ;;  %12037 = vmatprep.mubr.bf16.mxu0 %v14056_v46  ;;  %v13732_v46 = vld [vmem:[%s13931_s20 + $0x1c] sm:$0xff]  }
  0xa6   : > { %12077 = vmatprep.mubr.bf16.mxu1 %v14176_v15  ;;  %12098 = vmatpush3.bf16.msra.mxu0 %v13391_v32  ;;  %v13748_v11 = vld [vmem:[%s13931_s20 + $0x5c] sm:$0xff]   ;;  %v13750_v15 = vld [vmem:[%s13931_s20 + $0x64] sm:$0xff]   ;;  %v13421_v32 = vld [vmem:[%s13931_s20 + $0x8c] sm:$0xff]  }
  0xa7   : > { %12138 = vmatpush3.bf16.msra.mxu1 %v13392_v33  ;;  %12099 = vmatprep.subr.bf16.mxu0 %v13393_v34 }
  0xa8   : > { %12139 = vmatprep.subr.bf16.mxu1 %v13394_v35 }
  0xaa   : > { %12100 = vmatpush3.bf16.msra.mxu0 %v13393_v34 }
  0xab   : > { %12140 = vmatpush3.bf16.msra.mxu1 %v13394_v35  ;;  %12165 = vmatprep.subr.bf16.mxu0 %v13395_v36 }
  0xac   : > { %12038 = vmatmul.mubr.bf16.gmra.mxu0 %v14072_v50  ;;  %12205 = vmatprep.subr.bf16.mxu1 %v13396_v37  ;;  %v13733_v50 = vld [vmem:[%s13931_s20 + $0x18] sm:$0xff]  }
  0xad   : > { %12078 = vmatmul.mubr.bf16.gmra.mxu1 %v14189_v19  ;;  %12041 = vmatprep.mubr.bf16.mxu0 %v14084_v54  ;;  %v13736_v54 = vld [vmem:[%s13931_s20 + $0x2c] sm:$0xff]  }
  0xae   : > { %12081 = vmatprep.mubr.bf16.mxu1 %v14198_v22  ;;  %v13415_v19 = vld [vmem:[%s17958_s1 + $0xb0] sm:$0xff]  }
  0xb4   : > { %12042 = vmatmul.mubr.bf16.gmra.mxu0 %v14094_v56  ;;  %v13405_v56 = vld [vmem:[%s17958_s1 + $0x190] sm:$0xff]  }
  0xb5   : > { %12082 = vmatmul.mubr.bf16.gmra.mxu1 %v14205_v24  ;;  %12101 = vmatprep.mubr.bf16.mxu0 %v13727_v38  ;;  %v13752_v24 = vld [vmem:[%s13931_s20 + $0x20] sm:$0xff]  }
  0xb6   : > { %12141 = vmatprep.mubr.bf16.mxu1 %v13728_v39  ;;  %v13424_v38 = vld [vmem:[%s17958_s1 + $0x220] sm:$0xff]  }
  0xbc   : > { %12102 = vmatmul.mubr.bf16.vlgmr.msra.gmra.mxu0 %v13729_v42  ;;  %v13427_v42 = vld [vmem:[%s17958_s1 + $0x98] sm:$0xff]  }
  0xbd   : > { %12142 = vmatmul.mubr.bf16.vlgmr.msra.gmra.mxu1 %v13730_v44  ;;  %12166 = vmatpush3.bf16.msra.mxu0 %v13395_v36 }
  0xbe   : > { %12206 = vmatpush3.bf16.msra.mxu1 %v13396_v37  ;;  %12167 = vmatprep.subr.bf16.mxu0 %v13397_v40  ;;  %v13423_v37 = vld [vmem:[%s17958_s1 + $0xa0] sm:$0xff]  }
  0xbf   : > { %12105 = vmatprep.mubr.bf16.mxu0 %v13731_v45  ;;  %12145 = vmatprep.mubr.bf16.mxu1 %v13732_v46  ;;  %v13755_v46 = vld [vmem:[%s13931_s20 + $0x38] sm:$0xff]  }
  0xc0   : > { %12207 = vmatprep.subr.bf16.mxu1 %v13398_v41 }
  0xc1   : > { %12168 = vmatpush3.bf16.msra.mxu0 %v13397_v40 }
  0xc2   : > { %12208 = vmatpush3.bf16.msra.mxu1 %v13398_v41  ;;  %12169 = vmatprep.subr.bf16.mxu0 %v13399_v43  ;;  %v13754_v41 = vld [vmem:[%s13931_s20 + $0x30] sm:$0xff]  }
  0xc3   : > { %12209 = vmatprep.subr.bf16.mxu1 %v13400_v47 }
  0xc4   : > { %12106 = vmatmul.mubr.bf16.gmra.mxu0 %v13733_v50 }
  0xc5   : > { %12146 = vmatmul.mubr.bf16.gmra.mxu1 %v13734_v52  ;;  %12170 = vmatpush3.bf16.msra.mxu0 %v13399_v43  ;;  %v13425_v52 = vld [vmem:[%s13931_s20 + $0x9c] sm:$0xff]  }
  0xc6   : > { %12109 = vmatprep.mubr.bf16.mxu0 %v13735_v53  ;;  %12149 = vmatprep.mubr.bf16.mxu1 %v13736_v54  ;;  %v13429_v54 = vld [vmem:[%s17958_s1 + $0x90] sm:$0xff]  }
  0xc7   : > { %12210 = vmatpush3.bf16.msra.mxu1 %v13400_v47  ;;  %12171 = vmatprep.subr.bf16.mxu0 %v13401_v48 }
  0xc8   : > { %12211 = vmatprep.subr.bf16.mxu1 %v13402_v49 }
  0xc9   : > { %12172 = vmatpush3.bf16.msra.mxu0 %v13401_v48  ;;  %v13422_v48 = vld [vmem:[%s13931_s20 + $0x94] sm:$0xff]  }
  0xca   : > { %12173 = vmatprep.subr.bf16.mxu0 %v13403_v51 }
  0xcb   : > { %12212 = vmatpush3.bf16.msra.mxu1 %v13402_v49  ;;  %v13428_v49 = vld [vmem:[%s17958_s1 + $0x218] sm:$0xff]  }
  0xcc   : > { %12110 = vmatmul.mubr.bf16.gmra.mxu0 %v13737_v58  ;;  %12213 = vmatprep.subr.bf16.mxu1 %v13404_v55 }
  0xcd   : > { %12150 = vmatmul.mubr.bf16.gmra.mxu1 %v13738_v59  ;;  %12113 = vmatprep.mubr.bf16.mxu0 %v13739_v60 }
  0xce   : > { %12153 = vmatprep.mubr.bf16.mxu1 %v13740_v62  ;;  %12174 = vmatpush3.bf16.msra.mxu0 %v13403_v51 }
  0xcf   : > { %12214 = vmatpush3.bf16.msra.mxu1 %v13404_v55  ;;  %12175 = vmatprep.subr.bf16.mxu0 %v13405_v56 }
  0xd0   : > { %12215 = vmatprep.subr.bf16.mxu1 %v13406_v57 }
  0xd2   : > { %12176 = vmatpush3.bf16.msra.mxu0 %v13405_v56 }
  0xd3   : > { %12216 = vmatpush3.bf16.msra.mxu1 %v13406_v57  ;;  %12177 = vmatprep.subr.bf16.mxu0 %v13407_v61  ;;  %v13432_v57 = vld [vmem:[%s17958_s1 + $0x210] sm:$0xff]  }
  0xd4   : > { %12114 = vmatmul.mubr.bf16.gmra.mxu0 %v13741_v2  ;;  %12217 = vmatprep.subr.bf16.mxu1 %v13408_v63 }
  0xd5   : > { %12154 = vmatmul.mubr.bf16.gmra.mxu1 %v13742_v3  ;;  %12117 = vmatprep.mubr.bf16.mxu0 %v13743_v4  ;;  %v13426_v4 = vld [vmem:[%s13931_s20 + $0xa4] sm:$0xff]  }
  0xd6   : > { %12157 = vmatprep.mubr.bf16.mxu1 %v13744_v6  ;;  %12178 = vmatpush3.bf16.msra.mxu0 %v13407_v61  ;;  %v13756_v61 = vld [vmem:[%s13931_s20 + $0x40] sm:$0xff]  }
  0xd7   : > { %12218 = vmatpush3.bf16.msra.mxu1 %v13408_v63  ;;  %12179 = vmatprep.subr.bf16.mxu0 %v13409_v0  ;;  %v13757_v63 = vld [vmem:[%s13931_s20 + $0x48] sm:$0xff]  }
  0xd8   : > { %12219 = vmatprep.subr.bf16.mxu1 %v13410_v1 }
  0xda   : > { %12180 = vmatpush3.bf16.msra.mxu0 %v13409_v0  ;;  %v13433_v0 = vld [vmem:[%s17958_s1 + $0x88] sm:$0xff]  }
  0xdb   : > { %12220 = vmatpush3.bf16.msra.mxu1 %v13410_v1  ;;  %12245 = vmatprep.subr.bf16.mxu0 %v13413_v5 }
  0xdc   : > { %12118 = vmatmul.mubr.bf16.gmra.mxu0 %v13745_v8  ;;  %12285 = vmatprep.subr.bf16.mxu1 %v13414_v7  ;;  %v13430_v8 = vld [vmem:[%s13931_s20 + $0xac] sm:$0xff]  }
  0xdd   : > { %12158 = vmatmul.mubr.bf16.gmra.mxu1 %v13746_v9  ;;  %12121 = vmatprep.mubr.bf16.mxu0 %v13747_v10  ;;  %v13437_v10 = vld [vmem:[%s17958_s1 + $0x80] sm:$0xff]  }
  0xde   : > { %12161 = vmatprep.mubr.bf16.mxu1 %v13748_v11 }
  0xe4   : > { %12122 = vmatmul.mubr.bf16.gmra.mxu0 %v13749_v14  ;;  %v13438_v14 = vld [vmem:[%s17958_s1 + $0x200] sm:$0xff]  }
  0xe5   : > { %12162 = vmatmul.mubr.bf16.gmra.mxu1 %v13750_v15  ;;  %12181 = vmatprep.mubr.bf16.mxu0 %v13751_v16 }
  0xe6   : > { %12221 = vmatprep.mubr.bf16.mxu1 %v13411_v13 }
  0xec   : > { %v11863_v22 = vpop.f32.mrf.mxu0  ;;  %12182 = vmatmul.mubr.bf16.vlgmr.msra.gmra.mxu0 %v13752_v24 }
  0xed   : > { %v11903_v27 = vpop.f32.mrf.mxu1  ;;  %12222 = vmatmul.mubr.bf16.vlgmr.msra.gmra.mxu1 %v13412_v17  ;;  %12246 = vmatpush3.bf16.msra.mxu0 %v13413_v5  ;;  %v13434_v5 = vld [vmem:[%s17958_s1 + $0x208] sm:$0xff]  }
  0xee   : > { %v14367_v12 = vadd.f32 %v11903_v27, %v11863_v22  ;;  %v488_v18 = vpop.f32.mrf.mxu0  ;;  %12286 = vmatpush3.bf16.msra.mxu1 %v13414_v7  ;;  %12247 = vmatprep.subr.bf16.mxu0 %v13415_v19  ;;  %v14440_v22 = vld [vmem:[%s17958_s1 + $0x78] sm:$0xff]  }
  0xef   : > { %v737_v28 = vpop.f32.mrf.mxu1  ;;  %12185 = vmatprep.mubr.bf16.mxu0 %v13753_v23  ;;  %12225 = vmatprep.mubr.bf16.mxu1 %v13416_v20 }
  0xf0   : > { %v14374_v30 = vadd.f32 %v737_v28, %v488_v18  ;;  %v11864_v31 = vpop.f32.mrf.mxu0  ;;  %12287 = vmatprep.subr.bf16.mxu1 %v13418_v21  ;;  %v13431_v18 = vld [vmem:[%s13931_s20 + $0xb4] sm:$0xff]  }
  0xf1   : > { %v11904_v33 = vpop.f32.mrf.mxu1  ;;  %12248 = vmatpush3.bf16.msra.mxu0 %v13415_v19  ;;  %v13758_v19 = vld [vmem:[%s13931_s20 + $0x50] sm:$0xff]   ;;  %v14448_v28 = vld [vmem:[%s17958_s1 + $0x138] sm:$0xff]  }
  0xf2   : > { %v14377_v34 = vadd.f32 %v11904_v33, %v11864_v31  ;;  %v491_v35 = vpop.f32.mrf.mxu0  ;;  %12288 = vmatpush3.bf16.msra.mxu1 %v13418_v21  ;;  %12249 = vmatprep.subr.bf16.mxu0 %v13419_v25  ;;  %v13759_v21 = vld [vmem:[%s13931_s20 + $0x58] sm:$0xff]  }
  0xf3   : > { %v740_v36 = vpop.f32.mrf.mxu1  ;;  %12289 = vmatprep.subr.bf16.mxu1 %v13420_v26 }
  0xf4   : > { %v14385_v39 = vadd.f32 %v740_v36, %v491_v35  ;;  %v11867_v40 = vpop.f32.mrf.mxu0  ;;  %12186 = vmatmul.mubr.bf16.gmra.mxu0 %v13754_v41  ;;  %v13761_v41 = vld [vmem:[%s13931_s20 + $0x68] sm:$0xff]  }
  0xf5   : > { %v11907_v43 = vpop.f32.mrf.mxu1  ;;  %12226 = vmatmul.mubr.bf16.gmra.mxu1 %v13417_v29  ;;  %12250 = vmatpush3.bf16.msra.mxu0 %v13419_v25 }
  0xf6   : > { %v14391_v44 = vadd.f32 %v11907_v43, %v11867_v40  ;;  %v504_v45 = vpop.f32.mrf.mxu0  ;;  %12189 = vmatprep.mubr.bf16.mxu0 %v13755_v46  ;;  %12229 = vmatprep.mubr.bf16.mxu1 %v13421_v32  ;;  %v13436_v46 = vld [vmem:[%s13931_s20 + $0xc4] sm:$0xff]  }
  0xf7   : > { %v753_v47 = vpop.f32.mrf.mxu1  ;;  %12290 = vmatpush3.bf16.msra.mxu1 %v13420_v26  ;;  %12251 = vmatprep.subr.bf16.mxu0 %v13423_v37  ;;  %v13435_v26 = vld [vmem:[%s13931_s20 + $0xbc] sm:$0xff]  }
  0xf8   : > { %v14398_v50 = vadd.f32 %v753_v47, %v504_v45  ;;  %v11868_v51 = vpop.f32.mrf.mxu0  ;;  %12291 = vmatprep.subr.bf16.mxu1 %v13424_v38  ;;  %v14465_v47 = vld [vmem:[%s13931_s20 + $0x60] sm:$0xff]  }
  0xf9   : > { %v11908_v53 = vpop.f32.mrf.mxu1  ;;  %12252 = vmatpush3.bf16.msra.mxu0 %v13423_v37 }
  0xfa   : > { %v14404_v55 = vadd.f32 %v11908_v53, %v11868_v51  ;;  %v507_v56 = vpop.f32.mrf.mxu0  ;;  %12253 = vmatprep.subr.bf16.mxu0 %v13427_v42 }
  0xfb   : > { %v756_v58 = vpop.f32.mrf.mxu1  ;;  %12292 = vmatpush3.bf16.msra.mxu1 %v13424_v38  ;;  %v13760_v38 = vld [vmem:[%s13931_s20 + $0x60] sm:$0xff]  }
  0xfc   : > { %v14409_v59 = vadd.f32 %v756_v58, %v507_v56  ;;  %v11871_v60 = vpop.f32.mrf.mxu0  ;;  %12190 = vmatmul.mubr.bf16.gmra.mxu0 %v13756_v61  ;;  %12293 = vmatprep.subr.bf16.mxu1 %v13428_v49 }
  0xfd   : > { %v11911_v62 = vpop.f32.mrf.mxu1  ;;  %12230 = vmatmul.mubr.bf16.gmra.mxu1 %v13422_v48  ;;  %12193 = vmatprep.mubr.bf16.mxu0 %v13757_v63 }
  0xfe   : > { %v14416_v1 = vadd.f32 %v11911_v62, %v11871_v60  ;;  %v520_v2 = vpop.f32.mrf.mxu0  ;;  %12233 = vmatprep.mubr.bf16.mxu1 %v13425_v52  ;;  %12254 = vmatpush3.bf16.msra.mxu0 %v13427_v42  ;;  %v13440_v52 = vld [vmem:[%s13931_s20 + $0x78] sm:$0xff]   ;;  %v13762_v60 = vld [vmem:[%s13931_s20 + $0x70] sm:$0xff]  }
  0xff   : > { %v769_v3 = vpop.f32.mrf.mxu1  ;;  %12294 = vmatpush3.bf16.msra.mxu1 %v13428_v49  ;;  %12255 = vmatprep.subr.bf16.mxu0 %v13429_v54 }
 0x100   : > { %v14422_v6 = vadd.f32 %v769_v3, %v520_v2  ;;  %v11872_v7 = vpop.f32.mrf.mxu0  ;;  %12295 = vmatprep.subr.bf16.mxu1 %v13432_v57  ;;  %v13442_v3 = vld [vmem:[%s13931_s20 + $0x80] sm:$0xff]  }
 0x101   : > { %v11912_v9 = vpop.f32.mrf.mxu1 }
 0x102   : > { %v14428_v11 = vadd.f32 %v11912_v9, %v11872_v7  ;;  %v523_v13 = vpop.f32.mrf.mxu0  ;;  %12256 = vmatpush3.bf16.msra.mxu0 %v13429_v54  ;;  %v13445_v9 = vld [vmem:[%s17958_s1 + $0x70] sm:$0xff]  }
 0x103   : > { %v772_v15 = vpop.f32.mrf.mxu1  ;;  %12296 = vmatpush3.bf16.msra.mxu1 %v13432_v57  ;;  %12257 = vmatprep.subr.bf16.mxu0 %v13433_v0 }
 0x104   : > { %v14433_v16 = vadd.f32 %v772_v15, %v523_v13  ;;  %v11875_v17 = vpop.f32.mrf.mxu0  ;;  %12194 = vmatmul.mubr.bf16.gmra.mxu0 %v13758_v19  ;;  %12297 = vmatprep.subr.bf16.mxu1 %v13434_v5  ;;  %v13447_v13 = vld [vmem:[%s13931_s20 + $0x88] sm:$0xff]  }
 0x105   : > { %v11915_v20 = vpop.f32.mrf.mxu1  ;;  %12234 = vmatmul.mubr.bf16.gmra.mxu1 %v13426_v4  ;;  %12197 = vmatprep.mubr.bf16.mxu0 %v13759_v21 }
 0x106   : > { %v14442_v24 = vadd.f32 %v11915_v20, %v11875_v17  ;;  %v536_v25 = vpop.f32.mrf.mxu0  ;;  %12237 = vmatprep.mubr.bf16.mxu1 %v13430_v8  ;;  %12258 = vmatpush3.bf16.msra.mxu0 %v13433_v0  ;;  %v14479_v0 = vld [vmem:[%s13931_s20 + $0x68] sm:$0xff]   ;;  %v1170_v8 = vlaneseq  ;;  %v13450_v17 = vld [vmem:[%s17958_s1 + $0x130] sm:$0xff]  }
 0x107   : > { %v785_v27 = vpop.f32.mrf.mxu1  ;;  %12298 = vmatpush3.bf16.msra.mxu1 %v13434_v5  ;;  %12259 = vmatprep.subr.bf16.mxu0 %v13437_v10 }
 0x108   : > { %v14450_v23 = vadd.f32 %v785_v27, %v536_v25  ;;  %v11876_v29 = vpop.f32.mrf.mxu0  ;;  %12299 = vmatprep.subr.bf16.mxu1 %v13438_v14 }
 0x109   : > { %v11916_v31 = vpop.f32.mrf.mxu1 }
 0x10a   : > { %v14453_v32 = vadd.f32 %v11916_v31, %v11876_v29  ;;  %v539_v33 = vpop.f32.mrf.mxu0  ;;  %12260 = vmatpush3.bf16.msra.mxu0 %v13437_v10  ;;  %v14488_v10 = vld [vmem:[%s13931_s20 + $0x70] sm:$0xff]   ;;  %v13451_v29 = vld [vmem:[%s17958_s1 + $0x68] sm:$0xff]   ;;  %v14508_v31 = vld [vmem:[%s13931_s20 + $0x78] sm:$0xff]  }
 0x10b   : > { %v788_v35 = vpop.f32.mrf.mxu1  ;;  %12300 = vmatpush3.bf16.msra.mxu1 %v13438_v14  ;;  %12325 = vmatprep.subr.bf16.mxu0 %v14440_v22 }
 0x10c   : > { %v14456_v36 = vadd.f32 %v788_v35, %v539_v33  ;;  %v11879_v37 = vpop.f32.mrf.mxu0  ;;  %12198 = vmatmul.mubr.bf16.gmra.mxu0 %v13760_v38  ;;  %12365 = vmatprep.subr.bf16.mxu1 %v14448_v28  ;;  %v13452_v35 = vld [vmem:[%s17958_s1 + $0x128] sm:$0xff]   ;;  %v14519_v38 = vld [vmem:[%s13931_s20 + $0x80] sm:$0xff]  }
 0x10d   : > { %v11919_v40 = vpop.f32.mrf.mxu1  ;;  %12238 = vmatmul.mubr.bf16.gmra.mxu1 %v13431_v18  ;;  %12201 = vmatprep.mubr.bf16.mxu0 %v13761_v41  ;;  %v14501_v18 = vshrl.u32 %v1170_v8, 7  ;;  %v13456_v8 = vld [vmem:[%s13931_s20 + $0xa0] sm:$0xff]  }
 0x10e   : > { %v14461_v42 = vadd.f32 %v11919_v40, %v11879_v37  ;;  %v552_v43 = vpop.f32.mrf.mxu0  ;;  %12241 = vmatprep.mubr.bf16.mxu1 %v13435_v26 }
 0x10f   : > { %v801_v45 = vpop.f32.mrf.mxu1  ;;  %18003 = vst [vmem:[#allocation3_spill] sm:$0xff] %v14501_v18  ;;  %vm1172_vm0 = vcmp.lt.s32.totalorder %v14501_v18, 7  ;;  %v15085_v18 = vld [vmem:[%s13931_s20 + $0xb8] sm:$0xff]  }
 0x110   : > { %v14467_v48 = vadd.f32 %v801_v45, %v552_v43  ;;  %v11880_v49 = vpop.f32.mrf.mxu0 }
 0x111   : > { %v11920_v51 = vpop.f32.mrf.mxu1 }
 0x112   : > { %v14470_v53 = vadd.f32 %v11920_v51, %v11880_v49  ;;  %v555_v54 = vpop.f32.mrf.mxu0  ;;  %v13457_v51 = vld [vmem:[%s17958_s1 + $0x60] sm:$0xff]  }
 0x113   : > { %v804_v56 = vpop.f32.mrf.mxu1 }
 0x114   : > { %v14472_v57 = vadd.f32 %v804_v56, %v555_v54  ;;  %v11883_v58 = vpop.f32.mrf.mxu0  ;;  %12202 = vmatmul.mubr.bf16.gmra.mxu0 %v13762_v60  ;;  %v13463_v54 = vld [vmem:[%s17958_s1 + $0x58] sm:$0xff]  }
 0x115   : > { %v11923_v61 = vpop.f32.mrf.mxu1  ;;  %12242 = vmatmul.mubr.bf16.gmra.mxu1 %v13436_v46  ;;  %12261 = vmatprep.mubr.bf16.mxu0 %v14465_v47 }
 0x116   : > { %v14476_v62 = vadd.f32 %v11923_v61, %v11883_v58  ;;  %v568_v63 = vpop.f32.mrf.mxu0  ;;  %12301 = vmatprep.mubr.bf16.mxu1 %v13440_v52 }
 0x117   : > { %v817_v2 = vpop.f32.mrf.mxu1 }
 0x118   : > { %v14482_v4 = vadd.f32 %v817_v2, %v568_v63  ;;  %v11884_v5 = vpop.f32.mrf.mxu0  ;;  %v14541_v2 = vld [vmem:[%s13931_s20 + $0x88] sm:$0xff]  }
 0x119   : > { %v11924_v7 = vpop.f32.mrf.mxu1 }
 0x11a   : > { %v14491_v14 = vadd.f32 %v11924_v7, %v11884_v5  ;;  %v571_v15 = vpop.f32.mrf.mxu0 }
 0x11b   : > { %v820_v19 = vpop.f32.mrf.mxu1 }
 0x11c   : > { %v14496_v20 = vadd.f32 %v820_v19, %v571_v15  ;;  %v11943_v21 = vpop.f32.mrf.mxu0  ;;  %12262 = vmatmul.mubr.bf16.vlgmr.msra.gmra.mxu0 %v14479_v0 }
 0x11d   : > { %v1124_v25 = vadd.f32 %v11943_v21, %v14367_v12  ;;  %v11983_v27 = vpop.f32.mrf.mxu1  ;;  %12302 = vmatmul.mubr.bf16.vlgmr.msra.gmra.mxu1 %v13442_v3  ;;  %12326 = vmatpush3.bf16.msra.mxu0 %v14440_v22  ;;  %v13449_v22 = vld [vmem:[%s13931_s20 + $0x90] sm:$0xff]  }
 0x11e   : > { %v1027_v26 = vpop.f32.mrf.mxu0  ;;  %12366 = vmatpush3.bf16.msra.mxu1 %v14448_v28  ;;  %12327 = vmatprep.subr.bf16.mxu0 %v13445_v9 }
 0x11f   : > { %v14511_v12 = vadd.f32 %v1027_v26, %v14374_v30  ;;  %v1295_v33 = vpop.f32.mrf.mxu1  ;;  %12265 = vmatprep.mubr.bf16.mxu0 %v14488_v10  ;;  %12305 = vmatprep.mubr.bf16.mxu1 %v13447_v13  ;;  %v13454_v30 = vld [vmem:[%s13931_s20 + $0x98] sm:$0xff]   ;;  %v1148_v43 = vrot.slane %v1124_v25, 1  ;;  %v13465_v26 = vld [vmem:[%s17958_s1 + $0x50] sm:$0xff]  }
 0x120   : > { %v11944_v37 = vpop.f32.mrf.mxu0  ;;  %12367 = vmatprep.subr.bf16.mxu1 %v13450_v17  ;;  %v13464_v13 = vld [vmem:[%s17958_s1 + $0x118] sm:$0xff]  }
 0x121   : > { %v1125_v28 = vadd.f32 %v11944_v37, %v14377_v34  ;;  %v11984_v40 = vpop.f32.mrf.mxu1  ;;  %12328 = vmatpush3.bf16.msra.mxu0 %v13445_v9  ;;  %v13458_v34 = vld [vmem:[%s17958_s1 + $0x120] sm:$0xff]   ;;  %v14550_v9 = vld [vmem:[%s13931_s20 + $0x90] sm:$0xff]  }
 0x122   : > { %v1030_v41 = vpop.f32.mrf.mxu0  ;;  %12368 = vmatpush3.bf16.msra.mxu1 %v13450_v17  ;;  %12329 = vmatprep.subr.bf16.mxu0 %v13451_v29 }
 0x123   : > { %v1149_v45 = vrot.slane %v1125_v28, 1  ;;  %v1123_v46 = vadd.f32 %v1030_v41, %v14385_v39  ;;  %v1298_v49 = vpop.f32.mrf.mxu1  ;;  %12369 = vmatprep.subr.bf16.mxu1 %v13452_v35  ;;  %v1146_v39 = vrot.slane %v14511_v12, 1 }
 0x124   : > { %v11947_v52 = vpop.f32.mrf.mxu0  ;;  %12266 = vmatmul.mubr.bf16.gmra.mxu0 %v14508_v31 }
 0x125   : > { %v1147_v56 = vrot.slane %v1123_v46, 1  ;;  %v1128_v58 = vadd.f32 %v11947_v52, %v14391_v44  ;;  %v11987_v60 = vpop.f32.mrf.mxu1  ;;  %12306 = vmatmul.mubr.bf16.gmra.mxu1 %v13449_v22  ;;  %12330 = vmatpush3.bf16.msra.mxu0 %v13451_v29  ;;  %v1193_v61 = vsel %vm1172_vm0, %v1148_v43, %v1149_v45 }
 0x126   : > { %v1043_v63 = vpop.f32.mrf.mxu0  ;;  %12269 = vmatprep.mubr.bf16.mxu0 %v14519_v38  ;;  %12309 = vmatprep.mubr.bf16.mxu1 %v13454_v30  ;;  %v14543_v3 = vadd.f32 %v11983_v27, %v1193_v61  ;;  %v13462_v61 = vld [vmem:[%s13931_s20 + $0xb0] sm:$0xff]  }
 0x127   : > { %v1194_v5 = vsel %vm1172_vm0, %v1147_v56, %v1148_v43  ;;  %v1126_v44 = vadd.f32 %v1043_v63, %v14398_v50  ;;  %v1311_v7 = vpop.f32.mrf.mxu1  ;;  %12370 = vmatpush3.bf16.msra.mxu1 %v13452_v35  ;;  %12331 = vmatprep.subr.bf16.mxu0 %v13457_v51  ;;  %v1195_v15 = vsel %vm1172_vm0, %v1146_v39, %v1147_v56  ;;  %v13460_v50 = vld [vmem:[%s13931_s20 + $0xa8] sm:$0xff]   ;;  %v13470_v35 = vld [vmem:[%s17958_s1 + $0x110] sm:$0xff]   ;;  %v1152_v37 = vrot.slane %v1128_v58, 1  ;;  %v14596_v63 = vld [vmem:[%s13931_s20 + $0xa0] sm:$0xff]  }
 0x128   : > { %v14559_v17 = vadd.f32 %v1298_v49, %v1194_v5  ;;  %v11948_v19 = vpop.f32.mrf.mxu0  ;;  %12371 = vmatprep.subr.bf16.mxu1 %v13458_v34  ;;  %v14562_v21 = vadd.f32 %v1295_v33, %v1195_v15  ;;  %v13472_v5 = vld [vmem:[%s17958_s1 + $0x108] sm:$0xff]  }
 0x129   : > { %v1150_v25 = vrot.slane %v1126_v44, 1  ;;  %v1129_v27 = vadd.f32 %v11948_v19, %v14404_v55  ;;  %v11988_v29 = vpop.f32.mrf.mxu1  ;;  %12332 = vmatpush3.bf16.msra.mxu0 %v13457_v51 }
 0x12a   : > { %v1046_v22 = vpop.f32.mrf.mxu0  ;;  %12333 = vmatprep.subr.bf16.mxu0 %v13463_v54 }
 0x12b   : > { %v1153_v28 = vrot.slane %v1129_v27, 1  ;;  %v1127_v33 = vadd.f32 %v1046_v22, %v14409_v59  ;;  %v1314_v30 = vpop.f32.mrf.mxu1  ;;  %12372 = vmatpush3.bf16.msra.mxu1 %v13458_v34  ;;  %v1192_v55 = vsel %vm1172_vm0, %v1149_v45, %v1150_v25  ;;  %v13471_v59 = vld [vmem:[%s17958_s1 + $0x48] sm:$0xff]  }
 0x12c   : > { %v11951_v41 = vpop.f32.mrf.mxu0  ;;  %12270 = vmatmul.mubr.bf16.gmra.mxu0 %v14541_v2  ;;  %12373 = vmatprep.subr.bf16.mxu1 %v13464_v13  ;;  %v14575_v43 = vadd.f32 %v11984_v40, %v1192_v55  ;;  %v14585_v40 = vld [vmem:[%s13931_s20 + $0x98] sm:$0xff]  }
 0x12d   : > { %v1151_v46 = vrot.slane %v1127_v33, 1  ;;  %v1132_v49 = vadd.f32 %v11951_v41, %v14416_v1  ;;  %v11991_v51 = vpop.f32.mrf.mxu1  ;;  %12310 = vmatmul.mubr.bf16.gmra.mxu1 %v13456_v8  ;;  %12273 = vmatprep.mubr.bf16.mxu0 %v14550_v9  ;;  %v1189_v45 = vsel %vm1172_vm0, %v1152_v37, %v1153_v28  ;;  %v13467_v8 = vld [vmem:[%s13931_s20 + $0xb8] sm:$0xff]  }
 0x12e   : > { %v1059_v34 = vpop.f32.mrf.mxu0  ;;  %12313 = vmatprep.mubr.bf16.mxu1 %v13460_v50  ;;  %12334 = vmatpush3.bf16.msra.mxu0 %v13463_v54  ;;  %v14587_v52 = vadd.f32 %v11987_v60, %v1189_v45  ;;  %v14616_v50 = vld [vmem:[%s17958_s1 + $0x40] sm:$0xff]  }
 0x12f   : > { %v1190_v1 = vsel %vm1172_vm0, %v1151_v46, %v1152_v37  ;;  %v1130_v56 = vadd.f32 %v1059_v34, %v14422_v6  ;;  %v14592_v58 = vpop.f32.mrf.mxu1  ;;  %12374 = vmatpush3.bf16.msra.mxu1 %v13464_v13  ;;  %12335 = vmatprep.subr.bf16.mxu0 %v13465_v26  ;;  %v1191_v54 = vsel %vm1172_vm0, %v1150_v25, %v1151_v46  ;;  %v14621_v25 = vld [vmem:[%s17958_s1 + $0x100] sm:$0xff]  }
 0x130   : > { %v14603_v60 = vadd.f32 %v1314_v30, %v1190_v1  ;;  %v11952_v44 = vpop.f32.mrf.mxu0  ;;  %12375 = vmatprep.subr.bf16.mxu1 %v13470_v35  ;;  %v14606_v6 = vadd.f32 %v1311_v7, %v1191_v54  ;;  %v1156_v7 = vrot.slane %v1132_v49, 1  ;;  %v13469_v1 = vld [vmem:[%s13931_s20 + $0xc0] sm:$0xff]  }
 0x131   : > { %v1154_v15 = vrot.slane %v1130_v56, 1  ;;  %v14609_v13 = vadd.f32 %v11952_v44, %v14428_v11  ;;  %v14611_v19 = vpop.f32.mrf.mxu1  ;;  %v14659_v56 = vld [vmem:[%s13931_s20 + $0xb0] sm:$0xff]  }
 0x132   : > { %v1062_v27 = vpop.f32.mrf.mxu0  ;;  %12336 = vmatpush3.bf16.msra.mxu0 %v13465_v26 }
 0x133   : > { %v1157_v22 = vrot.slane %v14609_v13, 1  ;;  %v1131_v11 = vadd.f32 %v1062_v27, %v14433_v16  ;;  %v1330_v37 = vpop.f32.mrf.mxu1  ;;  %12376 = vmatpush3.bf16.msra.mxu1 %v13470_v35  ;;  %12337 = vmatprep.subr.bf16.mxu0 %v13471_v59  ;;  %v1188_v33 = vsel %vm1172_vm0, %v1153_v28, %v1154_v15  ;;  %v14678_v27 = vld [vmem:[%s13931_s20 + $0xc8] sm:$0xff]  }
 0x134   : > { %v11955_v30 = vpop.f32.mrf.mxu0  ;;  %12274 = vmatmul.mubr.bf16.gmra.mxu0 %v14585_v40  ;;  %12377 = vmatprep.subr.bf16.mxu1 %v13472_v5  ;;  %v14628_v26 = vadd.f32 %v11988_v29, %v1188_v33  ;;  %v14641_v29 = vld [vmem:[%s13931_s20 + $0xa8] sm:$0xff]  }
 0x135   : > { %v1155_v55 = vrot.slane %v1131_v11, 1  ;;  %v14631_v41 = vadd.f32 %v11955_v30, %v14442_v24  ;;  %v14633_v16 = vpop.f32.mrf.mxu1  ;;  %12314 = vmatmul.mubr.bf16.gmra.mxu1 %v13462_v61  ;;  %12277 = vmatprep.mubr.bf16.mxu0 %v14596_v63  ;;  %v1185_v35 = vsel %vm1172_vm0, %v1156_v7, %v1157_v22  ;;  %v14646_v24 = vld [vmem:[%s17958_s1 + $0x1f8] sm:$0xff]   ;;  %v13856_v61 = vmov 0  }
 0x136   : > { %v1075_v28 = vpop.f32.mrf.mxu0  ;;  %12317 = vmatprep.mubr.bf16.mxu1 %v13467_v8  ;;  %12338 = vmatpush3.bf16.msra.mxu0 %v13471_v59  ;;  %v14648_v46 = vadd.f32 %v11991_v51, %v1185_v35  ;;  %v14665_v59 = vld [vmem:[%s17958_s1 + $0x38] sm:$0xff]   ;;  %228 = vst [vmem:[#allocation2] sm:$0xf] %v13856_v61  ;;  %229 = vst [vmem:[#allocation2 + $0x4] sm:$0xf] %v13856_v61 }
 0x137   : > { %v1186_v49 = vsel %vm1172_vm0, %v1155_v55, %v1156_v7  ;;  %v14653_v45 = vadd.f32 %v1075_v28, %v14450_v23  ;;  %v14655_v34 = vpop.f32.mrf.mxu1  ;;  %12378 = vmatpush3.bf16.msra.mxu1 %v13472_v5  ;;  %12339 = vmatprep.subr.bf16.mxu0 %v14616_v50  ;;  %v1187_v51 = vsel %vm1172_vm0, %v1154_v15, %v1155_v55  ;;  %v1160_v11 = vrot.slane %v14631_v41, 1  ;;  %v14706_v28 = vld [vmem:[%s13931_s20 + $0xb8] sm:$0xff]  }
 0x138   : > { %230 = vst [vmem:[#allocation2 + $0x8] sm:$0xf] %v13856_v61  ;;  %232 = vst [vmem:[#allocation2 + $0xcc] sm:$0xf] %v13856_v61  ;;  %v14669_v23 = vadd.f32 %v1330_v37, %v1186_v49  ;;  %v11956_v5 = vpop.f32.mrf.mxu0  ;;  %12379 = vmatprep.subr.bf16.mxu1 %v14621_v25  ;;  %v14673_v54 = vadd.f32 %v14592_v58, %v1187_v51 }
 0x139   : > { %233 = vst [vmem:[#allocation2 + $0xd0] sm:$0xf] %v13856_v61  ;;  %234 = vst [vmem:[#allocation2 + $0xd4] sm:$0xf] %v13856_v61  ;;  %v1158_v44 = vrot.slane %v14653_v45, 1  ;;  %v1137_v8 = vadd.f32 %v11956_v5, %v14453_v32  ;;  %v11996_v15 = vpop.f32.mrf.mxu1 }
 0x13a   : > { %236 = vst [vmem:[#allocation2 + $0x14] sm:$0xf] %v13856_v61  ;;  %237 = vst [vmem:[#allocation2 + $0x20] sm:$0xf] %v13856_v61  ;;  %v1078_v7 = vpop.f32.mrf.mxu0  ;;  %12340 = vmatpush3.bf16.msra.mxu0 %v14616_v50 }
 0x13b   : > { %238 = vst [vmem:[#allocation2 + $0x2c] sm:$0xf] %v13856_v61  ;;  %239 = vst [vmem:[#allocation2 + $0x38] sm:$0xf] %v13856_v61  ;;  %v1161_v37 = vrot.slane %v1137_v8, 1  ;;  %v1135_v33 = vadd.f32 %v1078_v7, %v14456_v36  ;;  %v1346_v30 = vpop.f32.mrf.mxu1  ;;  %12380 = vmatpush3.bf16.msra.mxu1 %v14621_v25  ;;  %12405 = vmatprep.subr.bf16.mxu0 %v14646_v24  ;;  %v1184_v32 = vsel %vm1172_vm0, %v1157_v22, %v1158_v44  ;;  %v14717_v8 = vld [vmem:[%s13931_s20 + $0xd0] sm:$0xff]  }
 0x13c   : > { %240 = vst [vmem:[#allocation2 + $0x44] sm:$0xf] %v13856_v61  ;;  %241 = vst [vmem:[#allocation2 + $0x50] sm:$0xf] %v13856_v61  ;;  %v11959_v58 = vpop.f32.mrf.mxu0  ;;  %12278 = vmatmul.mubr.bf16.gmra.mxu0 %v14641_v29  ;;  %12445 = vmatprep.subr.bf16.mxu1 %v14665_v59  ;;  %v14692_v50 = vadd.f32 %v14611_v19, %v1184_v32 }
 0x13d   : > { %242 = vst [vmem:[#allocation2 + $0x5c] sm:$0xf] %v13856_v61  ;;  %243 = vst [vmem:[#allocation2 + $0x68] sm:$0xf] %v13856_v61  ;;  %v1159_v36 = vrot.slane %v1135_v33, 1  ;;  %v1140_v55 = vadd.f32 %v11959_v58, %v14461_v42  ;;  %v11999_v25 = vpop.f32.mrf.mxu1  ;;  %12318 = vmatmul.mubr.bf16.gmra.mxu1 %v13469_v1  ;;  %12281 = vmatprep.mubr.bf16.mxu0 %v14659_v56  ;;  %v1181_v13 = vsel %vm1172_vm0, %v1160_v11, %v1161_v37 }
 0x13e   : > { %244 = vst [vmem:[#allocation2 + $0x74] sm:$0xf] %v13856_v61  ;;  %245 = vst [vmem:[#allocation2 + $0x80] sm:$0xf] %v13856_v61  ;;  %v1091_v22 = vpop.f32.mrf.mxu0  ;;  %12321 = vmatprep.mubr.bf16.mxu1 %v14678_v27  ;;  %v14700_v41 = vadd.f32 %v14633_v16, %v1181_v13  ;;  %v14731_v13 = vld [vmem:[%s13931_s20 + $0x6c] sm:$0xff]  }
 0x13f   : > { %246 = vst [vmem:[#allocation2 + $0x8c] sm:$0xf] %v13856_v61  ;;  %247 = vst [vmem:[#allocation2 + $0x98] sm:$0xf] %v13856_v61  ;;  %v1182_v19 = vsel %vm1172_vm0, %v1159_v36, %v1160_v11  ;;  %v1138_v35 = vadd.f32 %v1091_v22, %v14467_v48  ;;  %v1359_v42 = vpop.f32.mrf.mxu1  ;;  %v1183_v49 = vsel %vm1172_vm0, %v1158_v44, %v1159_v36  ;;  %v1164_v48 = vrot.slane %v1140_v55, 1 }
 0x140   : > { %248 = vst [vmem:[#allocation2 + $0xa4] sm:$0xf] %v13856_v61  ;;  %249 = vst [vmem:[#allocation2 + $0xb0] sm:$0xf] %v13856_v61  ;;  %v14710_v45 = vadd.f32 %v1346_v30, %v1182_v19  ;;  %v11960_v1 = vpop.f32.mrf.mxu0  ;;  %v14713_v51 = vadd.f32 %v14655_v34, %v1183_v49 }
 0x141   : > { %250 = vst [vmem:[#allocation2 + $0xbc] sm:$0xf] %v13856_v61  ;;  %251 = vst [vmem:[#allocation2 + $0xc8] sm:$0xf] %v13856_v61  ;;  %v1141_v16 = vadd.f32 %v11960_v1, %v14470_v53  ;;  %v12000_v5 = vpop.f32.mrf.mxu1 }
 0x142   : > { %235 = vst [vmem:[#allocation2 + $0x8] sm:$0xf] %v13856_v61  ;;  %252 = vst [vmem:[#allocation2 + $0xd4] sm:$0xf] %v13856_v61  ;;  %v1162_v61 = vrot.slane %v1138_v35, 1  ;;  %v1094_v7 = vpop.f32.mrf.mxu0 }
 0x143   : > { %v1165_v11 = vrot.slane %v1141_v16, 1  ;;  %v1139_v33 = vadd.f32 %v1094_v7, %v14472_v57  ;;  %v1362_v32 = vpop.f32.mrf.mxu1 }
 0x144   : > { %v1180_v44 = vsel %vm1172_vm0, %v1161_v37, %v1162_v61  ;;  %v11963_v30 = vpop.f32.mrf.mxu0  ;;  %12282 = vmatmul.mubr.bf16.gmra.mxu0 %v14706_v28 }
 0x145   : > { %v14723_v34 = vadd.f32 %v11996_v15, %v1180_v44  ;;  %v1163_v58 = vrot.slane %v1139_v33, 1  ;;  %v1144_v53 = vadd.f32 %v11963_v30, %v14476_v62  ;;  %v12003_v36 = vpop.f32.mrf.mxu1  ;;  %12322 = vmatmul.mubr.bf16.gmra.mxu1 %v14717_v8  ;;  %12341 = vmatprep.mubr.bf16.mxu0 %v14465_v47  ;;  %v1177_v57 = vsel %vm1172_vm0, %v1164_v48, %v1165_v11 }
 0x146   : > { %v1107_v55 = vpop.f32.mrf.mxu0  ;;  %12381 = vmatprep.mubr.bf16.mxu1 %v14731_v13  ;;  %v14734_v37 = vadd.f32 %v11999_v25, %v1177_v57  ;;  %v13481_v25 = vld [vmem:[%s17958_s1 + $0x1f0] sm:$0xff]  }
 0x147   : > { %v1178_v15 = vsel %vm1172_vm0, %v1163_v58, %v1164_v48  ;;  %v1142_v62 = vadd.f32 %v1107_v55, %v14482_v4  ;;  %v1375_v22 = vpop.f32.mrf.mxu1  ;;  %v1179_v19 = vsel %vm1172_vm0, %v1162_v61, %v1163_v58  ;;  %v1168_v4 = vrot.slane %v1144_v53, 1  ;;  %v14764_v55 = vld [vmem:[%s13931_s20 + $0x74] sm:$0xff]  }
 0x148   : > { %v14741_v47 = vadd.f32 %v1362_v32, %v1178_v15  ;;  %v11964_v35 = vpop.f32.mrf.mxu0  ;;  %v14743_v49 = vadd.f32 %v1359_v42, %v1179_v19  ;;  %v13482_v42 = vld [vmem:[%s17958_s1 + $0x30] sm:$0xff]   ;;  %v14783_v19 = vld [vmem:[%s13931_s20 + $0x7c] sm:$0xff]  }
 0x149   : > { %v1166_v1 = vrot.slane %v1142_v62, 1  ;;  %v1145_v16 = vadd.f32 %v11964_v35, %v14491_v14  ;;  %v12004_v7 = vpop.f32.mrf.mxu1 }
 0x14a   : > { %v1110_v48 = vpop.f32.mrf.mxu0 }
 0x14b   : > { %v1169_v33 = vrot.slane %v1145_v16, 1  ;;  %v1143_v44 = vadd.f32 %v1110_v48, %v14496_v20  ;;  %v1378_v61 = vpop.f32.mrf.mxu1  ;;  %v1176_v32 = vsel %vm1172_vm0, %v1165_v11, %v1166_v1 }
 0x14c   : > { %v12023_v14 = vpop.f32.mrf.mxu0  ;;  %12342 = vmatmul.mubr.bf16.vlgmr.msra.gmra.mxu0 %v14479_v0  ;;  %v14756_v30 = vadd.f32 %v12000_v5, %v1176_v32  ;;  %v13483_v0 = vld [vmem:[%s17958_s1 + $0x1e8] sm:$0xff]  }
 0x14d   : > { %v1196_v58 = vsel %vm1172_vm0, %v1169_v33, %v1146_v39  ;;  %v1167_v53 = vrot.slane %v1143_v44, 1  ;;  %v1609_v20 = vadd.f32 %v12023_v14, %v14543_v3  ;;  %v12063_v57 = vpop.f32.mrf.mxu1  ;;  %12382 = vmatmul.mubr.bf16.vlgmr.msra.gmra.mxu1 %v14764_v55  ;;  %12406 = vmatpush3.bf16.msra.mxu0 %v14646_v24  ;;  %v1173_v12 = vsel %vm1172_vm0, %v1168_v4, %v1169_v33 }
 0x14e   : > { %v14773_v5 = vadd.f32 %v12004_v7, %v1196_v58  ;;  %v1512_v39 = vpop.f32.mrf.mxu0  ;;  %12446 = vmatpush3.bf16.msra.mxu1 %v14665_v59  ;;  %12407 = vmatprep.subr.bf16.mxu0 %v13481_v25  ;;  %v14776_v3 = vadd.f32 %v12003_v36, %v1173_v12  ;;  %v13484_v59 = vld [vmem:[%s17958_s1 + $0x28] sm:$0xff]   ;;  %v13487_v58 = vld [vmem:[%s17958_s1 + $0x1d8] sm:$0xff]  }
 0x14f   : > { %v1174_v11 = vsel %vm1172_vm0, %v1167_v53, %v1168_v4  ;;  %v1826_v15 = vadd.f32 %v12063_v57, %v1609_v20  ;;  %v1607_v24 = vadd.f32 %v1512_v39, %v14562_v21  ;;  %v1729_v62 = vpop.f32.mrf.mxu1  ;;  %12345 = vmatprep.mubr.bf16.mxu0 %v14488_v10  ;;  %12385 = vmatprep.mubr.bf16.mxu1 %v14783_v19  ;;  %v14814_v20 = vld [vmem:[%s13931_s20 + $0x8c] sm:$0xff]  }
 0x150   : > { %v14789_v35 = vadd.f32 %v1378_v61, %v1174_v11  ;;  %v12024_v36 = vpop.f32.mrf.mxu0  ;;  %12447 = vmatprep.subr.bf16.mxu1 %v13482_v42  ;;  %v1175_v16 = vsel %vm1172_vm0, %v1166_v1, %v1167_v53  ;;  %v13485_v1 = vld [vmem:[%s17958_s1 + $0x1e0] sm:$0xff]  }
 0x151   : > { %v1824_v7 = vadd.f32 %v1729_v62, %v1607_v24  ;;  %v1610_v21 = vadd.f32 %v12024_v36, %v14575_v43  ;;  %v12064_v48 = vpop.f32.mrf.mxu1  ;;  %12408 = vmatpush3.bf16.msra.mxu0 %v13481_v25  ;;  %v14794_v10 = vadd.f32 %v1375_v22, %v1175_v16  ;;  %v13486_v43 = vld [vmem:[%s17958_s1 + $0x20] sm:$0xff]   ;;  %v1850_v25 = vrot.slane %v1826_v15, 1  ;;  %v13489_v62 = vld [vmem:[%s17958_s1 + $0x1d0] sm:$0xff]  }
 0x152   : > { %v1515_v4 = vpop.f32.mrf.mxu0  ;;  %12448 = vmatpush3.bf16.msra.mxu1 %v13482_v42  ;;  %12409 = vmatprep.subr.bf16.mxu0 %v13483_v0  ;;  %v13490_v16 = vld [vmem:[%s17958_s1 + $0x10] sm:$0xff]  }
 0x153   : > { %v1827_v33 = vadd.f32 %v12064_v48, %v1610_v21  ;;  %v1608_v44 = vadd.f32 %v1515_v4, %v14559_v17  ;;  %v1732_v61 = vpop.f32.mrf.mxu1  ;;  %12449 = vmatprep.subr.bf16.mxu1 %v13484_v59  ;;  %v14806_v17 = vld [vmem:[%s13931_s20 + $0x84] sm:$0xff]  }
 0x154   : > { %v12027_v22 = vpop.f32.mrf.mxu0  ;;  %12346 = vmatmul.mubr.bf16.gmra.mxu0 %v14508_v31  ;;  %v1848_v31 = vrot.slane %v1824_v7, 1 }
 0x155   : > { %v1825_v42 = vadd.f32 %v1732_v61, %v1608_v44  ;;  %v1613_v32 = vadd.f32 %v12027_v22, %v14587_v52  ;;  %v12067_v14 = vpop.f32.mrf.mxu1  ;;  %12386 = vmatmul.mubr.bf16.gmra.mxu1 %v14806_v17  ;;  %12410 = vmatpush3.bf16.msra.mxu0 %v13483_v0  ;;  %v13488_v0 = vld [vmem:[%s17958_s1 + $0x18] sm:$0xff]  }
 0x156   : > { %v1528_v53 = vpop.f32.mrf.mxu0  ;;  %12349 = vmatprep.mubr.bf16.mxu0 %v14519_v38  ;;  %12389 = vmatprep.mubr.bf16.mxu1 %v14814_v20 }
 0x157   : > { %v1849_v57 = vrot.slane %v1825_v42, 1  ;;  %v1830_v52 = vadd.f32 %v12067_v14, %v1613_v32  ;;  %v1611_v12 = vadd.f32 %v1528_v53, %v14606_v6  ;;  %v1745_v39 = vpop.f32.mrf.mxu1  ;;  %12450 = vmatpush3.bf16.msra.mxu1 %v13484_v59  ;;  %12411 = vmatprep.subr.bf16.mxu0 %v13485_v1  ;;  %v1851_v59 = vrot.slane %v1827_v33, 1  ;;  %v14840_v32 = vld [vmem:[%s13931_s20 + $0x94] sm:$0xff]  }
 0x158   : > { %v12028_v11 = vpop.f32.mrf.mxu0  ;;  %12451 = vmatprep.subr.bf16.mxu1 %v13486_v43 }
 0x159   : > { %v1828_v15 = vadd.f32 %v1745_v39, %v1611_v12  ;;  %v1614_v38 = vadd.f32 %v12028_v11, %v14628_v26  ;;  %v12068_v24 = vpop.f32.mrf.mxu1  ;;  %12412 = vmatpush3.bf16.msra.mxu0 %v13485_v1  ;;  %v14827_v6 = vsel %vm1172_vm0, %v1848_v31, %v1849_v57  ;;  %v14834_v26 = vsel %vm1172_vm0, %v1849_v57, %v1850_v25  ;;  %v14852_v25 = vld [vmem:[%s13931_s20 + $0x9c] sm:$0xff]  }
 0x15a   : > { %v1531_v36 = vpop.f32.mrf.mxu0  ;;  %12413 = vmatprep.subr.bf16.mxu0 %v13487_v58  ;;  %v1854_v7 = vrot.slane %v1830_v52, 1 }
 0x15b   : > { %v1852_v21 = vrot.slane %v1828_v15, 1  ;;  %v1831_v48 = vadd.f32 %v12068_v24, %v1614_v38  ;;  %v1612_v4 = vadd.f32 %v1531_v36, %v14603_v60  ;;  %v1748_v44 = vpop.f32.mrf.mxu1  ;;  %12452 = vmatpush3.bf16.msra.mxu1 %v13486_v43  ;;  %v13491_v60 = vld [vmem:[%s17958_s1 + $0x1c8] sm:$0xff]  }
 0x15c   : > { %v12031_v33 = vpop.f32.mrf.mxu0  ;;  %12350 = vmatmul.mubr.bf16.gmra.mxu0 %v14541_v2  ;;  %12453 = vmatprep.subr.bf16.mxu1 %v13488_v0 }
 0x15d   : > { %v1855_v61 = vrot.slane %v1831_v48, 1  ;;  %v1829_v1 = vadd.f32 %v1748_v44, %v1612_v4  ;;  %v1617_v22 = vadd.f32 %v12031_v33, %v14648_v46  ;;  %v12071_v42 = vpop.f32.mrf.mxu1  ;;  %12390 = vmatmul.mubr.bf16.gmra.mxu1 %v14840_v32  ;;  %12353 = vmatprep.mubr.bf16.mxu0 %v14550_v9  ;;  %v14849_v43 = vsel %vm1172_vm0, %v1851_v59, %v1852_v21  ;;  %v13492_v9 = vld [vmem:[%s17958_s1 + $0x8] sm:$0xff]  }
 0x15e   : > { %v1544_v2 = vpop.f32.mrf.mxu0  ;;  %12393 = vmatprep.mubr.bf16.mxu1 %v14852_v25  ;;  %12414 = vmatpush3.bf16.msra.mxu0 %v13487_v58  ;;  %v14878_v48 = vld [vmem:[%s13931_s20 + $0xa4] sm:$0xff]   ;;  %v14887_v44 = vld [vmem:[%s13931_s20 + $0xac] sm:$0xff]  }
 0x15f   : > { %v1853_v46 = vrot.slane %v1829_v1, 1  ;;  %v1834_v14 = vadd.f32 %v12071_v42, %v1617_v22  ;;  %v1615_v53 = vadd.f32 %v1544_v2, %v14673_v54  ;;  %v1761_v31 = vpop.f32.mrf.mxu1  ;;  %12454 = vmatpush3.bf16.msra.mxu1 %v13488_v0  ;;  %12415 = vmatprep.subr.bf16.mxu0 %v13489_v62  ;;  %v14861_v57 = vsel %vm1172_vm0, %v1854_v7, %v1855_v61 }
 0x160   : > { %v12032_v52 = vpop.f32.mrf.mxu0  ;;  %12455 = vmatprep.subr.bf16.mxu1 %v13490_v16 }
 0x161   : > { %v1832_v12 = vadd.f32 %v1761_v31, %v1615_v53  ;;  %v1618_v58 = vadd.f32 %v12032_v52, %v14692_v50  ;;  %v12072_v39 = vpop.f32.mrf.mxu1  ;;  %v14866_v54 = vsel %vm1172_vm0, %v1852_v21, %v1853_v46  ;;  %v13493_v50 = vld [vmem:[%s17958_s1 + $0x1c0] sm:$0xff]   ;;  %v1858_v59 = vrot.slane %v1834_v14, 1 }
 0x162   : > { %v1547_v0 = vpop.f32.mrf.mxu0  ;;  %12416 = vmatpush3.bf16.msra.mxu0 %v13489_v62  ;;  %v13494_v62 = vld [vmem:[%s17958_s1] sm:$0xff]  }
 0x163   : > { %v1856_v11 = vrot.slane %v1832_v12, 1  ;;  %v1835_v15 = vadd.f32 %v12072_v39, %v1618_v58  ;;  %v1616_v38 = vadd.f32 %v1547_v0, %v14669_v23  ;;  %v1764_v24 = vpop.f32.mrf.mxu1  ;;  %12456 = vmatpush3.bf16.msra.mxu1 %v13490_v16  ;;  %12417 = vmatprep.subr.bf16.mxu0 %v13491_v60  ;;  %v14916_v0 = vld [vmem:[%s13931_s20 + $0xb4] sm:$0xff]  }
 0x164   : > { %v12035_v36 = vpop.f32.mrf.mxu0  ;;  %12354 = vmatmul.mubr.bf16.gmra.mxu0 %v14585_v40  ;;  %12457 = vmatprep.subr.bf16.mxu1 %v13492_v9  ;;  %18004 = vst [vmem:[#allocation4_spill] sm:$0xff] %v14916_v0 }
 0x165   : > { %v1859_v7 = vrot.slane %v1835_v15, 1  ;;  %v1833_v21 = vadd.f32 %v1764_v24, %v1616_v38  ;;  %v1621_v23 = vadd.f32 %v12035_v36, %v14700_v41  ;;  %v12075_v16 = vpop.f32.mrf.mxu1  ;;  %12394 = vmatmul.mubr.bf16.gmra.mxu1 %v14878_v48  ;;  %12357 = vmatprep.mubr.bf16.mxu0 %v14596_v63  ;;  %v14884_v4 = vsel %vm1172_vm0, %v1855_v61, %v1856_v11  ;;  %v14894_v63 = vld [vmem:[%s17958_s1 + $0xf8] sm:$0xff]  }
 0x166   : > { %v1560_v40 = vpop.f32.mrf.mxu0  ;;  %12397 = vmatprep.mubr.bf16.mxu1 %v14887_v44  ;;  %12418 = vmatpush3.bf16.msra.mxu0 %v13491_v60  ;;  %v14903_v60 = vld [vmem:[%s17958_s1 + $0x1b8] sm:$0xff]  }
 0x167   : > { %v1857_v33 = vrot.slane %v1833_v21, 1  ;;  %v1838_v1 = vadd.f32 %v12075_v16, %v1621_v23  ;;  %v1619_v41 = vadd.f32 %v1560_v40, %v14713_v51  ;;  %v1777_v22 = vpop.f32.mrf.mxu1  ;;  %12458 = vmatpush3.bf16.msra.mxu1 %v13492_v9  ;;  %12419 = vmatprep.subr.bf16.mxu0 %v13493_v50  ;;  %v14898_v61 = vsel %vm1172_vm0, %v1858_v59, %v1859_v7  ;;  %v14921_v11 = vld [vmem:[%s13931_s20 + $0xbc] sm:$0xff]  }
 0x168   : > { %v12036_v42 = vpop.f32.mrf.mxu0  ;;  %12459 = vmatprep.subr.bf16.mxu1 %v13494_v62  ;;  %18005 = vst [vmem:[#allocation5_spill] sm:$0xff] %v14921_v11 }
 0x169   : > { %v1836_v51 = vadd.f32 %v1777_v22, %v1619_v41  ;;  %v1622_v2 = vadd.f32 %v12036_v42, %v14723_v34  ;;  %v12076_v46 = vpop.f32.mrf.mxu1  ;;  %v14908_v14 = vsel %vm1172_vm0, %v1857_v33, %v1858_v59  ;;  %v1862_v59 = vrot.slane %v1838_v1, 1 }
 0x16a   : > { %v1563_v53 = vpop.f32.mrf.mxu0  ;;  %12420 = vmatpush3.bf16.msra.mxu0 %v13493_v50 }
 0x16b   : > { %v1839_v31 = vadd.f32 %v12076_v46, %v1622_v2  ;;  %v1620_v9 = vadd.f32 %v1563_v53, %v14710_v45  ;;  %v1780_v52 = vpop.f32.mrf.mxu1  ;;  %12460 = vmatpush3.bf16.msra.mxu1 %v13494_v62  ;;  %12485 = vmatprep.subr.bf16.mxu0 %v14894_v63  ;;  %v1860_v15 = vrot.slane %v1836_v51, 1  ;;  %v14938_v46 = vld [vmem:[%s13931_s20 + $0xc4] sm:$0xff]   ;;  %v14942_v53 = vld [vmem:[%s13931_s20 + $0x78] sm:$0xff]  }
 0x16c   : > { %v12039_v12 = vpop.f32.mrf.mxu0  ;;  %12358 = vmatmul.mubr.bf16.gmra.mxu0 %v14641_v29  ;;  %12525 = vmatprep.subr.bf16.mxu1 %v14903_v60  ;;  %18006 = vst [vmem:[#allocation6_spill] sm:$0xff] %v14938_v46 }
 0x16d   : > { %v1837_v34 = vadd.f32 %v1780_v52, %v1620_v9  ;;  %v1625_v58 = vadd.f32 %v12039_v12, %v14734_v37  ;;  %v12079_v39 = vpop.f32.mrf.mxu1  ;;  %12398 = vmatmul.mubr.bf16.gmra.mxu1 %v14916_v0  ;;  %12361 = vmatprep.mubr.bf16.mxu0 %v14659_v56  ;;  %v1863_v16 = vrot.slane %v1839_v31, 1  ;;  %v13776_v9 = vld [vmem:[%s13931_s20 + $0x60] sm:$0xff]  }
 0x16e   : > { %v1576_v45 = vpop.f32.mrf.mxu0  ;;  %12401 = vmatprep.mubr.bf16.mxu1 %v14921_v11  ;;  %v15110_v11 = vld [vmem:[%s13931_s20 + $0xc0] sm:$0xff]  }
 0x16f   : > { %v1861_v38 = vrot.slane %v1837_v34, 1  ;;  %v1842_v29 = vadd.f32 %v12079_v39, %v1625_v58  ;;  %v1623_v24 = vadd.f32 %v1576_v45, %v14743_v49  ;;  %v1793_v50 = vpop.f32.mrf.mxu1  ;;  %18015 = vst [vmem:[#allocation15_spill] sm:$0xff] %v15110_v11 }
 0x170   : > { %v12040_v37 = vpop.f32.mrf.mxu0 }
 0x171   : > { %v1840_v36 = vadd.f32 %v1793_v50, %v1623_v24  ;;  %v1626_v62 = vadd.f32 %v12040_v37, %v14756_v30  ;;  %v12080_v7 = vpop.f32.mrf.mxu1  ;;  %v14928_v56 = vsel %vm1172_vm0, %v1860_v15, %v1861_v38  ;;  %v14932_v23 = vsel %vm1172_vm0, %v1861_v38, %v1862_v59 }
 0x172   : > { %v1579_v21 = vpop.f32.mrf.mxu0  ;;  %v1866_v30 = vrot.slane %v1842_v29, 1 }
 0x173   : > { %v1864_v49 = vrot.slane %v1840_v36, 1  ;;  %v1843_v40 = vadd.f32 %v12080_v7, %v1626_v62  ;;  %v1624_v33 = vadd.f32 %v1579_v21, %v14741_v47  ;;  %v1796_v1 = vpop.f32.mrf.mxu1  ;;  %v14965_v7 = vld [vmem:[%s13931_s20 + $0x80] sm:$0xff]  }
 0x174   : > { %v12043_v41 = vpop.f32.mrf.mxu0  ;;  %12362 = vmatmul.mubr.bf16.gmra.mxu0 %v14706_v28 }
 0x175   : > { %v1867_v22 = vrot.slane %v1843_v40, 1  ;;  %v1841_v42 = vadd.f32 %v1796_v1, %v1624_v33  ;;  %v1629_v51 = vadd.f32 %v12043_v41, %v14776_v3  ;;  %v12083_v2 = vpop.f32.mrf.mxu1  ;;  %12402 = vmatmul.mubr.bf16.gmra.mxu1 %v14938_v46  ;;  %12421 = vmatprep.mubr.bf16.mxu0 %v14942_v53  ;;  %v14947_v47 = vsel %vm1172_vm0, %v1863_v16, %v1864_v49  ;;  %v13778_v33 = vld [vmem:[%s13931_s20 + $0x68] sm:$0xff]   ;;  %v13512_v46 = vld [vmem:[%s17960_s3 + $0xb8] sm:$0xff]  }
 0x176   : > { %v1592_v31 = vpop.f32.mrf.mxu0  ;;  %12461 = vmatprep.mubr.bf16.mxu1 %v13776_v9 }
 0x177   : > { %v1865_v52 = vrot.slane %v1841_v42, 1  ;;  %v1846_v12 = vadd.f32 %v12083_v2, %v1629_v51  ;;  %v1627_v3 = vadd.f32 %v1592_v31, %v14794_v10  ;;  %v1809_v34 = vpop.f32.mrf.mxu1  ;;  %v14953_v58 = vsel %vm1172_vm0, %v1866_v30, %v1867_v22  ;;  %v13497_v10 = vld [vmem:[%s17958_s1 + $0xf0] sm:$0xff]   ;;  %v13499_v30 = vld [vmem:[%s17958_s1 + $0xe8] sm:$0xff]  }
 0x178   : > { %18007 = vst [vmem:[#allocation7_spill] sm:$0xff] %v14953_v58  ;;  %v12044_v39 = vpop.f32.mrf.mxu0  ;;  %v14986_v51 = vld [vmem:[%s13931_s20 + $0x88] sm:$0xff]  }
 0x179   : > { %v1844_v45 = vadd.f32 %v1809_v34, %v1627_v3  ;;  %v1630_v15 = vadd.f32 %v12044_v39, %v14773_v5  ;;  %v12084_v38 = vpop.f32.mrf.mxu1  ;;  %v14958_v29 = vsel %vm1172_vm0, %v1864_v49, %v1865_v52  ;;  %v13498_v5 = vld [vmem:[%s17958_s1 + $0x1b0] sm:$0xff]   ;;  %v1870_v21 = vrot.slane %v1846_v12, 1  ;;  %v13501_v3 = vld [vmem:[%s17958_s1 + $0xe0] sm:$0xff]  }
 0x17a   : > { %18008 = vst [vmem:[#allocation8_spill] sm:$0xff] %v14958_v29  ;;  %v1595_v24 = vpop.f32.mrf.mxu0  ;;  %v15015_v39 = vld [vmem:[%s13931_s20 + $0x90] sm:$0xff]  }
 0x17b   : > { %v1868_v50 = vrot.slane %v1844_v45, 1  ;;  %v1847_v59 = vadd.f32 %v12084_v38, %v1630_v15  ;;  %v1628_v37 = vadd.f32 %v1595_v24, %v14789_v35  ;;  %v1812_v36 = vpop.f32.mrf.mxu1  ;;  %v13502_v45 = vld [vmem:[%s17958_s1 + $0x1a0] sm:$0xff]   ;;  %v13782_v38 = vld [vmem:[%s13931_s20 + $0x78] sm:$0xff]  }
 0x17c   : > { %v12103_v62 = vpop.f32.mrf.mxu0  ;;  %12422 = vmatmul.mubr.bf16.vlgmr.msra.gmra.mxu0 %v14965_v7 }
 0x17d   : > { %v1871_v16 = vrot.slane %v1847_v59, 1  ;;  %v1845_v49 = vadd.f32 %v1812_v36, %v1628_v37  ;;  %v12143_v40 = vpop.f32.mrf.mxu1  ;;  %12462 = vmatmul.mubr.bf16.vlgmr.msra.gmra.mxu1 %v13778_v33  ;;  %12486 = vmatpush3.bf16.msra.mxu0 %v14894_v63  ;;  %v14975_v35 = vsel %vm1172_vm0, %v1867_v22, %v1868_v50  ;;  %v13780_v63 = vld [vmem:[%s13931_s20 + $0x70] sm:$0xff]   ;;  %v13500_v22 = vld [vmem:[%s17958_s1 + $0x1a8] sm:$0xff]   ;;  %v13784_v50 = vld [vmem:[%s13931_s20 + $0x80] sm:$0xff]  }
 0x17e   : > { %18009 = vst [vmem:[#allocation9_spill] sm:$0xff] %v14975_v35  ;;  %v14977_v1 = vpop.f32.mrf.mxu0  ;;  %12526 = vmatpush3.bf16.msra.mxu1 %v14903_v60  ;;  %12487 = vmatprep.subr.bf16.mxu0 %v13497_v10  ;;  %v13503_v59 = vld [vmem:[%s17958_s1 + $0xd8] sm:$0xff]   ;;  %v15049_v33 = vld [vmem:[%s13931_s20 + $0xa0] sm:$0xff]   ;;  %v13794_v35 = vld [vmem:[%s13931_s20 + $0xa8] sm:$0xff]  }
 0x17f   : > { %v1869_v41 = vrot.slane %v1845_v49, 1  ;;  %v14983_v42 = vpop.f32.mrf.mxu1  ;;  %12425 = vmatprep.mubr.bf16.mxu0 %v14986_v51  ;;  %12465 = vmatprep.mubr.bf16.mxu1 %v13780_v63  ;;  %v14995_v60 = vsel %vm1172_vm0, %v1870_v21, %v1871_v16  ;;  %v13504_v62 = vld [vmem:[%s17958_s1 + $0x198] sm:$0xff]   ;;  %v13505_v49 = vld [vmem:[%s17958_s1 + $0xd0] sm:$0xff]   ;;  %v13786_v63 = vld [vmem:[%s13931_s20 + $0x88] sm:$0xff]  }
 0x180   : > { %18010 = vst [vmem:[#allocation10_spill] sm:$0xff] %v14995_v60  ;;  %v14997_v2 = vpop.f32.mrf.mxu0  ;;  %12527 = vmatprep.subr.bf16.mxu1 %v13498_v5 }
 0x181   : > { %v14999_v31 = vpop.f32.mrf.mxu1  ;;  %12488 = vmatpush3.bf16.msra.mxu0 %v13497_v10  ;;  %v15003_v9 = vsel %vm1172_vm0, %v1869_v41, %v1870_v21  ;;  %v15027_v10 = vld [vmem:[%s13931_s20 + $0x98] sm:$0xff]  }
 0x182   : > { %18011 = vst [vmem:[#allocation11_spill] sm:$0xff] %v15003_v9  ;;  %v15005_v52 = vpop.f32.mrf.mxu0  ;;  %12528 = vmatpush3.bf16.msra.mxu1 %v13498_v5  ;;  %12489 = vmatprep.subr.bf16.mxu0 %v13499_v30  ;;  %v13792_v9 = vld [vmem:[%s13931_s20 + $0xa0] sm:$0xff]  }
 0x183   : > { %v15007_v12 = vpop.f32.mrf.mxu1  ;;  %12529 = vmatprep.subr.bf16.mxu1 %v13500_v22 }
 0x184   : > { %v15012_v34 = vpop.f32.mrf.mxu0  ;;  %12426 = vmatmul.mubr.bf16.gmra.mxu0 %v15015_v39 }
 0x185   : > { %v15021_v15 = vpop.f32.mrf.mxu1  ;;  %12466 = vmatmul.mubr.bf16.gmra.mxu1 %v13782_v38  ;;  %12490 = vmatpush3.bf16.msra.mxu0 %v13499_v30  ;;  %v13506_v30 = vld [vmem:[%s17958_s1 + $0x190] sm:$0xff]  }
 0x186   : > { %v15024_v24 = vpop.f32.mrf.mxu0  ;;  %12429 = vmatprep.mubr.bf16.mxu0 %v15027_v10  ;;  %12469 = vmatprep.mubr.bf16.mxu1 %v13784_v50  ;;  %v13507_v50 = vld [vmem:[%s17958_s1 + $0xc8] sm:$0xff]  }
 0x187   : > { %v15034_v37 = vpop.f32.mrf.mxu1  ;;  %12530 = vmatpush3.bf16.msra.mxu1 %v13500_v22  ;;  %12491 = vmatprep.subr.bf16.mxu0 %v13501_v3  ;;  %v15059_v22 = vld [vmem:[%s13931_s20 + $0xa8] sm:$0xff]  }
 0x188   : > { %v15036_v36 = vpop.f32.mrf.mxu0  ;;  %12531 = vmatprep.subr.bf16.mxu1 %v13502_v45 }
 0x189   : > { %v15041_v5 = vpop.f32.mrf.mxu1  ;;  %12492 = vmatpush3.bf16.msra.mxu0 %v13501_v3 }
 0x18a   : > { %v2004_v21 = vpop.f32.mrf.mxu0  ;;  %12493 = vmatprep.subr.bf16.mxu0 %v13503_v59 }
 0x18b   : > { %v2205_v16 = vpop.f32.mrf.mxu1  ;;  %12532 = vmatpush3.bf16.msra.mxu1 %v13502_v45  ;;  %v13788_v45 = vld [vmem:[%s13931_s20 + $0x90] sm:$0xff]  }
 0x18c   : > { %v15046_v40 = vpop.f32.mrf.mxu0  ;;  %12430 = vmatmul.mubr.bf16.gmra.mxu0 %v15049_v33  ;;  %12533 = vmatprep.subr.bf16.mxu1 %v13504_v62  ;;  %v13508_v16 = vld [vmem:[%s17958_s1 + $0x188] sm:$0xff]  }
 0x18d   : > { %v15055_v41 = vpop.f32.mrf.mxu1  ;;  %12470 = vmatmul.mubr.bf16.gmra.mxu1 %v13786_v63  ;;  %12433 = vmatprep.mubr.bf16.mxu0 %v15059_v22 }
 0x18e   : > { %v2016_v3 = vpop.f32.mrf.mxu0  ;;  %12473 = vmatprep.mubr.bf16.mxu1 %v13788_v45  ;;  %12494 = vmatpush3.bf16.msra.mxu0 %v13503_v59 }
 0x18f   : > { %v2217_v38 = vpop.f32.mrf.mxu1  ;;  %12534 = vmatpush3.bf16.msra.mxu1 %v13504_v62  ;;  %12495 = vmatprep.subr.bf16.mxu0 %v13505_v49  ;;  %v13509_v62 = vld [vmem:[%s17958_s1 + $0xc0] sm:$0xff]  }
 0x190   : > { %v12112_v21 = vpop.f32.mrf.mxu0  ;;  %12535 = vmatprep.subr.bf16.mxu1 %v13506_v30  ;;  %v15077_v38 = vld [vmem:[%s13931_s20 + $0xb0] sm:$0xff]  }
 0x191   : > { %v12152_v63 = vpop.f32.mrf.mxu1  ;;  %v13510_v21 = vld [vmem:[%s17958_s1 + $0x180] sm:$0xff]  }
 0x192   : > { %v15069_v3 = vpop.f32.mrf.mxu0  ;;  %12496 = vmatpush3.bf16.msra.mxu0 %v13505_v49  ;;  %v13790_v63 = vld [vmem:[%s13931_s20 + $0x98] sm:$0xff]  }
 0x193   : > { %v15071_v59 = vpop.f32.mrf.mxu1  ;;  %12536 = vmatpush3.bf16.msra.mxu1 %v13506_v30  ;;  %12497 = vmatprep.subr.bf16.mxu0 %v13507_v50 }
 0x194   : > { %v12115_v45 = vpop.f32.mrf.mxu0  ;;  %12434 = vmatmul.mubr.bf16.gmra.mxu0 %v15077_v38  ;;  %12537 = vmatprep.subr.bf16.mxu1 %v13508_v16 }
 0x195   : > { %v12155_v49 = vpop.f32.mrf.mxu1  ;;  %12474 = vmatmul.mubr.bf16.gmra.mxu1 %v13790_v63  ;;  %12437 = vmatprep.mubr.bf16.mxu0 %v15085_v18 }
 0x196   : > { %v15088_v30 = vpop.f32.mrf.mxu0  ;;  %12477 = vmatprep.mubr.bf16.mxu1 %v13792_v9  ;;  %12498 = vmatpush3.bf16.msra.mxu0 %v13507_v50  ;;  %v13511_v49 = vld [vmem:[%s17960_s3 + $0x178] sm:$0xff]  }
 0x197   : > { %v15091_v45 = vpop.f32.mrf.mxu1  ;;  %12538 = vmatpush3.bf16.msra.mxu1 %v13508_v16  ;;  %12499 = vmatprep.subr.bf16.mxu0 %v13509_v62 }
 0x198   : > { %v15096_v63 = vpop.f32.mrf.mxu0  ;;  %12539 = vmatprep.subr.bf16.mxu1 %v13510_v21 }
 0x199   : > { %v15101_v9 = vpop.f32.mrf.mxu1 }
 0x19a   : > { %18012 = vst [vmem:[#allocation12_spill] sm:$0xff] %v15101_v9  ;;  %v15103_v50 = vpop.f32.mrf.mxu0  ;;  %12500 = vmatpush3.bf16.msra.mxu0 %v13509_v62  ;;  %v13795_v62 = vld [vmem:[%s13931_s20 + $0xb0] sm:$0xff]  }
 0x19b   : > { %v15105_v16 = vpop.f32.mrf.mxu1  ;;  %12540 = vmatpush3.bf16.msra.mxu1 %v13510_v21  ;;  %12565 = vmatprep.subr.bf16.mxu0 %v13511_v49 }
 0x19c   : > { %18013 = vst [vmem:[#allocation13_spill] sm:$0xff] %v15105_v16  ;;  %v15107_v60 = vpop.f32.mrf.mxu0  ;;  %12438 = vmatmul.mubr.bf16.gmra.mxu0 %v15110_v11  ;;  %12605 = vmatprep.subr.bf16.mxu1 %v13512_v46 }
 0x19d   : > { %18014 = vst [vmem:[#allocation14_spill] sm:$0xff] %v15107_v60  ;;  %v15113_v0 = vpop.f32.mrf.mxu1  ;;  %12478 = vmatmul.mubr.bf16.gmra.mxu1 %v13794_v35  ;;  %12441 = vmatprep.mubr.bf16.mxu0 %v14678_v27 }
 0x19e   : > { %18016 = vst [vmem:[#allocation16_spill] sm:$0xff] %v15113_v0  ;;  %v15117_v9 = vpop.f32.mrf.mxu0  ;;  %12481 = vmatprep.mubr.bf16.mxu1 %v13795_v62 }
 0x19f   : > { %v15120_v16 = vpop.f32.mrf.mxu1 }
 0x1a0   : > { %v15122_v21 = vpop.f32.mrf.mxu0 }
 0x1a1   : > { %v15124_v29 = vpop.f32.mrf.mxu1 }
 0x1a2   : > { %18017 = vst [vmem:[#allocation17_spill] sm:$0xff] %v15124_v29  ;;  %v2048_v60 = vpop.f32.mrf.mxu0  ;;  %v2073_v29 = vadd.f32 %v14977_v1, %v14827_v6  ;;  %v2075_v6 = vadd.f32 %v14997_v2, %v14849_v43  ;;  %v2074_v1 = vadd.f32 %v15005_v52, %v14834_v26  ;;  %v2077_v43 = vadd.f32 %v15012_v34, %v14861_v57 }
 0x1a3   : > { %v2249_v58 = vpop.f32.mrf.mxu1  ;;  %v2078_v34 = vadd.f32 %v15036_v36, %v14884_v4  ;;  %v13518_v4 = vld [vmem:[%s17960_s3 + $0xa0] sm:$0xff]  }
 0x1a4   : > { %v15126_v11 = vpop.f32.mrf.mxu0  ;;  %12442 = vmatmul.mubr.bf16.gmra.mxu0 %v14717_v8  ;;  %v13513_v8 = vld [vmem:[%s17960_s3 + $0x170] sm:$0xff]   ;;  %v2276_v57 = vadd.f32 %v14999_v31, %v2075_v6  ;;  %v2275_v2 = vadd.f32 %v15007_v12, %v2074_v1  ;;  %v13517_v31 = vld [vmem:[%s17960_s3 + $0x160] sm:$0xff]  }
 0x1a5   : > { %18018 = vst [vmem:[#allocation18_spill] sm:$0xff] %v15126_v11  ;;  %v15129_v0 = vpop.f32.mrf.mxu1  ;;  %12482 = vmatmul.mubr.bf16.gmra.mxu1 %v14706_v28  ;;  %12501 = vmatprep.mubr.bf16.mxu0 %v14731_v13  ;;  %v13514_v13 = vld [vmem:[%s17960_s3 + $0xb0] sm:$0xff]  }
 0x1a6   : > { %v2060_v27 = vpop.f32.mrf.mxu0  ;;  %12541 = vmatprep.mubr.bf16.mxu1 %v14942_v53  ;;  %v2274_v53 = vadd.f32 %v14983_v42, %v2073_v29 }
 0x1a7   : > { %v2261_v35 = vpop.f32.mrf.mxu1 }
 0x1a8   : > { %v12124_v62 = vpop.f32.mrf.mxu0 }
 0x1a9   : > { %v12164_v60 = vpop.f32.mrf.mxu1 }
 0x1aa   : > { %v15136_v58 = vpop.f32.mrf.mxu0 }
 0x1ab   : > { %v15138_v11 = vpop.f32.mrf.mxu1 }
 0x1ac   : > { %v12183_v28 = vpop.f32.mrf.mxu0  ;;  %12502 = vmatmul.mubr.bf16.vlgmr.msra.gmra.mxu0 %v14764_v55  ;;  %v15159_v55 = vld [vmem:[%s17959_s2] ss:$0 sm:$0xff] }
 0x1ad   : > { %v15152_v27 = vpop.f32.mrf.mxu1  ;;  %12542 = vmatmul.mubr.bf16.vlgmr.msra.gmra.mxu1 %v14965_v7  ;;  %12505 = vmatprep.mubr.bf16.mxu0 %v14783_v19  ;;  %v13515_v19 = vld [vmem:[%s17960_s3 + $0x168] sm:$0xff]   ;;  %v2076_v7 = vadd.f32 %v15024_v24, %v14866_v54  ;;  %v2278_v54 = vadd.f32 %v15021_v15, %v2077_v43 }
 0x1ae   : > { %v2388_v35 = vpop.f32.mrf.mxu0  ;;  %12545 = vmatprep.mubr.bf16.mxu1 %v14986_v51  ;;  %12566 = vmatpush3.bf16.msra.mxu0 %v13511_v49  ;;  %v13516_v51 = vld [vmem:[%s17960_s3 + $0xa8] sm:$0xff]  }
 0x1af   : > { %v2475_v29 = vadd.f32 %v2388_v35, %v2274_v53  ;;  %v15164_v26 = vpop.f32.mrf.mxu1  ;;  %12606 = vmatpush3.bf16.msra.mxu1 %v13512_v46  ;;  %12567 = vmatprep.subr.bf16.mxu0 %v13513_v8  ;;  %v2277_v12 = vadd.f32 %v15034_v37, %v2076_v7  ;;  %v2279_v37 = vadd.f32 %v15041_v5, %v2078_v34  ;;  %v13520_v5 = vld [vmem:[%s17960_s3 + $0x98] sm:$0xff]  }
 0x1b0   : > { %v12184_v42 = vpop.f32.mrf.mxu0  ;;  %12607 = vmatprep.subr.bf16.mxu1 %v13514_v13 }
 0x1b1   : > { %v2497_v46 = vadd.f32 %v15159_v55, %v2475_v29  ;;  %v15177_v52 = vpop.f32.mrf.mxu1  ;;  %v2477_v62 = vadd.f32 %v12184_v42, %v2276_v57 }
 0x1b2   : > { %v2391_v49 = vpop.f32.mrf.mxu0  ;;  %12568 = vmatpush3.bf16.msra.mxu0 %v13513_v8 }
 0x1b3   : > { %v2513_v24 = vmax.f32 %v2497_v46, 0.0  ;;  %v2476_v60 = vadd.f32 %v2391_v49, %v2275_v2  ;;  %v15182_v28 = vpop.f32.mrf.mxu1  ;;  %12608 = vmatpush3.bf16.msra.mxu1 %v13514_v13  ;;  %12569 = vmatprep.subr.bf16.mxu0 %v13515_v19 }
 0x1b4   : > { %v12187_v53 = vpop.f32.mrf.mxu0  ;;  %12506 = vmatmul.mubr.bf16.gmra.mxu0 %v14806_v17  ;;  %12609 = vmatprep.subr.bf16.mxu1 %v13516_v51  ;;  %v2499_v17 = vadd.f32 %v15159_v55, %v2477_v62  ;;  %v13522_v62 = vld [vmem:[%s17960_s3 + $0x90] sm:$0xff]  }
 0x1b5   : > { %v10808_v15 = vpack.c.bf16 %v2513_v24, %v2513_v24  ;;  %v2498_v36 = vadd.f32 %v15159_v55, %v2476_v60  ;;  %v2479_v8 = vadd.f32 %v12187_v53, %v2278_v54  ;;  %v15193_v13 = vpop.f32.mrf.mxu1  ;;  %12546 = vmatmul.mubr.bf16.gmra.mxu1 %v15015_v39  ;;  %12509 = vmatprep.mubr.bf16.mxu0 %v14814_v20  ;;  %v13519_v20 = vld [vmem:[%s17960_s3 + $0x158] sm:$0xff]   ;;  %v13521_v54 = vld [vmem:[%s17960_s3 + $0x150] sm:$0xff]  }
 0x1b6   : > { %v2403_v6 = vpop.f32.mrf.mxu0  ;;  %12549 = vmatprep.mubr.bf16.mxu1 %v15027_v10  ;;  %12570 = vmatpush3.bf16.msra.mxu0 %v13515_v19  ;;  %v2080_v39 = vadd.f32 %v15046_v40, %v14898_v61  ;;  %v2515_v46 = vmax.f32 %v2499_v17, 0.0 }
 0x1b7   : > { %2594 = vst [vmem:[#allocation2 + $0xc] sm:$0xf] %v10808_v15  ;;  %v2514_v1 = vmax.f32 %v2498_v36, 0.0  ;;  %v2501_v35 = vadd.f32 %v15159_v55, %v2479_v8  ;;  %v2478_v43 = vadd.f32 %v2403_v6, %v2277_v12  ;;  %v15201_v29 = vpop.f32.mrf.mxu1  ;;  %12610 = vmatpush3.bf16.msra.mxu1 %v13516_v51  ;;  %12571 = vmatprep.subr.bf16.mxu0 %v13517_v31 }
 0x1b8   : > { %v12188_v10 = vpop.f32.mrf.mxu0  ;;  %12611 = vmatprep.subr.bf16.mxu1 %v13518_v4  ;;  %v2281_v60 = vadd.f32 %v15055_v41, %v2080_v39 }
 0x1b9   : > { %v10809_v19 = vpack.c.bf16 %v2514_v1, %v2514_v1  ;;  %v2517_v7 = vmax.f32 %v2501_v35, 0.0  ;;  %v2500_v42 = vadd.f32 %v15159_v55, %v2478_v43  ;;  %v2480_v57 = vadd.f32 %v12188_v10, %v2279_v37  ;;  %v15212_v51 = vpop.f32.mrf.mxu1 }
 0x1ba   : > { %v2406_v2 = vpop.f32.mrf.mxu0  ;;  %12572 = vmatpush3.bf16.msra.mxu0 %v13517_v31  ;;  %v2079_v31 = vadd.f32 %v15069_v3, %v14908_v14  ;;  %v13523_v14 = vld [vmem:[%s17960_s3 + $0x148] sm:$0xff]   ;;  %v2083_v43 = vadd.f32 %v15096_v63, %v14947_v47  ;;  %v18019_v47 = vld [vmem:[#allocation7_spill] sm:$0xff]  ;;  %v18020_v63 = vld [vmem:[#allocation14_spill] sm:$0xff] }
 0x1bb   : > { %2595 = vst [vmem:[#allocation2 + $0x10] sm:$0xf] %v10809_v19  ;;  %v10812_v34 = vpack.c.bf16 %v2517_v7, %v2517_v7  ;;  %v2516_v49 = vmax.f32 %v2500_v42, 0.0  ;;  %v2502_v61 = vadd.f32 %v15159_v55, %v2480_v57  ;;  %v15215_v40 = vpop.f32.mrf.mxu1  ;;  %12612 = vmatpush3.bf16.msra.mxu1 %v13518_v4  ;;  %12573 = vmatprep.subr.bf16.mxu0 %v13519_v20  ;;  %v15280_v42 = vld [vmem:[%s17960_s3 + $0x78] sm:$0xff]   ;;  %v18022_v57 = vld [vmem:[#allocation12_spill] sm:$0xff] }
 0x1bc   : > { %v12191_v24 = vpop.f32.mrf.mxu0  ;;  %12510 = vmatmul.mubr.bf16.gmra.mxu0 %v14840_v32  ;;  %12613 = vmatprep.subr.bf16.mxu1 %v13520_v5  ;;  %v2284_v2 = vadd.f32 %v18022_v57, %v2083_v43 }
 0x1bd   : > { %2598 = vst [vmem:[#allocation2 + $0x24] sm:$0xf] %v10812_v34  ;;  %v10875_v12 = vpack.c.bf16 %v2516_v49, %v2515_v46  ;;  %v2518_v53 = vmax.f32 %v2502_v61, 0.0  ;;  %v15227_v4 = vpop.f32.mrf.mxu1  ;;  %12550 = vmatmul.mubr.bf16.gmra.mxu1 %v15049_v33  ;;  %12513 = vmatprep.mubr.bf16.mxu0 %v14852_v25  ;;  %v2482_v36 = vadd.f32 %v12191_v24, %v2281_v60  ;;  %v13524_v25 = vld [vmem:[%s17960_s3 + $0x88] sm:$0xff]   ;;  %v18025_v60 = vld [vmem:[#allocation16_spill] sm:$0xff] }
 0x1be   : > { %v2418_v32 = vpop.f32.mrf.mxu0  ;;  %12553 = vmatprep.mubr.bf16.mxu1 %v15059_v22  ;;  %12574 = vmatpush3.bf16.msra.mxu0 %v13519_v20  ;;  %v2081_v33 = vadd.f32 %v15088_v30, %v14928_v56  ;;  %v2280_v22 = vadd.f32 %v15071_v59, %v2079_v31  ;;  %v13526_v56 = vld [vmem:[%s17960_s3 + $0x140] sm:$0xff]   ;;  %v2082_v20 = vadd.f32 %v15103_v50, %v14932_v23  ;;  %v18023_v46 = vld [vmem:[#allocation13_spill] sm:$0xff] }
 0x1bf   : > { %11080 = vst [vmem:[#allocation2 + $0x18] sm:$0xff] %v10875_v12   ;;  %v10813_v15 = vpack.c.bf16 %v2518_v53, %v2518_v53  ;;  %v15232_v41 = vpop.f32.mrf.mxu1  ;;  %12614 = vmatpush3.bf16.msra.mxu1 %v13520_v5  ;;  %12575 = vmatprep.subr.bf16.mxu0 %v13521_v54  ;;  %v2504_v6 = vadd.f32 %v15159_v55, %v2482_v36  ;;  %v13527_v59 = vld [vmem:[%s17960_s3 + $0x80] sm:$0xff]   ;;  %v18024_v24 = vld [vmem:[#allocation9_spill] sm:$0xff] }
 0x1c0   : > { %v12192_v3 = vpop.f32.mrf.mxu0  ;;  %12615 = vmatprep.subr.bf16.mxu1 %v13522_v62  ;;  %v2282_v30 = vadd.f32 %v15091_v45, %v2081_v33  ;;  %v15269_v45 = vld [vmem:[%s17960_s3 + $0x238] sm:$0xff]   ;;  %v2085_v23 = vadd.f32 %v18020_v63, %v18019_v47  ;;  %v2283_v34 = vadd.f32 %v18023_v46, %v2082_v20  ;;  %v18026_v33 = vld [vmem:[#allocation4_spill] sm:$0xff]  ;;  %v18031_v47 = vld [vmem:[#allocation18_spill] sm:$0xff] }
 0x1c1   : > { %2599 = vst [vmem:[#allocation2 + $0x28] sm:$0xf] %v10813_v15  ;;  %v15243_v8 = vpop.f32.mrf.mxu1  ;;  %v2520_v50 = vmax.f32 %v2504_v6, 0.0  ;;  %v18028_v6 = vld [vmem:[#allocation5_spill] sm:$0xff] }
 0x1c2   : > { %v2420_v37 = vpop.f32.mrf.mxu0  ;;  %12576 = vmatpush3.bf16.msra.mxu0 %v13521_v54  ;;  %v2286_v31 = vadd.f32 %v18025_v60, %v2085_v23 }
 0x1c3   : > { %v2481_v17 = vadd.f32 %v2420_v37, %v2280_v22  ;;  %v15246_v1 = vpop.f32.mrf.mxu1  ;;  %12616 = vmatpush3.bf16.msra.mxu1 %v13522_v62  ;;  %12577 = vmatprep.subr.bf16.mxu0 %v13523_v14  ;;  %v2086_v62 = vadd.f32 %v15122_v21, %v18024_v24  ;;  %v18027_v37 = vld [vmem:[#allocation15_spill] sm:$0xff] }
 0x1c4   : > { %v12195_v35 = vpop.f32.mrf.mxu0  ;;  %12514 = vmatmul.mubr.bf16.gmra.mxu0 %v14878_v48  ;;  %12617 = vmatprep.subr.bf16.mxu1 %v13524_v25 }
 0x1c5   : > { %v2503_v39 = vadd.f32 %v15159_v55, %v2481_v17  ;;  %v15261_v10 = vpop.f32.mrf.mxu1  ;;  %12554 = vmatmul.mubr.bf16.gmra.mxu1 %v15077_v38  ;;  %12517 = vmatprep.mubr.bf16.mxu0 %v14887_v44  ;;  %v18021_v44 = vld [vmem:[#allocation8_spill] sm:$0xff]  ;;  %v18029_v17 = vld [vmem:[#allocation17_spill] sm:$0xff] }
 0x1c6   : > { %v2432_v48 = vpop.f32.mrf.mxu0  ;;  %12557 = vmatprep.mubr.bf16.mxu1 %v15085_v18  ;;  %12578 = vmatpush3.bf16.msra.mxu0 %v13523_v14  ;;  %v2084_v38 = vadd.f32 %v15117_v9, %v18021_v44  ;;  %v13796_v35 = vld [vmem:[%s13931_s20 + $0xc8] sm:$0xff]  }
 0x1c7   : > { %v2519_v5 = vmax.f32 %v2503_v39, 0.0  ;;  %v2483_v19 = vadd.f32 %v2432_v48, %v2282_v30  ;;  %v15273_v7 = vpop.f32.mrf.mxu1  ;;  %12618 = vmatpush3.bf16.msra.mxu1 %v13524_v25  ;;  %12579 = vmatprep.subr.bf16.mxu0 %v13526_v56  ;;  %v18030_v48 = vld [vmem:[#allocation10_spill] sm:$0xff] }
 0x1c8   : > { %v12196_v18 = vpop.f32.mrf.mxu0  ;;  %12619 = vmatprep.subr.bf16.mxu1 %v13527_v59  ;;  %v2285_v36 = vadd.f32 %v15120_v16, %v2084_v38  ;;  %v2088_v63 = vadd.f32 %v18031_v47, %v18030_v48  ;;  %v15341_v48 = vld [vmem:[#allocation2 + $0x10] sm:$0xff]  }
 0x1c9   : > { %v10880_v49 = vpack.c.bf16 %v2520_v50, %v2519_v5  ;;  %v2505_v61 = vadd.f32 %v15159_v55, %v2483_v19  ;;  %v15285_v54 = vpop.f32.mrf.mxu1  ;;  %v2485_v53 = vadd.f32 %v12196_v18, %v2284_v2  ;;  %v15312_v18 = vld [vmem:[#allocation2] sm:$0xff]   ;;  %v13525_v2 = vld [vmem:[#allocation2 + $0xc] sm:$0xff]  }
 0x1ca   : > { %v2435_v9 = vpop.f32.mrf.mxu0  ;;  %12580 = vmatpush3.bf16.msra.mxu0 %v13526_v56  ;;  %v2287_v56 = vadd.f32 %v18029_v17, %v2086_v62  ;;  %v2289_v60 = vadd.f32 %v15129_v0, %v2088_v63 }
 0x1cb   : > { %11081 = vst [vmem:[#allocation2 + $0x30] sm:$0xff] %v10880_v49   ;;  %v2521_v12 = vmax.f32 %v2505_v61, 0.0  ;;  %v2484_v32 = vadd.f32 %v2435_v9, %v2283_v34  ;;  %v15290_v15 = vpop.f32.mrf.mxu1  ;;  %12620 = vmatpush3.bf16.msra.mxu1 %v13527_v59  ;;  %12645 = vmatprep.subr.bf16.mxu0 %v15269_v45  ;;  %v2507_v16 = vadd.f32 %v15159_v55, %v2485_v53  ;;  %v18032_v9 = vld [vmem:[#allocation6_spill] sm:$0xff] }
 0x1cc   : > { %v12199_v14 = vpop.f32.mrf.mxu0  ;;  %12518 = vmatmul.mubr.bf16.gmra.mxu0 %v18026_v33  ;;  %12685 = vmatprep.subr.bf16.mxu1 %v15280_v42 }
 0x1cd   : > { %v10816_v21 = vpack.c.bf16 %v2521_v12, %v2521_v12  ;;  %v2506_v3 = vadd.f32 %v15159_v55, %v2484_v32  ;;  %v2487_v25 = vadd.f32 %v12199_v14, %v2286_v31  ;;  %v15297_v22 = vpop.f32.mrf.mxu1  ;;  %12558 = vmatmul.mubr.bf16.gmra.mxu1 %v18027_v37  ;;  %12521 = vmatprep.mubr.bf16.mxu0 %v18028_v6  ;;  %v2523_v46 = vmax.f32 %v2507_v16, 0.0  ;;  %v18033_v31 = vld [vmem:[#allocation11_spill] sm:$0xff]  ;;  %v13797_v14 = vld [vmem:[%s13931_s20 + $0xd0] sm:$0xff]  }
 0x1ce   : > { %v2447_v30 = vpop.f32.mrf.mxu0  ;;  %12561 = vmatprep.mubr.bf16.mxu1 %v13796_v35  ;;  %v2087_v12 = vadd.f32 %v15136_v58, %v18033_v31  ;;  %v13543_v6 = vld [vmem:[%s17960_s3 + $0x230] sm:$0xff]   ;;  %v15364_v31 = vld [vmem:[#allocation2 + $0x18] sm:$0xff]  }
 0x1cf   : > { %2602 = vst [vmem:[#allocation2 + $0x3c] sm:$0xf] %v10816_v21  ;;  %v2522_v59 = vmax.f32 %v2506_v3, 0.0  ;;  %v2509_v43 = vadd.f32 %v15159_v55, %v2487_v25  ;;  %v2486_v20 = vadd.f32 %v2447_v30, %v2285_v36  ;;  %v15305_v39 = vpop.f32.mrf.mxu1  ;;  %v13544_v30 = vld [vmem:[%s17960_s3 + $0x70] sm:$0xff]  }
 0x1d0   : > { %v12200_v23 = vpop.f32.mrf.mxu0  ;;  %v2288_v37 = vadd.f32 %v15138_v11, %v2087_v12  ;;  %v13531_v11 = vld [vmem:[#allocation2 + $0x1c] sm:$0xff]  }
 0x1d1   : > { %v10817_v50 = vpack.c.bf16 %v2522_v59, %v2522_v59  ;;  %v2525_v5 = vmax.f32 %v2509_v43, 0.0  ;;  %v2508_v19 = vadd.f32 %v15159_v55, %v2486_v20  ;;  %v2488_v44 = vadd.f32 %v12200_v23, %v2287_v56  ;;  %v15310_v38 = vpop.f32.mrf.mxu1  ;;  %v13529_v56 = vld [vmem:[#allocation2 + $0x14] sm:$0xff]   ;;  %v15339_v43 = vld [vmem:[#allocation2 + $0x8] sm:$0xff]  }
 0x1d2   : > { %v2450_v57 = vpop.f32.mrf.mxu0  ;;  %v13535_v12 = vld [vmem:[#allocation2 + $0x2c] sm:$0xff]  }
 0x1d3   : > { %2603 = vst [vmem:[#allocation2 + $0x40] sm:$0xf] %v10817_v50  ;;  %v10820_v34 = vpack.c.bf16 %v2525_v5, %v2525_v5  ;;  %v2524_v49 = vmax.f32 %v2508_v19, 0.0  ;;  %v2510_v61 = vadd.f32 %v15159_v55, %v2488_v44  ;;  %v15315_v24 = vpop.f32.mrf.mxu1  ;;  %v13547_v5 = vld [vmem:[%s17960_s3 + $0x228] sm:$0xff]  }
 0x1d4   : > { %v12203_v62 = vpop.f32.mrf.mxu0  ;;  %12522 = vmatmul.mubr.bf16.gmra.mxu0 %v18032_v9  ;;  %v13533_v9 = vld [vmem:[#allocation2 + $0x24] sm:$0xff]  }
 0x1d5   : > { %2606 = vst [vmem:[#allocation2 + $0x54] sm:$0xf] %v10820_v34  ;;  %v10885_v53 = vpack.c.bf16 %v2524_v49, %v2523_v46  ;;  %v2526_v32 = vmax.f32 %v2510_v61, 0.0  ;;  %v15321_v36 = vpop.f32.mrf.mxu1  ;;  %12562 = vmatmul.mubr.bf16.gmra.mxu1 %v13797_v14  ;;  %12581 = vmatprep.mubr.bf16.mxu0 %v13525_v2  ;;  %v2490_v3 = vadd.f32 %v12203_v62, %v2289_v60  ;;  %v13552_v14 = vld [vmem:[%s17960_s3 + $0x60] sm:$0xff]  }
 0x1d6   : > { %v2462_v33 = vpop.f32.mrf.mxu0  ;;  %12621 = vmatprep.mubr.bf16.mxu1 %v15312_v18 }
 0x1d7   : > { %11082 = vst [vmem:[#allocation2 + $0x48] sm:$0xff] %v10885_v53   ;;  %v10821_v21 = vpack.c.bf16 %v2526_v32, %v2526_v32  ;;  %v15325_v25 = vpop.f32.mrf.mxu1  ;;  %v2512_v35 = vadd.f32 %v15159_v55, %v2490_v3  ;;  %v13551_v53 = vld [vmem:[%s17960_s3 + $0x220] sm:$0xff]  }
 0x1d8   : > { %v12204_v0 = vpop.f32.mrf.mxu0  ;;  %v15369_v32 = vld [vmem:[#allocation2 + $0x20] sm:$0xff]  }
 0x1d9   : > { %2607 = vst [vmem:[#allocation2 + $0x58] sm:$0xf] %v10821_v21  ;;  %v15328_v58 = vpop.f32.mrf.mxu1  ;;  %v2528_v19 = vmax.f32 %v2512_v35, 0.0 }
 0x1da   : > { %v2464_v17 = vpop.f32.mrf.mxu0 }
 0x1db   : > { %v2489_v16 = vadd.f32 %v2464_v17, %v2288_v37  ;;  %v15337_v59 = vpop.f32.mrf.mxu1 }
 0x1dc   : > { %v12263_v20 = vpop.f32.mrf.mxu0  ;;  %12582 = vmatmul.mubr.bf16.vlgmr.msra.gmra.mxu0 %v13529_v56 }
 0x1dd   : > { %v2511_v47 = vadd.f32 %v15159_v55, %v2489_v16  ;;  %v3104_v63 = vadd.f32 %v12263_v20, %v15152_v27  ;;  %v12303_v23 = vpop.f32.mrf.mxu1  ;;  %12622 = vmatmul.mubr.bf16.vlgmr.msra.gmra.mxu1 %v15339_v43  ;;  %12585 = vmatprep.mubr.bf16.mxu0 %v13531_v11  ;;  %v18034_v16 = vld [vmem:[#allocation3_spill] sm:$0xff] }
 0x1de   : > { %12625 = vmatprep.mubr.bf16.mxu1 %v15341_v48  ;;  %v3095_v50 = vpop.f32.mrf.mxu0  ;;  %12646 = vmatpush3.bf16.msra.mxu0 %v15269_v45  ;;  %v13548_v45 = vld [vmem:[%s17960_s3 + $0x68] sm:$0xff]   ;;  %vm7273_vm1 = vcmp.lt.s32.totalorder %v18034_v16, 1 }
 0x1df   : > { %v2527_v44 = vmax.f32 %v2511_v47, 0.0  ;;  %v15351_v57 = vadd.f32 %v12303_v23, %v3104_v63  ;;  %v3096_v55 = vadd.f32 %v3095_v50, %v15164_v26  ;;  %v3385_v27 = vpop.f32.mrf.mxu1  ;;  %12686 = vmatpush3.bf16.msra.mxu1 %v15280_v42  ;;  %12647 = vmatprep.subr.bf16.mxu0 %v13543_v6  ;;  %v13556_v47 = vld [vmem:[%s17960_s3 + $0x58] sm:$0xff]   ;;  %v15394_v50 = vld [vmem:[#allocation2 + $0x28] sm:$0xff]  }
 0x1e0   : > { %v12264_v2 = vpop.f32.mrf.mxu0  ;;  %12687 = vmatprep.subr.bf16.mxu1 %v13544_v30 }
 0x1e1   : > { %v10890_v46 = vpack.c.bf16 %v2528_v19, %v2527_v44  ;;  %v15358_v34 = vadd.f32 %v3385_v27, %v3096_v55  ;;  %v3107_v49 = vadd.f32 %v12264_v2, %v15177_v52  ;;  %v12304_v61 = vpop.f32.mrf.mxu1 }
 0x1e2   : > { %v3098_v62 = vpop.f32.mrf.mxu0  ;;  %12648 = vmatpush3.bf16.msra.mxu0 %v13543_v6 }
 0x1e3   : > { %11083 = vst [vmem:[#allocation2 + $0x60] sm:$0xff] %v10890_v46   ;;  %v15361_v26 = vadd.f32 %v12304_v61, %v3107_v49  ;;  %v3099_v42 = vadd.f32 %v3098_v62, %v15182_v28  ;;  %v3388_v60 = vpop.f32.mrf.mxu1  ;;  %12688 = vmatpush3.bf16.msra.mxu1 %v13544_v30  ;;  %12649 = vmatprep.subr.bf16.mxu0 %v13547_v5  ;;  %v3506_v28 = vrot.slane %v15351_v57, 1  ;;  %v3504_v37 = vrot.slane %v15358_v34, 1  ;;  %v13537_v57 = vld [vmem:[#allocation2 + $0x34] sm:$0xff]   ;;  %v13541_v49 = vld [vmem:[#allocation2 + $0x3c] sm:$0xff]  }
 0x1e4   : > { %v12267_v52 = vpop.f32.mrf.mxu0  ;;  %12586 = vmatmul.mubr.bf16.gmra.mxu0 %v13533_v9  ;;  %12689 = vmatprep.subr.bf16.mxu1 %v13548_v45  ;;  %v15416_v9 = vld [vmem:[#allocation2 + $0x30] sm:$0xff]  }
 0x1e5   : > { %v3507_v33 = vrot.slane %v15361_v26, 1  ;;  %v3481_v21 = vadd.f32 %v3388_v60, %v3099_v42  ;;  %v3120_v3 = vadd.f32 %v12267_v52, %v15193_v13  ;;  %v12307_v0 = vpop.f32.mrf.mxu1  ;;  %12626 = vmatmul.mubr.bf16.gmra.mxu1 %v15364_v31  ;;  %12589 = vmatprep.mubr.bf16.mxu0 %v13535_v12  ;;  %v13555_v13 = vld [vmem:[%s17960_s3 + $0x218] sm:$0xff]  }
 0x1e6   : > { %12629 = vmatprep.mubr.bf16.mxu1 %v15369_v32  ;;  %v3111_v6 = vpop.f32.mrf.mxu0  ;;  %12650 = vmatpush3.bf16.msra.mxu0 %v13547_v5  ;;  %v13559_v5 = vld [vmem:[%s17960_s3 + $0x210] sm:$0xff]  }
 0x1e7   : > { %v3505_v17 = vrot.slane %v3481_v21, 1  ;;  %v15380_v56 = vadd.f32 %v12307_v0, %v3120_v3  ;;  %v3112_v30 = vadd.f32 %v3111_v6, %v15201_v29  ;;  %v3401_v35 = vpop.f32.mrf.mxu1  ;;  %12690 = vmatpush3.bf16.msra.mxu1 %v13548_v45  ;;  %12651 = vmatprep.subr.bf16.mxu0 %v13551_v53  ;;  %v15388_v11 = vsel %vm1172_vm0, %v3506_v28, %v3507_v33  ;;  %v13564_v0 = vld [vmem:[%s17960_s3 + $0x48] sm:$0xff]  }
 0x1e8   : > { %v12268_v20 = vpop.f32.mrf.mxu0  ;;  %12691 = vmatprep.subr.bf16.mxu1 %v13552_v14 }
 0x1e9   : > { %v3484_v63 = vadd.f32 %v3401_v35, %v3112_v30  ;;  %v3123_v29 = vadd.f32 %v12268_v20, %v15212_v51  ;;  %v12308_v23 = vpop.f32.mrf.mxu1  ;;  %v15403_v19 = vsel %vm1172_vm0, %v3504_v37, %v3505_v17  ;;  %v13560_v51 = vld [vmem:[%s17960_s3 + $0x50] sm:$0xff]   ;;  %v15410_v55 = vsel %vm1172_vm0, %v3505_v17, %v3506_v28  ;;  %v13545_v35 = vld [vmem:[#allocation2 + $0x44] sm:$0xff]  }
 0x1ea   : > { %v3114_v44 = vpop.f32.mrf.mxu0  ;;  %12652 = vmatpush3.bf16.msra.mxu0 %v13551_v53  ;;  %v3510_v61 = vrot.slane %v15380_v56, 1 }
 0x1eb   : > { %v3508_v27 = vrot.slane %v3484_v63, 1  ;;  %v15412_v2 = vadd.f32 %v12308_v23, %v3123_v29  ;;  %v3115_v45 = vadd.f32 %v3114_v44, %v15215_v40  ;;  %v3404_v46 = vpop.f32.mrf.mxu1  ;;  %12692 = vmatpush3.bf16.msra.mxu1 %v13552_v14  ;;  %12653 = vmatprep.subr.bf16.mxu0 %v13555_v13  ;;  %v15451_v23 = vld [vmem:[#allocation2 + $0x38] sm:$0xff]   ;;  %v13566_v44 = vld [vmem:[%s17960_s3 + $0x200] sm:$0xff]  }
 0x1ec   : > { %v12271_v62 = vpop.f32.mrf.mxu0  ;;  %12590 = vmatmul.mubr.bf16.gmra.mxu0 %v13537_v57  ;;  %12693 = vmatprep.subr.bf16.mxu1 %v13556_v47 }
 0x1ed   : > { %v3511_v26 = vrot.slane %v15412_v2, 1  ;;  %v3485_v42 = vadd.f32 %v3404_v46, %v3115_v45  ;;  %v3136_v60 = vadd.f32 %v12271_v62, %v15227_v4  ;;  %v12311_v12 = vpop.f32.mrf.mxu1  ;;  %12630 = vmatmul.mubr.bf16.gmra.mxu1 %v15394_v50  ;;  %12593 = vmatprep.mubr.bf16.mxu0 %v13541_v49  ;;  %v15423_v40 = vsel %vm1172_vm0, %v3507_v33, %v3508_v27  ;;  %v13563_v4 = vld [vmem:[%s17960_s3 + $0x208] sm:$0xff]  }
 0x1ee   : > { %12633 = vmatprep.mubr.bf16.mxu1 %v15416_v9  ;;  %v3127_v53 = vpop.f32.mrf.mxu0  ;;  %12654 = vmatpush3.bf16.msra.mxu0 %v13555_v13 }
 0x1ef   : > { %v3509_v52 = vrot.slane %v3485_v42, 1  ;;  %v15426_v14 = vadd.f32 %v12311_v12, %v3136_v60  ;;  %v3128_v28 = vadd.f32 %v3127_v53, %v15232_v41  ;;  %v3417_v21 = vpop.f32.mrf.mxu1  ;;  %12694 = vmatpush3.bf16.msra.mxu1 %v13556_v47  ;;  %12655 = vmatprep.subr.bf16.mxu0 %v13559_v5  ;;  %v15434_v33 = vsel %vm1172_vm0, %v3510_v61, %v3511_v26 }
 0x1f0   : > { %v12272_v3 = vpop.f32.mrf.mxu0  ;;  %12695 = vmatprep.subr.bf16.mxu1 %v13560_v51 }
 0x1f1   : > { %v3488_v6 = vadd.f32 %v3417_v21, %v3128_v28  ;;  %v3139_v41 = vadd.f32 %v12272_v3, %v15243_v8  ;;  %v12312_v17 = vpop.f32.mrf.mxu1  ;;  %v15442_v56 = vsel %vm1172_vm0, %v3508_v27, %v3509_v52  ;;  %v15446_v13 = vsel %vm1172_vm0, %v3509_v52, %v3510_v61  ;;  %v13549_v8 = vld [vmem:[#allocation2 + $0x4c] sm:$0xff]   ;;  %v15457_v27 = vld [vmem:[#allocation2 + $0x40] sm:$0xff]   ;;  %v15483_v52 = vld [vmem:[%s17960_s3 + $0x1f8] sm:$0xff]  }
 0x1f2   : > { %v3130_v30 = vpop.f32.mrf.mxu0  ;;  %12656 = vmatpush3.bf16.msra.mxu0 %v13559_v5  ;;  %v3514_v5 = vrot.slane %v15426_v14, 1  ;;  %v13553_v3 = vld [vmem:[#allocation2 + $0x54] sm:$0xff]  }
 0x1f3   : > { %v3512_v20 = vrot.slane %v3488_v6, 1  ;;  %v15448_v47 = vadd.f32 %v12312_v17, %v3139_v41  ;;  %v3131_v63 = vadd.f32 %v3130_v30, %v15246_v1  ;;  %v3420_v29 = vpop.f32.mrf.mxu1  ;;  %12696 = vmatpush3.bf16.msra.mxu1 %v13560_v51  ;;  %12657 = vmatprep.subr.bf16.mxu0 %v13563_v4  ;;  %v13567_v1 = vld [vmem:[%s17960_s3 + $0x40] sm:$0xff]  }
 0x1f4   : > { %v12275_v57 = vpop.f32.mrf.mxu0  ;;  %12594 = vmatmul.mubr.bf16.gmra.mxu0 %v13545_v35  ;;  %12697 = vmatprep.subr.bf16.mxu1 %v13564_v0  ;;  %v15495_v35 = vld [vmem:[#allocation2 + $0x48] sm:$0xff]  }
 0x1f5   : > { %v3515_v2 = vrot.slane %v15448_v47, 1  ;;  %v3489_v45 = vadd.f32 %v3420_v29, %v3131_v63  ;;  %v3152_v51 = vadd.f32 %v12275_v57, %v15261_v10  ;;  %v12315_v46 = vpop.f32.mrf.mxu1  ;;  %12634 = vmatmul.mubr.bf16.gmra.mxu1 %v15451_v23  ;;  %12597 = vmatprep.mubr.bf16.mxu0 %v13549_v8  ;;  %v15467_v49 = vsel %vm1172_vm0, %v3511_v26, %v3512_v20  ;;  %v15478_v26 = vld [vmem:[%s17960_s3 + $0x138] sm:$0xff]   ;;  %v15498_v63 = vld [vmem:[#allocation2 + $0x50] sm:$0xff]  }
 0x1f6   : > { %12637 = vmatprep.mubr.bf16.mxu1 %v15457_v27  ;;  %v3143_v61 = vpop.f32.mrf.mxu0  ;;  %12658 = vmatpush3.bf16.msra.mxu0 %v13563_v4 }
 0x1f7   : > { %v3513_v62 = vrot.slane %v3489_v45, 1  ;;  %v3494_v42 = vadd.f32 %v12315_v46, %v3152_v51  ;;  %v3144_v60 = vadd.f32 %v3143_v61, %v15273_v7  ;;  %v3433_v12 = vpop.f32.mrf.mxu1  ;;  %12698 = vmatpush3.bf16.msra.mxu1 %v13564_v0  ;;  %12659 = vmatprep.subr.bf16.mxu0 %v13566_v44  ;;  %v15473_v10 = vsel %vm1172_vm0, %v3514_v5, %v3515_v2 }
 0x1f8   : > { %v12276_v53 = vpop.f32.mrf.mxu0  ;;  %12699 = vmatprep.subr.bf16.mxu1 %v13567_v1 }
 0x1f9   : > { %v3492_v7 = vadd.f32 %v3433_v12, %v3144_v60  ;;  %v3155_v14 = vadd.f32 %v12276_v53, %v15285_v54  ;;  %v12316_v28 = vpop.f32.mrf.mxu1  ;;  %v15488_v21 = vsel %vm1172_vm0, %v3512_v20, %v3513_v62  ;;  %v15492_v0 = vsel %vm1172_vm0, %v3513_v62, %v3514_v5  ;;  %v13557_v54 = vld [vmem:[#allocation2 + $0x5c] sm:$0xff]   ;;  %v13561_v53 = vld [vmem:[#allocation2 + $0x64] sm:$0xff]  }
 0x1fa   : > { %v3146_v4 = vpop.f32.mrf.mxu0  ;;  %12660 = vmatpush3.bf16.msra.mxu0 %v13566_v44  ;;  %v3518_v20 = vrot.slane %v3494_v42, 1 }
 0x1fb   : > { %v3516_v6 = vrot.slane %v3492_v7, 1  ;;  %v3495_v41 = vadd.f32 %v12316_v28, %v3155_v14  ;;  %v3147_v17 = vadd.f32 %v3146_v4, %v15290_v15  ;;  %v3436_v30 = vpop.f32.mrf.mxu1  ;;  %12700 = vmatpush3.bf16.msra.mxu1 %v13567_v1  ;;  %12725 = vmatprep.subr.bf16.mxu0 %v15478_v26 }
 0x1fc   : > { %v12279_v47 = vpop.f32.mrf.mxu0  ;;  %12598 = vmatmul.mubr.bf16.gmra.mxu0 %v13553_v3  ;;  %12765 = vmatprep.subr.bf16.mxu1 %v15483_v52  ;;  %v15523_v3 = vld [vmem:[#allocation2 + $0x58] sm:$0xff]  }
 0x1fd   : > { %v3519_v29 = vrot.slane %v3495_v41, 1  ;;  %v3493_v8 = vadd.f32 %v3436_v30, %v3147_v17  ;;  %v3168_v44 = vadd.f32 %v12279_v47, %v15297_v22  ;;  %v12319_v5 = vpop.f32.mrf.mxu1  ;;  %12638 = vmatmul.mubr.bf16.gmra.mxu1 %v15495_v35  ;;  %12601 = vmatprep.mubr.bf16.mxu0 %v13557_v54  ;;  %v15505_v15 = vsel %vm1172_vm0, %v3515_v2, %v3516_v6  ;;  %v15525_v41 = vld [vmem:[#allocation2 + $0x18] sm:$0xff]  }
 0x1fe   : > { %12641 = vmatprep.mubr.bf16.mxu1 %v15498_v63  ;;  %v3159_v57 = vpop.f32.mrf.mxu0 }
 0x1ff   : > { %v3517_v1 = vrot.slane %v3493_v8, 1  ;;  %v3498_v45 = vadd.f32 %v12319_v5, %v3168_v44  ;;  %v3160_v51 = vadd.f32 %v3159_v57, %v15305_v39  ;;  %v3449_v46 = vpop.f32.mrf.mxu1  ;;  %v15511_v61 = vsel %vm1172_vm0, %v3518_v20, %v3519_v29 }
 0x200   : > { %v12280_v22 = vpop.f32.mrf.mxu0 }
 0x201   : > { %v3496_v62 = vadd.f32 %v3449_v46, %v3160_v51  ;;  %v3171_v42 = vadd.f32 %v12280_v22, %v15310_v38  ;;  %v12320_v60 = vpop.f32.mrf.mxu1  ;;  %v15516_v2 = vsel %vm1172_vm0, %v3516_v6, %v3517_v1  ;;  %v15520_v7 = vsel %vm1172_vm0, %v3517_v1, %v3518_v20 }
 0x202   : > { %v3162_v12 = vpop.f32.mrf.mxu0  ;;  %v3522_v38 = vrot.slane %v3498_v45, 1 }
 0x203   : > { %v3520_v39 = vrot.slane %v3496_v62, 1  ;;  %v3499_v14 = vadd.f32 %v12320_v60, %v3171_v42  ;;  %v3163_v28 = vadd.f32 %v3162_v12, %v15315_v24  ;;  %v3452_v4 = vpop.f32.mrf.mxu1 }
 0x204   : > { %v12283_v17 = vpop.f32.mrf.mxu0  ;;  %12602 = vmatmul.mubr.bf16.gmra.mxu0 %v13561_v53  ;;  %v15552_v53 = vld [vmem:[#allocation2 + $0x28] sm:$0xff]  }
 0x205   : > { %v3523_v6 = vrot.slane %v3499_v14, 1  ;;  %v3497_v30 = vadd.f32 %v3452_v4, %v3163_v28  ;;  %v3184_v54 = vadd.f32 %v12283_v17, %v15321_v36  ;;  %v12323_v47 = vpop.f32.mrf.mxu1  ;;  %12642 = vmatmul.mubr.bf16.gmra.mxu1 %v15523_v3  ;;  %12661 = vmatprep.mubr.bf16.mxu0 %v15525_v41  ;;  %v15532_v24 = vsel %vm1172_vm0, %v3519_v29, %v3520_v39  ;;  %v13586_v28 = vld [vmem:[%s17960_s3 + $0x130] sm:$0xff]  }
 0x206   : > { %v3175_v20 = vpop.f32.mrf.mxu0  ;;  %12701 = vmatprep.mubr.bf16.mxu1 %v15312_v18  ;;  %v15545_v18 = vld [vmem:[#allocation2 + $0x20] sm:$0xff]  }
 0x207   : > { %v3521_v8 = vrot.slane %v3497_v30, 1  ;;  %v3502_v44 = vadd.f32 %v12323_v47, %v3184_v54  ;;  %v3176_v5 = vadd.f32 %v3175_v20, %v15325_v25  ;;  %v3465_v57 = vpop.f32.mrf.mxu1  ;;  %v15538_v36 = vsel %vm1172_vm0, %v3522_v38, %v3523_v6 }
 0x208   : > { %v12284_v1 = vpop.f32.mrf.mxu0 }
 0x209   : > { %v3500_v45 = vadd.f32 %v3465_v57, %v3176_v5  ;;  %v3187_v51 = vadd.f32 %v12284_v1, %v15328_v58  ;;  %v12324_v46 = vpop.f32.mrf.mxu1  ;;  %v15543_v29 = vsel %vm1172_vm0, %v3520_v39, %v3521_v8  ;;  %v15549_v25 = vsel %vm1172_vm0, %v3521_v8, %v3522_v38  ;;  %v13575_v58 = vld [vmem:[%s17960_s3 + $0x1f0] sm:$0xff]  }
 0x20a   : > { %v3178_v22 = vpop.f32.mrf.mxu0  ;;  %v3526_v39 = vrot.slane %v3502_v44, 1  ;;  %v15601_v1 = vld [vmem:[#allocation2 + $0x30] sm:$0xff]  }
 0x20b   : > { %v3524_v62 = vrot.slane %v3500_v45, 1  ;;  %v3503_v42 = vadd.f32 %v12324_v46, %v3187_v51  ;;  %v3179_v60 = vadd.f32 %v3178_v22, %v15337_v59  ;;  %v3468_v12 = vpop.f32.mrf.mxu1  ;;  %v15606_v22 = vld [vmem:[#allocation2 + $0x38] sm:$0xff]  }
 0x20c   : > { %v12343_v14 = vpop.f32.mrf.mxu0  ;;  %12662 = vmatmul.mubr.bf16.vlgmr.msra.gmra.mxu0 %v15545_v18 }
 0x20d   : > { %v3527_v4 = vrot.slane %v3503_v42, 1  ;;  %v3501_v38 = vadd.f32 %v3468_v12, %v3179_v60  ;;  %v3747_v17 = vadd.f32 %v12343_v14, %v15388_v11  ;;  %v12383_v59 = vpop.f32.mrf.mxu1  ;;  %12702 = vmatmul.mubr.bf16.vlgmr.msra.gmra.mxu1 %v15339_v43  ;;  %12665 = vmatprep.mubr.bf16.mxu0 %v15552_v53  ;;  %v15566_v30 = vsel %vm1172_vm0, %v3523_v6, %v3524_v62  ;;  %v13577_v43 = vld [vmem:[%s17960_s3 + $0x1e8] sm:$0xff]   ;;  %v13589_v42 = vld [vmem:[%s17960_s3 + $0x120] sm:$0xff]  }
 0x20e   : > { %12705 = vmatprep.mubr.bf16.mxu1 %v15341_v48  ;;  %v3650_v54 = vpop.f32.mrf.mxu0  ;;  %12766 = vmatpush3.bf16.msra.mxu1 %v15483_v52 }
 0x20f   : > { %v3525_v47 = vrot.slane %v3501_v38, 1  ;;  %v15570_v20 = vadd.f32 %v12383_v59, %v3747_v17  ;;  %v3745_v8 = vadd.f32 %v3650_v54, %v15403_v19  ;;  %v3867_v11 = vpop.f32.mrf.mxu1  ;;  %12767 = vmatprep.subr.bf16.mxu1 %v13575_v58  ;;  %v15578_v6 = vsel %vm1172_vm0, %v3526_v39, %v3527_v4  ;;  %12726 = vmatpush3.bf16.msra.mxu0 %v15478_v26  ;;  %v13587_v19 = vld [vmem:[%s17960_s3 + $0x128] sm:$0xff]  }
 0x210   : > { %v12344_v48 = vpop.f32.mrf.mxu0  ;;  %v15585_v52 = vsel %vm1172_vm0, %v3527_v4, %v3504_v37  ;;  %12727 = vmatprep.subr.bf16.mxu0 %v13586_v28  ;;  %v13581_v4 = vld [vmem:[%s17960_s3 + $0x1d8] sm:$0xff]  }
 0x211   : > { %v15590_v44 = vadd.f32 %v3867_v11, %v3745_v8  ;;  %v3748_v5 = vadd.f32 %v12344_v48, %v15423_v40  ;;  %v12384_v57 = vpop.f32.mrf.mxu1  ;;  %v15595_v26 = vsel %vm1172_vm0, %v3524_v62, %v3525_v47  ;;  %v15599_v34 = vsel %vm1172_vm0, %v3525_v47, %v3526_v39  ;;  %v13579_v40 = vld [vmem:[%s17960_s3 + $0x1e0] sm:$0xff]   ;;  %v15638_v11 = vld [vmem:[#allocation2 + $0x48] sm:$0xff]  }
 0x212   : > { %v3653_v37 = vpop.f32.mrf.mxu0  ;;  %12768 = vmatpush3.bf16.msra.mxu1 %v13575_v58 }
 0x213   : > { %v15603_v45 = vadd.f32 %v12384_v57, %v3748_v5  ;;  %v3746_v51 = vadd.f32 %v3653_v37, %v15410_v55  ;;  %v3870_v46 = vpop.f32.mrf.mxu1  ;;  %12769 = vmatprep.subr.bf16.mxu1 %v13577_v43  ;;  %12728 = vmatpush3.bf16.msra.mxu0 %v13586_v28 }
 0x214   : > { %v12347_v62 = vpop.f32.mrf.mxu0  ;;  %12666 = vmatmul.mubr.bf16.gmra.mxu0 %v15601_v1  ;;  %12729 = vmatprep.subr.bf16.mxu0 %v13587_v19 }
 0x215   : > { %v15615_v60 = vadd.f32 %v3870_v46, %v3746_v51  ;;  %v3751_v55 = vadd.f32 %v12347_v62, %v15434_v33  ;;  %v12387_v12 = vpop.f32.mrf.mxu1  ;;  %12706 = vmatmul.mubr.bf16.gmra.mxu1 %v15364_v31  ;;  %12669 = vmatprep.mubr.bf16.mxu0 %v15606_v22  ;;  %v13591_v31 = vld [vmem:[%s17960_s3 + $0x118] sm:$0xff]  }
 0x216   : > { %12709 = vmatprep.mubr.bf16.mxu1 %v15369_v32  ;;  %v3666_v58 = vpop.f32.mrf.mxu0  ;;  %12770 = vmatpush3.bf16.msra.mxu1 %v13577_v43  ;;  %v13582_v43 = vld [vmem:[%s17960_s3 + $0x1d0] sm:$0xff]  }
 0x217   : > { %v15621_v39 = vadd.f32 %v12387_v12, %v3751_v55  ;;  %v3749_v14 = vadd.f32 %v3666_v58, %v15442_v56  ;;  %v3883_v28 = vpop.f32.mrf.mxu1  ;;  %12771 = vmatprep.subr.bf16.mxu1 %v13579_v40  ;;  %12730 = vmatpush3.bf16.msra.mxu0 %v13587_v19  ;;  %v15633_v56 = vld [vmem:[#allocation2 + $0x40] sm:$0xff]  }
 0x218   : > { %v12348_v33 = vpop.f32.mrf.mxu0  ;;  %12731 = vmatprep.subr.bf16.mxu0 %v13589_v42 }
 0x219   : > { %v15630_v32 = vadd.f32 %v3883_v28, %v3749_v14  ;;  %v3752_v38 = vadd.f32 %v12348_v33, %v15467_v49  ;;  %v12388_v17 = vpop.f32.mrf.mxu1  ;;  %v13594_v49 = vld [vmem:[%s17960_s3 + $0x110] sm:$0xff]   ;;  %v15670_v28 = vld [vmem:[#allocation2 + $0x58] sm:$0xff]  }
 0x21a   : > { %v3669_v59 = vpop.f32.mrf.mxu0  ;;  %12772 = vmatpush3.bf16.msra.mxu1 %v13579_v40  ;;  %v13583_v40 = vld [vmem:[%s17960_s3 + $0x1c8] sm:$0xff]  }
 0x21b   : > { %v15635_v54 = vadd.f32 %v12388_v17, %v3752_v38  ;;  %v3750_v47 = vadd.f32 %v3669_v59, %v15446_v13  ;;  %v3886_v8 = vpop.f32.mrf.mxu1  ;;  %12773 = vmatprep.subr.bf16.mxu1 %v13581_v4  ;;  %12732 = vmatpush3.bf16.msra.mxu0 %v13589_v42 }
 0x21c   : > { %v12351_v48 = vpop.f32.mrf.mxu0  ;;  %12670 = vmatmul.mubr.bf16.gmra.mxu0 %v15633_v56  ;;  %12733 = vmatprep.subr.bf16.mxu0 %v13591_v31 }
 0x21d   : > { %v15647_v19 = vadd.f32 %v3886_v8, %v3750_v47  ;;  %v3755_v13 = vadd.f32 %v12351_v48, %v15473_v10  ;;  %v12391_v5 = vpop.f32.mrf.mxu1  ;;  %12710 = vmatmul.mubr.bf16.gmra.mxu1 %v15394_v50  ;;  %12673 = vmatprep.mubr.bf16.mxu0 %v15638_v11  ;;  %v13597_v50 = vld [vmem:[%s17960_s3 + $0x108] sm:$0xff]  }
 0x21e   : > { %12713 = vmatprep.mubr.bf16.mxu1 %v15416_v9  ;;  %v3682_v57 = vpop.f32.mrf.mxu0  ;;  %12774 = vmatpush3.bf16.msra.mxu1 %v13581_v4  ;;  %v13584_v4 = vld [vmem:[%s17960_s3 + $0x1c0] sm:$0xff]  }
 0x21f   : > { %v15653_v37 = vadd.f32 %v12391_v5, %v3755_v13  ;;  %v3753_v51 = vadd.f32 %v3682_v57, %v15488_v21  ;;  %v3899_v46 = vpop.f32.mrf.mxu1  ;;  %12775 = vmatprep.subr.bf16.mxu1 %v13582_v43  ;;  %12734 = vmatpush3.bf16.msra.mxu0 %v13591_v31  ;;  %v15665_v21 = vld [vmem:[#allocation2 + $0x50] sm:$0xff]   ;;  %v15699_v13 = vld [vmem:[#allocation2 + $0x60] sm:$0xff]  }
 0x220   : > { %v12352_v10 = vpop.f32.mrf.mxu0  ;;  %12735 = vmatprep.subr.bf16.mxu0 %v13594_v49 }
 0x221   : > { %v15662_v9 = vadd.f32 %v3899_v46, %v3753_v51  ;;  %v3756_v62 = vadd.f32 %v12352_v10, %v15505_v15  ;;  %v12392_v42 = vpop.f32.mrf.mxu1  ;;  %v13601_v15 = vld [vmem:[%s17960_s3 + $0x100] sm:$0xff]  }
 0x222   : > { %v3685_v55 = vpop.f32.mrf.mxu0  ;;  %12776 = vmatpush3.bf16.msra.mxu1 %v13582_v43  ;;  %v13588_v43 = vld [vmem:[%s17960_s3 + $0xf8] sm:$0xff]  }
 0x223   : > { %v15667_v12 = vadd.f32 %v12392_v42, %v3756_v62  ;;  %v3754_v58 = vadd.f32 %v3685_v55, %v15492_v0  ;;  %v3902_v14 = vpop.f32.mrf.mxu1  ;;  %12777 = vmatprep.subr.bf16.mxu1 %v13583_v40  ;;  %12736 = vmatpush3.bf16.msra.mxu0 %v13594_v49 }
 0x224   : > { %v12355_v33 = vpop.f32.mrf.mxu0  ;;  %12674 = vmatmul.mubr.bf16.gmra.mxu0 %v15665_v21  ;;  %12737 = vmatprep.subr.bf16.mxu0 %v13597_v50 }
 0x225   : > { %v15679_v31 = vadd.f32 %v3902_v14, %v3754_v58  ;;  %v3759_v0 = vadd.f32 %v12355_v33, %v15511_v61  ;;  %v12395_v38 = vpop.f32.mrf.mxu1  ;;  %12714 = vmatmul.mubr.bf16.gmra.mxu1 %v15451_v23  ;;  %12677 = vmatprep.mubr.bf16.mxu0 %v15670_v28  ;;  %v15694_v23 = vld [vmem:[%s17960_s3 + $0x38] sm:$0xff]  }
 0x226   : > { %12717 = vmatprep.mubr.bf16.mxu1 %v15457_v27  ;;  %v3698_v17 = vpop.f32.mrf.mxu0  ;;  %12778 = vmatpush3.bf16.msra.mxu1 %v13583_v40 }
 0x227   : > { %v15685_v59 = vadd.f32 %v12395_v38, %v3759_v0  ;;  %v3757_v47 = vadd.f32 %v3698_v17, %v15516_v2  ;;  %v3915_v8 = vpop.f32.mrf.mxu1  ;;  %12779 = vmatprep.subr.bf16.mxu1 %v13584_v4  ;;  %12738 = vmatpush3.bf16.msra.mxu0 %v13597_v50 }
 0x228   : > { %v12356_v61 = vpop.f32.mrf.mxu0  ;;  %12739 = vmatprep.subr.bf16.mxu0 %v13601_v15 }
 0x229   : > { %v15696_v27 = vadd.f32 %v3915_v8, %v3757_v47  ;;  %v3760_v48 = vadd.f32 %v12356_v61, %v15532_v24  ;;  %v12396_v49 = vpop.f32.mrf.mxu1 }
 0x22a   : > { %v3701_v2 = vpop.f32.mrf.mxu0  ;;  %12780 = vmatpush3.bf16.msra.mxu1 %v13584_v4 }
 0x22b   : > { %v15701_v5 = vadd.f32 %v12396_v49, %v3760_v48  ;;  %v3758_v57 = vadd.f32 %v3701_v2, %v15520_v7  ;;  %v3918_v51 = vpop.f32.mrf.mxu1  ;;  %12845 = vmatprep.subr.bf16.mxu1 %v13588_v43  ;;  %12740 = vmatpush3.bf16.msra.mxu0 %v13601_v15 }
 0x22c   : > { %v12359_v46 = vpop.f32.mrf.mxu0  ;;  %12678 = vmatmul.mubr.bf16.gmra.mxu0 %v15699_v13  ;;  %12805 = vmatprep.subr.bf16.mxu0 %v15694_v23 }
 0x22d   : > { %v15706_v40 = vadd.f32 %v3918_v51, %v3758_v57  ;;  %v3763_v24 = vadd.f32 %v12359_v46, %v15538_v36  ;;  %v12399_v10 = vpop.f32.mrf.mxu1  ;;  %12718 = vmatmul.mubr.bf16.gmra.mxu1 %v15495_v35 }
 0x22e   : > { %12721 = vmatprep.mubr.bf16.mxu1 %v15498_v63  ;;  %v3714_v50 = vpop.f32.mrf.mxu0 }
 0x22f   : > { %v15711_v62 = vadd.f32 %v12399_v10, %v3763_v24  ;;  %v3761_v7 = vadd.f32 %v3714_v50, %v15543_v29  ;;  %v3931_v42 = vpop.f32.mrf.mxu1 }
 0x230   : > { %v12360_v55 = vpop.f32.mrf.mxu0 }
 0x231   : > { %v15714_v58 = vadd.f32 %v3931_v42, %v3761_v7  ;;  %v3764_v14 = vadd.f32 %v12360_v55, %v15566_v30  ;;  %v12400_v4 = vpop.f32.mrf.mxu1 }
 0x232   : > { %v3717_v33 = vpop.f32.mrf.mxu0 }
 0x233   : > { %v15717_v15 = vadd.f32 %v12400_v4, %v3764_v14  ;;  %v3762_v36 = vadd.f32 %v3717_v33, %v15549_v25  ;;  %v3934_v35 = vpop.f32.mrf.mxu1 }
 0x234   : > { %v12363_v0 = vpop.f32.mrf.mxu0 }
 0x235   : > { %v15720_v63 = vadd.f32 %v3934_v35, %v3762_v36  ;;  %v3767_v38 = vadd.f32 %v12363_v0, %v15578_v6  ;;  %v12403_v17 = vpop.f32.mrf.mxu1  ;;  %12722 = vmatmul.mubr.bf16.gmra.mxu1 %v15523_v3 }
 0x236   : > { %12781 = vmatprep.mubr.bf16.mxu1 %v15525_v41  ;;  %v3730_v29 = vpop.f32.mrf.mxu0  ;;  %v13590_v41 = vld [vmem:[%s17960_s3 + $0xf0] sm:$0xff]  }
 0x237   : > { %v15725_v47 = vadd.f32 %v12403_v17, %v3767_v38  ;;  %v3765_v30 = vadd.f32 %v3730_v29, %v15595_v26  ;;  %v3947_v8 = vpop.f32.mrf.mxu1 }
 0x238   : > { %v12364_v61 = vpop.f32.mrf.mxu0 }
 0x239   : > { %v15728_v48 = vadd.f32 %v3947_v8, %v3765_v30  ;;  %v3768_v25 = vadd.f32 %v12364_v61, %v15585_v52  ;;  %v12404_v49 = vpop.f32.mrf.mxu1 }
 0x23a   : > { %v3733_v2 = vpop.f32.mrf.mxu0 }
 0x23b   : > { %v15731_v57 = vadd.f32 %v12404_v49, %v3768_v25  ;;  %v3766_v6 = vadd.f32 %v3733_v2, %v15599_v34  ;;  %v3950_v3 = vpop.f32.mrf.mxu1  ;;  %v13592_v34 = vld [vmem:[%s17960_s3 + $0xe8] sm:$0xff]  }
 0x23c   : > { %v12423_v51 = vpop.f32.mrf.mxu0 }
 0x23d   : > { %v15737_v46 = vadd.f32 %v3950_v3, %v3766_v6  ;;  %v12463_v26 = vpop.f32.mrf.mxu1  ;;  %12782 = vmatmul.mubr.bf16.vlgmr.msra.gmra.mxu1 %v15545_v18  ;;  %v4181_v50 = vadd.f32 %v12423_v51, %v15570_v20  ;;  %v13598_v3 = vld [vmem:[%s17960_s3 + $0xd0] sm:$0xff]  }
 0x23e   : > { %12785 = vmatprep.mubr.bf16.mxu1 %v15552_v53  ;;  %v4084_v52 = vpop.f32.mrf.mxu0  ;;  %12846 = vmatpush3.bf16.msra.mxu1 %v13588_v43  ;;  %v13593_v43 = vld [vmem:[%s17960_s3 + $0xe0] sm:$0xff]  }
 0x23f   : > { %v15741_v24 = vpop.f32.mrf.mxu1  ;;  %12847 = vmatprep.subr.bf16.mxu1 %v13590_v41  ;;  %v4179_v7 = vadd.f32 %v4084_v52, %v15590_v44  ;;  %v4205_v4 = vrot.slane %v4181_v50, 1 }
 0x240   : > { %v12424_v10 = vpop.f32.mrf.mxu0 }
 0x241   : > { %v15748_v42 = vpop.f32.mrf.mxu1  ;;  %v4203_v33 = vrot.slane %v4179_v7, 1  ;;  %v4182_v20 = vadd.f32 %v12424_v10, %v15603_v45 }
 0x242   : > { %v4087_v55 = vpop.f32.mrf.mxu0  ;;  %12848 = vmatpush3.bf16.msra.mxu1 %v13590_v41 }
 0x243   : > { %v4180_v18 = vadd.f32 %v4087_v55, %v15615_v60  ;;  %v15751_v53 = vpop.f32.mrf.mxu1  ;;  %12849 = vmatprep.subr.bf16.mxu1 %v13592_v34  ;;  %v4206_v29 = vrot.slane %v4182_v20, 1  ;;  %v13602_v20 = vld [vmem:[%s17960_s3 + $0xc0] sm:$0xff]  }
 0x244   : > { %v12427_v14 = vpop.f32.mrf.mxu0 }
 0x245   : > { %v4204_v36 = vrot.slane %v4180_v18, 1  ;;  %v15757_v44 = vpop.f32.mrf.mxu1  ;;  %12786 = vmatmul.mubr.bf16.gmra.mxu1 %v15601_v1  ;;  %v4185_v0 = vadd.f32 %v12427_v14, %v15621_v39  ;;  %v13595_v1 = vld [vmem:[%s17960_s3 + $0xd8] sm:$0xff]  }
 0x246   : > { %12789 = vmatprep.mubr.bf16.mxu1 %v15606_v22  ;;  %v4100_v60 = vpop.f32.mrf.mxu0  ;;  %12850 = vmatpush3.bf16.msra.mxu1 %v13592_v34 }
 0x247   : > { %v15763_v35 = vsel %vm1172_vm0, %v4204_v36, %v4205_v4  ;;  %v4183_v38 = vadd.f32 %v4100_v60, %v15630_v32  ;;  %v15767_v17 = vpop.f32.mrf.mxu1  ;;  %v15771_v45 = vsel %vm1172_vm0, %v4203_v33, %v4204_v36  ;;  %12851 = vmatprep.subr.bf16.mxu1 %v13593_v43  ;;  %v4209_v32 = vrot.slane %v4185_v0, 1 }
 0x248   : > { %v12428_v22 = vpop.f32.mrf.mxu0 }
 0x249   : > { %v4207_v30 = vrot.slane %v4183_v38, 1  ;;  %v4186_v8 = vadd.f32 %v12428_v22, %v15635_v54  ;;  %v15777_v61 = vpop.f32.mrf.mxu1  ;;  %v15830_v22 = vld [vmem:[%s17960_s3 + $0x178] sm:$0xff]  }
 0x24a   : > { %v4103_v39 = vpop.f32.mrf.mxu0  ;;  %12852 = vmatpush3.bf16.msra.mxu1 %v13593_v43 }
 0x24b   : > { %v4210_v25 = vrot.slane %v4186_v8, 1  ;;  %v4184_v49 = vadd.f32 %v4103_v39, %v15647_v19  ;;  %v4359_v2 = vpop.f32.mrf.mxu1  ;;  %v15782_v6 = vsel %vm1172_vm0, %v4206_v29, %v4207_v30  ;;  %12853 = vmatprep.subr.bf16.mxu1 %v13595_v1 }
 0x24c   : > { %v12431_v41 = vpop.f32.mrf.mxu0 }
 0x24d   : > { %v4208_v54 = vrot.slane %v4184_v49, 1  ;;  %v15787_v51 = vpop.f32.mrf.mxu1  ;;  %12790 = vmatmul.mubr.bf16.gmra.mxu1 %v15633_v56  ;;  %v15792_v26 = vsel %vm1172_vm0, %v4209_v32, %v4210_v25  ;;  %v4189_v52 = vadd.f32 %v12431_v41, %v15653_v37  ;;  %v13600_v56 = vld [vmem:[%s17960_s3 + $0xc8] sm:$0xff]  }
 0x24e   : > { %12793 = vmatprep.mubr.bf16.mxu1 %v15638_v11  ;;  %v4116_v19 = vpop.f32.mrf.mxu0  ;;  %12854 = vmatpush3.bf16.msra.mxu1 %v13595_v1 }
 0x24f   : > { %v4187_v34 = vadd.f32 %v4116_v19, %v15662_v9  ;;  %v4371_v10 = vpop.f32.mrf.mxu1  ;;  %v15799_v50 = vsel %vm1172_vm0, %v4207_v30, %v4208_v54  ;;  %12855 = vmatprep.subr.bf16.mxu1 %v13598_v3  ;;  %v4213_v37 = vrot.slane %v4189_v52, 1 }
 0x250   : > { %v12432_v7 = vpop.f32.mrf.mxu0 }
 0x251   : > { %v4211_v55 = vrot.slane %v4187_v34, 1  ;;  %v4190_v11 = vadd.f32 %v12432_v7, %v15667_v12  ;;  %v12472_v18 = vpop.f32.mrf.mxu1 }
 0x252   : > { %v4119_v43 = vpop.f32.mrf.mxu0  ;;  %12856 = vmatpush3.bf16.msra.mxu1 %v13598_v3 }
 0x253   : > { %v4214_v14 = vrot.slane %v4190_v11, 1  ;;  %v4188_v9 = vadd.f32 %v4119_v43, %v15679_v31  ;;  %v15806_v4 = vpop.f32.mrf.mxu1  ;;  %v15810_v33 = vsel %vm1172_vm0, %v4210_v25, %v4211_v55  ;;  %12857 = vmatprep.subr.bf16.mxu1 %v13600_v56 }
 0x254   : > { %v12435_v36 = vpop.f32.mrf.mxu0 }
 0x255   : > { %v4212_v12 = vrot.slane %v4188_v9, 1  ;;  %v12475_v60 = vpop.f32.mrf.mxu1  ;;  %12794 = vmatmul.mubr.bf16.gmra.mxu1 %v15665_v21  ;;  %v15818_v0 = vsel %vm1172_vm0, %v4213_v37, %v4214_v14  ;;  %v4193_v29 = vadd.f32 %v12435_v36, %v15685_v59 }
 0x256   : > { %12797 = vmatprep.mubr.bf16.mxu1 %v15670_v28  ;;  %v4132_v31 = vpop.f32.mrf.mxu0  ;;  %12858 = vmatpush3.bf16.msra.mxu1 %v13600_v56 }
 0x257   : > { %v15823_v38 = vsel %vm1172_vm0, %v4212_v12, %v4213_v37  ;;  %v15825_v1 = vpop.f32.mrf.mxu1  ;;  %12859 = vmatprep.subr.bf16.mxu1 %v13602_v20  ;;  %v4191_v30 = vadd.f32 %v4132_v31, %v15696_v27  ;;  %v4217_v49 = vrot.slane %v4193_v29, 1 }
 0x258   : > { %v12436_v21 = vpop.f32.mrf.mxu0 }
 0x259   : > { %v15834_v28 = vpop.f32.mrf.mxu1  ;;  %v4215_v2 = vrot.slane %v4191_v30, 1  ;;  %v4194_v3 = vadd.f32 %v12436_v21, %v15701_v5 }
 0x25a   : > { %v4135_v8 = vpop.f32.mrf.mxu0  ;;  %12860 = vmatpush3.bf16.msra.mxu1 %v13602_v20 }
 0x25b   : > { %v4192_v39 = vadd.f32 %v4135_v8, %v15706_v40  ;;  %v15837_v32 = vpop.f32.mrf.mxu1  ;;  %12925 = vmatprep.subr.bf16.mxu1 %v15830_v22  ;;  %v4218_v10 = vrot.slane %v4194_v3, 1 }
 0x25c   : > { %v12439_v25 = vpop.f32.mrf.mxu0 }
 0x25d   : > { %v4216_v41 = vrot.slane %v4192_v39, 1  ;;  %v15841_v54 = vpop.f32.mrf.mxu1  ;;  %12798 = vmatmul.mubr.bf16.gmra.mxu1 %v15699_v13  ;;  %v4197_v40 = vadd.f32 %v12439_v25, %v15711_v62 }
 0x25e   : > { %v4148_v59 = vpop.f32.mrf.mxu0 }
 0x25f   : > { %v15846_v27 = vsel %vm1172_vm0, %v4216_v41, %v4217_v49  ;;  %v4195_v19 = vadd.f32 %v4148_v59, %v15714_v58  ;;  %v15850_v52 = vpop.f32.mrf.mxu1  ;;  %v15854_v34 = vsel %vm1172_vm0, %v4215_v2, %v4216_v41  ;;  %v4221_v11 = vrot.slane %v4197_v40, 1 }
 0x260   : > { %v12440_v5 = vpop.f32.mrf.mxu0  ;;  %v4428_v59 = vadd.f32 %v15741_v24, %v15771_v45 }
 0x261   : > { %v4219_v56 = vrot.slane %v4195_v19, 1  ;;  %v4198_v13 = vadd.f32 %v12440_v5, %v15717_v15  ;;  %v15857_v7 = vpop.f32.mrf.mxu1 }
 0x262   : > { %v4151_v55 = vpop.f32.mrf.mxu0 }
 0x263   : > { %v4222_v18 = vrot.slane %v4198_v13, 1  ;;  %v4196_v62 = vadd.f32 %v4151_v55, %v15720_v63  ;;  %v4403_v43 = vpop.f32.mrf.mxu1  ;;  %v15862_v58 = vsel %vm1172_vm0, %v4218_v10, %v4219_v56  ;;  %v4430_v10 = vadd.f32 %v15748_v42, %v15782_v6 }
 0x264   : > { %v12443_v37 = vpop.f32.mrf.mxu0  ;;  %v4429_v13 = vadd.f32 %v15751_v53, %v15763_v35  ;;  %v4432_v42 = vadd.f32 %v15757_v44, %v15792_v26 }
 0x265   : > { %v4220_v14 = vrot.slane %v4196_v62, 1  ;;  %v15864_v9 = vpop.f32.mrf.mxu1  ;;  %v15868_v20 = vsel %vm1172_vm0, %v4221_v11, %v4222_v18  ;;  %v4201_v36 = vadd.f32 %v12443_v37, %v15725_v47 }
 0x266   : > { %v4164_v15 = vpop.f32.mrf.mxu0 }
 0x267   : > { %v4199_v12 = vadd.f32 %v4164_v15, %v15728_v48  ;;  %v4415_v60 = vpop.f32.mrf.mxu1  ;;  %v15874_v63 = vsel %vm1172_vm0, %v4219_v56, %v4220_v14  ;;  %v4225_v39 = vrot.slane %v4201_v36, 1 }
 0x268   : > { %v12444_v31 = vpop.f32.mrf.mxu0 }
 0x269   : > { %v4223_v21 = vrot.slane %v4199_v12, 1  ;;  %v4202_v29 = vadd.f32 %v12444_v31, %v15731_v57  ;;  %v12484_v30 = vpop.f32.mrf.mxu1  ;;  %v4431_v12 = vadd.f32 %v15767_v17, %v15799_v50 }
 0x26a   : > { %v4167_v8 = vpop.f32.mrf.mxu0 }
 0x26b   : > { %v4226_v25 = vrot.slane %v4202_v29, 1  ;;  %v4200_v49 = vadd.f32 %v4167_v8, %v15737_v46  ;;  %v15878_v2 = vpop.f32.mrf.mxu1  ;;  %v15882_v47 = vsel %vm1172_vm0, %v4222_v18, %v4223_v21  ;;  %v15901_v18 = vld [vmem:[%s17959_s2] ss:$0 sm:$0xff]  ;;  %v4433_v8 = vadd.f32 %v15777_v61, %v15810_v33 }
 0x26c   : > { %v12503_v48 = vpop.f32.mrf.mxu0 }
 0x26d   : > { %v4224_v3 = vrot.slane %v4200_v49, 1  ;;  %v12543_v41 = vpop.f32.mrf.mxu1  ;;  %v15888_v57 = vsel %vm1172_vm0, %v4225_v39, %v4226_v25 }
 0x26e   : > { %v4542_v40 = vpop.f32.mrf.mxu0 }
 0x26f   : > { %v15892_v46 = vsel %vm1172_vm0, %v4224_v3, %v4225_v39  ;;  %v4629_v19 = vadd.f32 %v4542_v40, %v4428_v59  ;;  %v4743_v5 = vpop.f32.mrf.mxu1 }
 0x270   : > { %v12504_v56 = vpop.f32.mrf.mxu0 }
 0x271   : > { %v4830_v55 = vadd.f32 %v4743_v5, %v4629_v19  ;;  %v12544_v24 = vpop.f32.mrf.mxu1  ;;  %v4631_v45 = vadd.f32 %v12504_v56, %v4430_v10  ;;  %v4435_v5 = vadd.f32 %v15787_v51, %v15818_v0  ;;  %v4434_v51 = vadd.f32 %v15806_v4, %v15823_v38 }
 0x272   : > { %v4545_v11 = vpop.f32.mrf.mxu0 }
 0x273   : > { %v4846_v62 = vadd.f32 %v15901_v18, %v4830_v55  ;;  %v4630_v43 = vadd.f32 %v4545_v11, %v4429_v13  ;;  %v4746_v37 = vpop.f32.mrf.mxu1  ;;  %v4832_v36 = vadd.f32 %v12544_v24, %v4631_v45 }
 0x274   : > { %v12507_v6 = vpop.f32.mrf.mxu0 }
 0x275   : > { %v4862_v14 = vmax.f32 %v4846_v62, 0.0  ;;  %v4831_v15 = vadd.f32 %v4746_v37, %v4630_v43  ;;  %v4633_v53 = vadd.f32 %v12507_v6, %v4432_v42  ;;  %v12547_v35 = vpop.f32.mrf.mxu1  ;;  %v4848_v3 = vadd.f32 %v15901_v18, %v4832_v36 }
 0x276   : > { %v4557_v60 = vpop.f32.mrf.mxu0 }
 0x277   : > { %v10824_v31 = vpack.c.bf16 %v4862_v14, %v4862_v14  ;;  %v4847_v21 = vadd.f32 %v15901_v18, %v4831_v15  ;;  %v4834_v29 = vadd.f32 %v12547_v35, %v4633_v53  ;;  %v4758_v30 = vpop.f32.mrf.mxu1  ;;  %v4632_v39 = vadd.f32 %v4557_v60, %v4431_v12 }
 0x278   : > { %v12508_v44 = vpop.f32.mrf.mxu0  ;;  %v4864_v24 = vmax.f32 %v4848_v3, 0.0 }
 0x279   : > { %4943 = vst [vmem:[#allocation2 + $0x6c] sm:$0xf] %v10824_v31  ;;  %v4863_v26 = vmax.f32 %v4847_v21, 0.0  ;;  %v4850_v25 = vadd.f32 %v15901_v18, %v4834_v29  ;;  %v4634_v49 = vadd.f32 %v12508_v44, %v4433_v8  ;;  %v12548_v48 = vpop.f32.mrf.mxu1  ;;  %v4833_v17 = vadd.f32 %v4758_v30, %v4632_v39  ;;  %v13799_v44 = vld [vmem:[#allocation2 + $0xc] sm:$0xff]  }
 0x27a   : > { %v4560_v50 = vpop.f32.mrf.mxu0  ;;  %v4436_v30 = vadd.f32 %v15825_v1, %v15854_v34 }
 0x27b   : > { %v10825_v41 = vpack.c.bf16 %v4863_v26, %v4863_v26  ;;  %v4866_v59 = vmax.f32 %v4850_v25, 0.0  ;;  %v4835_v40 = vadd.f32 %v12548_v48, %v4634_v49  ;;  %v4761_v19 = vpop.f32.mrf.mxu1  ;;  %v4849_v61 = vadd.f32 %v15901_v18, %v4833_v17 }
 0x27c   : > { %v12511_v33 = vpop.f32.mrf.mxu0  ;;  %v4438_v26 = vadd.f32 %v15834_v28, %v15862_v58  ;;  %v4437_v49 = vadd.f32 %v15837_v32, %v15846_v27  ;;  %v13604_v28 = vld [vmem:[%s17960_s3 + $0x30] sm:$0xff]  }
 0x27d   : > { %4944 = vst [vmem:[#allocation2 + $0x70] sm:$0xf] %v10825_v41  ;;  %v10828_v10 = vpack.c.bf16 %v4866_v59, %v4866_v59  ;;  %v4851_v56 = vadd.f32 %v15901_v18, %v4835_v40  ;;  %v4636_v13 = vadd.f32 %v12511_v33, %v4435_v5  ;;  %v12551_v55 = vpop.f32.mrf.mxu1  ;;  %v4865_v45 = vmax.f32 %v4849_v61, 0.0 }
 0x27e   : > { %v4572_v11 = vpop.f32.mrf.mxu0  ;;  %v4440_v5 = vadd.f32 %v15841_v54, %v15868_v20  ;;  %v4441_v54 = vadd.f32 %v15857_v7, %v15882_v47  ;;  %v13608_v20 = vld [vmem:[%s17960_s3 + $0x170] sm:$0xff]   ;;  %v13605_v7 = vld [vmem:[%s17960_s3 + $0x28] sm:$0xff]  }
 0x27f   : > { %4947 = vst [vmem:[#allocation2 + $0x84] sm:$0xf] %v10828_v10  ;;  %v4867_v62 = vmax.f32 %v4851_v56, 0.0  ;;  %v4773_v43 = vpop.f32.mrf.mxu1  ;;  %v10895_v37 = vpack.c.bf16 %v4865_v45, %v4864_v24  ;;  %v4837_v14 = vadd.f32 %v12551_v55, %v4636_v13  ;;  %v4439_v56 = vadd.f32 %v15850_v52, %v15874_v63  ;;  %v13800_v55 = vld [vmem:[#allocation2 + $0x14] sm:$0xff]  }
 0x280   : > { %v12512_v42 = vpop.f32.mrf.mxu0  ;;  %v13596_v6 = vld [vmem:[#allocation2 + $0x68] sm:$0xff]   ;;  %v13801_v43 = vld [vmem:[#allocation2 + $0x1c] sm:$0xff]  }
 0x281   : > { %v10829_v0 = vpack.c.bf16 %v4867_v62, %v4867_v62  ;;  %v12552_v15 = vpop.f32.mrf.mxu1  ;;  %11084 = vst [vmem:[#allocation2 + $0x78] sm:$0xff] %v10895_v37   ;;  %12681 = vmatprep.mubr.bf16.mxu0 %v13596_v6  ;;  %12801 = vmatprep.mubr.bf16.mxu1 %v13596_v6  ;;  %v4853_v31 = vadd.f32 %v15901_v18, %v4837_v14 }
 0x282   : > { %v4574_v53 = vpop.f32.mrf.mxu0 }
 0x283   : > { %4948 = vst [vmem:[#allocation2 + $0x88] sm:$0xf] %v10829_v0  ;;  %v4635_v35 = vadd.f32 %v4574_v53, %v4434_v51  ;;  %v4775_v36 = vpop.f32.mrf.mxu1  ;;  %v4869_v48 = vmax.f32 %v4853_v31, 0.0  ;;  %v13610_v31 = vld [vmem:[%s17960_s3 + $0x168] sm:$0xff]  }
 0x284   : > { %v12515_v12 = vpop.f32.mrf.mxu0  ;;  %v13599_v60 = vld [vmem:[#allocation2 + $0x70] sm:$0xff]  }
 0x285   : > { %v4836_v21 = vadd.f32 %v4775_v36, %v4635_v35  ;;  %v12555_v29 = vpop.f32.mrf.mxu1  ;;  %12682 = vmatmul.mubr.bf16.gmra.mxu0 %v13599_v60  ;;  %12802 = vmatmul.mubr.bf16.gmra.mxu1 %v13599_v60  ;;  %v4443_v36 = vadd.f32 %v15864_v9, %v15888_v57  ;;  %v13607_v12 = vld [vmem:[%s17960_s3 + $0x20] sm:$0xff]  }
 0x286   : > { %v4586_v4 = vpop.f32.mrf.mxu0  ;;  %12741 = vmatprep.mubr.bf16.mxu0 %v13799_v44  ;;  %12861 = vmatprep.mubr.bf16.mxu1 %v13799_v44  ;;  %v13611_v9 = vld [vmem:[%s17960_s3 + $0x160] sm:$0xff]  }
 0x287   : > { %v4852_v38 = vadd.f32 %v15901_v18, %v4836_v21  ;;  %v4637_v8 = vadd.f32 %v4586_v4, %v4436_v30  ;;  %v4787_v39 = vpop.f32.mrf.mxu1 }
 0x288   : > { %v12516_v25 = vpop.f32.mrf.mxu0 }
 0x289   : > { %v4868_v3 = vmax.f32 %v4852_v38, 0.0  ;;  %v4838_v1 = vadd.f32 %v4787_v39, %v4637_v8  ;;  %v12556_v34 = vpop.f32.mrf.mxu1  ;;  %v4639_v17 = vadd.f32 %v12516_v25, %v4438_v26  ;;  %v13802_v39 = vld [vmem:[#allocation2 + $0x24] sm:$0xff]   ;;  %v13803_v25 = vld [vmem:[#allocation2 + $0x2c] sm:$0xff]  }
 0x28a   : > { %v4589_v50 = vpop.f32.mrf.mxu0 }
 0x28b   : > { %v10900_v41 = vpack.c.bf16 %v4869_v48, %v4868_v3  ;;  %v4854_v59 = vadd.f32 %v15901_v18, %v4838_v1  ;;  %v4638_v40 = vadd.f32 %v4589_v50, %v4437_v49  ;;  %v4790_v19 = vpop.f32.mrf.mxu1  ;;  %v4840_v10 = vadd.f32 %v12556_v34, %v4639_v17  ;;  %v13609_v50 = vld [vmem:[%s17960_s3 + $0x18] sm:$0xff]  }
 0x28c   : > { %v12519_v61 = vpop.f32.mrf.mxu0  ;;  %v4442_v3 = vadd.f32 %v15878_v2, %v15892_v46  ;;  %v13613_v2 = vld [vmem:[%s17960_s3 + $0x158] sm:$0xff]  }
 0x28d   : > { %11085 = vst [vmem:[#allocation2 + $0x90] sm:$0xff] %v10900_v41   ;;  %v4870_v32 = vmax.f32 %v4854_v59, 0.0  ;;  %v4839_v27 = vadd.f32 %v4790_v19, %v4638_v40  ;;  %v4641_v58 = vadd.f32 %v12519_v61, %v4440_v5  ;;  %v12559_v33 = vpop.f32.mrf.mxu1  ;;  %12742 = vmatmul.mubr.bf16.vlgmr.msra.gmra.mxu0 %v13800_v55  ;;  %12862 = vmatmul.mubr.bf16.vlgmr.msra.gmra.mxu1 %v13800_v55 }
 0x28e   : > { %v4601_v13 = vpop.f32.mrf.mxu0  ;;  %12745 = vmatprep.mubr.bf16.mxu0 %v13801_v43  ;;  %12806 = vmatpush3.bf16.msra.mxu0 %v15694_v23  ;;  %v4856_v51 = vadd.f32 %v15901_v18, %v4840_v10 }
 0x28f   : > { %v10832_v24 = vpack.c.bf16 %v4870_v32, %v4870_v32  ;;  %v4855_v45 = vadd.f32 %v15901_v18, %v4839_v27  ;;  %v4842_v11 = vadd.f32 %v12559_v33, %v4641_v58  ;;  %v4802_v62 = vpop.f32.mrf.mxu1  ;;  %v4640_v52 = vadd.f32 %v4601_v13, %v4439_v56  ;;  %12865 = vmatprep.mubr.bf16.mxu1 %v13801_v43  ;;  %v13804_v58 = vld [vmem:[#allocation2 + $0x34] sm:$0xff]   ;;  %v13805_v13 = vld [vmem:[#allocation2 + $0x3c] sm:$0xff]  }
 0x290   : > { %v12520_v63 = vpop.f32.mrf.mxu0  ;;  %12807 = vmatprep.subr.bf16.mxu0 %v13604_v28  ;;  %12926 = vmatpush3.bf16.msra.mxu1 %v15830_v22  ;;  %v4872_v57 = vmax.f32 %v4856_v51, 0.0  ;;  %v13615_v33 = vld [vmem:[%s17960_s3 + $0x150] sm:$0xff]   ;;  %v13806_v51 = vld [vmem:[#allocation2 + $0x44] sm:$0xff]  }
 0x291   : > { %4951 = vst [vmem:[#allocation2 + $0x9c] sm:$0xf] %v10832_v24  ;;  %v4871_v47 = vmax.f32 %v4855_v45, 0.0  ;;  %v4858_v37 = vadd.f32 %v15901_v18, %v4842_v11  ;;  %v4642_v42 = vadd.f32 %v12520_v63, %v4441_v54  ;;  %v12560_v6 = vpop.f32.mrf.mxu1  ;;  %v4841_v0 = vadd.f32 %v4802_v62, %v4640_v52  ;;  %12927 = vmatprep.subr.bf16.mxu1 %v13608_v20 }
 0x292   : > { %v4604_v23 = vpop.f32.mrf.mxu0  ;;  %12808 = vmatpush3.bf16.msra.mxu0 %v13604_v28  ;;  %v13612_v28 = vld [vmem:[%s17960_s3 + $0x10] sm:$0xff]  }
 0x293   : > { %v10833_v14 = vpack.c.bf16 %v4871_v47, %v4871_v47  ;;  %v4874_v15 = vmax.f32 %v4858_v37, 0.0  ;;  %v4843_v53 = vadd.f32 %v12560_v6, %v4642_v42  ;;  %v4805_v35 = vpop.f32.mrf.mxu1  ;;  %v4857_v60 = vadd.f32 %v15901_v18, %v4841_v0  ;;  %12809 = vmatprep.subr.bf16.mxu0 %v13605_v7  ;;  %v13618_v37 = vld [vmem:[%s17960_s3] sm:$0xff]  }
 0x294   : > { %v12523_v22 = vpop.f32.mrf.mxu0  ;;  %12928 = vmatpush3.bf16.msra.mxu1 %v13608_v20  ;;  %v13614_v20 = vld [vmem:[%s17960_s3 + $0x8] sm:$0xff]   ;;  %v13619_v0 = vld [vmem:[%s17960_s3 + $0x140] sm:$0xff]  }
 0x295   : > { %4952 = vst [vmem:[#allocation2 + $0xa0] sm:$0xf] %v10833_v14  ;;  %v10836_v21 = vpack.c.bf16 %v4874_v15, %v4874_v15  ;;  %v4859_v29 = vadd.f32 %v15901_v18, %v4843_v53  ;;  %v4644_v30 = vadd.f32 %v12523_v22, %v4443_v36  ;;  %v12563_v4 = vpop.f32.mrf.mxu1  ;;  %v4873_v38 = vmax.f32 %v4857_v60, 0.0  ;;  %12746 = vmatmul.mubr.bf16.gmra.mxu0 %v13802_v39  ;;  %v13807_v14 = vld [vmem:[#allocation2 + $0x4c] sm:$0xff]   ;;  %v13620_v36 = vld [vmem:[%s17960_s3 + $0x1b8] sm:$0xff]  }
 0x296   : > { %v4616_v8 = vpop.f32.mrf.mxu0  ;;  %12866 = vmatmul.mubr.bf16.gmra.mxu1 %v13802_v39  ;;  %12749 = vmatprep.mubr.bf16.mxu0 %v13803_v25 }
 0x297   : > { %4955 = vst [vmem:[#allocation2 + $0xb4] sm:$0xf] %v10836_v21  ;;  %v4875_v44 = vmax.f32 %v4859_v29, 0.0  ;;  %v4817_v26 = vpop.f32.mrf.mxu1  ;;  %12869 = vmatprep.mubr.bf16.mxu1 %v13803_v25  ;;  %v10905_v49 = vpack.c.bf16 %v4873_v38, %v4872_v57  ;;  %12810 = vmatpush3.bf16.msra.mxu0 %v13605_v7  ;;  %v4845_v34 = vadd.f32 %v12563_v4, %v4644_v30  ;;  %v13616_v7 = vld [vmem:[%s17960_s3 + $0x148] sm:$0xff]   ;;  %v13628_v21 = vld [vmem:[%s17960_s3 + $0x238] sm:$0xff]  }
 0x298   : > { %v12524_v48 = vpop.f32.mrf.mxu0  ;;  %12929 = vmatprep.subr.bf16.mxu1 %v13610_v31  ;;  %12811 = vmatprep.subr.bf16.mxu0 %v13607_v12  ;;  %v13809_v38 = vld [vmem:[#allocation2 + $0x5c] sm:$0xff]  }
 0x299   : > { %v10837_v1 = vpack.c.bf16 %v4875_v44, %v4875_v44  ;;  %v12564_v17 = vpop.f32.mrf.mxu1  ;;  %12930 = vmatpush3.bf16.msra.mxu1 %v13610_v31  ;;  %11086 = vst [vmem:[#allocation2 + $0xa8] sm:$0xff] %v10905_v49   ;;  %v4861_v46 = vadd.f32 %v15901_v18, %v4845_v34 }
 0x29a   : > { %v4618_v41 = vpop.f32.mrf.mxu0  ;;  %12931 = vmatprep.subr.bf16.mxu1 %v13611_v9 }
 0x29b   : > { %4956 = vst [vmem:[#allocation2 + $0xb8] sm:$0xf] %v10837_v1  ;;  %v4643_v59 = vadd.f32 %v4618_v41, %v4442_v3  ;;  %v4819_v40 = vpop.f32.mrf.mxu1  ;;  %12812 = vmatpush3.bf16.msra.mxu0 %v13607_v12  ;;  %v4877_v24 = vmax.f32 %v4861_v46, 0.0  ;;  %v16025_v1 = vld [vmem:[#allocation2 + $0x6c] sm:$0xff]  }
 0x29c   : > { %v12583_v19 = vpop.f32.mrf.mxu0  ;;  %12813 = vmatprep.subr.bf16.mxu0 %v13609_v50 }
 0x29d   : > { %v4844_v5 = vadd.f32 %v4819_v40, %v4643_v59  ;;  %v12623_v61 = vpop.f32.mrf.mxu1  ;;  %12932 = vmatpush3.bf16.msra.mxu1 %v13611_v9  ;;  %12750 = vmatmul.mubr.bf16.gmra.mxu0 %v13804_v58  ;;  %v13808_v9 = vld [vmem:[#allocation2 + $0x54] sm:$0xff]   ;;  %v13811_v59 = vld [vmem:[#allocation2] sm:$0xff]  }
 0x29e   : > { %v15973_v32 = vadd.f32 %v12623_v61, %v12583_v19  ;;  %v5193_v27 = vpop.f32.mrf.mxu0  ;;  %12870 = vmatmul.mubr.bf16.gmra.mxu1 %v13804_v58  ;;  %12753 = vmatprep.mubr.bf16.mxu0 %v13805_v13  ;;  %v13623_v58 = vld [vmem:[%s17960_s3 + $0x1b0] sm:$0xff]  }
 0x29f   : > { %v4860_v10 = vadd.f32 %v15901_v18, %v4844_v5  ;;  %v5442_v56 = vpop.f32.mrf.mxu1  ;;  %12873 = vmatprep.mubr.bf16.mxu1 %v13805_v13  ;;  %12814 = vmatpush3.bf16.msra.mxu0 %v13609_v50  ;;  %v13810_v50 = vld [vmem:[#allocation2 + $0x64] sm:$0xff]  }
 0x2a0   : > { %v15979_v55 = vadd.f32 %v5442_v56, %v5193_v27  ;;  %v12584_v54 = vpop.f32.mrf.mxu0  ;;  %12933 = vmatprep.subr.bf16.mxu1 %v13613_v2  ;;  %12815 = vmatprep.subr.bf16.mxu0 %v13612_v28  ;;  %v16038_v27 = vld [vmem:[#allocation2 + $0x74] sm:$0xff]   ;;  %v13812_v13 = vld [vmem:[#allocation2 + $0x8] sm:$0xff]  }
 0x2a1   : > { %v4876_v45 = vmax.f32 %v4860_v10, 0.0  ;;  %v12624_v11 = vpop.f32.mrf.mxu1  ;;  %12934 = vmatpush3.bf16.msra.mxu1 %v13613_v2 }
 0x2a2   : > { %v15984_v62 = vadd.f32 %v12624_v11, %v12584_v54  ;;  %v15986_v18 = vpop.f32.mrf.mxu0  ;;  %12935 = vmatprep.subr.bf16.mxu1 %v13615_v33  ;;  %v16046_v54 = vld [vmem:[#allocation2 + $0x7c] sm:$0xff]  }
 0x2a3   : > { %v10910_v43 = vpack.c.bf16 %v4877_v24, %v4876_v45  ;;  %v15988_v52 = vpop.f32.mrf.mxu1  ;;  %12816 = vmatpush3.bf16.msra.mxu0 %v13612_v28  ;;  %v13813_v45 = vld [vmem:[#allocation2 + $0x10] sm:$0xff]  }
 0x2a4   : > { %v12587_v63 = vpop.f32.mrf.mxu0  ;;  %12817 = vmatprep.subr.bf16.mxu0 %v13614_v20 }
 0x2a5   : > { %11087 = vst [vmem:[#allocation2 + $0xc0] sm:$0xff] %v10910_v43   ;;  %v12627_v47 = vpop.f32.mrf.mxu1  ;;  %12936 = vmatpush3.bf16.msra.mxu1 %v13615_v33  ;;  %12754 = vmatmul.mubr.bf16.gmra.mxu0 %v13806_v51 }
 0x2a6   : > { %v15996_v42 = vadd.f32 %v12627_v47, %v12587_v63  ;;  %v5209_v6 = vpop.f32.mrf.mxu0  ;;  %12874 = vmatmul.mubr.bf16.gmra.mxu1 %v13806_v51  ;;  %12757 = vmatprep.mubr.bf16.mxu0 %v13807_v14  ;;  %v13626_v63 = vld [vmem:[%s17960_s3 + $0x1a8] sm:$0xff]  }
 0x2a7   : > { %v5458_v23 = vpop.f32.mrf.mxu1  ;;  %12877 = vmatprep.mubr.bf16.mxu1 %v13807_v14  ;;  %12818 = vmatpush3.bf16.msra.mxu0 %v13614_v20  ;;  %v13631_v20 = vld [vmem:[%s17960_s3 + $0x230] sm:$0xff]  }
 0x2a8   : > { %v16001_v15 = vadd.f32 %v5458_v23, %v5209_v6  ;;  %v12588_v53 = vpop.f32.mrf.mxu0  ;;  %12937 = vmatprep.subr.bf16.mxu1 %v13616_v7  ;;  %12819 = vmatprep.subr.bf16.mxu0 %v13618_v37  ;;  %v13634_v23 = vld [vmem:[%s17960_s3 + $0x228] sm:$0xff]  }
 0x2a9   : > { %v12628_v35 = vpop.f32.mrf.mxu1  ;;  %12938 = vmatpush3.bf16.msra.mxu1 %v13616_v7 }
 0x2aa   : > { %v16006_v12 = vadd.f32 %v12628_v35, %v12588_v53  ;;  %v16008_v60 = vpop.f32.mrf.mxu0  ;;  %12939 = vmatprep.subr.bf16.mxu1 %v13619_v0  ;;  %v16068_v53 = vld [vmem:[#allocation2 + $0x8c] sm:$0xff]   ;;  %v13630_v35 = vld [vmem:[%s17960_s3 + $0x1a0] sm:$0xff]  }
 0x2ab   : > { %v16010_v22 = vpop.f32.mrf.mxu1  ;;  %12820 = vmatpush3.bf16.msra.mxu0 %v13618_v37 }
 0x2ac   : > { %v12591_v31 = vpop.f32.mrf.mxu0  ;;  %12885 = vmatprep.subr.bf16.mxu0 %v13620_v36 }
 0x2ad   : > { %v12631_v29 = vpop.f32.mrf.mxu1  ;;  %12940 = vmatpush3.bf16.msra.mxu1 %v13619_v0  ;;  %12758 = vmatmul.mubr.bf16.gmra.mxu0 %v13808_v9  ;;  %v16063_v0 = vld [vmem:[#allocation2 + $0x84] sm:$0xff]  }
 0x2ae   : > { %v16015_v30 = vadd.f32 %v12631_v29, %v12591_v31  ;;  %v5225_v4 = vpop.f32.mrf.mxu0  ;;  %12878 = vmatmul.mubr.bf16.gmra.mxu1 %v13808_v9  ;;  %12761 = vmatprep.mubr.bf16.mxu0 %v13809_v38  ;;  %v13636_v29 = vld [vmem:[%s17960_s3 + $0x220] sm:$0xff]  }
 0x2af   : > { %v5474_v57 = vpop.f32.mrf.mxu1  ;;  %12881 = vmatprep.mubr.bf16.mxu1 %v13809_v38  ;;  %13005 = vmatprep.subr.bf16.mxu1 %v13628_v21  ;;  %v13815_v9 = vld [vmem:[#allocation2 + $0x20] sm:$0xff]  }
 0x2b0   : > { %v16017_v8 = vadd.f32 %v5474_v57, %v5225_v4  ;;  %v12592_v39 = vpop.f32.mrf.mxu0 }
 0x2b1   : > { %v12632_v44 = vpop.f32.mrf.mxu1 }
 0x2b2   : > { %v16019_v26 = vadd.f32 %v12632_v44, %v12592_v39  ;;  %v16021_v25 = vpop.f32.mrf.mxu0  ;;  %v13632_v44 = vld [vmem:[%s17960_s3 + $0x198] sm:$0xff]  }
 0x2b3   : > { %v16023_v49 = vpop.f32.mrf.mxu1 }
 0x2b4   : > { %v12595_v48 = vpop.f32.mrf.mxu0 }
 0x2b5   : > { %v12635_v3 = vpop.f32.mrf.mxu1  ;;  %12762 = vmatmul.mubr.bf16.gmra.mxu0 %v13810_v50 }
 0x2b6   : > { %v16027_v34 = vadd.f32 %v12635_v3, %v12595_v48  ;;  %v5241_v17 = vpop.f32.mrf.mxu0  ;;  %12882 = vmatmul.mubr.bf16.gmra.mxu1 %v13810_v50  ;;  %12821 = vmatprep.mubr.bf16.mxu0 %v13811_v59  ;;  %v13639_v59 = vld [vmem:[%s17960_s3 + $0x218] sm:$0xff]  }
 0x2b7   : > { %v5490_v41 = vpop.f32.mrf.mxu1  ;;  %12941 = vmatprep.mubr.bf16.mxu1 %v16025_v1 }
 0x2b8   : > { %v16030_v40 = vadd.f32 %v5490_v41, %v5241_v17  ;;  %v12596_v19 = vpop.f32.mrf.mxu0  ;;  %v16091_v41 = vld [vmem:[#allocation2 + $0x94] sm:$0xff]  }
 0x2b9   : > { %v12636_v2 = vpop.f32.mrf.mxu1 }
 0x2ba   : > { %v16032_v46 = vadd.f32 %v12636_v2, %v12596_v19  ;;  %v16034_v5 = vpop.f32.mrf.mxu0 }
 0x2bb   : > { %v16036_v61 = vpop.f32.mrf.mxu1 }
 0x2bc   : > { %v12599_v28 = vpop.f32.mrf.mxu0 }
 0x2bd   : > { %v12639_v33 = vpop.f32.mrf.mxu1  ;;  %12822 = vmatmul.mubr.bf16.vlgmr.msra.gmra.mxu0 %v13812_v13  ;;  %v13642_v13 = vld [vmem:[%s17960_s3 + $0x210] sm:$0xff]  }
 0x2be   : > { %v16043_v10 = vadd.f32 %v12639_v33, %v12599_v28  ;;  %v5257_v56 = vpop.f32.mrf.mxu0  ;;  %12942 = vmatmul.mubr.bf16.vlgmr.msra.gmra.mxu1 %v16038_v27  ;;  %12825 = vmatprep.mubr.bf16.mxu0 %v13813_v45  ;;  %v16097_v28 = vld [vmem:[#allocation2 + $0x9c] sm:$0xff]  }
 0x2bf   : > { %v5506_v24 = vpop.f32.mrf.mxu1  ;;  %12886 = vmatpush3.bf16.msra.mxu0 %v13620_v36  ;;  %12945 = vmatprep.mubr.bf16.mxu1 %v16046_v54 }
 0x2c0   : > { %v16051_v11 = vadd.f32 %v5506_v24, %v5257_v56  ;;  %v12600_v43 = vpop.f32.mrf.mxu0  ;;  %12887 = vmatprep.subr.bf16.mxu0 %v13623_v58  ;;  %13006 = vmatpush3.bf16.msra.mxu1 %v13628_v21  ;;  %v13814_v21 = vld [vmem:[#allocation2 + $0x18] sm:$0xff]   ;;  %v13816_v56 = vld [vmem:[#allocation2 + $0x28] sm:$0xff]   ;;  %v13817_v24 = vld [vmem:[#allocation2 + $0x30] sm:$0xff]  }
 0x2c1   : > { %v12640_v7 = vpop.f32.mrf.mxu1  ;;  %13007 = vmatprep.subr.bf16.mxu1 %v13631_v20 }
 0x2c2   : > { %v16057_v47 = vadd.f32 %v12640_v7, %v12600_v43  ;;  %v16059_v37 = vpop.f32.mrf.mxu0  ;;  %v5446_v43 = vadd.f32 %v15988_v52, %v15986_v18 }
 0x2c3   : > { %v16061_v6 = vpop.f32.mrf.mxu1  ;;  %12888 = vmatpush3.bf16.msra.mxu0 %v13623_v58  ;;  %v13637_v58 = vld [vmem:[%s17960_s3 + $0x190] sm:$0xff]  }
 0x2c4   : > { %v12603_v51 = vpop.f32.mrf.mxu0  ;;  %12889 = vmatprep.subr.bf16.mxu0 %v13626_v63  ;;  %13008 = vmatpush3.bf16.msra.mxu1 %v13631_v20 }
 0x2c5   : > { %v12643_v14 = vpop.f32.mrf.mxu1  ;;  %12826 = vmatmul.mubr.bf16.gmra.mxu0 %v13814_v21  ;;  %13009 = vmatprep.subr.bf16.mxu1 %v13634_v23 }
 0x2c6   : > { %v16073_v36 = vadd.f32 %v12643_v14, %v12603_v51  ;;  %v5273_v31 = vpop.f32.mrf.mxu0  ;;  %12946 = vmatmul.mubr.bf16.gmra.mxu1 %v16063_v0  ;;  %12829 = vmatprep.mubr.bf16.mxu0 %v13815_v9 }
 0x2c7   : > { %v5522_v4 = vpop.f32.mrf.mxu1  ;;  %12949 = vmatprep.mubr.bf16.mxu1 %v16068_v53  ;;  %12890 = vmatpush3.bf16.msra.mxu0 %v13626_v63 }
 0x2c8   : > { %v16080_v57 = vadd.f32 %v5522_v4, %v5273_v31  ;;  %v12604_v38 = vpop.f32.mrf.mxu0  ;;  %12891 = vmatprep.subr.bf16.mxu0 %v13630_v35  ;;  %13010 = vmatpush3.bf16.msra.mxu1 %v13634_v23 }
 0x2c9   : > { %v12644_v39 = vpop.f32.mrf.mxu1  ;;  %13011 = vmatprep.subr.bf16.mxu1 %v13636_v29 }
 0x2ca   : > { %v16085_v48 = vadd.f32 %v12644_v39, %v12604_v38  ;;  %v16087_v3 = vpop.f32.mrf.mxu0  ;;  %v16123_v38 = vld [vmem:[#allocation2 + $0xac] sm:$0xff]   ;;  %v13646_v39 = vld [vmem:[%s17960_s3 + $0x180] sm:$0xff]  }
 0x2cb   : > { %v16089_v17 = vpop.f32.mrf.mxu1  ;;  %12892 = vmatpush3.bf16.msra.mxu0 %v13630_v35 }
 0x2cc   : > { %v12663_v50 = vpop.f32.mrf.mxu0  ;;  %12893 = vmatprep.subr.bf16.mxu0 %v13632_v44  ;;  %13012 = vmatpush3.bf16.msra.mxu1 %v13636_v29  ;;  %v16116_v29 = vld [vmem:[#allocation2 + $0xa4] sm:$0xff]  }
 0x2cd   : > { %v5829_v19 = vadd.f32 %v12663_v50, %v15973_v32  ;;  %v12703_v2 = vpop.f32.mrf.mxu1  ;;  %12830 = vmatmul.mubr.bf16.gmra.mxu0 %v13816_v56  ;;  %13013 = vmatprep.subr.bf16.mxu1 %v13639_v59 }
 0x2ce   : > { %v5732_v33 = vpop.f32.mrf.mxu0  ;;  %12950 = vmatmul.mubr.bf16.gmra.mxu1 %v16091_v41  ;;  %12833 = vmatprep.mubr.bf16.mxu0 %v13817_v24 }
 0x2cf   : > { %v16107_v32 = vadd.f32 %v5732_v33, %v15979_v55  ;;  %v5997_v20 = vpop.f32.mrf.mxu1  ;;  %12953 = vmatprep.mubr.bf16.mxu1 %v16097_v28  ;;  %12894 = vmatpush3.bf16.msra.mxu0 %v13632_v44  ;;  %v13641_v55 = vld [vmem:[%s17960_s3 + $0x188] sm:$0xff]   ;;  %v5853_v23 = vrot.slane %v5829_v19, 1 }
 0x2d0   : > { %v12664_v45 = vpop.f32.mrf.mxu0  ;;  %12895 = vmatprep.subr.bf16.mxu0 %v13637_v58  ;;  %13014 = vmatpush3.bf16.msra.mxu1 %v13639_v59  ;;  %v13818_v59 = vld [vmem:[#allocation2 + $0x38] sm:$0xff]  }
 0x2d1   : > { %v5830_v63 = vadd.f32 %v12664_v45, %v15984_v62  ;;  %v12704_v7 = vpop.f32.mrf.mxu1  ;;  %13015 = vmatprep.subr.bf16.mxu1 %v13642_v13  ;;  %v13644_v62 = vld [vmem:[%s17960_s3 + $0x208] sm:$0xff]   ;;  %v17969_v18 = vrot.slane %v16107_v32, 1 }
 0x2d2   : > { %v5735_v51 = vpop.f32.mrf.mxu0 }
 0x2d3   : > { %v5854_v14 = vrot.slane %v5830_v63, 1  ;;  %v5828_v35 = vadd.f32 %v5735_v51, %v5446_v43  ;;  %v6000_v31 = vpop.f32.mrf.mxu1  ;;  %12896 = vmatpush3.bf16.msra.mxu0 %v13637_v58 }
 0x2d4   : > { %v12667_v21 = vpop.f32.mrf.mxu0  ;;  %12897 = vmatprep.subr.bf16.mxu0 %v13641_v55  ;;  %13016 = vmatpush3.bf16.msra.mxu1 %v13642_v13  ;;  %v13819_v13 = vld [vmem:[#allocation2 + $0x40] sm:$0xff]  }
 0x2d5   : > { %v5852_v52 = vrot.slane %v5828_v35, 1  ;;  %v5833_v4 = vadd.f32 %v12667_v21, %v15996_v42  ;;  %v12707_v9 = vpop.f32.mrf.mxu1  ;;  %v5895_v44 = vsel %vm1172_vm0, %v5853_v23, %v5854_v14  ;;  %12834 = vmatmul.mubr.bf16.gmra.mxu0 %v13818_v59  ;;  %v13647_v42 = vld [vmem:[%s17960_s3 + $0x200] sm:$0xff]   ;;  %13017 = vmatprep.subr.bf16.mxu1 %v13644_v62  ;;  %v16154_v35 = vld [vmem:[%s17960_s3 + $0xb8] sm:$0xff]  }
 0x2d6   : > { %v5748_v50 = vpop.f32.mrf.mxu0  ;;  %12954 = vmatmul.mubr.bf16.gmra.mxu1 %v16116_v29  ;;  %v16134_v19 = vadd.f32 %v12703_v2, %v5895_v44  ;;  %12837 = vmatprep.mubr.bf16.mxu0 %v13819_v13  ;;  %v16158_v44 = vld [vmem:[#allocation2 + $0xb4] sm:$0xff]  }
 0x2d7   : > { %v5896_v58 = vsel %vm1172_vm0, %v5852_v52, %v5853_v23  ;;  %v5831_v33 = vadd.f32 %v5748_v50, %v16001_v15  ;;  %v6013_v56 = vpop.f32.mrf.mxu1  ;;  %12957 = vmatprep.mubr.bf16.mxu1 %v16123_v38  ;;  %v5897_v24 = vsel %vm1172_vm0, %v17969_v18, %v5852_v52  ;;  %12898 = vmatpush3.bf16.msra.mxu0 %v13641_v55  ;;  %v5857_v55 = vrot.slane %v5833_v4, 1  ;;  %v13830_v18 = vld [vmem:[#allocation2 + $0x50] sm:$0xff]  }
 0x2d8   : > { %v16144_v45 = vadd.f32 %v6000_v31, %v5896_v58  ;;  %v12668_v43 = vpop.f32.mrf.mxu0  ;;  %v16146_v2 = vadd.f32 %v5997_v20, %v5897_v24  ;;  %v5462_v15 = vadd.f32 %v16010_v22, %v16008_v60  ;;  %13018 = vmatpush3.bf16.msra.mxu1 %v13644_v62  ;;  %12899 = vmatprep.subr.bf16.mxu0 %v13646_v39  ;;  %v16168_v58 = vld [vmem:[#allocation2 + $0xbc] sm:$0xff]  }
 0x2d9   : > { %v5855_v63 = vrot.slane %v5831_v33, 1  ;;  %v5834_v51 = vadd.f32 %v12668_v43, %v16006_v12  ;;  %v12708_v23 = vpop.f32.mrf.mxu1  ;;  %13019 = vmatprep.subr.bf16.mxu1 %v13647_v42  ;;  %v16163_v12 = vld [vmem:[%s17960_s3 + $0x138] sm:$0xff]   ;;  %v13820_v33 = vld [vmem:[#allocation2 + $0x48] sm:$0xff]   ;;  %v13821_v43 = vld [vmem:[#allocation2 + $0x50] sm:$0xff]  }
 0x2da   : > { %v5751_v31 = vpop.f32.mrf.mxu0 }
 0x2db   : > { %v5858_v21 = vrot.slane %v5834_v51, 1  ;;  %v5832_v20 = vadd.f32 %v5751_v31, %v5462_v15  ;;  %v6016_v52 = vpop.f32.mrf.mxu1  ;;  %v5894_v60 = vsel %vm1172_vm0, %v5854_v14, %v5855_v63  ;;  %12900 = vmatpush3.bf16.msra.mxu0 %v13646_v39  ;;  %v5478_v31 = vadd.f32 %v16023_v49, %v16021_v25 }
 0x2dc   : > { %v12671_v22 = vpop.f32.mrf.mxu0  ;;  %v16165_v62 = vadd.f32 %v12704_v7, %v5894_v60  ;;  %13020 = vmatpush3.bf16.msra.mxu1 %v13647_v42  ;;  %12965 = vmatprep.subr.bf16.mxu0 %v16154_v35 }
 0x2dd   : > { %v5856_v50 = vrot.slane %v5832_v20, 1  ;;  %v5837_v4 = vadd.f32 %v12671_v22, %v16015_v30  ;;  %v12711_v59 = vpop.f32.mrf.mxu1  ;;  %v5891_v14 = vsel %vm1172_vm0, %v5857_v55, %v5858_v21  ;;  %12838 = vmatmul.mubr.bf16.gmra.mxu0 %v13820_v33  ;;  %13085 = vmatprep.subr.bf16.mxu1 %v16163_v12 }
 0x2de   : > { %v5764_v39 = vpop.f32.mrf.mxu0  ;;  %12958 = vmatmul.mubr.bf16.gmra.mxu1 %v16158_v44  ;;  %v16174_v13 = vadd.f32 %v12707_v9, %v5891_v14  ;;  %12841 = vmatprep.mubr.bf16.mxu0 %v13821_v43  ;;  %v13822_v43 = vld [vmem:[#allocation2 + $0x58] sm:$0xff]  }
 0x2df   : > { %v5892_v7 = vsel %vm1172_vm0, %v5856_v50, %v5857_v55  ;;  %v5835_v30 = vadd.f32 %v5764_v39, %v16017_v8  ;;  %v6029_v24 = vpop.f32.mrf.mxu1  ;;  %12961 = vmatprep.mubr.bf16.mxu1 %v16168_v58  ;;  %v5893_v42 = vsel %vm1172_vm0, %v5855_v63, %v5856_v50  ;;  %v5861_v22 = vrot.slane %v5837_v4, 1  ;;  %v16192_v50 = vld [vmem:[#allocation2 + $0xc4] sm:$0xff]  }
 0x2e0   : > { %v16182_v15 = vadd.f32 %v6016_v52, %v5892_v7  ;;  %v12672_v51 = vpop.f32.mrf.mxu0  ;;  %v16185_v9 = vadd.f32 %v6013_v56, %v5893_v42 }
 0x2e1   : > { %v5859_v55 = vrot.slane %v5835_v30, 1  ;;  %v5838_v8 = vadd.f32 %v12672_v51, %v16019_v26  ;;  %v12712_v20 = vpop.f32.mrf.mxu1  ;;  %v16197_v30 = vld [vmem:[#allocation2 + $0x78] sm:$0xff]  }
 0x2e2   : > { %v5767_v60 = vpop.f32.mrf.mxu0  ;;  %18035 = vst [vmem:[#allocation7_spill] sm:$0xff] %v16197_v30 }
 0x2e3   : > { %v5862_v14 = vrot.slane %v5838_v8, 1  ;;  %v5836_v39 = vadd.f32 %v5767_v60, %v5478_v31  ;;  %v6032_v33 = vpop.f32.mrf.mxu1  ;;  %v5890_v63 = vsel %vm1172_vm0, %v5858_v21, %v5859_v55 }
 0x2e4   : > { %v12675_v52 = vpop.f32.mrf.mxu0  ;;  %v16194_v56 = vadd.f32 %v12708_v23, %v5890_v63 }
 0x2e5   : > { %v5860_v7 = vrot.slane %v5836_v39, 1  ;;  %v5841_v25 = vadd.f32 %v12675_v52, %v16027_v34  ;;  %v12715_v49 = vpop.f32.mrf.mxu1  ;;  %v5887_v26 = vsel %vm1172_vm0, %v5861_v22, %v5862_v14  ;;  %12842 = vmatmul.mubr.bf16.gmra.mxu0 %v13822_v43  ;;  %v13823_v34 = vld [vmem:[#allocation2 + $0x18] sm:$0xff]  }
 0x2e6   : > { %v5780_v4 = vpop.f32.mrf.mxu0  ;;  %12962 = vmatmul.mubr.bf16.gmra.mxu1 %v16192_v50  ;;  %v16202_v21 = vadd.f32 %v12711_v59, %v5887_v26  ;;  %12901 = vmatprep.mubr.bf16.mxu0 %v13823_v34  ;;  %v5494_v59 = vadd.f32 %v16036_v61, %v16034_v5 }
 0x2e7   : > { %v5888_v23 = vsel %vm1172_vm0, %v5860_v7, %v5861_v22  ;;  %v5839_v42 = vadd.f32 %v5780_v4, %v16030_v40  ;;  %v6045_v51 = vpop.f32.mrf.mxu1  ;;  %13021 = vmatprep.mubr.bf16.mxu1 %v16197_v30  ;;  %v5889_v31 = vsel %vm1172_vm0, %v5859_v55, %v5860_v7  ;;  %v5865_v26 = vrot.slane %v5841_v25, 1  ;;  %v16219_v7 = vld [vmem:[#allocation2 + $0x80] sm:$0xff]   ;;  %v16426_v30 = vld [vmem:[#allocation2 + $0x90] sm:$0xff]  }
 0x2e8   : > { %v16210_v8 = vadd.f32 %v6032_v33, %v5888_v23  ;;  %v12676_v60 = vpop.f32.mrf.mxu0  ;;  %v16212_v39 = vadd.f32 %v6029_v24, %v5889_v31  ;;  %18036 = vst [vmem:[#allocation14_spill] sm:$0xff] %v16219_v7  ;;  %v13651_v24 = vld [vmem:[%s17960_s3 + $0xb0] sm:$0xff]   ;;  %v13824_v31 = vld [vmem:[#allocation2 + $0x20] sm:$0xff]  }
 0x2e9   : > { %v5863_v63 = vrot.slane %v5839_v42, 1  ;;  %v5842_v22 = vadd.f32 %v12676_v60, %v16032_v46  ;;  %v12716_v40 = vpop.f32.mrf.mxu1  ;;  %v13659_v60 = vld [vmem:[%s17960_s3 + $0x130] sm:$0xff]  }
 0x2ea   : > { %v5783_v52 = vpop.f32.mrf.mxu0 }
 0x2eb   : > { %v5866_v4 = vrot.slane %v5842_v22, 1  ;;  %v5840_v43 = vadd.f32 %v5783_v52, %v5494_v59  ;;  %v6048_v34 = vpop.f32.mrf.mxu1  ;;  %v5886_v55 = vsel %vm1172_vm0, %v5862_v14, %v5863_v63  ;;  %v16230_v14 = vld [vmem:[#allocation2 + $0x88] sm:$0xff]  }
 0x2ec   : > { %v12679_v33 = vpop.f32.mrf.mxu0  ;;  %v16224_v5 = vadd.f32 %v12712_v20, %v5886_v55  ;;  %18037 = vst [vmem:[#allocation8_spill] sm:$0xff] %v16230_v14  ;;  %v13825_v52 = vld [vmem:[#allocation2 + $0x28] sm:$0xff]  }
 0x2ed   : > { %v5864_v61 = vrot.slane %v5840_v43, 1  ;;  %v5845_v46 = vadd.f32 %v12679_v33, %v16043_v10  ;;  %v12719_v23 = vpop.f32.mrf.mxu1  ;;  %v5883_v25 = vsel %vm1172_vm0, %v5865_v26, %v5866_v4  ;;  %12902 = vmatmul.mubr.bf16.vlgmr.msra.gmra.mxu0 %v13824_v31 }
 0x2ee   : > { %v5796_v42 = vpop.f32.mrf.mxu0  ;;  %13022 = vmatmul.mubr.bf16.vlgmr.msra.gmra.mxu1 %v16219_v7  ;;  %v16235_v20 = vadd.f32 %v12715_v49, %v5883_v25  ;;  %12905 = vmatprep.mubr.bf16.mxu0 %v13825_v52  ;;  %v13654_v49 = vld [vmem:[%s17960_s3 + $0xa8] sm:$0xff]   ;;  %v13826_v52 = vld [vmem:[#allocation2 + $0x30] sm:$0xff]   ;;  %v16397_v7 = vld [vmem:[#allocation2 + $0x78] sm:$0xff]  }
 0x2ef   : > { %v5884_v10 = vsel %vm1172_vm0, %v5864_v61, %v5865_v26  ;;  %v5843_v59 = vadd.f32 %v5796_v42, %v16051_v11  ;;  %v6061_v22 = vpop.f32.mrf.mxu1  ;;  %12966 = vmatpush3.bf16.msra.mxu0 %v16154_v35  ;;  %v5885_v43 = vsel %vm1172_vm0, %v5863_v63, %v5864_v61  ;;  %13025 = vmatprep.mubr.bf16.mxu1 %v16230_v14  ;;  %v5869_v61 = vrot.slane %v5845_v46, 1  ;;  %v16271_v46 = vld [vmem:[#allocation2 + $0x98] sm:$0xff]   ;;  %v13834_v14 = vld [vmem:[#allocation2 + $0x70] sm:$0xff]  }
 0x2f0   : > { %v16243_v55 = vadd.f32 %v6048_v34, %v5884_v10  ;;  %v12680_v33 = vpop.f32.mrf.mxu0  ;;  %12967 = vmatprep.subr.bf16.mxu0 %v13651_v24  ;;  %v16249_v26 = vadd.f32 %v6045_v51, %v5885_v43  ;;  %v5510_v11 = vadd.f32 %v16061_v6, %v16059_v37  ;;  %13086 = vmatpush3.bf16.msra.mxu1 %v16163_v12  ;;  %v16262_v37 = vld [vmem:[#allocation2 + $0x90] sm:$0xff]  }
 0x2f1   : > { %v5867_v25 = vrot.slane %v5843_v59, 1  ;;  %v16254_v35 = vadd.f32 %v12680_v33, %v16057_v47  ;;  %v16256_v63 = vpop.f32.mrf.mxu1  ;;  %13087 = vmatprep.subr.bf16.mxu1 %v13659_v60  ;;  %18039 = vst [vmem:[#allocation13_spill] sm:$0xff] %v16262_v37  ;;  %v13662_v47 = vld [vmem:[%s17960_s3 + $0x128] sm:$0xff]   ;;  %18041 = vst [vmem:[#allocation16_spill] sm:$0xff] %v16271_v46 }
 0x2f2   : > { %18038 = vst [vmem:[#allocation12_spill] sm:$0xff] %v16256_v63  ;;  %v5799_v34 = vpop.f32.mrf.mxu0  ;;  %v16474_v63 = vld [vmem:[#allocation2 + $0xb0] sm:$0xff]  }
 0x2f3   : > { %v17970_v42 = vrot.slane %v16254_v35, 1  ;;  %v5844_v31 = vadd.f32 %v5799_v34, %v5510_v11  ;;  %v6064_v10 = vpop.f32.mrf.mxu1  ;;  %12968 = vmatpush3.bf16.msra.mxu0 %v13651_v24  ;;  %v5882_v51 = vsel %vm1172_vm0, %v5866_v4, %v5867_v25  ;;  %v13658_v24 = vld [vmem:[%s17960_s3 + $0xa0] sm:$0xff]   ;;  %18057 = vst [vmem:[#allocation25_spill] sm:$0xff] %v16474_v63 }
 0x2f4   : > { %12969 = vmatprep.subr.bf16.mxu0 %v13654_v49  ;;  %v16267_v6 = vadd.f32 %v12716_v40, %v5882_v51  ;;  %13088 = vmatpush3.bf16.msra.mxu1 %v13659_v60  ;;  %v13664_v40 = vld [vmem:[%s17960_s3 + $0x120] sm:$0xff]   ;;  %v13827_v60 = vld [vmem:[#allocation2 + $0x38] sm:$0xff]  }
 0x2f5   : > { %v5868_v12 = vrot.slane %v5844_v31, 1  ;;  %v16269_v59 = vpop.f32.mrf.mxu1  ;;  %v5879_v4 = vsel %vm1172_vm0, %v5869_v61, %v17970_v42  ;;  %12906 = vmatmul.mubr.bf16.gmra.mxu0 %v13826_v52  ;;  %13089 = vmatprep.subr.bf16.mxu1 %v13662_v47  ;;  %v16304_v52 = vld [vmem:[#allocation2 + $0xa0] sm:$0xff]   ;;  %v13831_v42 = vld [vmem:[#allocation2 + $0x58] sm:$0xff]  }
 0x2f6   : > { %18040 = vst [vmem:[#allocation9_spill] sm:$0xff] %v16269_v59  ;;  %13026 = vmatmul.mubr.bf16.gmra.mxu1 %v16262_v37  ;;  %v16284_v43 = vadd.f32 %v12719_v23, %v5879_v4  ;;  %12909 = vmatprep.mubr.bf16.mxu0 %v13827_v60  ;;  %18048 = vst [vmem:[#allocation6_spill] sm:$0xff] %v16304_v52  ;;  %v13668_v60 = vld [vmem:[%s17960_s3 + $0x88] sm:$0xff]   ;;  %v16367_v37 = vld [vmem:[#allocation2 + $0x60] sm:$0xff]  }
 0x2f7   : > { %v5880_v33 = vsel %vm1172_vm0, %v5868_v12, %v5869_v61  ;;  %v16288_v11 = vpop.f32.mrf.mxu1  ;;  %13029 = vmatprep.mubr.bf16.mxu1 %v16271_v46  ;;  %v5881_v34 = vsel %vm1172_vm0, %v5867_v25, %v5868_v12  ;;  %12970 = vmatpush3.bf16.msra.mxu0 %v13654_v49  ;;  %v13660_v61 = vld [vmem:[%s17960_s3 + $0x98] sm:$0xff]   ;;  %v16311_v25 = vld [vmem:[#allocation2 + $0xa8] sm:$0xff]   ;;  %v13669_v12 = vld [vmem:[%s17960_s3 + $0x110] sm:$0xff]  }
 0x2f8   : > { %18042 = vst [vmem:[#allocation4_spill] sm:$0xff] %v16284_v43  ;;  %18043 = vst [vmem:[#allocation15_spill] sm:$0xff] %v16288_v11  ;;  %v16293_v31 = vadd.f32 %v6064_v10, %v5880_v33  ;;  %v16295_v51 = vadd.f32 %v6061_v22, %v5881_v34  ;;  %12971 = vmatprep.subr.bf16.mxu0 %v13658_v24  ;;  %13090 = vmatpush3.bf16.msra.mxu1 %v13662_v47  ;;  %v13667_v49 = vld [vmem:[%s17960_s3 + $0x118] sm:$0xff]   ;;  %v13665_v10 = vld [vmem:[%s17960_s3 + $0x90] sm:$0xff]  }
 0x2f9   : > { %v16297_v23 = vpop.f32.mrf.mxu1  ;;  %13091 = vmatprep.subr.bf16.mxu1 %v13664_v40  ;;  %18049 = vst [vmem:[#allocation11_spill] sm:$0xff] %v16311_v25  ;;  %v13828_v47 = vld [vmem:[#allocation2 + $0x40] sm:$0xff]   ;;  %v13829_v33 = vld [vmem:[#allocation2 + $0x48] sm:$0xff]   ;;  %v16363_v46 = vld [vmem:[#allocation2 + $0xd0] sm:$0xff]  }
 0x2fa   : > { %18044 = vst [vmem:[#allocation5_spill] sm:$0xff] %v16293_v31  ;;  %18045 = vst [vmem:[#allocation17_spill] sm:$0xff] %v16295_v51  ;;  %v16445_v11 = vld [vmem:[#allocation2 + $0x98] sm:$0xff]   ;;  %v16450_v59 = vld [vmem:[#allocation2 + $0xa0] sm:$0xff]  }
 0x2fb   : > { %18046 = vst [vmem:[#allocation10_spill] sm:$0xff] %v16297_v23  ;;  %v16302_v4 = vpop.f32.mrf.mxu1  ;;  %12972 = vmatpush3.bf16.msra.mxu0 %v13658_v24  ;;  %18054 = vst [vmem:[#allocation22_spill] sm:$0xff] %v16363_v46  ;;  %v16421_v23 = vld [vmem:[#allocation2 + $0x88] sm:$0xff]  }
 0x2fc   : > { %18047 = vst [vmem:[#allocation18_spill] sm:$0xff] %v16302_v4  ;;  %12973 = vmatprep.subr.bf16.mxu0 %v13660_v61  ;;  %13092 = vmatpush3.bf16.msra.mxu1 %v13664_v40  ;;  %v16402_v4 = vld [vmem:[#allocation2 + $0x80] sm:$0xff]   ;;  %v16469_v31 = vld [vmem:[#allocation2 + $0xa8] sm:$0xff]  }
 0x2fd   : > { %v16309_v22 = vpop.f32.mrf.mxu1  ;;  %12910 = vmatmul.mubr.bf16.gmra.mxu0 %v13828_v47  ;;  %13093 = vmatprep.subr.bf16.mxu1 %v13667_v49  ;;  %v16330_v47 = vld [vmem:[#allocation2 + $0xb0] sm:$0xff]  }
 0x2fe   : > { %13030 = vmatmul.mubr.bf16.gmra.mxu1 %v16304_v52  ;;  %12913 = vmatprep.mubr.bf16.mxu0 %v13829_v33  ;;  %18050 = vst [vmem:[#allocation3_spill] sm:$0xff] %v16330_v47  ;;  %v13672_v33 = vld [vmem:[%s17960_s3 + $0x108] sm:$0xff]   ;;  %v16354_v52 = vld [vmem:[#allocation2 + $0xc0] sm:$0xff]  }
 0x2ff   : > { %v16320_v24 = vpop.f32.mrf.mxu1  ;;  %13033 = vmatprep.mubr.bf16.mxu1 %v16311_v25  ;;  %12974 = vmatpush3.bf16.msra.mxu0 %v13660_v61  ;;  %v16335_v61 = vld [vmem:[#allocation2 + $0xb8] sm:$0xff]   ;;  %18053 = vst [vmem:[#allocation21_spill] sm:$0xff] %v16354_v52 }
 0x300   : > { %12975 = vmatprep.subr.bf16.mxu0 %v13665_v10  ;;  %13094 = vmatpush3.bf16.msra.mxu1 %v13667_v49  ;;  %18051 = vst [vmem:[#allocation19_spill] sm:$0xff] %v16335_v61  ;;  %v13674_v49 = vld [vmem:[%s17960_s3 + $0x80] sm:$0xff]  }
 0x301   : > { %v16323_v40 = vpop.f32.mrf.mxu1  ;;  %13095 = vmatprep.subr.bf16.mxu1 %v13669_v12 }
 0x303   : > { %v16328_v34 = vpop.f32.mrf.mxu1  ;;  %12976 = vmatpush3.bf16.msra.mxu0 %v13665_v10  ;;  %v13675_v10 = vld [vmem:[%s17960_s3 + $0x100] sm:$0xff]  }
 0x304   : > { %12977 = vmatprep.subr.bf16.mxu0 %v13668_v60  ;;  %13096 = vmatpush3.bf16.msra.mxu1 %v13669_v12  ;;  %v16350_v12 = vld [vmem:[#allocation2 + $0xc8] sm:$0xff]  }
 0x305   : > { %12914 = vmatmul.mubr.bf16.gmra.mxu0 %v13830_v18  ;;  %v16345_v25 = vpop.f32.mrf.mxu1  ;;  %13097 = vmatprep.subr.bf16.mxu1 %v13672_v33  ;;  %v13677_v18 = vld [vmem:[%s17960_s3 + $0x78] sm:$0xff]   ;;  %18052 = vst [vmem:[#allocation20_spill] sm:$0xff] %v16350_v12 }
 0x306   : > { %13034 = vmatmul.mubr.bf16.gmra.mxu1 %v16330_v47  ;;  %12917 = vmatprep.mubr.bf16.mxu0 %v13831_v42  ;;  %v13684_v42 = vld [vmem:[%s17960_s3 + $0x38] sm:$0xff]  }
 0x307   : > { %13037 = vmatprep.mubr.bf16.mxu1 %v16335_v61  ;;  %12978 = vmatpush3.bf16.msra.mxu0 %v13668_v60  ;;  %v16352_v47 = vpop.f32.mrf.mxu1  ;;  %v13832_v60 = vld [vmem:[#allocation2 + $0x60] sm:$0xff]  }
 0x308   : > { %13098 = vmatpush3.bf16.msra.mxu1 %v13672_v33  ;;  %12979 = vmatprep.subr.bf16.mxu0 %v13674_v49  ;;  %v13833_v33 = vld [vmem:[#allocation2 + $0x68] sm:$0xff]  }
 0x309   : > { %13099 = vmatprep.subr.bf16.mxu1 %v13675_v10  ;;  %v16361_v61 = vpop.f32.mrf.mxu1 }
 0x30b   : > { %12980 = vmatpush3.bf16.msra.mxu0 %v13674_v49  ;;  %v16365_v49 = vpop.f32.mrf.mxu1 }
 0x30c   : > { %13100 = vmatpush3.bf16.msra.mxu1 %v13675_v10  ;;  %13045 = vmatprep.subr.bf16.mxu0 %v13677_v18 }
 0x30d   : > { %12918 = vmatmul.mubr.bf16.gmra.mxu0 %v13832_v60  ;;  %13165 = vmatprep.subr.bf16.mxu1 %v13684_v42  ;;  %v16372_v10 = vpop.f32.mrf.mxu1 }
 0x30e   : > { %13038 = vmatmul.mubr.bf16.gmra.mxu1 %v16354_v52  ;;  %12921 = vmatprep.mubr.bf16.mxu0 %v13833_v33  ;;  %v16376_v33 = vld [vmem:[#allocation2 + $0x68] sm:$0xff]   ;;  %v16381_v52 = vld [vmem:[#allocation2 + $0x70] sm:$0xff]  }
 0x30f   : > { %13041 = vmatprep.mubr.bf16.mxu1 %v16350_v12  ;;  %v16374_v60 = vpop.f32.mrf.mxu1  ;;  %v13679_v12 = vld [vmem:[%s17960_s3 + $0x70] sm:$0xff]  }
 0x315   : > { %12922 = vmatmul.mubr.bf16.gmra.mxu0 %v13834_v14  ;;  %v16389_v14 = vpop.f32.mrf.mxu1 }
 0x316   : > { %13042 = vmatmul.mubr.bf16.gmra.mxu1 %v16363_v46  ;;  %12981 = vmatprep.mubr.bf16.mxu0 %v16367_v37  ;;  %v13682_v46 = vld [vmem:[%s17960_s3 + $0x68] sm:$0xff]  }
 0x317   : > { %13101 = vmatprep.mubr.bf16.mxu1 %v16025_v1  ;;  %v13687_v1 = vld [vmem:[%s17960_s3 + $0x30] sm:$0xff]  }
 0x31d   : > { %12982 = vmatmul.mubr.bf16.vlgmr.msra.gmra.mxu0 %v16376_v33 }
 0x31e   : > { %13102 = vmatmul.mubr.bf16.vlgmr.msra.gmra.mxu1 %v16038_v27  ;;  %12985 = vmatprep.mubr.bf16.mxu0 %v16381_v52  ;;  %v16395_v27 = vpop.f32.mrf.mxu1 }
 0x31f   : > { %13046 = vmatpush3.bf16.msra.mxu0 %v13677_v18  ;;  %13105 = vmatprep.mubr.bf16.mxu1 %v16046_v54  ;;  %v13690_v18 = vld [vmem:[%s17960_s3 + $0x28] sm:$0xff]   ;;  %v13686_v54 = vld [vmem:[%s17960_s3 + $0x60] sm:$0xff]  }
 0x320   : > { %13047 = vmatprep.subr.bf16.mxu0 %v13679_v12  ;;  %13166 = vmatpush3.bf16.msra.mxu1 %v13684_v42  ;;  %v16414_v42 = vpop.f32.mrf.mxu1 }
 0x321   : > { %13167 = vmatprep.subr.bf16.mxu1 %v13687_v1 }
 0x323   : > { %13048 = vmatpush3.bf16.msra.mxu0 %v13679_v12  ;;  %v13692_v12 = vld [vmem:[%s17960_s3 + $0x20] sm:$0xff]  }
 0x324   : > { %13049 = vmatprep.subr.bf16.mxu0 %v13682_v46  ;;  %13168 = vmatpush3.bf16.msra.mxu1 %v13687_v1  ;;  %v13689_v1 = vld [vmem:[%s17960_s3 + $0x58] sm:$0xff]  }
 0x325   : > { %12986 = vmatmul.mubr.bf16.gmra.mxu0 %v16397_v7  ;;  %13169 = vmatprep.subr.bf16.mxu1 %v13690_v18 }
 0x326   : > { %13106 = vmatmul.mubr.bf16.gmra.mxu1 %v16063_v0  ;;  %12989 = vmatprep.mubr.bf16.mxu0 %v16402_v4  ;;  %v16419_v0 = vpop.f32.mrf.mxu1 }
 0x327   : > { %13109 = vmatprep.mubr.bf16.mxu1 %v16068_v53  ;;  %13050 = vmatpush3.bf16.msra.mxu0 %v13682_v46  ;;  %v13695_v53 = vld [vmem:[%s17960_s3 + $0x18] sm:$0xff]   ;;  %v13693_v46 = vld [vmem:[%s17960_s3 + $0x50] sm:$0xff]  }
 0x328   : > { %13051 = vmatprep.subr.bf16.mxu0 %v13686_v54  ;;  %13170 = vmatpush3.bf16.msra.mxu1 %v13690_v18  ;;  %v13698_v18 = vld [vmem:[%s17960_s3 + $0x10] sm:$0xff]  }
 0x329   : > { %13171 = vmatprep.subr.bf16.mxu1 %v13692_v12 }
 0x32b   : > { %13052 = vmatpush3.bf16.msra.mxu0 %v13686_v54  ;;  %v16438_v54 = vpop.f32.mrf.mxu1 }
 0x32c   : > { %13053 = vmatprep.subr.bf16.mxu0 %v13689_v1  ;;  %13172 = vmatpush3.bf16.msra.mxu1 %v13692_v12  ;;  %v13697_v12 = vld [vmem:[%s17960_s3 + $0x48] sm:$0xff]  }
 0x32d   : > { %12990 = vmatmul.mubr.bf16.gmra.mxu0 %v16421_v23  ;;  %13173 = vmatprep.subr.bf16.mxu1 %v13695_v53 }
 0x32e   : > { %13110 = vmatmul.mubr.bf16.gmra.mxu1 %v16091_v41  ;;  %12993 = vmatprep.mubr.bf16.mxu0 %v16426_v30  ;;  %v16443_v41 = vpop.f32.mrf.mxu1 }
 0x32f   : > { %13113 = vmatprep.mubr.bf16.mxu1 %v16097_v28  ;;  %13054 = vmatpush3.bf16.msra.mxu0 %v13689_v1  ;;  %v13700_v28 = vld [vmem:[%s17960_s3 + $0x8] sm:$0xff]   ;;  %v13701_v1 = vld [vmem:[%s17960_s3 + $0x40] sm:$0xff]  }
 0x330   : > { %13055 = vmatprep.subr.bf16.mxu0 %v13693_v46  ;;  %13174 = vmatpush3.bf16.msra.mxu1 %v13695_v53  ;;  %v13702_v53 = vld [vmem:[%s17960_s3] sm:$0xff]  }
 0x331   : > { %13175 = vmatprep.subr.bf16.mxu1 %v13698_v18 }
 0x333   : > { %13056 = vmatpush3.bf16.msra.mxu0 %v13693_v46  ;;  %v16462_v46 = vpop.f32.mrf.mxu1 }
 0x334   : > { %13057 = vmatprep.subr.bf16.mxu0 %v13697_v12  ;;  %13176 = vmatpush3.bf16.msra.mxu1 %v13698_v18  ;;  %18055 = vst [vmem:[#allocation23_spill] sm:$0xff] %v16462_v46  ;;  %v13703_v18 = vld [vmem:[%s17960_s3 + $0x1f8] sm:$0xff]  }
 0x335   : > { %12994 = vmatmul.mubr.bf16.gmra.mxu0 %v16445_v11  ;;  %13177 = vmatprep.subr.bf16.mxu1 %v13700_v28 }
 0x336   : > { %13114 = vmatmul.mubr.bf16.gmra.mxu1 %v16116_v29  ;;  %12997 = vmatprep.mubr.bf16.mxu0 %v16450_v59  ;;  %v16467_v29 = vpop.f32.mrf.mxu1 }
 0x337   : > { %13117 = vmatprep.mubr.bf16.mxu1 %v16123_v38  ;;  %13058 = vmatpush3.bf16.msra.mxu0 %v13697_v12  ;;  %18056 = vst [vmem:[#allocation24_spill] sm:$0xff] %v16467_v29  ;;  %v13706_v38 = vld [vmem:[%s17960_s3 + $0x1b8] sm:$0xff]  }
 0x338   : > { %13178 = vmatpush3.bf16.msra.mxu1 %v13700_v28  ;;  %13059 = vmatprep.subr.bf16.mxu0 %v13701_v1  ;;  %v16480_v12 = vpop.f32.mrf.mxu1 }
 0x339   : > { %13179 = vmatprep.subr.bf16.mxu1 %v13702_v53  ;;  %18058 = vst [vmem:[#allocation26_spill] sm:$0xff] %v16480_v12 }
 0x33a   : > { %v16482_v28 = vpop.f32.mrf.mxu1 }
 0x33b   : > { %13060 = vmatpush3.bf16.msra.mxu0 %v13701_v1  ;;  %18059 = vst [vmem:[#allocation27_spill] sm:$0xff] %v16482_v28  ;;  %v16484_v1 = vld [vmem:[#allocation2 + $0xb8] sm:$0xff]  }
 0x33c   : > { %13180 = vmatpush3.bf16.msra.mxu1 %v13702_v53  ;;  %13125 = vmatprep.subr.bf16.mxu0 %v13703_v18  ;;  %18060 = vst [vmem:[#allocation28_spill] sm:$0xff] %v16484_v1 }
 0x33d   : > { %12998 = vmatmul.mubr.bf16.gmra.mxu0 %v16469_v31  ;;  %13245 = vmatprep.subr.bf16.mxu1 %v13706_v38 }
 0x33e   : > { %13118 = vmatmul.mubr.bf16.gmra.mxu1 %v16158_v44  ;;  %13001 = vmatprep.mubr.bf16.mxu0 %v16474_v63 }
 0x33f   : > { %13121 = vmatprep.mubr.bf16.mxu1 %v16168_v58 }
 0x345   : > { %v12683_v29 = vpop.f32.mrf.mxu0  ;;  %v16486_v46 = vpop.f32.mrf.mxu1  ;;  %13002 = vmatmul.mubr.bf16.gmra.mxu0 %v16484_v1 }
 0x346   : > { %18061 = vst [vmem:[#allocation29_spill] sm:$0xff] %v16486_v46  ;;  %13122 = vmatmul.mubr.bf16.gmra.mxu1 %v16192_v50  ;;  %v5849_v44 = vadd.f32 %v12683_v29, %v16073_v36  ;;  %13061 = vmatprep.mubr.bf16.mxu0 %v16367_v37  ;;  %v5526_v46 = vadd.f32 %v16089_v17, %v16087_v3 }
 0x347   : > { %13181 = vmatprep.mubr.bf16.mxu1 %v16367_v37  ;;  %v5812_v58 = vpop.f32.mrf.mxu0  ;;  %v16493_v53 = vpop.f32.mrf.mxu1  ;;  %v13704_v37 = vld [vmem:[%s17960_s3 + $0x1f0] sm:$0xff]  }
 0x348   : > { %18062 = vst [vmem:[#allocation30_spill] sm:$0xff] %v16493_v53  ;;  %v5847_v28 = vadd.f32 %v5812_v58, %v16080_v57  ;;  %v5873_v29 = vrot.slane %v5849_v44, 1  ;;  %v18063_v57 = vrot.slane %v16254_v35, 1 }
 0x349   : > { %v12684_v12 = vpop.f32.mrf.mxu0  ;;  %v16496_v51 = vpop.f32.mrf.mxu1 }
 0x34a   : > { %v5871_v1 = vrot.slane %v5847_v28, 1  ;;  %v5850_v50 = vadd.f32 %v12684_v12, %v16085_v48  ;;  %v13708_v48 = vld [vmem:[%s17960_s3 + $0x1b0] sm:$0xff]  }
 0x34b   : > { %v5815_v63 = vpop.f32.mrf.mxu0  ;;  %v16501_v36 = vpop.f32.mrf.mxu1 }
 0x34c   : > { %v5874_v53 = vrot.slane %v5850_v50, 1  ;;  %v5848_v43 = vadd.f32 %v5815_v63, %v5526_v46  ;;  %v16510_v58 = vsel %vm1172_vm0, %v18063_v57, %v5871_v1  ;;  %v18064_v46 = vrot.slane %v16107_v32, 1 }
 0x34d   : > { %v12743_v3 = vpop.f32.mrf.mxu0  ;;  %v16512_v17 = vpop.f32.mrf.mxu1  ;;  %13062 = vmatmul.mubr.bf16.vlgmr.msra.gmra.mxu0 %v16376_v33 }
 0x34e   : > { %13182 = vmatmul.mubr.bf16.vlgmr.msra.gmra.mxu1 %v16376_v33  ;;  %v5872_v12 = vrot.slane %v5848_v43, 1  ;;  %v6311_v63 = vadd.f32 %v12743_v3, %v16134_v19  ;;  %13065 = vmatprep.mubr.bf16.mxu0 %v16381_v52  ;;  %v16523_v35 = vsel %vm1172_vm0, %v5873_v29, %v5874_v53  ;;  %v16529_v28 = vsel %vm1172_vm0, %v5874_v53, %v18064_v46  ;;  %v13705_v19 = vld [vmem:[%s17960_s3 + $0x1e8] sm:$0xff]  }
 0x34f   : > { %13126 = vmatpush3.bf16.msra.mxu0 %v13703_v18  ;;  %13185 = vmatprep.mubr.bf16.mxu1 %v16381_v52  ;;  %v6214_v33 = vpop.f32.mrf.mxu0  ;;  %v16532_v44 = vpop.f32.mrf.mxu1 }
 0x350   : > { %13127 = vmatprep.subr.bf16.mxu0 %v13704_v37  ;;  %v6309_v43 = vadd.f32 %v6214_v33, %v16146_v2  ;;  %13246 = vmatpush3.bf16.msra.mxu1 %v13706_v38  ;;  %v16540_v32 = vsel %vm1172_vm0, %v5871_v1, %v5872_v12  ;;  %v16544_v18 = vsel %vm1172_vm0, %v5872_v12, %v5873_v29  ;;  %v13710_v38 = vld [vmem:[%s17960_s3 + $0x1a8] sm:$0xff]  }
 0x351   : > { %v12744_v52 = vpop.f32.mrf.mxu0  ;;  %v16546_v53 = vpop.f32.mrf.mxu1  ;;  %13247 = vmatprep.subr.bf16.mxu1 %v13708_v48  ;;  %v6528_v50 = vadd.f32 %v16309_v22, %v6311_v63 }
 0x352   : > { %v6312_v57 = vadd.f32 %v12744_v52, %v16165_v62  ;;  %v16556_v1 = vadd.f32 %v16320_v24, %v6309_v43  ;;  %v13707_v62 = vld [vmem:[%s17960_s3 + $0x1e0] sm:$0xff]  }
 0x353   : > { %13128 = vmatpush3.bf16.msra.mxu0 %v13704_v37  ;;  %v6217_v3 = vpop.f32.mrf.mxu0  ;;  %v16550_v2 = vpop.f32.mrf.mxu1  ;;  %v13711_v24 = vld [vmem:[%s17960_s3 + $0x1a0] sm:$0xff]   ;;  %v6552_v63 = vrot.slane %v6528_v50, 1 }
 0x354   : > { %13129 = vmatprep.subr.bf16.mxu0 %v13705_v19  ;;  %v6529_v29 = vadd.f32 %v16323_v40, %v6312_v57  ;;  %v6310_v12 = vadd.f32 %v6217_v3, %v16144_v45  ;;  %13248 = vmatpush3.bf16.msra.mxu1 %v13708_v48 }
 0x355   : > { %v12747_v22 = vpop.f32.mrf.mxu0  ;;  %13066 = vmatmul.mubr.bf16.gmra.mxu0 %v16397_v7  ;;  %13249 = vmatprep.subr.bf16.mxu1 %v13710_v38 }
 0x356   : > { %v16563_v37 = vpop.f32.mrf.mxu1  ;;  %13186 = vmatmul.mubr.bf16.gmra.mxu1 %v16397_v7  ;;  %v6553_v40 = vrot.slane %v6529_v29, 1  ;;  %v6527_v45 = vadd.f32 %v16328_v34, %v6310_v12  ;;  %v6315_v46 = vadd.f32 %v12747_v22, %v16174_v13  ;;  %13069 = vmatprep.mubr.bf16.mxu0 %v16402_v4  ;;  %v17999_v7 = vrot.slane %v16556_v1, 1  ;;  %v13709_v34 = vld [vmem:[%s17960_s3 + $0x1d8] sm:$0xff]  }
 0x357   : > { %13189 = vmatprep.mubr.bf16.mxu1 %v16402_v4  ;;  %v6230_v48 = vpop.f32.mrf.mxu0  ;;  %13130 = vmatpush3.bf16.msra.mxu0 %v13705_v19 }
 0x358   : > { %v16574_v33 = vpop.f32.mrf.mxu1  ;;  %v6551_v43 = vrot.slane %v6527_v45, 1  ;;  %v6313_v52 = vadd.f32 %v6230_v48, %v16185_v9  ;;  %13131 = vmatprep.subr.bf16.mxu0 %v13707_v62  ;;  %13250 = vmatpush3.bf16.msra.mxu1 %v13710_v38  ;;  %v16583_v13 = vsel %vm1172_vm0, %v6552_v63, %v6553_v40  ;;  %v6532_v4 = vadd.f32 %v16345_v25, %v6315_v46  ;;  %v13713_v25 = vld [vmem:[%s17960_s3 + $0x198] sm:$0xff]   ;;  %v13712_v45 = vld [vmem:[%s17960_s3 + $0x1d0] sm:$0xff]  }
 0x359   : > { %v12748_v50 = vpop.f32.mrf.mxu0  ;;  %13251 = vmatprep.subr.bf16.mxu1 %v13711_v24 }
 0x35a   : > { %v16586_v19 = vpop.f32.mrf.mxu1  ;;  %v6530_v57 = vadd.f32 %v16352_v47, %v6313_v52  ;;  %v6316_v9 = vadd.f32 %v12748_v50, %v16194_v56  ;;  %v16594_v3 = vsel %vm1172_vm0, %v17999_v7, %v6551_v43  ;;  %v16603_v12 = vsel %vm1172_vm0, %v6551_v43, %v6552_v63 }
 0x35b   : > { %v6233_v38 = vpop.f32.mrf.mxu0  ;;  %13132 = vmatpush3.bf16.msra.mxu0 %v13707_v62  ;;  %v6556_v62 = vrot.slane %v6532_v4, 1 }
 0x35c   : > { %v16596_v29 = vpop.f32.mrf.mxu1  ;;  %v6554_v47 = vrot.slane %v6530_v57, 1  ;;  %v6533_v56 = vadd.f32 %v16361_v61, %v6316_v9  ;;  %v6314_v22 = vadd.f32 %v6233_v38, %v16182_v15  ;;  %13133 = vmatprep.subr.bf16.mxu0 %v13709_v34  ;;  %13252 = vmatpush3.bf16.msra.mxu1 %v13711_v24  ;;  %v13715_v61 = vld [vmem:[%s17960_s3 + $0x190] sm:$0xff]  }
 0x35d   : > { %v12751_v46 = vpop.f32.mrf.mxu0  ;;  %13070 = vmatmul.mubr.bf16.gmra.mxu0 %v16421_v23  ;;  %13253 = vmatprep.subr.bf16.mxu1 %v13713_v25 }
 0x35e   : > { %v16610_v48 = vpop.f32.mrf.mxu1  ;;  %13190 = vmatmul.mubr.bf16.gmra.mxu1 %v16421_v23  ;;  %v6557_v63 = vrot.slane %v6533_v56, 1  ;;  %v6531_v15 = vadd.f32 %v16365_v49, %v6314_v22  ;;  %v6319_v24 = vadd.f32 %v12751_v46, %v16202_v21  ;;  %13073 = vmatprep.mubr.bf16.mxu0 %v16426_v30  ;;  %v16623_v43 = vsel %vm1172_vm0, %v6553_v40, %v6554_v47  ;;  %v13714_v21 = vld [vmem:[%s17960_s3 + $0x1c8] sm:$0xff]  }
 0x35f   : > { %13193 = vmatprep.mubr.bf16.mxu1 %v16426_v30  ;;  %v6246_v52 = vpop.f32.mrf.mxu0  ;;  %13134 = vmatpush3.bf16.msra.mxu0 %v13709_v34 }
 0x360   : > { %v16625_v4 = vpop.f32.mrf.mxu1  ;;  %v6555_v23 = vrot.slane %v6531_v15, 1  ;;  %v6317_v50 = vadd.f32 %v6246_v52, %v16212_v39  ;;  %13135 = vmatprep.subr.bf16.mxu0 %v13712_v45  ;;  %13254 = vmatpush3.bf16.msra.mxu1 %v13713_v25  ;;  %v16633_v30 = vsel %vm1172_vm0, %v6556_v62, %v6557_v63  ;;  %v6536_v49 = vadd.f32 %v16372_v10, %v6319_v24  ;;  %v13716_v10 = vld [vmem:[%s17960_s3 + $0x188] sm:$0xff]  }
 0x361   : > { %v12752_v40 = vpop.f32.mrf.mxu0  ;;  %13255 = vmatprep.subr.bf16.mxu1 %v13715_v61 }
 0x362   : > { %v16636_v57 = vpop.f32.mrf.mxu1  ;;  %v6534_v34 = vadd.f32 %v16374_v60, %v6317_v50  ;;  %v6320_v39 = vadd.f32 %v12752_v40, %v16224_v5  ;;  %v16642_v9 = vsel %vm1172_vm0, %v6554_v47, %v6555_v23  ;;  %v16651_v56 = vsel %vm1172_vm0, %v6555_v23, %v6556_v62  ;;  %v13717_v47 = vld [vmem:[%s17960_s3 + $0x1c0] sm:$0xff]  }
 0x363   : > { %v6249_v38 = vpop.f32.mrf.mxu0  ;;  %13136 = vmatpush3.bf16.msra.mxu0 %v13712_v45  ;;  %v6560_v45 = vrot.slane %v6536_v49, 1 }
 0x364   : > { %v16644_v25 = vpop.f32.mrf.mxu1  ;;  %v6558_v22 = vrot.slane %v6534_v34, 1  ;;  %v6537_v60 = vadd.f32 %v16389_v14, %v6320_v39  ;;  %v6318_v5 = vadd.f32 %v6249_v38, %v16210_v8  ;;  %13137 = vmatprep.subr.bf16.mxu0 %v13714_v21  ;;  %13256 = vmatpush3.bf16.msra.mxu1 %v13715_v61  ;;  %v13718_v14 = vld [vmem:[%s17960_s3 + $0x180] sm:$0xff]  }
 0x365   : > { %v12755_v46 = vpop.f32.mrf.mxu0  ;;  %13074 = vmatmul.mubr.bf16.gmra.mxu0 %v16445_v11  ;;  %13257 = vmatprep.subr.bf16.mxu1 %v13716_v10 }
 0x366   : > { %v16658_v15 = vpop.f32.mrf.mxu1  ;;  %13194 = vmatmul.mubr.bf16.gmra.mxu1 %v16445_v11  ;;  %v6561_v62 = vrot.slane %v6537_v60, 1  ;;  %v6535_v8 = vadd.f32 %v16395_v27, %v6318_v5  ;;  %v6323_v61 = vadd.f32 %v12755_v46, %v16235_v20  ;;  %13077 = vmatprep.mubr.bf16.mxu0 %v16450_v59  ;;  %v16671_v24 = vsel %vm1172_vm0, %v6557_v63, %v6558_v22  ;;  %v16679_v20 = vld [vmem:[%s17960_s3 + $0xf8] sm:$0xff]  }
 0x367   : > { %13197 = vmatprep.mubr.bf16.mxu1 %v16450_v59  ;;  %v6262_v52 = vpop.f32.mrf.mxu0  ;;  %13138 = vmatpush3.bf16.msra.mxu0 %v13714_v21 }
 0x368   : > { %v16673_v23 = vpop.f32.mrf.mxu1  ;;  %v6559_v11 = vrot.slane %v6535_v8, 1  ;;  %v6321_v50 = vadd.f32 %v6262_v52, %v16249_v26  ;;  %13258 = vmatpush3.bf16.msra.mxu1 %v13716_v10  ;;  %13139 = vmatprep.subr.bf16.mxu0 %v13717_v47  ;;  %v16683_v59 = vsel %vm1172_vm0, %v6560_v45, %v6561_v62  ;;  %v6540_v27 = vadd.f32 %v16414_v42, %v6323_v61  ;;  %v18066_v8 = vld [vmem:[#allocation25_spill] sm:$0xff] }
 0x369   : > { %v12756_v63 = vpop.f32.mrf.mxu0  ;;  %13259 = vmatprep.subr.bf16.mxu1 %v13718_v14  ;;  %v18067_v52 = vld [vmem:[#allocation17_spill] sm:$0xff] }
 0x36a   : > { %v16686_v49 = vpop.f32.mrf.mxu1  ;;  %v6538_v21 = vadd.f32 %v16419_v0, %v6321_v50  ;;  %v6324_v26 = vadd.f32 %v12756_v63, %v16267_v6  ;;  %v16692_v40 = vsel %vm1172_vm0, %v6558_v22, %v6559_v11  ;;  %v16698_v38 = vsel %vm1172_vm0, %v6559_v11, %v6560_v45  ;;  %v18065_v45 = vld [vmem:[#allocation4_spill] sm:$0xff] }
 0x36b   : > { %v6265_v34 = vpop.f32.mrf.mxu0  ;;  %13140 = vmatpush3.bf16.msra.mxu0 %v13717_v47  ;;  %v6564_v6 = vrot.slane %v6540_v27, 1  ;;  %v18069_v27 = vld [vmem:[#allocation23_spill] sm:$0xff] }
 0x36c   : > { %v16694_v39 = vpop.f32.mrf.mxu1  ;;  %v6562_v42 = vrot.slane %v6538_v21, 1  ;;  %v6541_v10 = vadd.f32 %v16438_v54, %v6324_v26  ;;  %v6322_v60 = vadd.f32 %v6265_v34, %v16243_v55  ;;  %13260 = vmatpush3.bf16.msra.mxu1 %v13718_v14  ;;  %13205 = vmatprep.subr.bf16.mxu0 %v16679_v20 }
 0x36d   : > { %v12759_v0 = vpop.f32.mrf.mxu0  ;;  %13078 = vmatmul.mubr.bf16.gmra.mxu0 %v16469_v31 }
 0x36e   : > { %v16703_v22 = vpop.f32.mrf.mxu1  ;;  %13198 = vmatmul.mubr.bf16.gmra.mxu1 %v16469_v31  ;;  %v6565_v5 = vrot.slane %v6541_v10, 1  ;;  %v6539_v47 = vadd.f32 %v16443_v41, %v6322_v60  ;;  %v6327_v46 = vadd.f32 %v12759_v0, %v18065_v45  ;;  %13081 = vmatprep.mubr.bf16.mxu0 %v18066_v8  ;;  %v16713_v55 = vsel %vm1172_vm0, %v6561_v62, %v6562_v42  ;;  %v18068_v31 = vld [vmem:[#allocation12_spill] sm:$0xff] }
 0x36f   : > { %13201 = vmatprep.mubr.bf16.mxu1 %v18066_v8  ;;  %v6278_v54 = vpop.f32.mrf.mxu0  ;;  %v6111_v50 = vadd.f32 %v18068_v31, %v16510_v58  ;;  %v18070_v62 = vld [vmem:[#allocation24_spill] sm:$0xff]  ;;  %v18071_v8 = vld [vmem:[#allocation26_spill] sm:$0xff]  ;;  %v18073_v31 = vld [vmem:[#allocation9_spill] sm:$0xff] }
 0x370   : > { %v16715_v14 = vpop.f32.mrf.mxu1  ;;  %v6563_v61 = vrot.slane %v6539_v47, 1  ;;  %v6325_v11 = vadd.f32 %v6278_v54, %v18067_v52  ;;  %v16722_v41 = vsel %vm1172_vm0, %v6564_v6, %v6565_v5  ;;  %v6544_v63 = vadd.f32 %v18069_v27, %v6327_v46  ;;  %v18072_v54 = vld [vmem:[#allocation5_spill] sm:$0xff] }
 0x371   : > { %v12760_v21 = vpop.f32.mrf.mxu0 }
 0x372   : > { %v16725_v26 = vpop.f32.mrf.mxu1  ;;  %v6542_v34 = vadd.f32 %v18070_v62, %v6325_v11  ;;  %v6328_v10 = vadd.f32 %v12760_v21, %v6111_v50  ;;  %v16730_v60 = vsel %vm1172_vm0, %v6562_v42, %v6563_v61  ;;  %v16736_v58 = vsel %vm1172_vm0, %v6563_v61, %v6564_v6  ;;  %v18075_v42 = vld [vmem:[#allocation28_spill] sm:$0xff]  ;;  %v18076_v62 = vld [vmem:[#allocation15_spill] sm:$0xff] }
 0x373   : > { %v6281_v0 = vpop.f32.mrf.mxu0  ;;  %v6114_v11 = vadd.f32 %v18073_v31, %v16523_v35  ;;  %v6568_v50 = vrot.slane %v6544_v63, 1  ;;  %v6112_v6 = vadd.f32 %v18076_v62, %v16540_v32  ;;  %v18081_v32 = vld [vmem:[#allocation29_spill] sm:$0xff] }
 0x374   : > { %v16732_v47 = vpop.f32.mrf.mxu1  ;;  %v6566_v45 = vrot.slane %v6542_v34, 1  ;;  %v6545_v46 = vadd.f32 %v18071_v8, %v6328_v10  ;;  %v6326_v52 = vadd.f32 %v6281_v0, %v18072_v54  ;;  %v18077_v34 = vld [vmem:[#allocation27_spill] sm:$0xff]  ;;  %v18080_v54 = vld [vmem:[#allocation10_spill] sm:$0xff] }
 0x375   : > { %v12763_v27 = vpop.f32.mrf.mxu0  ;;  %13082 = vmatmul.mubr.bf16.gmra.mxu0 %v18075_v42  ;;  %v18078_v8 = vld [vmem:[#allocation7_spill] sm:$0xff]  ;;  %v6115_v31 = vadd.f32 %v18080_v54, %v16529_v28 }
 0x376   : > { %v16742_v21 = vpop.f32.mrf.mxu1  ;;  %13202 = vmatmul.mubr.bf16.gmra.mxu1 %v18075_v42  ;;  %v6569_v61 = vrot.slane %v6545_v46, 1  ;;  %v6543_v7 = vadd.f32 %v18077_v34, %v6326_v52  ;;  %v6331_v10 = vadd.f32 %v12763_v27, %v6114_v11  ;;  %13141 = vmatprep.mubr.bf16.mxu0 %v18078_v8  ;;  %v16753_v35 = vsel %vm1172_vm0, %v6565_v5, %v6566_v45  ;;  %v18083_v34 = vld [vmem:[#allocation30_spill] sm:$0xff] }
 0x377   : > { %18074 = vst [vmem:[#allocation4_spill] sm:$0xff] %v16742_v21  ;;  %13261 = vmatprep.mubr.bf16.mxu1 %v18078_v8  ;;  %v6294_v63 = vpop.f32.mrf.mxu0  ;;  %v18084_v21 = vld [vmem:[#allocation18_spill] sm:$0xff] }
 0x378   : > { %v16755_v0 = vpop.f32.mrf.mxu1  ;;  %v6567_v42 = vrot.slane %v6543_v7, 1  ;;  %v6548_v46 = vadd.f32 %v18081_v32, %v6331_v10  ;;  %v6329_v62 = vadd.f32 %v6294_v63, %v6112_v6  ;;  %v16762_v52 = vsel %vm1172_vm0, %v6568_v50, %v6569_v61  ;;  %v13720_v6 = vld [vmem:[%s17960_s3 + $0xf0] sm:$0xff]  }
 0x379   : > { %18079 = vst [vmem:[#allocation25_spill] sm:$0xff] %v16755_v0  ;;  %v12764_v11 = vpop.f32.mrf.mxu0  ;;  %v6113_v0 = vadd.f32 %v18084_v21, %v16544_v18 }
 0x37a   : > { %v16764_v27 = vpop.f32.mrf.mxu1  ;;  %v6546_v5 = vadd.f32 %v18083_v34, %v6329_v62  ;;  %v6332_v8 = vadd.f32 %v12764_v11, %v6115_v31  ;;  %v16771_v28 = vsel %vm1172_vm0, %v6566_v45, %v6567_v42  ;;  %v16780_v63 = vsel %vm1172_vm0, %v6567_v42, %v6568_v50  ;;  %v18086_v45 = vld [vmem:[#allocation14_spill] sm:$0xff] }
 0x37b   : > { %18082 = vst [vmem:[#allocation17_spill] sm:$0xff] %v16764_v27  ;;  %v6297_v7 = vpop.f32.mrf.mxu0  ;;  %v6572_v18 = vrot.slane %v6548_v46, 1  ;;  %v18087_v27 = vld [vmem:[#allocation8_spill] sm:$0xff] }
 0x37c   : > { %v16773_v10 = vpop.f32.mrf.mxu1  ;;  %v6570_v54 = vrot.slane %v6546_v5, 1  ;;  %v6549_v31 = vadd.f32 %v16496_v51, %v6332_v8  ;;  %v6330_v32 = vadd.f32 %v6297_v7, %v6113_v0 }
 0x37d   : > { %18085 = vst [vmem:[#allocation12_spill] sm:$0xff] %v16773_v10  ;;  %v12823_v21 = vpop.f32.mrf.mxu0  ;;  %13142 = vmatmul.mubr.bf16.vlgmr.msra.gmra.mxu0 %v18086_v45 }
 0x37e   : > { %v16783_v62 = vpop.f32.mrf.mxu1  ;;  %13262 = vmatmul.mubr.bf16.vlgmr.msra.gmra.mxu1 %v18086_v45  ;;  %v6573_v11 = vrot.slane %v6549_v31, 1  ;;  %v6547_v34 = vadd.f32 %v16501_v36, %v6330_v32  ;;  %v6793_v10 = vadd.f32 %v12823_v21, %v16583_v13  ;;  %13145 = vmatprep.mubr.bf16.mxu0 %v18087_v27  ;;  %v16793_v51 = vsel %vm1172_vm0, %v6569_v61, %v6570_v54  ;;  %v13721_v36 = vld [vmem:[%s17960_s3 + $0xe8] sm:$0xff]   ;;  %v18090_v45 = vld [vmem:[#allocation16_spill] sm:$0xff] }
 0x37f   : > { %13206 = vmatpush3.bf16.msra.mxu0 %v16679_v20  ;;  %13265 = vmatprep.mubr.bf16.mxu1 %v18087_v27  ;;  %v6696_v50 = vpop.f32.mrf.mxu0  ;;  %v18088_v61 = vrot.slane %v16556_v1, 1 }
 0x380   : > { %v16796_v0 = vpop.f32.mrf.mxu1  ;;  %13207 = vmatprep.subr.bf16.mxu0 %v13720_v6  ;;  %v6571_v42 = vrot.slane %v6547_v34, 1  ;;  %v6791_v13 = vadd.f32 %v6696_v50, %v16594_v3  ;;  %v16804_v20 = vsel %vm1172_vm0, %v6572_v18, %v6573_v11  ;;  %v16815_v8 = vadd.f32 %v16512_v17, %v6793_v10  ;;  %v13723_v50 = vld [vmem:[%s17960_s3 + $0xd8] sm:$0xff]  }
 0x381   : > { %v16810_v46 = vsel %vm1172_vm0, %v6573_v11, %v18088_v61  ;;  %v12824_v27 = vpop.f32.mrf.mxu0 }
 0x382   : > { %v16812_v5 = vpop.f32.mrf.mxu1  ;;  %v6794_v7 = vadd.f32 %v12824_v27, %v16623_v43  ;;  %v16820_v3 = vsel %vm1172_vm0, %v6570_v54, %v6571_v42  ;;  %v16824_v1 = vsel %vm1172_vm0, %v6571_v42, %v6572_v18  ;;  %v16827_v31 = vadd.f32 %v16532_v44, %v6791_v13  ;;  %v13722_v43 = vld [vmem:[%s17960_s3 + $0xe0] sm:$0xff]   ;;  %v18089_v18 = vld [vmem:[#allocation13_spill] sm:$0xff] }
 0x383   : > { %13208 = vmatpush3.bf16.msra.mxu0 %v13720_v6  ;;  %v6699_v32 = vpop.f32.mrf.mxu0 }
 0x384   : > { %v16829_v21 = vpop.f32.mrf.mxu1  ;;  %13209 = vmatprep.subr.bf16.mxu0 %v13721_v36  ;;  %v6792_v17 = vadd.f32 %v6699_v32, %v16603_v12  ;;  %v16836_v10 = vadd.f32 %v16546_v53, %v6794_v7 }
 0x385   : > { %v12827_v6 = vpop.f32.mrf.mxu0  ;;  %13146 = vmatmul.mubr.bf16.gmra.mxu0 %v18089_v18 }
 0x386   : > { %v16838_v54 = vpop.f32.mrf.mxu1  ;;  %13266 = vmatmul.mubr.bf16.gmra.mxu1 %v18089_v18  ;;  %v6797_v44 = vadd.f32 %v12827_v6, %v16633_v30  ;;  %13149 = vmatprep.mubr.bf16.mxu0 %v18090_v45  ;;  %v16846_v12 = vadd.f32 %v16550_v2, %v6792_v17 }
 0x387   : > { %13269 = vmatprep.mubr.bf16.mxu1 %v18090_v45  ;;  %v6712_v11 = vpop.f32.mrf.mxu0  ;;  %13210 = vmatpush3.bf16.msra.mxu0 %v13721_v36 }
 0x388   : > { %v16848_v34 = vpop.f32.mrf.mxu1  ;;  %v6795_v53 = vadd.f32 %v6712_v11, %v16642_v9  ;;  %13211 = vmatprep.subr.bf16.mxu0 %v13722_v43  ;;  %v16855_v30 = vadd.f32 %v16563_v37, %v6797_v44  ;;  %v13724_v37 = vld [vmem:[%s17960_s3 + $0xd0] sm:$0xff]   ;;  %v13725_v44 = vld [vmem:[%s17960_s3 + $0xc8] sm:$0xff]  }
 0x389   : > { %v12828_v42 = vpop.f32.mrf.mxu0 }
 0x38a   : > { %v16857_v13 = vpop.f32.mrf.mxu1  ;;  %v6798_v2 = vadd.f32 %v12828_v42, %v16671_v24  ;;  %v16861_v61 = vadd.f32 %v16574_v33, %v6795_v53  ;;  %v18093_v24 = vld [vmem:[#allocation6_spill] sm:$0xff] }
 0x38b   : > { %v6715_v27 = vpop.f32.mrf.mxu0  ;;  %13212 = vmatpush3.bf16.msra.mxu0 %v13722_v43  ;;  %v18094_v43 = vld [vmem:[#allocation11_spill] sm:$0xff] }
 0x38c   : > { %v16863_v36 = vpop.f32.mrf.mxu1  ;;  %v6796_v9 = vadd.f32 %v6715_v27, %v16651_v56  ;;  %13213 = vmatprep.subr.bf16.mxu0 %v13723_v50  ;;  %v16870_v7 = vadd.f32 %v16586_v19, %v6798_v2 }
 0x38d   : > { %18091 = vst [vmem:[#allocation23_spill] sm:$0xff] %v16863_v36  ;;  %v12831_v32 = vpop.f32.mrf.mxu0  ;;  %13150 = vmatmul.mubr.bf16.gmra.mxu0 %v18093_v24  ;;  %v11095_v36 = vld [vmem:[%s13931_s20 + $0x48] sm:$0xff]  }
 0x38e   : > { %v16872_v17 = vpop.f32.mrf.mxu1  ;;  %13270 = vmatmul.mubr.bf16.gmra.mxu1 %v18093_v24  ;;  %v6801_v33 = vadd.f32 %v12831_v32, %v16683_v59  ;;  %13153 = vmatprep.mubr.bf16.mxu0 %v18094_v43  ;;  %v16880_v56 = vadd.f32 %v16596_v29, %v6796_v9 }
 0x38f   : > { %18092 = vst [vmem:[#allocation24_spill] sm:$0xff] %v16872_v17  ;;  %13273 = vmatprep.mubr.bf16.mxu1 %v18094_v43  ;;  %v6728_v6 = vpop.f32.mrf.mxu0  ;;  %13214 = vmatpush3.bf16.msra.mxu0 %v13723_v50 }
 0x390   : > { %v16882_v18 = vpop.f32.mrf.mxu1  ;;  %v6799_v19 = vadd.f32 %v6728_v6, %v16692_v40  ;;  %13215 = vmatprep.subr.bf16.mxu0 %v13724_v37  ;;  %v16889_v59 = vadd.f32 %v16610_v48, %v6801_v33  ;;  %v13726_v48 = vld [vmem:[%s17960_s3 + $0xc0] sm:$0xff]  }
 0x391   : > { %18095 = vst [vmem:[#allocation26_spill] sm:$0xff] %v16882_v18  ;;  %v12832_v45 = vpop.f32.mrf.mxu0 }
 0x392   : > { %v16891_v11 = vpop.f32.mrf.mxu1  ;;  %v6802_v29 = vadd.f32 %v12832_v45, %v16713_v55  ;;  %v16895_v53 = vadd.f32 %v16625_v4, %v6799_v19  ;;  %v18099_v55 = vld [vmem:[#allocation3_spill] sm:$0xff] }
 0x393   : > { %18096 = vst [vmem:[#allocation5_spill] sm:$0xff] %v16891_v11  ;;  %v6731_v42 = vpop.f32.mrf.mxu0  ;;  %13216 = vmatpush3.bf16.msra.mxu0 %v13724_v37  ;;  %v18100_v37 = vld [vmem:[#allocation19_spill] sm:$0xff] }
 0x394   : > { %v16897_v50 = vpop.f32.mrf.mxu1  ;;  %v6800_v40 = vadd.f32 %v6731_v42, %v16698_v38  ;;  %13217 = vmatprep.subr.bf16.mxu0 %v13725_v44  ;;  %v16904_v2 = vadd.f32 %v16636_v57, %v6802_v29  ;;  %v18105_v42 = vld [vmem:[#allocation21_spill] sm:$0xff] }
 0x395   : > { %18097 = vst [vmem:[#allocation9_spill] sm:$0xff] %v16897_v50  ;;  %v12835_v27 = vpop.f32.mrf.mxu0  ;;  %13154 = vmatmul.mubr.bf16.gmra.mxu0 %v18099_v55 }
 0x396   : > { %v16906_v9 = vpop.f32.mrf.mxu1  ;;  %13274 = vmatmul.mubr.bf16.gmra.mxu1 %v18099_v55  ;;  %v6805_v4 = vadd.f32 %v12835_v27, %v16722_v41  ;;  %13157 = vmatprep.mubr.bf16.mxu0 %v18100_v37  ;;  %v16914_v38 = vadd.f32 %v16644_v25, %v6800_v40 }
 0x397   : > { %18098 = vst [vmem:[#allocation28_spill] sm:$0xff] %v16906_v9  ;;  %13277 = vmatprep.mubr.bf16.mxu1 %v18100_v37  ;;  %v6744_v32 = vpop.f32.mrf.mxu0  ;;  %13218 = vmatpush3.bf16.msra.mxu0 %v13725_v44 }
 0x398   : > { %v16916_v24 = vpop.f32.mrf.mxu1  ;;  %v6803_v57 = vadd.f32 %v6744_v32, %v16730_v60  ;;  %13219 = vmatprep.subr.bf16.mxu0 %v13726_v48  ;;  %v16920_v33 = vadd.f32 %v16658_v15, %v6805_v4 }
 0x399   : > { %18101 = vst [vmem:[#allocation15_spill] sm:$0xff] %v16916_v24  ;;  %v12836_v43 = vpop.f32.mrf.mxu0 }
 0x39a   : > { %v16922_v6 = vpop.f32.mrf.mxu1  ;;  %v6806_v41 = vadd.f32 %v12836_v43, %v16753_v35  ;;  %v16926_v19 = vadd.f32 %v16673_v23, %v6803_v57  ;;  %v18106_v23 = vld [vmem:[#allocation20_spill] sm:$0xff] }
 0x39b   : > { %18102 = vst [vmem:[#allocation27_spill] sm:$0xff] %v16922_v6  ;;  %v6747_v25 = vpop.f32.mrf.mxu0  ;;  %13220 = vmatpush3.bf16.msra.mxu0 %v13726_v48 }
 0x39c   : > { %v16928_v45 = vpop.f32.mrf.mxu1  ;;  %v6804_v44 = vadd.f32 %v6747_v25, %v16736_v58  ;;  %v16932_v60 = vadd.f32 %v16686_v49, %v6806_v41  ;;  %v13835_v25 = vld [vmem:[#allocation2 + $0x6c] sm:$0xff]  }
 0x39d   : > { %18103 = vst [vmem:[#allocation7_spill] sm:$0xff] %v16928_v45  ;;  %v12839_v29 = vpop.f32.mrf.mxu0  ;;  %13158 = vmatmul.mubr.bf16.gmra.mxu0 %v18105_v42 }
 0x39e   : > { %v16934_v15 = vpop.f32.mrf.mxu1  ;;  %13278 = vmatmul.mubr.bf16.gmra.mxu1 %v18105_v42  ;;  %v6809_v35 = vadd.f32 %v12839_v29, %v16762_v52  ;;  %13161 = vmatprep.mubr.bf16.mxu0 %v18106_v23  ;;  %v16941_v40 = vadd.f32 %v16694_v39, %v6804_v44 }
 0x39f   : > { %18104 = vst [vmem:[#allocation10_spill] sm:$0xff] %v16934_v15  ;;  %13281 = vmatprep.mubr.bf16.mxu1 %v18106_v23  ;;  %v6760_v58 = vpop.f32.mrf.mxu0 }
 0x3a0   : > { %v16944_v48 = vpop.f32.mrf.mxu1  ;;  %v6807_v49 = vadd.f32 %v6760_v58, %v16771_v28  ;;  %v16948_v27 = vadd.f32 %v16703_v22, %v6809_v35  ;;  %v18111_v22 = vld [vmem:[#allocation22_spill] sm:$0xff]  ;;  %v18115_v58 = vld [vmem:[#allocation25_spill] sm:$0xff] }
 0x3a1   : > { %18107 = vst [vmem:[#allocation29_spill] sm:$0xff] %v16944_v48  ;;  %v12840_v55 = vpop.f32.mrf.mxu0  ;;  %v13838_v48 = vld [vmem:[#allocation2 + $0x84] sm:$0xff]  }
 0x3a2   : > { %v16950_v4 = vpop.f32.mrf.mxu1  ;;  %v6810_v52 = vadd.f32 %v12840_v55, %v16793_v51  ;;  %v16954_v37 = vadd.f32 %v16715_v14, %v6807_v49 }
 0x3a3   : > { %18108 = vst [vmem:[#allocation30_spill] sm:$0xff] %v16950_v4  ;;  %v6763_v39 = vpop.f32.mrf.mxu0 }
 0x3a4   : > { %v16956_v32 = vpop.f32.mrf.mxu1  ;;  %v6808_v57 = vadd.f32 %v6763_v39, %v16780_v63  ;;  %v16960_v43 = vadd.f32 %v16725_v26, %v6810_v52  ;;  %v18113_v63 = vld [vmem:[#allocation4_spill] sm:$0xff]  ;;  %v18117_v39 = vld [vmem:[#allocation17_spill] sm:$0xff] }
 0x3a5   : > { %18109 = vst [vmem:[#allocation18_spill] sm:$0xff] %v16956_v32  ;;  %v12843_v28 = vpop.f32.mrf.mxu0  ;;  %13162 = vmatmul.mubr.bf16.gmra.mxu0 %v18111_v22 }
 0x3a6   : > { %v16962_v41 = vpop.f32.mrf.mxu1  ;;  %13282 = vmatmul.mubr.bf16.gmra.mxu1 %v18111_v22  ;;  %v6813_v51 = vadd.f32 %v12843_v28, %v16804_v20  ;;  %13221 = vmatprep.mubr.bf16.mxu0 %v13835_v25  ;;  %v16968_v14 = vadd.f32 %v16732_v47, %v6808_v57  ;;  %v13836_v22 = vld [vmem:[#allocation2 + $0x74] sm:$0xff]   ;;  %v11090_v25 = vld [vmem:[%s13931_s20 + $0x20] sm:$0xff]  }
 0x3a7   : > { %18110 = vst [vmem:[#allocation14_spill] sm:$0xff] %v16962_v41  ;;  %v6776_v44 = vpop.f32.mrf.mxu0 }
 0x3a8   : > { %v16970_v29 = vpop.f32.mrf.mxu1  ;;  %v6811_v26 = vadd.f32 %v6776_v44, %v16820_v3  ;;  %v16974_v42 = vadd.f32 %v18113_v63, %v6813_v51  ;;  %v13837_v51 = vld [vmem:[#allocation2 + $0x7c] sm:$0xff]  }
 0x3a9   : > { %18112 = vst [vmem:[#allocation8_spill] sm:$0xff] %v16970_v29  ;;  %v12844_v35 = vpop.f32.mrf.mxu0  ;;  %v18118_v44 = vld [vmem:[#allocation12_spill] sm:$0xff] }
 0x3aa   : > { %v16976_v23 = vpop.f32.mrf.mxu1  ;;  %v6814_v20 = vadd.f32 %v12844_v35, %v16810_v46  ;;  %v16980_v49 = vadd.f32 %v18115_v58, %v6811_v26  ;;  %v11089_v46 = vld [vmem:[%s13931_s20 + $0x18] sm:$0xff]  }
 0x3ab   : > { %18114 = vst [vmem:[#allocation13_spill] sm:$0xff] %v16976_v23  ;;  %v6779_v47 = vpop.f32.mrf.mxu0  ;;  %v10918_v58 = vunpack.c.l.bf16 %v11089_v46  ;;  %v11091_v23 = vld [vmem:[%s13931_s20 + $0x28] sm:$0xff]  }
 0x3ac   : > { %v16982_v55 = vpop.f32.mrf.mxu1  ;;  %v6812_v52 = vadd.f32 %v6779_v47, %v16824_v1  ;;  %v16986_v3 = vadd.f32 %v18117_v39, %v6814_v20  ;;  %v10919_v47 = vunpack.c.h.bf16 %v11089_v46 }
 0x3ad   : > { %18116 = vst [vmem:[#allocation16_spill] sm:$0xff] %v16982_v55  ;;  %v12903_v57 = vpop.f32.mrf.mxu0  ;;  %13222 = vmatmul.mubr.bf16.vlgmr.msra.gmra.mxu0 %v13836_v22  ;;  %v10922_v55 = vunpack.c.l.bf16 %v11090_v25 }
 0x3ae   : > { %v16988_v28 = vpop.f32.mrf.mxu1  ;;  %13225 = vmatprep.mubr.bf16.mxu0 %v13837_v51  ;;  %v16993_v26 = vadd.f32 %v18118_v44, %v6812_v52  ;;  %v7227_v1 = vadd.f32 %v12903_v57, %v16815_v8  ;;  %v7341_v57 = vrot.slane %v10918_v58, 1  ;;  %v7342_v46 = vrot.slane %v10919_v47, 1  ;;  %v13839_v58 = vld [vmem:[#allocation2 + $0x8c] sm:$0xff]  }
 0x3af   : > { %v7130_v63 = vpop.f32.mrf.mxu0  ;;  %v10927_v47 = vunpack.c.h.bf16 %v11091_v23 }
 0x3b0   : > { %v16995_v35 = vpop.f32.mrf.mxu1  ;;  %v17001_v22 = vadd.f32 %v7130_v63, %v16827_v31  ;;  %v7251_v29 = vrot.slane %v7227_v1, 7  ;;  %v7343_v31 = vrot.slane %v10922_v55, 1  ;;  %v17015_v1 = vld [vmem:[%s17961_s4] ss:$0 sm:$0xff]  ;;  %v10923_v55 = vunpack.c.h.bf16 %v11090_v25 }
 0x3b1   : > { %v12904_v20 = vpop.f32.mrf.mxu0 }
 0x3b2   : > { %v16998_v39 = vpop.f32.mrf.mxu1  ;;  %v7228_v51 = vadd.f32 %v12904_v20, %v16836_v10  ;;  %v10926_v10 = vunpack.c.l.bf16 %v11091_v23  ;;  %v18000_v63 = vrot.slane %v17001_v22, 7  ;;  %v7375_v23 = vsel %vm1172_vm0, %v7341_v57, %v7342_v46 }
 0x3b3   : > { %v7133_v52 = vpop.f32.mrf.mxu0  ;;  %v7374_v25 = vsel %vm1172_vm0, %v7342_v46, %v7343_v31  ;;  %v7344_v9 = vrot.slane %v10923_v55, 1  ;;  %v13840_v55 = vld [vmem:[#allocation2 + $0x94] sm:$0xff]  }
 0x3b4   : > { %v17006_v44 = vpop.f32.mrf.mxu1  ;;  %v7252_v41 = vrot.slane %v7228_v51, 7  ;;  %v7226_v8 = vadd.f32 %v7133_v52, %v16846_v12 }
 0x3b5   : > { %v12907_v32 = vpop.f32.mrf.mxu0  ;;  %13226 = vmatmul.mubr.bf16.gmra.mxu0 %v13838_v48 }
 0x3b6   : > { %v17009_v4 = vpop.f32.mrf.mxu1  ;;  %v7287_v12 = vsel %vm7273_vm1, %v7251_v29, %v7252_v41  ;;  %v7250_v20 = vrot.slane %v7226_v8, 7  ;;  %13229 = vmatprep.mubr.bf16.mxu0 %v13839_v58  ;;  %v7231_v15 = vadd.f32 %v12907_v32, %v16855_v30  ;;  %v11092_v29 = vld [vmem:[%s13931_s20 + $0x30] sm:$0xff]   ;;  %v17031_v8 = vld [vmem:[%s13931_s20 + $0x38] sm:$0xff]   ;;  %v7345_v32 = vrot.slane %v10926_v10, 1 }
 0x3b7   : > { %v7146_v48 = vpop.f32.mrf.mxu0  ;;  %v7386_v58 = vadd.f32 %v17015_v1, %v7287_v12  ;;  %v10930_v11 = vunpack.c.l.bf16 %v11092_v29  ;;  %v10931_v57 = vunpack.c.h.bf16 %v11092_v29  ;;  %v10934_v12 = vunpack.c.l.bf16 %v17031_v8 }
 0x3b8   : > { %v17019_v51 = vpop.f32.mrf.mxu1  ;;  %v17025_v52 = vsel %vm7273_vm1, %v18000_v63, %v7250_v20  ;;  %v7229_v45 = vadd.f32 %v7146_v48, %v16861_v61  ;;  %v11088_v20 = vld [vmem:[%s13931_s20 + $0x10] sm:$0xff]   ;;  %v7346_v61 = vrot.slane %v10927_v47, 1  ;;  %v7255_v18 = vrot.slane %v7231_v15, 7 }
 0x3b9   : > { %v12908_v6 = vpop.f32.mrf.mxu0  ;;  %v7402_v17 = vadd.f32 %v7386_v58, %v7375_v23  ;;  %v10915_v29 = vunpack.c.h.bf16 %v11088_v20  ;;  %v7373_v58 = vsel %vm1172_vm0, %v7344_v9, %v7345_v32 }
 0x3ba   : > { %v17038_v24 = vpop.f32.mrf.mxu1  ;;  %v7253_v63 = vrot.slane %v7229_v45, 7  ;;  %v7232_v30 = vadd.f32 %v12908_v6, %v16870_v7  ;;  %v10914_v7 = vunpack.c.l.bf16 %v11088_v20 }
 0x3bb   : > { %v7149_v48 = vpop.f32.mrf.mxu0 }
 0x3bc   : > { %v17042_v50 = vpop.f32.mrf.mxu1  ;;  %v7286_v46 = vsel %vm7273_vm1, %v7252_v41, %v7253_v63  ;;  %v7256_v31 = vrot.slane %v7232_v30, 7  ;;  %v7230_v45 = vadd.f32 %v7149_v48, %v16880_v56  ;;  %v7372_v41 = vsel %vm1172_vm0, %v7345_v32, %v7346_v61  ;;  %v13841_v30 = vld [vmem:[#allocation2 + $0x9c] sm:$0xff]  }
 0x3bd   : > { %18119 = vst [vmem:[#allocation6_spill] sm:$0xff] %v17042_v50  ;;  %v7387_v6 = vadd.f32 %v17015_v1, %v7286_v46  ;;  %v12911_v10 = vpop.f32.mrf.mxu0  ;;  %13230 = vmatmul.mubr.bf16.gmra.mxu0 %v13840_v55  ;;  %v7348_v55 = vrot.slane %v10931_v57, 1  ;;  %v7349_v61 = vrot.slane %v10934_v12, 1  ;;  %v17068_v9 = vrot.slane %v10914_v7, 1 }
 0x3be   : > { %v17049_v47 = vpop.f32.mrf.mxu1  ;;  %v7284_v15 = vsel %vm7273_vm1, %v7255_v18, %v7256_v31  ;;  %v7254_v63 = vrot.slane %v7230_v45, 7  ;;  %13233 = vmatprep.mubr.bf16.mxu0 %v13841_v30  ;;  %v7347_v31 = vrot.slane %v10930_v11, 1  ;;  %v11094_v45 = vld [vmem:[%s13931_s20 + $0x40] sm:$0xff]   ;;  %v17070_v32 = vrot.slane %v10915_v29, 1 }
 0x3bf   : > { %18120 = vst [vmem:[#allocation11_spill] sm:$0xff] %v17049_v47  ;;  %v7403_v56 = vadd.f32 %v7387_v6, %v7374_v25  ;;  %v7389_v23 = vadd.f32 %v17015_v1, %v7284_v15  ;;  %v7162_v48 = vpop.f32.mrf.mxu0  ;;  %v7418_v47 = vmax.f32 %v7402_v17, 0.0  ;;  %v7235_v17 = vadd.f32 %v12911_v10, %v16889_v59  ;;  %v17088_v59 = vld [vmem:[%s13931_s20 + $0x50] sm:$0xff]  }
 0x3c0   : > { %v17059_v20 = vpop.f32.mrf.mxu1  ;;  %v7285_v46 = vsel %vm7273_vm1, %v7254_v63, %v7255_v18  ;;  %v7233_v18 = vadd.f32 %v7162_v48, %v16895_v53  ;;  %v10935_v7 = vunpack.c.h.bf16 %v17031_v8  ;;  %v10938_v63 = vunpack.c.l.bf16 %v11094_v45  ;;  %v13842_v48 = vld [vmem:[#allocation2 + $0xa4] sm:$0xff]  }
 0x3c1   : > { %v7419_v30 = vmax.f32 %v7403_v56, 0.0  ;;  %v7405_v50 = vadd.f32 %v7389_v23, %v7372_v41  ;;  %v7388_v25 = vadd.f32 %v17015_v1, %v7285_v46  ;;  %v12912_v6 = vpop.f32.mrf.mxu0  ;;  %v7370_v56 = vsel %vm1172_vm0, %v7348_v55, %v7349_v61 }
 0x3c2   : > { %v17065_v15 = vpop.f32.mrf.mxu1  ;;  %v7371_v23 = vsel %vm1172_vm0, %v7347_v31, %v7348_v55  ;;  %v10942_v46 = vunpack.c.l.bf16 %v11095_v36  ;;  %v10943_v8 = vunpack.c.h.bf16 %v11095_v36  ;;  %v7236_v61 = vadd.f32 %v12912_v6, %v16904_v2  ;;  %v13843_v55 = vld [vmem:[#allocation2 + $0xac] sm:$0xff]   ;;  %v11097_v6 = vld [vmem:[%s13931_s20 + $0x58] sm:$0xff]  }
 0x3c3   : > { %v10964_v11 = vpack.c.bf16 %v7419_v30, %v7418_v47  ;;  %v7404_v57 = vadd.f32 %v7388_v25, %v7373_v58  ;;  %v7165_v12 = vpop.f32.mrf.mxu0  ;;  %v7421_v53 = vmax.f32 %v7405_v50, 0.0  ;;  %v10939_v30 = vunpack.c.h.bf16 %v11094_v45 }
 0x3c4   : > { %v17079_v41 = vpop.f32.mrf.mxu1  ;;  %v7234_v29 = vadd.f32 %v7165_v12, %v16914_v38  ;;  %v7259_v38 = vrot.slane %v7235_v17, 7  ;;  %v7257_v25 = vrot.slane %v7233_v18, 7  ;;  %v7350_v50 = vrot.slane %v10935_v7, 1 }
 0x3c5   : > { %18121 = vst [vmem:[#allocation3_spill] sm:$0xff] %v17079_v41  ;;  %11099 = vst [vmem:[%s17075_s10 + $0x8] sm:$0xff] %v10964_v11   ;;  %v7420_v10 = vmax.f32 %v7404_v57, 0.0  ;;  %v12915_v47 = vpop.f32.mrf.mxu0  ;;  %13234 = vmatmul.mubr.bf16.gmra.mxu0 %v13842_v48  ;;  %v7351_v57 = vrot.slane %v10938_v63, 1  ;;  %v7260_v48 = vrot.slane %v7236_v61, 7 }
 0x3c6   : > { %v17091_v58 = vpop.f32.mrf.mxu1  ;;  %v7258_v31 = vrot.slane %v7234_v29, 7  ;;  %13237 = vmatprep.mubr.bf16.mxu0 %v13843_v55  ;;  %v7239_v17 = vadd.f32 %v12915_v47, %v16920_v33  ;;  %v7353_v29 = vrot.slane %v10942_v46, 1 }
 0x3c7   : > { %18122 = vst [vmem:[#allocation19_spill] sm:$0xff] %v17091_v58  ;;  %v10969_v12 = vpack.c.bf16 %v7421_v53, %v7420_v10  ;;  %v7178_v11 = vpop.f32.mrf.mxu0  ;;  %v10946_v58 = vunpack.c.l.bf16 %v17088_v59  ;;  %v7354_v53 = vrot.slane %v10943_v8, 1 }
 0x3c8   : > { %v17094_v41 = vpop.f32.mrf.mxu1  ;;  %v7282_v36 = vsel %vm7273_vm1, %v7258_v31, %v7259_v38  ;;  %v7283_v45 = vsel %vm7273_vm1, %v7257_v25, %v7258_v31  ;;  %v7237_v2 = vadd.f32 %v7178_v11, %v16926_v19  ;;  %v7352_v25 = vrot.slane %v10939_v30, 1 }
 0x3c9   : > { %11100 = vst [vmem:[%s17075_s10 + $0x10] sm:$0xff] %v10969_v12   ;;  %v7390_v18 = vadd.f32 %v17015_v1, %v7283_v45  ;;  %v7391_v7 = vadd.f32 %v17015_v1, %v7282_v36  ;;  %v12916_v63 = vpop.f32.mrf.mxu0  ;;  %v7355_v12 = vrot.slane %v10946_v58, 1  ;;  %v10950_v11 = vunpack.c.l.bf16 %v11097_v6 }
 0x3ca   : > { %v17107_v10 = vpop.f32.mrf.mxu1  ;;  %v7261_v38 = vrot.slane %v7237_v2, 7  ;;  %v7240_v55 = vadd.f32 %v12916_v63, %v16932_v60  ;;  %v7263_v45 = vrot.slane %v7239_v17, 7  ;;  %v7369_v58 = vsel %vm1172_vm0, %v7350_v50, %v7351_v57 }
 0x3cb   : > { %18123 = vst [vmem:[#allocation21_spill] sm:$0xff] %v17107_v10  ;;  %v7406_v31 = vadd.f32 %v7390_v18, %v7371_v23  ;;  %v7407_v33 = vadd.f32 %v7391_v7, %v7370_v56  ;;  %v7181_v47 = vpop.f32.mrf.mxu0  ;;  %v13844_v56 = vld [vmem:[#allocation2 + $0xb4] sm:$0xff]   ;;  %v10951_v23 = vunpack.c.h.bf16 %v11097_v6  ;;  %v10947_v7 = vunpack.c.h.bf16 %v17088_v59 }
 0x3cc   : > { %v17110_v19 = vpop.f32.mrf.mxu1  ;;  %v7281_v36 = vsel %vm7273_vm1, %v7260_v48, %v7261_v38  ;;  %v7264_v46 = vrot.slane %v7240_v55, 7  ;;  %v7238_v8 = vadd.f32 %v7181_v47, %v16941_v40  ;;  %v13845_v40 = vld [vmem:[#allocation2 + $0xbc] sm:$0xff]   ;;  %v7367_v48 = vsel %vm1172_vm0, %v7353_v29, %v7354_v53 }
 0x3cd   : > { %v7422_v10 = vmax.f32 %v7406_v31, 0.0  ;;  %v7423_v61 = vmax.f32 %v7407_v33, 0.0  ;;  %v7392_v2 = vadd.f32 %v17015_v1, %v7281_v36  ;;  %v12919_v60 = vpop.f32.mrf.mxu0  ;;  %13238 = vmatmul.mubr.bf16.gmra.mxu0 %v13844_v56  ;;  %v7368_v6 = vsel %vm1172_vm0, %v7351_v57, %v7352_v25  ;;  %v10600_v33 = vld [vmem:[%s13931_s20 + $0xc] ss:$92 sps:$4 sm:$0xff]   ;;  %v11098_v29 = vld [vmem:[%s13931_s20 + $0x60] sm:$0xff]  }
 0x3ce   : > { %v17116_v30 = vpop.f32.mrf.mxu1  ;;  %v7279_v17 = vsel %vm7273_vm1, %v7263_v45, %v7264_v46  ;;  %v7262_v18 = vrot.slane %v7238_v8, 7  ;;  %13241 = vmatprep.mubr.bf16.mxu0 %v13845_v40  ;;  %v7243_v55 = vadd.f32 %v12919_v60, %v16948_v27  ;;  %v7357_v25 = vrot.slane %v10950_v11, 1 }
 0x3cf   : > { %v10974_v63 = vpack.c.bf16 %v7423_v61, %v7422_v10  ;;  %v7194_v50 = vpop.f32.mrf.mxu0  ;;  %v7394_v47 = vadd.f32 %v17015_v1, %v7279_v17  ;;  %v7366_v10 = vsel %vm1172_vm0, %v7354_v53, %v7355_v12  ;;  %v7408_v36 = vadd.f32 %v7392_v2, %v7369_v58 }
 0x3d0   : > { %v17128_v31 = vpop.f32.mrf.mxu1  ;;  %v7280_v45 = vsel %vm7273_vm1, %v7261_v38, %v7262_v18  ;;  %v7241_v59 = vadd.f32 %v7194_v50, %v16954_v37  ;;  %v7358_v8 = vrot.slane %v10951_v23, 1  ;;  %v7356_v17 = vrot.slane %v10947_v7, 1 }
 0x3d1   : > { %11101 = vst [vmem:[%s17075_s10 + $0x18] sm:$0xff] %v10974_v63   ;;  %v7393_v57 = vadd.f32 %v17015_v1, %v7280_v45  ;;  %v12920_v27 = vpop.f32.mrf.mxu0  ;;  %v7314_v38 = vunpack.c.l.bf16 %v10600_v33  ;;  %v7267_v37 = vrot.slane %v7243_v55, 7  ;;  %v10955_v53 = vunpack.c.h.bf16 %v11098_v29 }
 0x3d2   : > { %v17140_v61 = vpop.f32.mrf.mxu1  ;;  %v7265_v60 = vrot.slane %v7241_v59, 7  ;;  %v7244_v56 = vadd.f32 %v12920_v27, %v16960_v43  ;;  %v7337_v12 = vunpack.c.h.bf16 %v10600_v33  ;;  %v7410_v2 = vadd.f32 %v7394_v47, %v7367_v48  ;;  %v13846_v59 = vld [vmem:[#allocation2 + $0xc4] sm:$0xff]  }
 0x3d3   : > { %v7409_v18 = vadd.f32 %v7393_v57, %v7368_v6  ;;  %v7197_v40 = vpop.f32.mrf.mxu0  ;;  %v7424_v63 = vmax.f32 %v7408_v36, 0.0  ;;  %v7364_v7 = vsel %vm1172_vm0, %v7357_v25, %v7358_v8  ;;  %v10954_v33 = vunpack.c.l.bf16 %v11098_v29 }
 0x3d4   : > { %v17143_v50 = vpop.f32.mrf.mxu1  ;;  %v7278_v58 = vsel %vm7273_vm1, %v7264_v46, %v7265_v60  ;;  %v7268_v11 = vrot.slane %v7244_v56, 7  ;;  %v7242_v23 = vadd.f32 %v7197_v40, %v16968_v14  ;;  %v7365_v14 = vsel %vm1172_vm0, %v7356_v17, %v7357_v25 }
 0x3d5   : > { %v7425_v45 = vmax.f32 %v7409_v18, 0.0  ;;  %v7395_v43 = vadd.f32 %v17015_v1, %v7278_v58  ;;  %v12923_v6 = vpop.f32.mrf.mxu0  ;;  %13242 = vmatmul.mubr.bf16.gmra.mxu0 %v13846_v59  ;;  %v7338_v60 = vrot.slane %v7314_v38, 1  ;;  %v7426_v56 = vmax.f32 %v7410_v2, 0.0 }
 0x3d6   : > { %v17151_v55 = vpop.f32.mrf.mxu1  ;;  %v7276_v48 = vsel %vm7273_vm1, %v7267_v37, %v7268_v11  ;;  %v7266_v46 = vrot.slane %v7242_v23, 7  ;;  %v7360_v40 = vrot.slane %v10955_v53, 1  ;;  %v7361_v58 = vrot.slane %v7337_v12, 1 }
 0x3d7   : > { %v10979_v47 = vpack.c.bf16 %v7425_v45, %v7424_v63  ;;  %v7411_v36 = vadd.f32 %v7395_v43, %v7366_v10  ;;  %v7397_v57 = vadd.f32 %v17015_v1, %v7276_v48  ;;  %v7210_v27 = vpop.f32.mrf.mxu0  ;;  %v7247_v10 = vadd.f32 %v12923_v6, %v16974_v42 }
 0x3d8   : > { %v17158_v8 = vpop.f32.mrf.mxu1  ;;  %v7277_v18 = vsel %vm7273_vm1, %v7266_v46, %v7267_v37  ;;  %v7245_v63 = vadd.f32 %v7210_v27, %v16980_v49  ;;  %v7385_v37 = vadd.f32 %v17015_v1, %v17025_v52  ;;  %v7359_v45 = vrot.slane %v10954_v33, 1 }
 0x3d9   : > { %11102 = vst [vmem:[%s17075_s10 + $0x20] sm:$0xff] %v10979_v47   ;;  %v7427_v11 = vmax.f32 %v7411_v36, 0.0  ;;  %v7413_v23 = vadd.f32 %v7397_v57, %v7364_v7  ;;  %v7396_v25 = vadd.f32 %v17015_v1, %v7277_v18  ;;  %v12924_v29 = vpop.f32.mrf.mxu0  ;;  %v7376_v42 = vsel %vm1172_vm0, %v17068_v9, %v17070_v32 }
 0x3da   : > { %v17165_v17 = vpop.f32.mrf.mxu1  ;;  %v7248_v38 = vadd.f32 %v12924_v29, %v16986_v3  ;;  %v7377_v49 = vsel %vm1172_vm0, %v7338_v60, %v17068_v9  ;;  %v7271_v59 = vrot.slane %v7247_v10, 7  ;;  %v7362_v48 = vsel %vm1172_vm0, %v7360_v40, %v7361_v58 }
 0x3db   : > { %v10984_v53 = vpack.c.bf16 %v7427_v11, %v7426_v56  ;;  %v7412_v12 = vadd.f32 %v7396_v25, %v7365_v14  ;;  %v7213_v2 = vpop.f32.mrf.mxu0  ;;  %v7429_v52 = vmax.f32 %v7413_v23, 0.0  ;;  %v7269_v33 = vrot.slane %v7245_v63, 7 }
 0x3dc   : > { %v17171_v43 = vpop.f32.mrf.mxu1  ;;  %v7272_v7 = vrot.slane %v7248_v38, 7  ;;  %v7246_v3 = vadd.f32 %v7213_v2, %v16993_v26  ;;  %v18124_v32 = vrot.slane %v17001_v22, 7  ;;  %v7401_v36 = vadd.f32 %v7385_v37, %v7376_v42 }
 0x3dd   : > { %11103 = vst [vmem:[%s17075_s10 + $0x28] sm:$0xff] %v10984_v53   ;;  %v7428_v6 = vmax.f32 %v7412_v12, 0.0  ;;  %v12983_v46 = vpop.f32.mrf.mxu0  ;;  %v7363_v60 = vsel %vm1172_vm0, %v7359_v45, %v7360_v40 }
 0x3de   : > { %v17184_v14 = vpop.f32.mrf.mxu1  ;;  %v7289_v47 = vsel %vm7273_vm1, %v7272_v7, %v18124_v32  ;;  %v7270_v9 = vrot.slane %v7246_v3, 7  ;;  %v8005_v26 = vadd.f32 %v12983_v46, %v16783_v62  ;;  %v7417_v37 = vmax.f32 %v7401_v36, 0.0 }
 0x3df   : > { %v10989_v57 = vpack.c.bf16 %v7429_v52, %v7428_v6  ;;  %v7384_v27 = vadd.f32 %v17015_v1, %v7289_v47  ;;  %v7996_v56 = vpop.f32.mrf.mxu0 }
 0x3e0   : > { %v17194_v18 = vpop.f32.mrf.mxu1  ;;  %v7274_v58 = vsel %vm7273_vm1, %v7270_v9, %v7271_v59  ;;  %v7275_v22 = vsel %vm7273_vm1, %v7269_v33, %v7270_v9  ;;  %v8383_v11 = vadd.f32 %v16988_v28, %v8005_v26  ;;  %v7997_v62 = vadd.f32 %v7996_v56, %v16796_v0 }
 0x3e1   : > { %11104 = vst [vmem:[%s17075_s10 + $0x30] sm:$0xff] %v10989_v57   ;;  %v7400_v23 = vadd.f32 %v7384_v27, %v7377_v49  ;;  %v7398_v25 = vadd.f32 %v17015_v1, %v7275_v22  ;;  %v7399_v10 = vadd.f32 %v17015_v1, %v7274_v58  ;;  %v12984_v40 = vpop.f32.mrf.mxu0  ;;  %v18125_v58 = vld [vmem:[#allocation23_spill] sm:$0xff] }
 0x3e2   : > { %v17205_v29 = vpop.f32.mrf.mxu1  ;;  %v17208_v63 = vadd.f32 %v16995_v35, %v7997_v62  ;;  %v8008_v38 = vadd.f32 %v12984_v40, %v16812_v5  ;;  %v8407_v5 = vrot.slane %v8383_v11, 1 }
 0x3e3   : > { %v7416_v53 = vmax.f32 %v7400_v23, 0.0  ;;  %v7414_v28 = vadd.f32 %v7398_v25, %v7363_v60  ;;  %v7415_v12 = vadd.f32 %v7399_v10, %v7362_v48  ;;  %v7999_v0 = vpop.f32.mrf.mxu0  ;;  %v18126_v23 = vld [vmem:[#allocation6_spill] sm:$0xff]  ;;  %v18127_v10 = vld [vmem:[#allocation24_spill] sm:$0xff] }
 0x3e4   : > { %v17211_v2 = vpop.f32.mrf.mxu1  ;;  %v8384_v45 = vadd.f32 %v16998_v39, %v8008_v38  ;;  %v8000_v1 = vadd.f32 %v7999_v0, %v16829_v21  ;;  %v18001_v46 = vrot.slane %v17208_v63, 1  ;;  %v18129_v0 = vld [vmem:[#allocation26_spill] sm:$0xff] }
 0x3e5   : > { %v10959_v42 = vpack.c.bf16 %v7417_v37, %v7416_v53  ;;  %v7430_v7 = vmax.f32 %v7414_v28, 0.0  ;;  %v7431_v49 = vmax.f32 %v7415_v12, 0.0  ;;  %v12987_v35 = vpop.f32.mrf.mxu0 }
 0x3e6   : > { %v17215_v3 = vpop.f32.mrf.mxu1  ;;  %v8408_v52 = vrot.slane %v8384_v45, 1  ;;  %v8382_v6 = vadd.f32 %v17006_v44, %v8000_v1  ;;  %v8021_v59 = vadd.f32 %v12987_v35, %v16838_v54  ;;  %v18130_v35 = vld [vmem:[#allocation5_spill] sm:$0xff] }
 0x3e7   : > { %10960 = vst [vmem:[%s17075_s10] sm:$0xff] %v10959_v42   ;;  %v10994_v48 = vpack.c.bf16 %v7431_v49, %v7430_v7  ;;  %v8012_v39 = vpop.f32.mrf.mxu0 }
 0x3e8   : > { %v17221_v33 = vpop.f32.mrf.mxu1  ;;  %v8406_v21 = vrot.slane %v8382_v6, 1  ;;  %v8387_v32 = vadd.f32 %v17009_v4, %v8021_v59  ;;  %v8013_v47 = vadd.f32 %v8012_v39, %v16848_v34  ;;  %v17227_v9 = vsel %vm1172_vm0, %v8407_v5, %v8408_v52 }
 0x3e9   : > { %11105 = vst [vmem:[%s17075_s10 + $0x38] sm:$0xff] %v10994_v48   ;;  %v12988_v44 = vpop.f32.mrf.mxu0 }
 0x3ea   : > { %v17230_v26 = vpop.f32.mrf.mxu1  ;;  %v8385_v54 = vadd.f32 %v17019_v51, %v8013_v47  ;;  %v8024_v36 = vadd.f32 %v12988_v44, %v16857_v13  ;;  %v17238_v57 = vsel %vm1172_vm0, %v18001_v46, %v8406_v21  ;;  %v17244_v27 = vsel %vm1172_vm0, %v8406_v21, %v8407_v5 }
 0x3eb   : > { %v8015_v4 = vpop.f32.mrf.mxu0  ;;  %v8411_v22 = vrot.slane %v8387_v32, 1  ;;  %v18131_v32 = vld [vmem:[#allocation9_spill] sm:$0xff] }
 0x3ec   : > { %v17240_v34 = vpop.f32.mrf.mxu1  ;;  %v8409_v60 = vrot.slane %v8385_v54, 1  ;;  %v8388_v56 = vadd.f32 %v17038_v24, %v8024_v36  ;;  %v8016_v51 = vadd.f32 %v8015_v4, %v18125_v58  ;;  %v18128_v24 = vld [vmem:[#allocation11_spill] sm:$0xff] }
 0x3ed   : > { %v12991_v13 = vpop.f32.mrf.mxu0  ;;  %v18132_v4 = vld [vmem:[#allocation3_spill] sm:$0xff] }
 0x3ee   : > { %v17248_v11 = vpop.f32.mrf.mxu1  ;;  %v8412_v62 = vrot.slane %v8388_v56, 1  ;;  %v8386_v25 = vadd.f32 %v18126_v23, %v8016_v51  ;;  %v8037_v40 = vadd.f32 %v12991_v13, %v18127_v10  ;;  %v17254_v38 = vsel %vm1172_vm0, %v8408_v52, %v8409_v60  ;;  %v18133_v56 = vld [vmem:[#allocation28_spill] sm:$0xff]  ;;  %v18135_v10 = vld [vmem:[#allocation15_spill] sm:$0xff] }
 0x3ef   : > { %v8028_v37 = vpop.f32.mrf.mxu0 }
 0x3f0   : > { %v17256_v53 = vpop.f32.mrf.mxu1  ;;  %v8410_v28 = vrot.slane %v8386_v25, 1  ;;  %v8391_v12 = vadd.f32 %v18128_v24, %v8037_v40  ;;  %v8029_v45 = vadd.f32 %v8028_v37, %v18129_v0  ;;  %v17262_v1 = vsel %vm1172_vm0, %v8411_v22, %v8412_v62  ;;  %v18136_v0 = vld [vmem:[#allocation27_spill] sm:$0xff] }
 0x3f1   : > { %v12992_v42 = vpop.f32.mrf.mxu0 }
 0x3f2   : > { %v17264_v7 = vpop.f32.mrf.mxu1  ;;  %v8389_v49 = vadd.f32 %v17059_v20, %v8029_v45  ;;  %v8040_v5 = vadd.f32 %v12992_v42, %v18130_v35  ;;  %v17270_v52 = vsel %vm1172_vm0, %v8409_v60, %v8410_v28  ;;  %v17276_v48 = vsel %vm1172_vm0, %v8410_v28, %v8411_v22 }
 0x3f3   : > { %v8031_v6 = vpop.f32.mrf.mxu0  ;;  %v8415_v44 = vrot.slane %v8391_v12, 1 }
 0x3f4   : > { %v17272_v59 = vpop.f32.mrf.mxu1  ;;  %v8413_v39 = vrot.slane %v8389_v49, 1  ;;  %v8392_v21 = vadd.f32 %v17065_v15, %v8040_v5  ;;  %v8032_v47 = vadd.f32 %v8031_v6, %v18131_v32  ;;  %v18134_v15 = vld [vmem:[#allocation19_spill] sm:$0xff]  ;;  %v18137_v6 = vld [vmem:[#allocation21_spill] sm:$0xff] }
 0x3f5   : > { %v12995_v20 = vpop.f32.mrf.mxu0  ;;  %v18138_v32 = vld [vmem:[#allocation7_spill] sm:$0xff] }
 0x3f6   : > { %v17280_v54 = vpop.f32.mrf.mxu1  ;;  %v8416_v36 = vrot.slane %v8392_v21, 1  ;;  %v8390_v60 = vadd.f32 %v18132_v4, %v8032_v47  ;;  %v8053_v58 = vadd.f32 %v12995_v20, %v18133_v56  ;;  %v17286_v51 = vsel %vm1172_vm0, %v8412_v62, %v8413_v39  ;;  %v18139_v56 = vld [vmem:[#allocation10_spill] sm:$0xff] }
 0x3f7   : > { %v8044_v22 = vpop.f32.mrf.mxu0 }
 0x3f8   : > { %v17288_v13 = vpop.f32.mrf.mxu1  ;;  %v8414_v23 = vrot.slane %v8390_v60, 1  ;;  %v8395_v25 = vadd.f32 %v18134_v15, %v8053_v58  ;;  %v8045_v40 = vadd.f32 %v8044_v22, %v18135_v10  ;;  %v17294_v37 = vsel %vm1172_vm0, %v8415_v44, %v8416_v36 }
 0x3f9   : > { %v12996_v28 = vpop.f32.mrf.mxu0 }
 0x3fa   : > { %v17296_v24 = vpop.f32.mrf.mxu1  ;;  %v8393_v12 = vadd.f32 %v17094_v41, %v8045_v40  ;;  %v8056_v62 = vadd.f32 %v12996_v28, %v18136_v0  ;;  %v17302_v45 = vsel %vm1172_vm0, %v8413_v39, %v8414_v23  ;;  %v17308_v35 = vsel %vm1172_vm0, %v8414_v23, %v8415_v44  ;;  %v18140_v40 = vld [vmem:[#allocation29_spill] sm:$0xff] }
 0x3fb   : > { %v8047_v42 = vpop.f32.mrf.mxu0  ;;  %v8419_v20 = vrot.slane %v8395_v25, 1 }
 0x3fc   : > { %v17304_v49 = vpop.f32.mrf.mxu1  ;;  %v8417_v5 = vrot.slane %v8393_v12, 1  ;;  %v8396_v21 = vadd.f32 %v18137_v6, %v8056_v62  ;;  %v8048_v47 = vadd.f32 %v8047_v42, %v18138_v32  ;;  %v18141_v62 = vld [vmem:[#allocation30_spill] sm:$0xff] }
 0x3fd   : > { %v12999_v41 = vpop.f32.mrf.mxu0 }
 0x3fe   : > { %v17312_v4 = vpop.f32.mrf.mxu1  ;;  %v8420_v60 = vrot.slane %v8396_v21, 1  ;;  %v8394_v39 = vadd.f32 %v17110_v19, %v8048_v47  ;;  %v8069_v58 = vadd.f32 %v12999_v41, %v18139_v56  ;;  %v17318_v22 = vsel %vm1172_vm0, %v8416_v36, %v8417_v5  ;;  %v18142_v41 = vld [vmem:[#allocation18_spill] sm:$0xff] }
 0x3ff   : > { %v8060_v44 = vpop.f32.mrf.mxu0 }
 0x400   : > { %v17320_v23 = vpop.f32.mrf.mxu1  ;;  %v8418_v15 = vrot.slane %v8394_v39, 1  ;;  %v8399_v10 = vadd.f32 %v17116_v30, %v8069_v58  ;;  %v8061_v25 = vadd.f32 %v8060_v44, %v18140_v40  ;;  %v17326_v28 = vsel %vm1172_vm0, %v8419_v20, %v8420_v60  ;;  %v18143_v40 = vld [vmem:[#allocation14_spill] sm:$0xff] }
 0x401   : > { %v13000_v12 = vpop.f32.mrf.mxu0 }
 0x402   : > { %v17328_v19 = vpop.f32.mrf.mxu1  ;;  %v8397_v0 = vadd.f32 %v17128_v31, %v8061_v25  ;;  %v8072_v36 = vadd.f32 %v13000_v12, %v18141_v62  ;;  %v17334_v42 = vsel %vm1172_vm0, %v8417_v5, %v8418_v15  ;;  %v17340_v30 = vsel %vm1172_vm0, %v8418_v15, %v8419_v20  ;;  %v18144_v62 = vld [vmem:[#allocation8_spill] sm:$0xff] }
 0x403   : > { %v8063_v6 = vpop.f32.mrf.mxu0  ;;  %v8423_v56 = vrot.slane %v8399_v10, 1 }
 0x404   : > { %v17336_v21 = vpop.f32.mrf.mxu1  ;;  %v8421_v32 = vrot.slane %v8397_v0, 1  ;;  %v8400_v47 = vadd.f32 %v17140_v61, %v8072_v36  ;;  %v8064_v39 = vadd.f32 %v8063_v6, %v18142_v41  ;;  %v18145_v41 = vld [vmem:[#allocation13_spill] sm:$0xff] }
 0x405   : > { %v13003_v31 = vpop.f32.mrf.mxu0 }
 0x406   : > { %v17344_v58 = vpop.f32.mrf.mxu1  ;;  %v8424_v44 = vrot.slane %v8400_v47, 1  ;;  %v8398_v5 = vadd.f32 %v17143_v50, %v8064_v39  ;;  %v8085_v25 = vadd.f32 %v13003_v31, %v18143_v40  ;;  %v17350_v12 = vsel %vm1172_vm0, %v8420_v60, %v8421_v32 }
 0x407   : > { %v8076_v20 = vpop.f32.mrf.mxu0 }
 0x408   : > { %v17352_v15 = vpop.f32.mrf.mxu1  ;;  %v8422_v0 = vrot.slane %v8398_v5, 1  ;;  %v8403_v61 = vadd.f32 %v17151_v55, %v8085_v25  ;;  %v8077_v10 = vadd.f32 %v8076_v20, %v18144_v62  ;;  %v17358_v36 = vsel %vm1172_vm0, %v8423_v56, %v8424_v44  ;;  %v18147_v20 = vld [vmem:[#allocation16_spill] sm:$0xff] }
 0x409   : > { %v13004_v6 = vpop.f32.mrf.mxu0 }
 0x40a   : > { %v17360_v50 = vpop.f32.mrf.mxu1  ;;  %v8401_v47 = vadd.f32 %v17158_v8, %v8077_v10  ;;  %v8088_v60 = vadd.f32 %v13004_v6, %v18145_v41  ;;  %v17366_v39 = vsel %vm1172_vm0, %v8421_v32, %v8422_v0  ;;  %v17372_v55 = vsel %vm1172_vm0, %v8422_v0, %v8423_v56 }
 0x40b   : > { %v8079_v31 = vpop.f32.mrf.mxu0  ;;  %v8427_v46 = vrot.slane %v8403_v61, 1 }
 0x40c   : > { %v17368_v5 = vpop.f32.mrf.mxu1  ;;  %v8425_v40 = vrot.slane %v8401_v47, 1  ;;  %v8404_v25 = vadd.f32 %v17165_v17, %v8088_v60  ;;  %v8080_v62 = vadd.f32 %v8079_v31, %v18147_v20  ;;  %v18148_v60 = vrot.slane %v17208_v63, 1 }
 0x40d   : > { %18146 = vst [vmem:[#allocation20_spill] sm:$0xff] %v17368_v5  ;;  %v13063_v8 = vpop.f32.mrf.mxu0 }
 0x40e   : > { %v17376_v10 = vpop.f32.mrf.mxu1  ;;  %v8428_v6 = vrot.slane %v8404_v25, 1  ;;  %v8402_v32 = vadd.f32 %v17171_v43, %v8080_v62  ;;  %v8648_v41 = vadd.f32 %v13063_v8, %v17227_v9  ;;  %v17382_v5 = vsel %vm1172_vm0, %v8424_v44, %v8425_v40 }
 0x40f   : > { %v8551_v56 = vpop.f32.mrf.mxu0 }
 0x410   : > { %v17384_v0 = vpop.f32.mrf.mxu1  ;;  %v8426_v47 = vrot.slane %v8402_v32, 1  ;;  %v8646_v17 = vadd.f32 %v8551_v56, %v17238_v57  ;;  %v17389_v61 = vsel %vm1172_vm0, %v8427_v46, %v8428_v6  ;;  %v17395_v43 = vsel %vm1172_vm0, %v8428_v6, %v18148_v60 }
 0x411   : > { %v13064_v9 = vpop.f32.mrf.mxu0  ;;  %v17400_v44 = vadd.f32 %v17184_v14, %v8648_v41 }
 0x412   : > { %v17397_v31 = vpop.f32.mrf.mxu1  ;;  %v8649_v25 = vadd.f32 %v13064_v9, %v17254_v38  ;;  %v17405_v57 = vsel %vm1172_vm0, %v8425_v40, %v8426_v47  ;;  %v17409_v20 = vsel %vm1172_vm0, %v8426_v47, %v8427_v46  ;;  %v17412_v63 = vadd.f32 %v17194_v18, %v8646_v17 }
 0x413   : > { %v8554_v62 = vpop.f32.mrf.mxu0 }
 0x414   : > { %v17414_v8 = vpop.f32.mrf.mxu1  ;;  %v8647_v6 = vadd.f32 %v8554_v62, %v17244_v27  ;;  %v17418_v14 = vadd.f32 %v17205_v29, %v8649_v25 }
 0x415   : > { %v13067_v38 = vpop.f32.mrf.mxu0 }
 0x416   : > { %v17420_v32 = vpop.f32.mrf.mxu1  ;;  %v8652_v40 = vadd.f32 %v13067_v38, %v17262_v1  ;;  %v17424_v41 = vadd.f32 %v17211_v2, %v8647_v6 }
 0x417   : > { %v8567_v46 = vpop.f32.mrf.mxu0 }
 0x418   : > { %v17426_v56 = vpop.f32.mrf.mxu1  ;;  %v8650_v18 = vadd.f32 %v8567_v46, %v17270_v52  ;;  %v17430_v47 = vadd.f32 %v17215_v3, %v8652_v40 }
 0x419   : > { %v13068_v27 = vpop.f32.mrf.mxu0 }
 0x41a   : > { %v17432_v17 = vpop.f32.mrf.mxu1  ;;  %v8653_v29 = vadd.f32 %v13068_v27, %v17286_v51  ;;  %v17436_v60 = vadd.f32 %v17221_v33, %v8650_v18 }
 0x41b   : > { %v8570_v1 = vpop.f32.mrf.mxu0 }
 0x41c   : > { %v17438_v9 = vpop.f32.mrf.mxu1  ;;  %v8651_v2 = vadd.f32 %v8570_v1, %v17276_v48  ;;  %v17442_v25 = vadd.f32 %v17230_v26, %v8653_v29 }
 0x41d   : > { %v13071_v52 = vpop.f32.mrf.mxu0 }
 0x41e   : > { %v17444_v62 = vpop.f32.mrf.mxu1  ;;  %v8656_v3 = vadd.f32 %v13071_v52, %v17294_v37  ;;  %v17448_v6 = vadd.f32 %v17240_v34, %v8651_v2 }
 0x41f   : > { %v8583_v51 = vpop.f32.mrf.mxu0 }
 0x420   : > { %v17450_v38 = vpop.f32.mrf.mxu1  ;;  %v8654_v33 = vadd.f32 %v8583_v51, %v17302_v45  ;;  %v17454_v40 = vadd.f32 %v17248_v11, %v8656_v3 }
 0x421   : > { %v13072_v48 = vpop.f32.mrf.mxu0 }
 0x422   : > { %v17456_v46 = vpop.f32.mrf.mxu1  ;;  %v8657_v26 = vadd.f32 %v13072_v48, %v17318_v22  ;;  %v17460_v18 = vadd.f32 %v17256_v53, %v8654_v33 }
 0x423   : > { %v8586_v37 = vpop.f32.mrf.mxu0 }
 0x424   : > { %v17462_v27 = vpop.f32.mrf.mxu1  ;;  %v8655_v34 = vadd.f32 %v8586_v37, %v17308_v35  ;;  %v17466_v29 = vadd.f32 %v17264_v7, %v8657_v26 }
 0x425   : > { %v13075_v45 = vpop.f32.mrf.mxu0 }
 0x426   : > { %v17468_v1 = vpop.f32.mrf.mxu1  ;;  %v8660_v11 = vadd.f32 %v13075_v45, %v17326_v28  ;;  %v17472_v2 = vadd.f32 %v17272_v59, %v8655_v34 }
 0x427   : > { %18149 = vst [vmem:[#allocation22_spill] sm:$0xff] %v17468_v1  ;;  %v8599_v22 = vpop.f32.mrf.mxu0 }
 0x428   : > { %v17474_v52 = vpop.f32.mrf.mxu1  ;;  %v8658_v53 = vadd.f32 %v8599_v22, %v17334_v42  ;;  %v17478_v3 = vadd.f32 %v17280_v54, %v8660_v11 }
 0x429   : > { %18150 = vst [vmem:[#allocation4_spill] sm:$0xff] %v17474_v52  ;;  %v13076_v35 = vpop.f32.mrf.mxu0 }
 0x42a   : > { %v17480_v51 = vpop.f32.mrf.mxu1  ;;  %v8661_v7 = vadd.f32 %v13076_v35, %v17350_v12  ;;  %v17484_v33 = vadd.f32 %v17288_v13, %v8658_v53 }
 0x42b   : > { %18151 = vst [vmem:[#allocation25_spill] sm:$0xff] %v17480_v51  ;;  %v8602_v28 = vpop.f32.mrf.mxu0 }
 0x42c   : > { %v17486_v48 = vpop.f32.mrf.mxu1  ;;  %v8659_v59 = vadd.f32 %v8602_v28, %v17340_v30  ;;  %v17490_v26 = vadd.f32 %v17296_v24, %v8661_v7 }
 0x42d   : > { %18152 = vst [vmem:[#allocation17_spill] sm:$0xff] %v17486_v48  ;;  %v13079_v42 = vpop.f32.mrf.mxu0 }
 0x42e   : > { %v17492_v37 = vpop.f32.mrf.mxu1  ;;  %v8664_v54 = vadd.f32 %v13079_v42, %v17358_v36  ;;  %v17496_v34 = vadd.f32 %v17304_v49, %v8659_v59 }
 0x42f   : > { %18153 = vst [vmem:[#allocation12_spill] sm:$0xff] %v17492_v37  ;;  %v8615_v12 = vpop.f32.mrf.mxu0 }
 0x430   : > { %v17498_v45 = vpop.f32.mrf.mxu1  ;;  %v8662_v13 = vadd.f32 %v8615_v12, %v17366_v39  ;;  %v17502_v11 = vadd.f32 %v17312_v4, %v8664_v54 }
 0x431   : > { %18154 = vst [vmem:[#allocation23_spill] sm:$0xff] %v17498_v45  ;;  %v13080_v30 = vpop.f32.mrf.mxu0 }
 0x432   : > { %v17504_v22 = vpop.f32.mrf.mxu1  ;;  %v8665_v24 = vadd.f32 %v13080_v30, %v17382_v5  ;;  %v17508_v53 = vadd.f32 %v17320_v23, %v8662_v13 }
 0x433   : > { %18155 = vst [vmem:[#allocation6_spill] sm:$0xff] %v17504_v22  ;;  %v8618_v36 = vpop.f32.mrf.mxu0  ;;  %v11108_v22 = vld [vmem:[%s13931_s20 + $0x80] sm:$0xff]  }
 0x434   : > { %v17510_v35 = vpop.f32.mrf.mxu1  ;;  %v8663_v49 = vadd.f32 %v8618_v36, %v17372_v55  ;;  %v17514_v7 = vadd.f32 %v17328_v19, %v8665_v24  ;;  %v18160_v36 = vld [vmem:[#allocation20_spill] sm:$0xff] }
 0x435   : > { %18156 = vst [vmem:[#allocation24_spill] sm:$0xff] %v17510_v35  ;;  %v13083_v39 = vpop.f32.mrf.mxu0 }
 0x436   : > { %v17516_v28 = vpop.f32.mrf.mxu1  ;;  %v8668_v4 = vadd.f32 %v13083_v39, %v17389_v61  ;;  %v17520_v59 = vadd.f32 %v17336_v21, %v8663_v49 }
 0x437   : > { %18157 = vst [vmem:[#allocation11_spill] sm:$0xff] %v17516_v28  ;;  %v8631_v5 = vpop.f32.mrf.mxu0 }
 0x438   : > { %v17522_v42 = vpop.f32.mrf.mxu1  ;;  %v8666_v23 = vadd.f32 %v8631_v5, %v17405_v57  ;;  %v17526_v54 = vadd.f32 %v17344_v58, %v8668_v4 }
 0x439   : > { %18158 = vst [vmem:[#allocation26_spill] sm:$0xff] %v17522_v42  ;;  %v13084_v55 = vpop.f32.mrf.mxu0 }
 0x43a   : > { %v8669_v19 = vadd.f32 %v13084_v55, %v17395_v43  ;;  %v17530_v12 = vadd.f32 %v17352_v15, %v8666_v23  ;;  %v17532_v13 = vpop.f32.mrf.mxu1 }
 0x43b   : > { %18159 = vst [vmem:[#allocation5_spill] sm:$0xff] %v17532_v13  ;;  %v8634_v61 = vpop.f32.mrf.mxu0 }
 0x43c   : > { %v8667_v21 = vadd.f32 %v8634_v61, %v17409_v20  ;;  %v17536_v30 = vadd.f32 %v17360_v50, %v8669_v19  ;;  %v17541_v58 = vpop.f32.mrf.mxu1 }
 0x43d   : > { %v13143_v24 = vpop.f32.mrf.mxu0  ;;  %18161 = vst [vmem:[#allocation9_spill] sm:$0xff] %v17541_v58 }
 0x43e   : > { %v17539_v57 = vadd.f32 %v18160_v36, %v8667_v21  ;;  %v9082_v43 = vadd.f32 %v13143_v24, %v17400_v44  ;;  %v17548_v5 = vpop.f32.mrf.mxu1 }
 0x43f   : > { %v8985_v49 = vpop.f32.mrf.mxu0 }
 0x440   : > { %v17545_v15 = vadd.f32 %v8985_v49, %v17412_v63  ;;  %v9106_v50 = vrot.slane %v9082_v43, 1  ;;  %v17556_v63 = vpop.f32.mrf.mxu1 }
 0x441   : > { %v13144_v39 = vpop.f32.mrf.mxu0 }
 0x442   : > { %v9083_v4 = vadd.f32 %v13144_v39, %v17418_v14  ;;  %v18002_v61 = vrot.slane %v17545_v15, 1 }
 0x443   : > { %v8988_v20 = vpop.f32.mrf.mxu0 }
 0x444   : > { %v9107_v23 = vrot.slane %v9083_v4, 1  ;;  %v9081_v55 = vadd.f32 %v8988_v20, %v17424_v41 }
 0x445   : > { %v13147_v19 = vpop.f32.mrf.mxu0 }
 0x446   : > { %v9105_v21 = vrot.slane %v9081_v55, 1  ;;  %v17554_v44 = vsel %vm1172_vm0, %v9106_v50, %v9107_v23  ;;  %v9086_v14 = vadd.f32 %v13147_v19, %v17430_v47  ;;  %v17573_v55 = vpop.f32.mrf.mxu1 }
 0x447   : > { %v9001_v24 = vpop.f32.mrf.mxu0 }
 0x448   : > { %v9084_v36 = vadd.f32 %v9001_v24, %v17436_v60  ;;  %v9150_v41 = vsel %vm1172_vm0, %v18002_v61, %v9105_v21  ;;  %v9149_v49 = vsel %vm1172_vm0, %v9105_v21, %v9106_v50  ;;  %v9110_v19 = vrot.slane %v9086_v14, 1 }
 0x449   : > { %v13148_v43 = vpop.f32.mrf.mxu0  ;;  %v17567_v39 = vadd.f32 %v17384_v0, %v9150_v41  ;;  %v17570_v4 = vadd.f32 %v17414_v8, %v9149_v49 }
 0x44a   : > { %v9108_v20 = vrot.slane %v9084_v36, 1  ;;  %v9087_v47 = vadd.f32 %v13148_v43, %v17442_v25  ;;  %v17584_v36 = vpop.f32.mrf.mxu1 }
 0x44b   : > { %v9004_v60 = vpop.f32.mrf.mxu0 }
 0x44c   : > { %v9111_v24 = vrot.slane %v9087_v47, 1  ;;  %v9085_v61 = vadd.f32 %v9004_v60, %v17448_v6  ;;  %v17578_v50 = vsel %vm1172_vm0, %v9107_v23, %v9108_v20  ;;  %v17597_v47 = vpop.f32.mrf.mxu1 }
 0x44d   : > { %v13151_v21 = vpop.f32.mrf.mxu0 }
 0x44e   : > { %v9109_v0 = vrot.slane %v9085_v61, 1  ;;  %v17582_v8 = vsel %vm1172_vm0, %v9110_v19, %v9111_v24  ;;  %v9090_v41 = vadd.f32 %v13151_v21, %v17454_v40 }
 0x44f   : > { %v9017_v25 = vpop.f32.mrf.mxu0 }
 0x450   : > { %v9088_v14 = vadd.f32 %v9017_v25, %v17460_v18  ;;  %v17590_v6 = vsel %vm1172_vm0, %v9108_v20, %v9109_v0  ;;  %v17594_v23 = vsel %vm1172_vm0, %v9109_v0, %v9110_v19  ;;  %v9114_v58 = vrot.slane %v9090_v41, 1  ;;  %v17608_v0 = vpop.f32.mrf.mxu1 }
 0x451   : > { %v13152_v61 = vpop.f32.mrf.mxu0 }
 0x452   : > { %v9112_v49 = vrot.slane %v9088_v14, 1  ;;  %v9091_v43 = vadd.f32 %v13152_v61, %v17466_v29 }
 0x453   : > { %v9020_v60 = vpop.f32.mrf.mxu0 }
 0x454   : > { %v9115_v13 = vrot.slane %v9091_v43, 1  ;;  %v9089_v40 = vadd.f32 %v9020_v60, %v17472_v2  ;;  %v17602_v18 = vsel %vm1172_vm0, %v9111_v24, %v9112_v49  ;;  %v17621_v60 = vpop.f32.mrf.mxu1 }
 0x455   : > { %v13155_v20 = vpop.f32.mrf.mxu0 }
 0x456   : > { %v9113_v21 = vrot.slane %v9089_v40, 1  ;;  %v17606_v19 = vsel %vm1172_vm0, %v9114_v58, %v9115_v13  ;;  %v9094_v25 = vadd.f32 %v13155_v20, %v17478_v3 }
 0x457   : > { %v9033_v29 = vpop.f32.mrf.mxu0 }
 0x458   : > { %v9092_v41 = vadd.f32 %v9033_v29, %v17484_v33  ;;  %v17614_v2 = vsel %vm1172_vm0, %v9112_v49, %v9113_v21  ;;  %v17618_v24 = vsel %vm1172_vm0, %v9113_v21, %v9114_v58  ;;  %v9118_v42 = vrot.slane %v9094_v25, 1  ;;  %v17632_v21 = vpop.f32.mrf.mxu1 }
 0x459   : > { %v13156_v14 = vpop.f32.mrf.mxu0 }
 0x45a   : > { %v9116_v61 = vrot.slane %v9092_v41, 1  ;;  %v9095_v43 = vadd.f32 %v13156_v14, %v17490_v26  ;;  %v17646_v28 = vpop.f32.mrf.mxu1 }
 0x45b   : > { %v9036_v40 = vpop.f32.mrf.mxu0 }
 0x45c   : > { %v9119_v3 = vrot.slane %v9095_v43, 1  ;;  %v9093_v33 = vadd.f32 %v9036_v40, %v17496_v34  ;;  %v17626_v49 = vsel %vm1172_vm0, %v9115_v13, %v9116_v61 }
 0x45d   : > { %v13159_v20 = vpop.f32.mrf.mxu0 }
 0x45e   : > { %v9117_v29 = vrot.slane %v9093_v33, 1  ;;  %v17630_v58 = vsel %vm1172_vm0, %v9118_v42, %v9119_v3  ;;  %v9098_v41 = vadd.f32 %v13159_v20, %v17502_v11  ;;  %v11107_v33 = vld [vmem:[%s13931_s20 + $0x78] sm:$0xff]  }
 0x45f   : > { %v9049_v26 = vpop.f32.mrf.mxu0 }
 0x460   : > { %v9096_v25 = vadd.f32 %v9049_v26, %v17508_v53  ;;  %v17638_v34 = vsel %vm1172_vm0, %v9116_v61, %v9117_v29  ;;  %v17642_v13 = vsel %vm1172_vm0, %v9117_v29, %v9118_v42  ;;  %v9122_v53 = vrot.slane %v9098_v41, 1 }
 0x461   : > { %18162 = vst [vmem:[#allocation3_spill] sm:$0xff] %v17638_v34  ;;  %18163 = vst [vmem:[#allocation28_spill] sm:$0xff] %v17642_v13  ;;  %v13160_v14 = vpop.f32.mrf.mxu0  ;;  %v11002_v29 = vunpack.c.l.bf16 %v11107_v33 }
 0x462   : > { %v9120_v43 = vrot.slane %v9096_v25, 1  ;;  %v9099_v40 = vadd.f32 %v13160_v14, %v17514_v7  ;;  %v11003_v25 = vunpack.c.h.bf16 %v11107_v33  ;;  %v17658_v14 = vpop.f32.mrf.mxu1 }
 0x463   : > { %v9052_v11 = vpop.f32.mrf.mxu0  ;;  %v9894_v37 = vrot.slane %v11002_v29, 1 }
 0x464   : > { %v9123_v20 = vrot.slane %v9099_v40, 1  ;;  %v9097_v61 = vadd.f32 %v9052_v11, %v17520_v59  ;;  %v17651_v26 = vsel %vm1172_vm0, %v9119_v3, %v9120_v43  ;;  %v11106_v40 = vld [vmem:[%s13931_s20 + $0x70] sm:$0xff]   ;;  %v11109_v11 = vld [vmem:[%s13931_s20 + $0x88] sm:$0xff]   ;;  %v9895_v51 = vrot.slane %v11003_v25, 1 }
 0x465   : > { %18164 = vst [vmem:[#allocation19_spill] sm:$0xff] %v17651_v26  ;;  %v13163_v42 = vpop.f32.mrf.mxu0  ;;  %v10998_v26 = vunpack.c.l.bf16 %v11106_v40  ;;  %v10999_v25 = vunpack.c.h.bf16 %v11106_v40 }
 0x466   : > { %v9121_v35 = vrot.slane %v9097_v61, 1  ;;  %v17656_v7 = vsel %vm1172_vm0, %v9122_v53, %v9123_v20  ;;  %v9102_v59 = vadd.f32 %v13163_v42, %v17526_v54  ;;  %v11110_v54 = vld [vmem:[%s13931_s20 + $0x90] sm:$0xff]   ;;  %v17675_v42 = vld [vmem:[%s13931_s20 + $0x98] sm:$0xff]  }
 0x467   : > { %18165 = vst [vmem:[#allocation15_spill] sm:$0xff] %v17656_v7  ;;  %v9065_v41 = vpop.f32.mrf.mxu0  ;;  %v11006_v7 = vunpack.c.l.bf16 %v11108_v22  ;;  %v11018_v34 = vunpack.c.l.bf16 %v17675_v42 }
 0x468   : > { %v9100_v3 = vadd.f32 %v9065_v41, %v17530_v12  ;;  %v17666_v61 = vsel %vm1172_vm0, %v9120_v43, %v9121_v35  ;;  %v17670_v33 = vsel %vm1172_vm0, %v9121_v35, %v9122_v53  ;;  %v17677_v12 = vpop.f32.mrf.mxu1  ;;  %v9347_v43 = vadd.f32 %v17376_v10, %v17554_v44 }
 0x469   : > { %18166 = vst [vmem:[#allocation27_spill] sm:$0xff] %v17666_v61  ;;  %18167 = vst [vmem:[#allocation21_spill] sm:$0xff] %v17670_v33  ;;  %v13164_v45 = vpop.f32.mrf.mxu0  ;;  %v11010_v61 = vunpack.c.l.bf16 %v11109_v11  ;;  %v11011_v35 = vunpack.c.h.bf16 %v11109_v11  ;;  %v11007_v53 = vunpack.c.h.bf16 %v11108_v22  ;;  %v9126_v33 = vrot.slane %v9102_v59, 1 }
 0x46a   : > { %v9124_v48 = vrot.slane %v9100_v3, 1  ;;  %v9103_v13 = vadd.f32 %v13164_v45, %v17536_v30  ;;  %18168 = vst [vmem:[#allocation7_spill] sm:$0xff] %v17677_v12  ;;  %v9896_v52 = vrot.slane %v11006_v7, 1  ;;  %v11015_v12 = vunpack.c.h.bf16 %v11110_v54 }
 0x46b   : > { %v9068_v41 = vpop.f32.mrf.mxu0  ;;  %v18169_v44 = vrot.slane %v17545_v15, 1  ;;  %v17701_v7 = vsel %vm1172_vm0, %v9894_v37, %v9895_v51  ;;  %v9898_v40 = vrot.slane %v11010_v61, 1  ;;  %v9899_v59 = vrot.slane %v11011_v35, 1 }
 0x46c   : > { %v9127_v29 = vrot.slane %v9103_v13, 1  ;;  %v9101_v3 = vadd.f32 %v9068_v41, %v17539_v57  ;;  %v17684_v45 = vsel %vm1172_vm0, %v9123_v20, %v9124_v48  ;;  %v17697_v13 = vpop.f32.mrf.mxu1  ;;  %v9897_v11 = vrot.slane %v11007_v53, 1 }
 0x46d   : > { %v13223_v30 = vpop.f32.mrf.mxu0  ;;  %v9348_v15 = vadd.f32 %v17397_v31, %v17578_v50  ;;  %v17717_v61 = vrot.slane %v10998_v26, 1  ;;  %v11014_v35 = vunpack.c.l.bf16 %v11110_v54  ;;  %v9901_v53 = vrot.slane %v11015_v12, 1 }
 0x46e   : > { %v9125_v1 = vrot.slane %v9101_v3, 1  ;;  %v9564_v10 = vadd.f32 %v13223_v30, %v9347_v43  ;;  %v17689_v22 = vsel %vm1172_vm0, %v9126_v33, %v9127_v29  ;;  %v17695_v57 = vsel %vm1172_vm0, %v9127_v29, %v18169_v44  ;;  %v17707_v43 = vld [vmem:[%s13931_s20 + $0xa0] sm:$0xff]  }
 0x46f   : > { %v9467_v20 = vpop.f32.mrf.mxu0  ;;  %v9902_v30 = vrot.slane %v11018_v34, 1  ;;  %v17720_v31 = vrot.slane %v10999_v25, 1  ;;  %v17724_v50 = vsel %vm1172_vm0, %v9895_v51, %v9896_v52  ;;  %v17731_v26 = vsel %vm1172_vm0, %v9898_v40, %v9899_v59 }
 0x470   : > { %v9562_v41 = vadd.f32 %v9467_v20, %v17567_v39  ;;  %v17711_v29 = vsel %vm1172_vm0, %v9124_v48, %v9125_v1  ;;  %v17715_v3 = vsel %vm1172_vm0, %v9125_v1, %v9126_v33  ;;  %v9781_v39 = vadd.f32 %v17548_v5, %v9564_v10  ;;  %v11113_v48 = vld [vmem:[%s13931_s20 + $0xa8] sm:$0xff]   ;;  %v17727_v20 = vpop.f32.mrf.mxu1 }
 0x471   : > { %v13224_v37 = vpop.f32.mrf.mxu0  ;;  %v17735_v34 = vsel %vm1172_vm0, %v9897_v11, %v9898_v40  ;;  %v11019_v5 = vunpack.c.h.bf16 %v17675_v42  ;;  %v11022_v33 = vunpack.c.l.bf16 %v17707_v43  ;;  %v9351_v12 = vadd.f32 %v17420_v32, %v17582_v8 }
 0x472   : > { %v9565_v44 = vadd.f32 %v13224_v37, %v9348_v15  ;;  %v17740_v54 = vadd.f32 %v17556_v63, %v9562_v41  ;;  %v9349_v10 = vadd.f32 %v17426_v56, %v17590_v6  ;;  %v9900_v40 = vrot.slane %v11014_v35, 1 }
 0x473   : > { %v9470_v1 = vpop.f32.mrf.mxu0  ;;  %v17750_v42 = vsel %vm1172_vm0, %v9901_v53, %v9902_v30  ;;  %v11026_v59 = vunpack.c.l.bf16 %v11113_v48  ;;  %v9805_v63 = vrot.slane %v9781_v39, 7  ;;  %v9352_v8 = vadd.f32 %v17432_v17, %v17602_v18 }
 0x474   : > { %v9782_v52 = vadd.f32 %v17573_v55, %v9565_v44  ;;  %v9563_v51 = vadd.f32 %v9470_v1, %v17570_v4  ;;  %v17753_v4 = vpop.f32.mrf.mxu1  ;;  %v9903_v56 = vrot.slane %v11019_v5, 1  ;;  %v17757_v6 = vrot.slane %v11022_v33, 1  ;;  %v17776_v5 = vld [vmem:[%s17961_s4] ss:$0 sm:$0xff] }
 0x475   : > { %v13227_v25 = vpop.f32.mrf.mxu0  ;;  %v11027_v15 = vunpack.c.h.bf16 %v11113_v48  ;;  %v9803_v37 = vrot.slane %v17740_v54, 7  ;;  %v17770_v17 = vsel %vm1172_vm0, %v9900_v40, %v9901_v53  ;;  %v9906_v18 = vrot.slane %v11026_v59, 1  ;;  %v11115_v48 = vld [vmem:[%s13931_s20 + $0xb8] sm:$0xff]  }
 0x476   : > { %v9806_v11 = vrot.slane %v9782_v52, 7  ;;  %v9780_v55 = vadd.f32 %v17584_v36, %v9563_v51  ;;  %v9568_v41 = vadd.f32 %v13227_v25, %v9351_v12  ;;  %v17763_v36 = vld [vmem:[%s13931_s20 + $0xb0] sm:$0xff]   ;;  %v9350_v52 = vadd.f32 %v17438_v9, %v17594_v23  ;;  %v17786_v53 = vpop.f32.mrf.mxu1 }
 0x477   : > { %v9483_v32 = vpop.f32.mrf.mxu0  ;;  %v17791_v12 = vsel %vm1172_vm0, %v9903_v56, %v17757_v6  ;;  %v9907_v25 = vrot.slane %v11027_v15, 1  ;;  %v11030_v40 = vunpack.c.l.bf16 %v17763_v36  ;;  %v11035_v56 = vunpack.c.h.bf16 %v11115_v48 }
 0x478   : > { %v9840_v35 = vsel %vm7273_vm1, %v9805_v63, %v9806_v11  ;;  %v9804_v30 = vrot.slane %v9780_v55, 7  ;;  %v9566_v39 = vadd.f32 %v9483_v32, %v9349_v10  ;;  %v9785_v44 = vadd.f32 %v17597_v47, %v9568_v41 }
 0x479   : > { %v13228_v1 = vpop.f32.mrf.mxu0  ;;  %v9933_v33 = vadd.f32 %v17776_v5, %v9840_v35  ;;  %v11023_v10 = vunpack.c.h.bf16 %v17707_v43  ;;  %v11034_v41 = vunpack.c.l.bf16 %v11115_v48  ;;  %v9355_v32 = vadd.f32 %v17444_v62, %v17606_v19 }
 0x47a   : > { %v17783_v47 = vsel %vm7273_vm1, %v9803_v37, %v9804_v30  ;;  %v9783_v9 = vadd.f32 %v17608_v0, %v9566_v39  ;;  %v9569_v23 = vadd.f32 %v13228_v1, %v9352_v8  ;;  %v9809_v0 = vrot.slane %v9785_v44, 7 }
 0x47b   : > { %v9486_v51 = vpop.f32.mrf.mxu0  ;;  %v9353_v35 = vadd.f32 %v17450_v38, %v17614_v2  ;;  %v9949_v15 = vadd.f32 %v9933_v33, %v17701_v7  ;;  %v17809_v62 = vsel %vm1172_vm0, %v9906_v18, %v9907_v25  ;;  %v9905_v38 = vrot.slane %v11023_v10, 1 }
 0x47c   : > { %v9807_v59 = vrot.slane %v9783_v9, 7  ;;  %v9786_v63 = vadd.f32 %v17621_v60, %v9569_v23  ;;  %v9567_v55 = vadd.f32 %v9486_v51, %v9350_v52  ;;  %v17804_v60 = vpop.f32.mrf.mxu1  ;;  %v17815_v9 = vrot.slane %v11034_v41, 1 }
 0x47d   : > { %v13231_v8 = vpop.f32.mrf.mxu0  ;;  %v9911_v23 = vrot.slane %v11035_v56, 1  ;;  %v9965_v51 = vmax.f32 %v9949_v15, 0.0  ;;  %v9356_v10 = vadd.f32 %v17456_v46, %v17626_v49  ;;  %v18170_v46 = vld [vmem:[#allocation22_spill] sm:$0xff] }
 0x47e   : > { %v9839_v43 = vsel %vm7273_vm1, %v9806_v11, %v9807_v59  ;;  %v9810_v30 = vrot.slane %v9786_v63, 7  ;;  %v9784_v39 = vadd.f32 %v17632_v21, %v9567_v55  ;;  %v9572_v1 = vadd.f32 %v13231_v8, %v9355_v32  ;;  %v17823_v63 = vpop.f32.mrf.mxu1 }
 0x47f   : > { %v9934_v44 = vadd.f32 %v17776_v5, %v9839_v43  ;;  %v9499_v52 = vpop.f32.mrf.mxu0  ;;  %v9908_v11 = vrot.slane %v11030_v40, 1  ;;  %v9354_v59 = vadd.f32 %v17462_v27, %v17618_v24  ;;  %v9359_v49 = vadd.f32 %v18170_v46, %v17630_v58  ;;  %v18171_v43 = vld [vmem:[#allocation3_spill] sm:$0xff] }
 0x480   : > { %v9837_v19 = vsel %vm7273_vm1, %v9809_v0, %v9810_v30  ;;  %v9808_v2 = vrot.slane %v9784_v39, 7  ;;  %v9570_v7 = vadd.f32 %v9499_v52, %v9353_v35  ;;  %v9789_v41 = vadd.f32 %v17646_v28, %v9572_v1  ;;  %v18172_v30 = vld [vmem:[#allocation4_spill] sm:$0xff] }
 0x481   : > { %v9950_v48 = vadd.f32 %v9934_v44, %v17724_v50  ;;  %v9936_v21 = vadd.f32 %v17776_v5, %v9837_v19  ;;  %v13232_v33 = vpop.f32.mrf.mxu0  ;;  %v11031_v28 = vunpack.c.h.bf16 %v17763_v36  ;;  %v9357_v39 = vadd.f32 %v18172_v30, %v18171_v43 }
 0x482   : > { %v9838_v18 = vsel %vm7273_vm1, %v9808_v2, %v9809_v0  ;;  %v9787_v8 = vadd.f32 %v17658_v14, %v9570_v7  ;;  %v9573_v0 = vadd.f32 %v13232_v33, %v9356_v10  ;;  %v17843_v58 = vsel %vm1172_vm0, %v9907_v25, %v9908_v11  ;;  %v18174_v11 = vld [vmem:[#allocation19_spill] sm:$0xff]  ;;  %v18177_v10 = vld [vmem:[#allocation17_spill] sm:$0xff] }
 0x483   : > { %v9966_v40 = vmax.f32 %v9950_v48, 0.0  ;;  %v9952_v50 = vadd.f32 %v9936_v21, %v17731_v26  ;;  %v9935_v55 = vadd.f32 %v17776_v5, %v9838_v18  ;;  %v9502_v32 = vpop.f32.mrf.mxu0  ;;  %v17835_v26 = vsel %vm1172_vm0, %v17757_v6, %v9905_v38  ;;  %v18173_v38 = vld [vmem:[#allocation7_spill] sm:$0xff]  ;;  %v17853_v48 = vld [vmem:[%s13931_s20 + $0x6c] ss:$92 sps:$4 sm:$0xff]   ;;  %v18176_v18 = vld [vmem:[#allocation28_spill] sm:$0xff] }
 0x484   : > { %v9571_v35 = vadd.f32 %v9502_v32, %v9354_v59  ;;  %v9813_v52 = vrot.slane %v9789_v41, 7  ;;  %v17849_v36 = vsel %vm1172_vm0, %v17815_v9, %v9911_v23  ;;  %v9790_v19 = vadd.f32 %v18173_v38, %v9573_v0  ;;  %v18175_v21 = vld [vmem:[#allocation25_spill] sm:$0xff] }
 0x485   : > { %v11048_v56 = vpack.c.bf16 %v9966_v40, %v9965_v51  ;;  %v9951_v27 = vadd.f32 %v9935_v55, %v17735_v34  ;;  %v13235_v24 = vpop.f32.mrf.mxu0  ;;  %v9748_v34 = vpop.f32.mrf.mxu1  ;;  %v9968_v44 = vmax.f32 %v9952_v50, 0.0  ;;  %v9360_v33 = vadd.f32 %v18175_v21, %v18174_v11 }
 0x486   : > { %v9788_v15 = vadd.f32 %v17697_v13, %v9571_v35  ;;  %v9576_v14 = vadd.f32 %v13235_v24, %v9359_v49  ;;  %v9811_v13 = vrot.slane %v9787_v8, 7  ;;  %v9358_v59 = vadd.f32 %v18177_v10, %v18176_v18  ;;  %v18182_v10 = vld [vmem:[#allocation6_spill] sm:$0xff] }
 0x487   : > { %11118 = vst [vmem:[%s17075_s10 + $0x48] sm:$0xff] %v11048_v56   ;;  %v9967_v1 = vmax.f32 %v9951_v27, 0.0  ;;  %v9515_v6 = vpop.f32.mrf.mxu0  ;;  %v9909_v40 = vrot.slane %v11031_v28, 1  ;;  %v13280_v32 = vpop.f32.mrf.mxu1  ;;  %v9867_v49 = vunpack.c.l.bf16 %v17853_v48  ;;  %v9814_v56 = vrot.slane %v9790_v19, 7  ;;  %v18178_v28 = vld [vmem:[#allocation15_spill] sm:$0xff] }
 0x488   : > { %v9812_v2 = vrot.slane %v9788_v15, 7  ;;  %v9574_v7 = vadd.f32 %v9515_v6, %v9357_v39  ;;  %v9793_v55 = vadd.f32 %v17727_v20, %v9576_v14  ;;  %v18179_v15 = vld [vmem:[#allocation12_spill] sm:$0xff]  ;;  %v18180_v39 = vld [vmem:[#allocation27_spill] sm:$0xff] }
 0x489   : > { %v11053_v25 = vpack.c.bf16 %v9968_v44, %v9967_v1  ;;  %v13236_v51 = vpop.f32.mrf.mxu0  ;;  %v9363_v43 = vadd.f32 %v18179_v15, %v18178_v28  ;;  %v18181_v44 = vld [vmem:[#allocation23_spill] sm:$0xff]  ;;  %v9751_v19 = vpop.f32.mrf.mxu1  ;;  %v17883_v21 = vsel %vm1172_vm0, %v9909_v40, %v17815_v9 }
 0x48a   : > { %v9835_v23 = vsel %vm7273_vm1, %v9812_v2, %v9813_v52  ;;  %v9836_v50 = vsel %vm7273_vm1, %v9811_v13, %v9812_v2  ;;  %v9791_v41 = vadd.f32 %v17753_v4, %v9574_v7  ;;  %v9577_v35 = vadd.f32 %v13236_v51, %v9360_v33  ;;  %v11116_v51 = vld [vmem:[%s13931_s20 + $0xc0] sm:$0xff]  }
 0x48b   : > { %11119 = vst [vmem:[%s17075_s10 + $0x50] sm:$0xff] %v11053_v25   ;;  %v9937_v8 = vadd.f32 %v17776_v5, %v9836_v50  ;;  %v9938_v0 = vadd.f32 %v17776_v5, %v9835_v23  ;;  %v9518_v46 = vpop.f32.mrf.mxu0  ;;  %v9361_v1 = vadd.f32 %v18181_v44, %v18180_v39  ;;  %v9817_v52 = vrot.slane %v9793_v55, 7  ;;  %v13283_v50 = vpop.f32.mrf.mxu1  ;;  %v18183_v55 = vld [vmem:[#allocation21_spill] sm:$0xff] }
 0x48c   : > { %v9815_v27 = vrot.slane %v9791_v41, 7  ;;  %v9575_v24 = vadd.f32 %v9518_v46, %v9358_v59  ;;  %v9794_v14 = vadd.f32 %v17786_v53, %v9577_v35  ;;  %v17885_v33 = vrot.slane %v9867_v49, 1  ;;  %v18184_v41 = vld [vmem:[#allocation24_spill] sm:$0xff] }
 0x48d   : > { %v9953_v20 = vadd.f32 %v9937_v8, %v17770_v17  ;;  %v9954_v4 = vadd.f32 %v9938_v0, %v17750_v42  ;;  %v13239_v30 = vpop.f32.mrf.mxu0  ;;  %v9364_v59 = vadd.f32 %v18182_v10, %v17684_v45  ;;  %v9362_v8 = vadd.f32 %v18184_v41, %v18183_v55 }
 0x48e   : > { %v9834_v6 = vsel %vm7273_vm1, %v9814_v56, %v9815_v27  ;;  %v9792_v13 = vadd.f32 %v17804_v60, %v9575_v24  ;;  %v9580_v38 = vadd.f32 %v13239_v30, %v9363_v43  ;;  %v9818_v42 = vrot.slane %v9794_v14, 7  ;;  %v18186_v30 = vld [vmem:[#allocation26_spill] sm:$0xff] }
 0x48f   : > { %v9969_v2 = vmax.f32 %v9953_v20, 0.0  ;;  %v9970_v7 = vmax.f32 %v9954_v4, 0.0  ;;  %v9939_v17 = vadd.f32 %v17776_v5, %v9834_v6  ;;  %v9531_v25 = vpop.f32.mrf.mxu0  ;;  %v11038_v24 = vunpack.c.l.bf16 %v11116_v51 }
 0x490   : > { %v9816_v53 = vrot.slane %v9792_v13, 7  ;;  %v9578_v11 = vadd.f32 %v9531_v25, %v9361_v1  ;;  %v9832_v18 = vsel %vm7273_vm1, %v9817_v52, %v9818_v42  ;;  %v9797_v40 = vadd.f32 %v17823_v63, %v9580_v38  ;;  %v18185_v63 = vld [vmem:[#allocation11_spill] sm:$0xff] }
 0x491   : > { %v11058_v60 = vpack.c.bf16 %v9970_v7, %v9969_v2  ;;  %v13240_v23 = vpop.f32.mrf.mxu0  ;;  %v9955_v0 = vadd.f32 %v9939_v17, %v17791_v12  ;;  %v9941_v46 = vadd.f32 %v17776_v5, %v9832_v18  ;;  %v11039_v43 = vunpack.c.h.bf16 %v11116_v51  ;;  %v18188_v18 = vld [vmem:[#allocation9_spill] sm:$0xff] }
 0x492   : > { %v9833_v9 = vsel %vm7273_vm1, %v9815_v27, %v9816_v53  ;;  %v9795_v35 = vadd.f32 %v9748_v34, %v9578_v11  ;;  %v9581_v56 = vadd.f32 %v13240_v23, %v9364_v59  ;;  %v9890_v20 = vunpack.c.h.bf16 %v17853_v48  ;;  %v9764_v27 = vpop.f32.mrf.mxu1 }
 0x493   : > { %11120 = vst [vmem:[%s17075_s10 + $0x58] sm:$0xff] %v11058_v60   ;;  %v9940_v49 = vadd.f32 %v17776_v5, %v9833_v9  ;;  %v9534_v45 = vpop.f32.mrf.mxu0  ;;  %v9367_v34 = vadd.f32 %v18185_v63, %v17689_v22  ;;  %v9365_v39 = vadd.f32 %v18186_v30, %v17711_v29  ;;  %v9971_v44 = vmax.f32 %v9955_v0, 0.0 }
 0x494   : > { %v9819_v28 = vrot.slane %v9795_v35, 7  ;;  %v9579_v15 = vadd.f32 %v9534_v45, %v9362_v8  ;;  %v9798_v4 = vadd.f32 %v13280_v32, %v9581_v56  ;;  %v9821_v1 = vrot.slane %v9797_v40, 7 }
 0x495   : > { %v9956_v12 = vadd.f32 %v9940_v49, %v17835_v26  ;;  %v13243_v14 = vpop.f32.mrf.mxu0  ;;  %v9957_v13 = vadd.f32 %v9941_v46, %v17809_v62  ;;  %v9912_v17 = vrot.slane %v11038_v24, 1  ;;  %v9366_v10 = vadd.f32 %v18188_v18, %v17715_v3 }
 0x496   : > { %v9831_v52 = vsel %vm7273_vm1, %v9818_v42, %v9819_v28  ;;  %v9796_v6 = vadd.f32 %v9751_v19, %v9579_v15  ;;  %v9822_v32 = vrot.slane %v9798_v4, 7  ;;  %v9584_v22 = vadd.f32 %v13243_v14, %v9367_v34  ;;  %v13284_v42 = vpop.f32.mrf.mxu1  ;;  %v18187_v19 = vld [vmem:[#allocation5_spill] sm:$0xff] }
 0x497   : > { %v9972_v48 = vmax.f32 %v9956_v12, 0.0  ;;  %v9942_v26 = vadd.f32 %v17776_v5, %v9831_v52  ;;  %v9547_v38 = vpop.f32.mrf.mxu0  ;;  %v9368_v62 = vadd.f32 %v18187_v19, %v17695_v57  ;;  %v9913_v59 = vrot.slane %v11039_v43, 1 }
 0x498   : > { %v9820_v2 = vrot.slane %v9796_v6, 7  ;;  %v9582_v7 = vadd.f32 %v9547_v38, %v9365_v39  ;;  %v9829_v53 = vsel %vm7273_vm1, %v9821_v1, %v9822_v32  ;;  %v9973_v23 = vmax.f32 %v9957_v13, 0.0  ;;  %v9767_v49 = vpop.f32.mrf.mxu1 }
 0x499   : > { %v11063_v25 = vpack.c.bf16 %v9972_v48, %v9971_v44  ;;  %v9958_v29 = vadd.f32 %v9942_v26, %v17843_v58  ;;  %v13244_v11 = vpop.f32.mrf.mxu0  ;;  %v9944_v51 = vadd.f32 %v17776_v5, %v9829_v53  ;;  %v9801_v0 = vadd.f32 %v13283_v50, %v9584_v22 }
 0x49a   : > { %v9830_v60 = vsel %vm7273_vm1, %v9820_v2, %v9821_v1  ;;  %v9585_v41 = vadd.f32 %v13244_v11, %v9368_v62  ;;  %v9799_v9 = vadd.f32 %v9764_v27, %v9582_v7  ;;  %v9914_v3 = vrot.slane %v9890_v20, 1 }
 0x49b   : > { %11121 = vst [vmem:[%s17075_s10 + $0x60] sm:$0xff] %v11063_v25   ;;  %v9974_v58 = vmax.f32 %v9958_v29, 0.0  ;;  %v9943_v55 = vadd.f32 %v17776_v5, %v9830_v60  ;;  %v9550_v8 = vpop.f32.mrf.mxu0  ;;  %v9960_v57 = vadd.f32 %v9944_v51, %v17849_v36  ;;  %v9932_v45 = vadd.f32 %v17776_v5, %v17783_v47 }
 0x49c   : > { %v9583_v40 = vadd.f32 %v9550_v8, %v9366_v10  ;;  %v9802_v56 = vadd.f32 %v13284_v42, %v9585_v41  ;;  %v9929_v28 = vsel %vm1172_vm0, %v17717_v61, %v17720_v31  ;;  %v9825_v43 = vrot.slane %v9801_v0, 7 }
 0x49d   : > { %v11068_v35 = vpack.c.bf16 %v9974_v58, %v9973_v23  ;;  %v9959_v46 = vadd.f32 %v9943_v55, %v17883_v21  ;;  %v9976_v36 = vmax.f32 %v9960_v57, 0.0  ;;  %v9823_v12 = vrot.slane %v9799_v9, 7 }
 0x49e   : > { %v9800_v24 = vadd.f32 %v9767_v49, %v9583_v40  ;;  %v9826_v15 = vrot.slane %v9802_v56, 7  ;;  %v9930_v21 = vsel %vm1172_vm0, %v17885_v33, %v17717_v61  ;;  %v9915_v31 = vsel %vm1172_vm0, %v9913_v59, %v9914_v3 }
 0x49f   : > { %11122 = vst [vmem:[%s17075_s10 + $0x68] sm:$0xff] %v11068_v35   ;;  %v9975_v50 = vmax.f32 %v9959_v46, 0.0  ;;  %v9916_v27 = vsel %vm1172_vm0, %v9912_v17, %v9913_v59  ;;  %v9948_v63 = vadd.f32 %v9932_v45, %v9929_v28 }
 0x4a0   : > { %v9824_v20 = vrot.slane %v9800_v24, 7  ;;  %v9842_v4 = vsel %vm7273_vm1, %v9826_v15, %v9803_v37 }
 0x4a1   : > { %v11073_v47 = vpack.c.bf16 %v9976_v36, %v9975_v50  ;;  %v9931_v34 = vadd.f32 %v17776_v5, %v9842_v4  ;;  %v9964_v44 = vmax.f32 %v9948_v63, 0.0 }
 0x4a2   : > { %v9827_v61 = vsel %vm7273_vm1, %v9824_v20, %v9825_v43  ;;  %v9828_v54 = vsel %vm7273_vm1, %v9823_v12, %v9824_v20 }
 0x4a3   : > { %11123 = vst [vmem:[%s17075_s10 + $0x70] sm:$0xff] %v11073_v47   ;;  %v9945_v37 = vadd.f32 %v17776_v5, %v9828_v54  ;;  %v9946_v33 = vadd.f32 %v17776_v5, %v9827_v61  ;;  %v9947_v14 = vadd.f32 %v9931_v34, %v9930_v21 }
 0x4a5   : > { %v9961_v30 = vadd.f32 %v9945_v37, %v9916_v27  ;;  %v9962_v39 = vadd.f32 %v9946_v33, %v9915_v31  ;;  %v9963_v1 = vmax.f32 %v9947_v14, 0.0 }
 0x4a7   : > { %v9977_v52 = vmax.f32 %v9961_v30, 0.0  ;;  %v9978_v6 = vmax.f32 %v9962_v39, 0.0  ;;  %v11043_v13 = vpack.c.bf16 %v9964_v44, %v9963_v1 }
 0x4a9   : > { %v11078_v48 = vpack.c.bf16 %v9978_v6, %v9977_v52  ;;  %11117 = vst [vmem:[%s17075_s10 + $0x40] sm:$0xff] %v11043_v13  }
 0x4ab   : > { %11124 = vst [vmem:[%s17075_s10 + $0x78] sm:$0xff] %v11078_v48  }
 0x4ac PF: > { %s15_s18 = sadd.s32 1, %s13854_s18  }
 0x4ad   : > { %p12_p4 = scmp.ge.s32.totalorder %s15_s18, 4  }
 0x4af   :  { %14 = sbr.rel (!%p12_p4) target bundleno = 1 (0x1), region = 82 }

</bundles_post_ra>
